<compile_context>
chip_gen: v7x
topology: tpu7x:2x2x1
jax: 0.10.0
libtpu: 0.0.40
codegen_flags: <defaults>
</compile_context>

<pallas_src>
import functools

import jax
import jax.numpy as jnp
from jax.experimental import pallas as pl
from jax.experimental.pallas import tpu as pltpu


def _round_up(x, m):
    return ((x + m - 1) // m) * m


def _fold_params(w_hwio, bias, w_img, wc_pad):
    """Fold 2x-nearest-upsample + 3x3 conv (pad=1) into one banded matmul.

    Returns
      w_fold: (3*wc_pad, 2*2*W*2*C_out) fp32
              row k = s*wc_pad + jc*C_in + c   (s: folded row tap, jc: padded col)
              col n = (((half*2 + di)*W + j)*2 + dj)*C_out + o
      b_fold: (1, 2*2*W*2*C_out)  bias replicated over (di, j, dj)
    """
    kh, kw, c_in, c2 = w_hwio.shape
    assert kh == 3 and kw == 3 and c2 % 2 == 0
    c_out = c2 // 2

    # F[parity, folded_tap, original_tap]: nearest upsample is separable, the
    # same fold applies to rows (di) and columns (dj).
    F = jnp.zeros((2, 3, 3), jnp.float32)
    F = F.at[0, 0, 0].set(1.0).at[0, 1, 1].set(1.0).at[0, 1, 2].set(1.0)
    F = F.at[1, 1, 0].set(1.0).at[1, 1, 1].set(1.0).at[1, 2, 2].set(1.0)

    # Band: padded input column jc feeds output column j at offset t = jc - j.
    jc = jnp.arange(w_img + 2)[:, None, None]
    jj = jnp.arange(w_img)[None, :, None]
    tt = jnp.arange(3)[None, None, :]
    band = (jc == jj + tt).astype(jnp.float32)                # (W+2, W, 3)

    w5 = w_hwio.astype(jnp.float32).reshape(3, 3, c_in, 2, c_out)
    # a=di, s=row tap, p=kh | b=dj, t=col tap, q=kw | J=jc | h=gate half
    wf = jnp.einsum('asp,btq,Jjt,pqcho->sJchajbo', F, F, band, w5)
    wf = wf.reshape(3, (w_img + 2) * c_in, 2 * 2 * w_img * 2 * c_out)
    wf = jnp.pad(wf, ((0, 0), (0, wc_pad - (w_img + 2) * c_in), (0, 0)))
    wf = wf.reshape(3 * wc_pad, -1)

    bf = jnp.broadcast_to(bias.astype(jnp.float32).reshape(2, 1, 1, 1, c_out),
                          (2, 2, w_img, 2, c_out)).reshape(1, -1)
    return wf, bf


def _gdeconv_kernel(xm_ref, xh_ref, w_ref, b_ref, o_ref):
    # xm_ref: (1, TH, wc_pad)       main rows of the padded, lane-dense input
    # xh_ref: (1, 8, wc_pad)        bottom halo (first 2 rows used)
    # w_ref:  (3*wc_pad, 8*W*C_out) folded banded weights (VMEM resident)
    # b_ref:  (1, 8*W*C_out)
    # o_ref:  (1, TH, 4*W*C_out)    gated output rows, lane-dense
    th = o_ref.shape[1]

    xm = xm_ref[0]
    halo = xh_ref[0]
    win = jnp.concatenate([xm, halo[:2, :]], axis=0)            # (TH+2, wc_pad)

    # im2col over the 3 folded row taps only; the column taps and both output
    # parities live in the folded weight's N dimension, so the LHS stays
    # lane-dense and 128-aligned (no per-channel interleave / relayout).
    lhs = jnp.concatenate([win[s:s + th, :] for s in range(3)], axis=1)

    pre = jax.lax.dot_general(
        lhs, w_ref[...], (((1,), (0,)), ((), ())),
        preferred_element_type=jnp.float32,
        precision=jax.lax.Precision.HIGHEST)
    pre = pre + b_ref[...]                                      # (TH, 8*W*C_out)

    half = b_ref.shape[1] // 2
    a = pre[:, :half]                                           # ELU half
    g = pre[:, half:]                                           # sigmoid half
    elu = jnp.where(a > 0, a, jnp.exp(jnp.minimum(a, 0.0)) - 1.0)
    sig = 1.0 / (1.0 + jnp.exp(-g))
    gated = elu * sig                                           # (TH, 4*W*C_out)

    o_ref[0] = gated.astype(o_ref.dtype)


def _auto_tile_h(n_batch, h, w, c_in, c_out, budget_bytes=8 << 20):
    """Largest multiple-of-8 row tile whose per-step VMEM stays under budget."""
    wc_pad = _round_up((w + 2) * c_in, 128)
    ndim = 8 * w * c_out

    def step_bytes(th):
        return 4 * (2 * (th + 8) * wc_pad                       # input blocks (x2 buf)
                    + 2 * th * _round_up(ndim // 2, 128)        # output block (x2 buf)
                    + th * (3 * wc_pad + 2 * _round_up(ndim, 128)))  # lhs/pre/gated

    th = min(256, _round_up(h, 8))
    while th > 8 and step_bytes(th) > budget_bytes:
        th = _round_up(th // 2, 8)
    # v7x has 2 TensorCores: expose at least 2 "parallel" grid steps if possible.
    while th > 8 and n_batch * ((h + th - 1) // th) < 2:
        th = _round_up(th // 2, 8)
    return max(th, 8)


@functools.partial(jax.jit, static_argnames=("tile_h", "out_layout"))
def _gdeconv_impl(x_nchw, w_hwio, bias, *, tile_h, out_layout):
    n, c_in, h, w = x_nchw.shape
    c_out = w_hwio.shape[-1] // 2
    wc = (w + 2) * c_in
    wc_pad = _round_up(wc, 128)
    ndim = 2 * 2 * w * 2 * c_out            # (half, di, j, dj, o) matmul columns
    out_w = ndim // 2                       # (di, j, dj, o) after gating

    r_tiles = (h + tile_h - 1) // tile_h
    h_pad = r_tiles * tile_h

    # Single fused pass over the small original-resolution input:
    # NCHW -> NHWC, conv zero ring + row padding for tiling/halo, and a
    # lane-dense, 128-aligned minor axis.  No upsampled or stacked
    # intermediate is ever written to HBM.
    xp = jnp.transpose(x_nchw, (0, 2, 3, 1))
    xp = jnp.pad(xp, ((0, 0), (1, h_pad - h + 7), (1, 1), (0, 0)))
    xp = xp.reshape(n, h_pad + 8, wc)
    xp = jnp.pad(xp, ((0, 0), (0, 0), (0, wc_pad - wc)))

    w_fold, b_fold = _fold_params(w_hwio, bias, w, wc_pad)

    step_bytes = 4 * (2 * (tile_h + 8) * wc_pad
                      + 2 * tile_h * _round_up(out_w, 128)
                      + tile_h * (3 * wc_pad + 2 * _round_up(ndim, 128)))
    weight_bytes = 4 * (3 * wc_pad * ndim + ndim)
    vmem_limit = int(min(max(2 * (step_bytes + weight_bytes), 32 << 20), 64 << 20))

    out = pl.pallas_call(
        _gdeconv_kernel,
        out_shape=jax.ShapeDtypeStruct((n, h_pad, out_w), x_nchw.dtype),
        grid=(n, r_tiles),
        in_specs=[
            # main rows of this tile (non-overlapping across grid steps)
            pl.BlockSpec((1, tile_h, wc_pad), lambda ni, ri: (ni, ri, 0)),
            # 2-row bottom halo, read through an aligned 8-row block of the
            # SAME array -> auto-pipelined, no manual DMA, no stacked copy
            pl.BlockSpec((1, 8, wc_pad),
                         lambda ni, ri: (ni, (ri + 1) * (tile_h // 8), 0)),
            # folded weights / bias: constant index map -> DMA'd once,
            # VMEM-resident across the whole grid
            pl.BlockSpec((3 * wc_pad, ndim), lambda ni, ri: (0, 0)),
            pl.BlockSpec((1, ndim), lambda ni, ri: (0, 0)),
        ],
        out_specs=pl.BlockSpec((1, tile_h, out_w), lambda ni, ri: (ni, ri, 0)),
        compiler_params=pltpu.CompilerParams(
            dimension_semantics=("parallel", "parallel"),
            vmem_limit_bytes=vmem_limit),
    )(xp, xp, w_fold, b_fold)

    out = out[:, :h].reshape(n, h, 2, w, 2, c_out)   # (n, i, di, j, dj, o)
    if out_layout == "NHWC":
        return out.reshape(n, 2 * h, 2 * w, c_out)
    # TODO(synk): this NHWC->NCHW permute is the only post-kernel HBM pass;
    # use out_layout="NHWC" to drop it if the consumer accepts channels-last.
    out = jnp.transpose(out, (0, 5, 1, 2, 3, 4))
    return out.reshape(n, c_out, 2 * h, 2 * w)


def gdeconv(x_nchw, w_hwio, bias, *, tile_h=None, out_layout="NCHW"):
    """GDeConv forward: 2x nearest upsample -> gated 3x3 conv (ELU * sigmoid).

    x_nchw: (N, C_in, H, W); w_hwio: (3, 3, C_in, 2*C_out); bias: (2*C_out,)
    Returns (N, C_out, 2H, 2W) for out_layout="NCHW" (matches the PyTorch
    module) or (N, 2H, 2W, C_out) for "NHWC" (skips the final permute).
    """
    n, c_in, h, w = x_nchw.shape
    assert w_hwio.shape[:3] == (3, 3, c_in) and w_hwio.shape[3] % 2 == 0
    c_out = w_hwio.shape[3] // 2
    if tile_h is None:
        tile_h = _auto_tile_h(n, h, w, c_in, c_out)
    assert tile_h % 8 == 0 and tile_h > 0
    # TODO(synk): tile the W axis the same way (halo BlockSpec on the lane
    # axis) for very wide images; the folded banded weight is
    # O(W^2 * C_in * C_out) and is built for the full width here.
    return _gdeconv_impl(x_nchw, w_hwio, bias, tile_h=int(tile_h),
                         out_layout=out_layout)


def _gdeconv_reference(x_nchw, w_hwio, bias):
    """Pure-JAX reference: F.interpolate(nearest, 2x) -> GConv(3x3, pad 1)."""
    c_out = w_hwio.shape[-1] // 2
    u = jnp.repeat(jnp.repeat(x_nchw, 2, axis=2), 2, axis=3)
    y = jax.lax.conv_general_dilated(
        u, w_hwio, window_strides=(1, 1), padding=((1, 1), (1, 1)),
        dimension_numbers=("NCHW", "HWIO", "NCHW"),
        precision=jax.lax.Precision.HIGHEST)
    y = y + bias[None, :, None, None]
    a, g = y[:, :c_out], y[:, c_out:]
    return jnp.where(a > 0, a, jnp.expm1(a)) * jax.nn.sigmoid(g)


if __name__ == "__main__":
    # GDeConv(cnum_in=4, cnum_out=8): conv emits 2*8=16 channels, gated to 8.
    N, C_IN, H, W = 2, 4, 16, 16
    C_OUT = 8

    key = jax.random.PRNGKey(0)
    kx, kw_, kb = jax.random.split(key, 3)
    x = jax.random.normal(kx, (N, C_IN, H, W), dtype=jnp.float32)
    weight = jax.random.normal(kw_, (3, 3, C_IN, 2 * C_OUT),
                               dtype=jnp.float32) * 0.1
    bias = jax.random.normal(kb, (2 * C_OUT,), dtype=jnp.float32) * 0.1

    # tile_h=8 -> 2 row tiles per image: exercises the interior halo path and
    # gives a 2x2 fully-parallel grid (both v7x TensorCores get work).
    out = jax.block_until_ready(gdeconv(x, weight, bias, tile_h=8))

    assert out.shape == (N, C_OUT, 2 * H, 2 * W), out.shape
    assert out.dtype == jnp.float32

    ref = _gdeconv_reference(x, weight, bias)
    max_err = float(jnp.max(jnp.abs(out - ref)))
    assert max_err < 5e-4, f"kernel/reference mismatch: max abs err {max_err}"
    print("KERNEL_OK")
</pallas_src>

<mosaic_0001>
module attributes {stable_mosaic.version = 11 : i64} {
  func.func @_gdeconv_kernel(%arg0: i32, %arg1: i32, %arg2: memref<1x8x128xf32, #tpu.memory_space<vmem>>, %arg3: memref<1x8x128xf32, #tpu.memory_space<vmem>>, %arg4: memref<384x1024xf32, #tpu.memory_space<vmem>>, %arg5: memref<1x1024xf32, #tpu.memory_space<vmem>>, %arg6: memref<1x8x512xf32, #tpu.memory_space<vmem>>) attributes {dimension_semantics = [#tpu.dimension_semantics<parallel>, #tpu.dimension_semantics<parallel>], iteration_bounds = array<i64: 2, 2>, scalar_prefetch = 0 : i64, scratch_operands = 0 : i64, tpu.core_type = #tpu.core_type<tc>, window_params = [{transform_indices = @transform_0, window_bounds = array<i64: 1, 8, 128>}, {transform_indices = @transform_1, window_bounds = array<i64: 1, 8, 128>}, {pipeline_mode = #tpu.pipeline_mode<synchronous>, transform_indices = @transform_2, window_bounds = array<i64: 384, 1024>}, {pipeline_mode = #tpu.pipeline_mode<synchronous>, transform_indices = @transform_3, window_bounds = array<i64: 1, 1024>}, {transform_indices = @transform_4, window_bounds = array<i64: 1, 8, 512>}]} {
    %c0 = arith.constant 0 : index
    %c0_0 = arith.constant 0 : index
    %c0_1 = arith.constant 0 : index
    %0 = vector.load %arg2[%c0, %c0_0, %c0_1] : memref<1x8x128xf32, #tpu.memory_space<vmem>>, vector<1x8x128xf32>
    %1 = vector.shape_cast %0 : vector<1x8x128xf32> to vector<8x128xf32>
    %c0_2 = arith.constant 0 : index
    %c0_3 = arith.constant 0 : index
    %c0_4 = arith.constant 0 : index
    %2 = vector.load %arg3[%c0_2, %c0_3, %c0_4] : memref<1x8x128xf32, #tpu.memory_space<vmem>>, vector<1x8x128xf32>
    %3 = vector.shape_cast %2 : vector<1x8x128xf32> to vector<8x128xf32>
    %4 = vector.extract_strided_slice %3 {offsets = [0, 0], sizes = [2, 128], strides = [1, 1]} : vector<8x128xf32> to vector<2x128xf32>
    %5 = tpu.concatenate %1, %4 in 0 : vector<8x128xf32>, vector<2x128xf32> -> vector<10x128xf32>
    %6 = vector.extract_strided_slice %5 {offsets = [0, 0], sizes = [8, 128], strides = [1, 1]} : vector<10x128xf32> to vector<8x128xf32>
    %7 = vector.extract_strided_slice %5 {offsets = [1, 0], sizes = [8, 128], strides = [1, 1]} : vector<10x128xf32> to vector<8x128xf32>
    %8 = vector.extract_strided_slice %5 {offsets = [2, 0], sizes = [8, 128], strides = [1, 1]} : vector<10x128xf32> to vector<8x128xf32>
    %9 = tpu.concatenate %6, %7, %8 in 1 : vector<8x128xf32>, vector<8x128xf32>, vector<8x128xf32> -> vector<8x384xf32>
    %c0_5 = arith.constant 0 : index
    %c0_6 = arith.constant 0 : index
    %10 = vector.load %arg4[%c0_5, %c0_6] : memref<384x1024xf32, #tpu.memory_space<vmem>>, vector<384x1024xf32>
    %cst = arith.constant dense<0.000000e+00> : vector<8x1024xf32>
    %11 = tpu.matmul %9, %10, %cst {dimension_numbers = #tpu.dot_dimension_numbers<[1], [0], [0], [1], [0, 0, 1, 1], [], []>, precision = #tpu.contract_precision<fp32>} : vector<8x384xf32>, vector<384x1024xf32>, vector<8x1024xf32> -> vector<8x1024xf32>
    %c0_7 = arith.constant 0 : index
    %c0_8 = arith.constant 0 : index
    %12 = vector.load %arg5[%c0_7, %c0_8] : memref<1x1024xf32, #tpu.memory_space<vmem>>, vector<1x1024xf32>
    %13 = vector.broadcast %12 : vector<1x1024xf32> to vector<8x1024xf32>
    %14 = arith.addf %11, %13 : vector<8x1024xf32>
    %15 = vector.extract_strided_slice %14 {offsets = [0, 0], sizes = [8, 512], strides = [1, 1]} : vector<8x1024xf32> to vector<8x512xf32>
    %16 = vector.extract_strided_slice %14 {offsets = [0, 512], sizes = [8, 512], strides = [1, 1]} : vector<8x1024xf32> to vector<8x512xf32>
    %cst_9 = arith.constant 0.000000e+00 : f32
    %17 = vector.broadcast %cst_9 : f32 to vector<8x512xf32>
    %18 = arith.cmpf ogt, %15, %17 : vector<8x512xf32>
    %cst_10 = arith.constant 0.000000e+00 : f32
    %19 = vector.broadcast %cst_10 : f32 to vector<8x512xf32>
    %20 = arith.minimumf %15, %19 : vector<8x512xf32>
    %21 = math.exp %20 : vector<8x512xf32>
    %cst_11 = arith.constant 1.000000e+00 : f32
    %22 = vector.broadcast %cst_11 : f32 to vector<8x512xf32>
    %23 = arith.subf %21, %22 : vector<8x512xf32>
    %24 = arith.select %18, %15, %23 : vector<8x512xi1>, vector<8x512xf32>
    %cst_12 = arith.constant 0.000000e+00 : f32
    %25 = vector.broadcast %cst_12 : f32 to vector<8x512xf32>
    %26 = arith.subf %25, %16 : vector<8x512xf32>
    %27 = math.exp %26 : vector<8x512xf32>
    %cst_13 = arith.constant 1.000000e+00 : f32
    %28 = vector.broadcast %cst_13 : f32 to vector<8x512xf32>
    %29 = arith.addf %28, %27 : vector<8x512xf32>
    %cst_14 = arith.constant 1.000000e+00 : f32
    %30 = vector.broadcast %cst_14 : f32 to vector<8x512xf32>
    %31 = arith.divf %30, %29 : vector<8x512xf32>
    %32 = arith.mulf %24, %31 : vector<8x512xf32>
    %c0_15 = arith.constant 0 : index
    %c0_16 = arith.constant 0 : index
    %c0_17 = arith.constant 0 : index
    %33 = vector.load %arg6[%c0_15, %c0_16, %c0_17] : memref<1x8x512xf32, #tpu.memory_space<vmem>>, vector<1x8x512xf32>
    %34 = vector.shape_cast %33 : vector<1x8x512xf32> to vector<8x512xf32>
    %35 = vector.shape_cast %32 : vector<8x512xf32> to vector<1x8x512xf32>
    tpu.vector_store %arg6[%c0_15, %c0_16, %c0_17], %35 {strides = array<i32>} : memref<1x8x512xf32, #tpu.memory_space<vmem>>, vector<1x8x512xf32>,
    return
  }
  func.func @transform_0(%arg0: i32, %arg1: i32) -> (i32, i32, i32) {
    %c0_i32 = arith.constant 0 : i32
    %c0_i32_0 = arith.constant 0 : i32
    return %arg0, %arg1, %c0_i32 : i32, i32, i32
  }
  func.func @transform_1(%arg0: i32, %arg1: i32) -> (i32, i32, i32) {
    %c1_i32 = arith.constant 1 : i32
    %0 = arith.addi %arg1, %c1_i32 : i32
    %c1_i32_0 = arith.constant 1 : i32
    %1 = arith.muli %0, %c1_i32_0 : i32
    %c0_i32 = arith.constant 0 : i32
    %c0_i32_1 = arith.constant 0 : i32
    return %arg0, %1, %c0_i32 : i32, i32, i32
  }
  func.func @transform_2(%arg0: i32, %arg1: i32) -> (i32, i32) {
    %c0_i32 = arith.constant 0 : i32
    %c0_i32_0 = arith.constant 0 : i32
    %c0_i32_1 = arith.constant 0 : i32
    return %c0_i32, %c0_i32_0 : i32, i32
  }
  func.func @transform_3(%arg0: i32, %arg1: i32) -> (i32, i32) {
    %c0_i32 = arith.constant 0 : i32
    %c0_i32_0 = arith.constant 0 : i32
    %c0_i32_1 = arith.constant 0 : i32
    return %c0_i32, %c0_i32_0 : i32, i32
  }
  func.func @transform_4(%arg0: i32, %arg1: i32) -> (i32, i32, i32) {
    %c0_i32 = arith.constant 0 : i32
    %c0_i32_0 = arith.constant 0 : i32
    return %arg0, %arg1, %c0_i32 : i32, i32, i32
  }
}

</mosaic_0001>

<bundles_post_ra>
// kernel: _gdeconv_impl.1
= control target key start
LH: loop header
LB: loop body
LE: loop exit
PB: predicated region body
PF: predicated region fallthrough
CT: control target
= control target key end

     0   :  { %s11981_s15 = smov 0   ;;  %s11983_s16 = smov 0   ;;  %s18492_s0 = inlined_call_operand.vmem [shape: f32[2,24,128], index: 0, kind: input, shape index: {}, may-alias: {0,1}]   ;;  %s18493_s1 = inlined_call_operand.vmem [shape: f32[2,24,128], index: 1, kind: input, shape index: {}, may-alias: {0,1}]   ;;  %s18494_s2 = inlined_call_operand.vmem [shape: f32[384,1024], index: 2, kind: input, shape index: {}]   ;;  %s18495_s3 = inlined_call_operand.vmem [shape: f32[1,1024], index: 3, kind: input, shape index: {}]   ;;  %s18496_s4 = inlined_call_operand.vmem [shape: f32[2,16,512], index: 4, kind: output, shape index: {}]  }
   0x1   :  { %s11985_s17 = smov 0   ;;  %s11987_s18 = smov 0  }
   0x2   :  { %s11989_s19 = smov 0  }
   0x3 LB: > { %s23_s20 = sadd.s32 1, %s11945_s17  ;;  %s26_s21 = sadd.s32 1, %s11949_s18  ;;  %s11953_s19 = sphi %s11989_s19, %s14_s19   ;;  %s11949_s18 = sphi %s11987_s18, %s22179_s18   ;;  %s11945_s17 = sphi %s11985_s17, %s22178_s17   ;;  %s11941_s16 = sphi %s11983_s16, %s22177_s16   ;;  %s11937_s15 = sphi %s11981_s15, %s22176_s15  }
   0x4   : > { %p24_p0 = scmp.ge.s32.totalorder %s23_s20, 2  ;;  %p9435_p1 = scmp.ge.s32.totalorder %s11953_s19, 1 }
   0x5   : > { %p200_p2 = scmp.lt.s32.totalorder %s11953_s19, 5 }
   0x6   : > { %s22181_s20 = smov (%p24_p0, %s23_s20), 0  ;;  %s22183_s21 = smov (!%p24_p0, %s26_s21), %s11949_s18 }
   0x7   : > { %p201_p3 = pnand %p9435_p1, %p200_p2  ;;  %p28_p4 = scmp.ge.s32.totalorder %s22183_s21, 2 }
   0x9   : > { %s22185_s21 = smov (%p28_p4, %s22183_s21), 0  ;;  %204 = sbr.rel (%p201_p3) target bundleno = 1528 (0x5f8), region = 36 }
  0x10   : > { %v284_v0 = vld [vmem:[%s18494_s2 + $0x8] sm:$0xff]  ;;  %v286_v2 = vld [vmem:[%s18494_s2 + $0x18] sm:$0xff]  ;;  %v283_v7 = vld [vmem:[%s18494_s2] sm:$0xff]  ;;  %p242_p5 = scmp.lt.s32.totalorder %s11941_s16, 1  ;;  %s250_s28 = sadd.s32 1, %s11937_s15  ;;  %vm273_vm0 = vcmask 1046528  }
  0x11   : > { %v292_v1 = vld [vmem:[%s18494_s2 + $0x48] sm:$0xff]  ;;  %v709_v3 = vand.u32 4294901760, %v284_v0  ;;  %v294_v5 = vld [vmem:[%s18494_s2 + $0x58] sm:$0xff]  ;;  %v2848_v6 = vand.u32 4294901760, %v286_v2  ;;  %v291_v8 = vld [vmem:[%s18494_s2 + $0x40] sm:$0xff]  ;;  %v711_v10 = vand.u32 4294901760, %v283_v7 }
  0x12   : > { %v713_v4 = vand.u32 4294901760, %v292_v1  ;;  %v2852_v9 = vand.u32 4294901760, %v294_v5  ;;  %v715_v11 = vand.u32 4294901760, %v291_v8  ;;  %v285_v12 = vld [vmem:[%s18494_s2 + $0x10] sm:$0xff]  ;;  %v300_v14 = vld [vmem:[%s18494_s2 + $0x88] sm:$0xff]  ;;  %v302_v20 = vld [vmem:[%s18494_s2 + $0x98] sm:$0xff] }
  0x13   : > { %v293_v13 = vld [vmem:[%s18494_s2 + $0x50] sm:$0xff]  ;;  %v12044_v16 = vsub.f32 %v284_v0, %v709_v3  ;;  %v12048_v18 = vsub.f32 %v286_v2, %v2848_v6  ;;  %v308_v19 = vld [vmem:[%s18494_s2 + $0xc8] sm:$0xff]  ;;  %v310_v21 = vld [vmem:[%s18494_s2 + $0xd8] sm:$0xff]  ;;  %v12065_v25 = vsub.f32 %v283_v7, %v711_v10  ;;  %v2850_v28 = vand.u32 4294901760, %v285_v12  ;;  %p244_p6 = scmp.lt.s32.totalorder %s11937_s15, 2  ;;  %s22187_s16 = smov (!%p242_p5, %s11941_s16), 1 }
  0x14   : > { %v12042_v15 = vpack.c.bf16 %v713_v4, %v709_v3  ;;  %v12046_v17 = vsub.f32 %v292_v1, %v713_v4  ;;  %v12059_v22 = vpack.c.bf16 %v2852_v9, %v2848_v6  ;;  %v12061_v23 = vsub.f32 %v294_v5, %v2852_v9  ;;  %v299_v26 = vld [vmem:[%s18494_s2 + $0x80] sm:$0xff]  ;;  %v301_v36 = vld [vmem:[%s18494_s2 + $0x90] sm:$0xff]  ;;  %v316_v42 = vld [vmem:[%s18494_s2 + $0x108] sm:$0xff]  ;;  %p12642_p7 = scmp.lt.s32.totalorder %s250_s28, 2  ;;  %s11847_s29 = smul.u32 3, %s22187_s16 }
  0x15   : > { %19721 = vst [vmem:[#allocation3_spill] sm:$0xff] %v12044_v16  ;;  %19723 = vst [vmem:[#allocation5_spill] sm:$0xff] %v12048_v18  ;;  %v12063_v24 = vpack.c.bf16 %v715_v11, %v711_v10  ;;  %v12071_v27 = vsub.f32 %v291_v8, %v715_v11  ;;  %v2854_v29 = vand.u32 4294901760, %v293_v13  ;;  %v717_v30 = vand.u32 4294901760, %v300_v14  ;;  %v307_v31 = vld [vmem:[%s18494_s2 + $0xc0] sm:$0xff]  ;;  %v309_v37 = vld [vmem:[%s18494_s2 + $0xd0] sm:$0xff] }
  0x16   : > { %19720 = vst [vmem:[#allocation2_spill] sm:$0xff] %v12042_v15  ;;  %19722 = vst [vmem:[#allocation4_spill] sm:$0xff] %v12046_v17  ;;  %9448 = vmatprep.subr.bf16.mxu0 %v12042_v15  ;;  %10024 = vmatprep.subr.bf16.mxu1 %v12059_v22  ;;  %v721_v32 = vand.u32 4294901760, %v308_v19  ;;  %v2856_v33 = vand.u32 4294901760, %v302_v20  ;;  %v2860_v34 = vand.u32 4294901760, %v310_v21  ;;  %v719_v35 = vand.u32 4294901760, %v299_v26 }
  0x17   : > { %19724 = vst [vmem:[#allocation6_spill] sm:$0xff] %v12059_v22  ;;  %19725 = vst [vmem:[#allocation7_spill] sm:$0xff] %v12061_v23  ;;  %9450 = vmatpush1.bf16.msra.mxu0 %v12063_v24  ;;  %v12084_v38 = vpack.c.bf16 %v2854_v29, %v2850_v28  ;;  %v12086_v39 = vsub.f32 %v285_v12, %v2850_v28  ;;  %v12088_v40 = vsub.f32 %v293_v13, %v2854_v29  ;;  %v324_v43 = vld [vmem:[%s18494_s2 + $0x148] sm:$0xff]  ;;  %v318_v44 = vld [vmem:[%s18494_s2 + $0x118] sm:$0xff]  ;;  %s12683_s27 = scalar_select %p244_p6, %s11937_s15, 2  ;;  %vm278_vm1 = vcmask 1045504  }
  0x18   : > { %19726 = vst [vmem:[#allocation8_spill] sm:$0xff] %v12063_v24  ;;  %19727 = vst [vmem:[#allocation9_spill] sm:$0xff] %v12065_v25  ;;  %v12090_v41 = vsub.f32 %v300_v14, %v717_v30  ;;  %v12101_v45 = vpack.c.bf16 %v721_v32, %v717_v30  ;;  %v12103_v46 = vsub.f32 %v308_v19, %v721_v32  ;;  %v326_v49 = vld [vmem:[%s18494_s2 + $0x158] sm:$0xff]  ;;  %v723_v51 = vand.u32 4294901760, %v307_v31  ;;  %v315_v58 = vld [vmem:[%s18494_s2 + $0x100] sm:$0xff]  ;;  %s22189_s28 = smov (!%p12642_p7, %s250_s28), 2 }
  0x19   : > { %19728 = vst [vmem:[#allocation10_spill] sm:$0xff] %v12071_v27  ;;  %19729 = vst [vmem:[#allocation11_spill] sm:$0xff] %v12084_v38  ;;  %v12105_v47 = vpack.c.bf16 %v2860_v34, %v2856_v33  ;;  %v12107_v48 = vsub.f32 %v302_v20, %v2856_v33  ;;  %10026 = vmatpush1.bf16.msra.mxu1 %v12084_v38  ;;  %v12113_v50 = vsub.f32 %v310_v21, %v2860_v34  ;;  %v323_v59 = vld [vmem:[%s18494_s2 + $0x140] sm:$0xff]  ;;  %v317_v0 = vld [vmem:[%s18494_s2 + $0x110] sm:$0xff]  ;;  %s12755_s30 = sadd.s32 %s11847_s29, %s12683_s27  ;;  %s12760_s5 = sadd.s32 %s11847_s29, %s22189_s28 }
  0x1a   : > { %19730 = vst [vmem:[#allocation12_spill] sm:$0xff] %v12086_v39  ;;  %19731 = vst [vmem:[#allocation13_spill] sm:$0xff] %v12088_v40  ;;  %v12115_v52 = vsub.f32 %v299_v26, %v719_v35  ;;  %v2858_v53 = vand.u32 4294901760, %v301_v36  ;;  %9452 = vmatprep.subr.bf16.mxu0 %v12101_v45  ;;  %v2862_v54 = vand.u32 4294901760, %v309_v37  ;;  %v725_v55 = vand.u32 4294901760, %v316_v42  ;;  %v325_v1 = vld [vmem:[%s18494_s2 + $0x150] sm:$0xff] }
  0x1b   : > { %19732 = vst [vmem:[#allocation14_spill] sm:$0xff] %v12090_v41  ;;  %19733 = vst [vmem:[#allocation15_spill] sm:$0xff] %v12101_v45  ;;  %10028 = vmatprep.subr.bf16.mxu1 %v12105_v47  ;;  %v729_v56 = vand.u32 4294901760, %v324_v43  ;;  %v2864_v57 = vand.u32 4294901760, %v318_v44  ;;  %v12125_v60 = vpack.c.bf16 %v723_v51, %v719_v35  ;;  %v12127_v61 = vsub.f32 %v307_v31, %v723_v51  ;;  %v332_v2 = vld [vmem:[%s18494_s2 + $0x188] sm:$0xff]  ;;  %v334_v8 = vld [vmem:[%s18494_s2 + $0x198] sm:$0xff] }
  0x1c   : > { %19734 = vst [vmem:[#allocation16_spill] sm:$0xff] %v12103_v46  ;;  %19735 = vst [vmem:[#allocation17_spill] sm:$0xff] %v12105_v47  ;;  %v12129_v62 = vsub.f32 %v301_v36, %v2858_v53  ;;  %v2868_v63 = vand.u32 4294901760, %v326_v49  ;;  %v12140_v3 = vpack.c.bf16 %v2862_v54, %v2858_v53  ;;  %v12142_v4 = vsub.f32 %v309_v37, %v2862_v54  ;;  %v340_v7 = vld [vmem:[%s18494_s2 + $0x1c8] sm:$0xff]  ;;  %v342_v9 = vld [vmem:[%s18494_s2 + $0x1d8] sm:$0xff]  ;;  %s9436_s13 = sshll.u32 %s12755_s30, 3 }
  0x1d   : > { %19736 = vst [vmem:[#allocation18_spill] sm:$0xff] %v12107_v48  ;;  %19737 = vst [vmem:[#allocation19_spill] sm:$0xff] %v12113_v50  ;;  %v12144_v5 = vpack.c.bf16 %v729_v56, %v725_v55  ;;  %v12146_v6 = vsub.f32 %v316_v42, %v725_v55  ;;  %9454 = vmatpush1.bf16.msra.mxu0 %v12125_v60  ;;  %v12158_v10 = vsub.f32 %v324_v43, %v729_v56  ;;  %v331_v31 = vld [vmem:[%s18494_s2 + $0x180] sm:$0xff]  ;;  %v333_v37 = vld [vmem:[%s18494_s2 + $0x190] sm:$0xff]  ;;  %s9437_s14 = sshll.u32 %s12760_s5, 3  ;;  %s12820_s6 = scalar_lea.vmem %s18492_s0, %s9436_s13 }
  0x1e   : > { %19738 = vst [vmem:[#allocation20_spill] sm:$0xff] %v12115_v52  ;;  %19739 = vst [vmem:[#allocation21_spill] sm:$0xff] %v12125_v60  ;;  %v12160_v11 = vpack.c.bf16 %v2868_v63, %v2864_v57  ;;  %v12162_v12 = vsub.f32 %v318_v44, %v2864_v57  ;;  %v12164_v13 = vsub.f32 %v326_v49, %v2868_v63  ;;  %10030 = vmatpush1.bf16.msra.mxu1 %v12140_v3  ;;  %v339_v36 = vld [vmem:[%s18494_s2 + $0x1c0] sm:$0xff]  ;;  %v341_v42 = vld [vmem:[%s18494_s2 + $0x1d0] sm:$0xff]  ;;  %s12825_s8 = scalar_lea.vmem %s18493_s1, %s9437_s14  ;;  %p262_p8 = scmp.lt.s32.totalorder %s11937_s15, 1 }
  0x1f   : > { %19740 = vst [vmem:[#allocation22_spill] sm:$0xff] %v12127_v61  ;;  %19741 = vst [vmem:[#allocation23_spill] sm:$0xff] %v12129_v62  ;;  %9456 = vmatprep.subr.bf16.mxu0 %v12144_v5  ;;  %v727_v14 = vand.u32 4294901760, %v315_v58  ;;  %v731_v19 = vand.u32 4294901760, %v323_v59  ;;  %v2866_v20 = vand.u32 4294901760, %v317_v0  ;;  %v2870_v21 = vand.u32 4294901760, %v325_v1 }
  0x20   : > { %19742 = vst [vmem:[#allocation24_spill] sm:$0xff] %v12140_v3  ;;  %19743 = vst [vmem:[#allocation25_spill] sm:$0xff] %v12142_v4  ;;  %10032 = vmatprep.subr.bf16.mxu1 %v12160_v11  ;;  %v733_v26 = vand.u32 4294901760, %v332_v2  ;;  %v737_v28 = vand.u32 4294901760, %v340_v7  ;;  %v2872_v29 = vand.u32 4294901760, %v334_v8  ;;  %v2876_v30 = vand.u32 4294901760, %v342_v9 }
  0x21   : > { %19744 = vst [vmem:[#allocation26_spill] sm:$0xff] %v12144_v5  ;;  %19745 = vst [vmem:[#allocation27_spill] sm:$0xff] %v12146_v6  ;;  %v12172_v32 = vpack.c.bf16 %v731_v19, %v727_v14  ;;  %v12174_v33 = vsub.f32 %v315_v58, %v727_v14  ;;  %v12176_v34 = vsub.f32 %v323_v59, %v731_v19  ;;  %v348_v53 = vld [vmem:[%s18494_s2 + $0x208] sm:$0xff]  ;;  %v350_v55 = vld [vmem:[%s18494_s2 + $0x218] sm:$0xff]  ;;  %v735_v59 = vand.u32 4294901760, %v331_v31  ;;  %s22191_s15 = smov (!%p262_p8, %s11937_s15), 1 }
  0x22   : > { %19746 = vst [vmem:[#allocation28_spill] sm:$0xff] %v12158_v10  ;;  %19747 = vst [vmem:[#allocation29_spill] sm:$0xff] %v12160_v11  ;;  %v12178_v35 = vpack.c.bf16 %v2870_v21, %v2866_v20  ;;  %v12189_v43 = vsub.f32 %v317_v0, %v2866_v20  ;;  %v12191_v44 = vsub.f32 %v325_v1, %v2870_v21  ;;  %v356_v54 = vld [vmem:[%s18494_s2 + $0x248] sm:$0xff]  ;;  %v739_v0 = vand.u32 4294901760, %v339_v36  ;;  %v358_v14 = vld [vmem:[%s18494_s2 + $0x258] sm:$0xff]  ;;  %s9438_s23 = sshll.u32 %s22191_s15, 2 }
  0x23   : > { %19748 = vst [vmem:[#allocation30_spill] sm:$0xff] %v12162_v12  ;;  %19749 = vst [vmem:[#allocation31_spill] sm:$0xff] %v12164_v13  ;;  %v12193_v49 = vpack.c.bf16 %v737_v28, %v733_v26  ;;  %v12195_v51 = vsub.f32 %v332_v2, %v733_v26  ;;  %9458 = vmatpush1.bf16.msra.mxu0 %v12172_v32  ;;  %v12208_v56 = vsub.f32 %v340_v7, %v737_v28  ;;  %v347_v21 = vld [vmem:[%s18494_s2 + $0x200] sm:$0xff]  ;;  %v349_v26 = vld [vmem:[%s18494_s2 + $0x210] sm:$0xff]  ;;  %s9439_s24 = sshll.u32 %s22187_s16, 3 }
  0x24   : > { %19750 = vst [vmem:[#allocation32_spill] sm:$0xff] %v12172_v32  ;;  %19751 = vst [vmem:[#allocation33_spill] sm:$0xff] %v12174_v33  ;;  %10034 = vmatpush1.bf16.msra.mxu1 %v12178_v35  ;;  %v12210_v57 = vpack.c.bf16 %v2876_v30, %v2872_v29  ;;  %v12212_v58 = vsub.f32 %v334_v8, %v2872_v29  ;;  %v12215_v63 = vsub.f32 %v342_v9, %v2876_v30  ;;  %v355_v9 = vld [vmem:[%s18494_s2 + $0x240] sm:$0xff]  ;;  %v365_v47 = vld [vmem:[%s18494_s2 + $0x290] sm:$0xff]  ;;  %s266_s25 = sadd.s32 %s9439_s24, %s9438_s23 }
  0x25   : > { %19752 = vst [vmem:[#allocation34_spill] sm:$0xff] %v12176_v34  ;;  %19753 = vst [vmem:[#allocation35_spill] sm:$0xff] %v12178_v35  ;;  %9460 = vmatprep.subr.bf16.mxu0 %v12193_v49  ;;  %v2874_v1 = vand.u32 4294901760, %v333_v37  ;;  %v2878_v2 = vand.u32 4294901760, %v341_v42  ;;  %v12221_v7 = vsub.f32 %v331_v31, %v735_v59  ;;  %v741_v19 = vand.u32 4294901760, %v348_v53  ;;  %v364_v35 = vld [vmem:[%s18494_s2 + $0x288] sm:$0xff] }
  0x26   : > { %19754 = vst [vmem:[#allocation36_spill] sm:$0xff] %v12189_v43  ;;  %19755 = vst [vmem:[#allocation37_spill] sm:$0xff] %v12191_v44  ;;  %10036 = vmatprep.subr.bf16.mxu1 %v12210_v57  ;;  %v745_v20 = vand.u32 4294901760, %v356_v54  ;;  %v2880_v8 = vand.u32 4294901760, %v350_v55  ;;  %v12232_v28 = vpack.c.bf16 %v739_v0, %v735_v59  ;;  %v12234_v29 = vsub.f32 %v339_v36, %v739_v0  ;;  %v380_v38 = vld [vmem:[%s18494_s2 + $0x308] sm:$0xff]  ;;  %s9440_s26 = sshll.u32 %s266_s25, 3 }
  0x27   : > { %19756 = vst [vmem:[#allocation38_spill] sm:$0xff] %v12193_v49  ;;  %19757 = vst [vmem:[#allocation39_spill] sm:$0xff] %v12195_v51  ;;  %v12236_v30 = vpack.c.bf16 %v2878_v2, %v2874_v1  ;;  %v12238_v31 = vsub.f32 %v333_v37, %v2874_v1  ;;  %v372_v49 = vld [vmem:[%s18494_s2 + $0x2c8] sm:$0xff]  ;;  %v12249_v59 = vsub.f32 %v341_v42, %v2878_v2  ;;  %v2884_v1 = vand.u32 4294901760, %v358_v14  ;;  %s268_s27 = scalar_lea.vmem %s18496_s4, %s9440_s26 }
  0x28   : > { %19758 = vst [vmem:[#allocation40_spill] sm:$0xff] %v12208_v56  ;;  %19759 = vst [vmem:[#allocation41_spill] sm:$0xff] %v12210_v57  ;;  %v357_v57 = vld [vmem:[%s18494_s2 + $0x250] sm:$0xff]  ;;  %v12251_v36 = vpack.c.bf16 %v745_v20, %v741_v19  ;;  %v12253_v0 = vsub.f32 %v348_v53, %v741_v19  ;;  %v12255_v37 = vsub.f32 %v356_v54, %v745_v20  ;;  %9462 = vmatpush1.bf16.msra.mxu0 %v12232_v28  ;;  %v366_v53 = vld [vmem:[%s18494_s2 + $0x298] sm:$0xff] }
  0x29   : > { %19760 = vst [vmem:[#allocation42_spill] sm:$0xff] %v12212_v58  ;;  %19761 = vst [vmem:[#allocation43_spill] sm:$0xff] %v12215_v63  ;;  %10038 = vmatpush1.bf16.msra.mxu1 %v12236_v30  ;;  %v12259_v32 = vsub.f32 %v350_v55, %v2880_v8  ;;  %v743_v11 = vand.u32 4294901760, %v347_v21  ;;  %v747_v3 = vand.u32 4294901760, %v355_v9  ;;  %v2882_v5 = vand.u32 4294901760, %v349_v26  ;;  %v374_v54 = vld [vmem:[%s18494_s2 + $0x2d8] sm:$0xff] }
  0x2a   : > { %19762 = vst [vmem:[#allocation44_spill] sm:$0xff] %v12221_v7  ;;  %19763 = vst [vmem:[#allocation45_spill] sm:$0xff] %v12232_v28  ;;  %9464 = vmatprep.subr.bf16.mxu0 %v12251_v36  ;;  %v2886_v42 = vand.u32 4294901760, %v357_v57  ;;  %v749_v2 = vand.u32 4294901760, %v364_v35  ;;  %v753_v60 = vand.u32 4294901760, %v372_v49  ;;  %v12268_v19 = vpack.c.bf16 %v2884_v1, %v2880_v8  ;;  %v371_v28 = vld [vmem:[%s18494_s2 + $0x2c0] sm:$0xff] }
  0x2b   : > { %19764 = vst [vmem:[#allocation46_spill] sm:$0xff] %v12234_v29  ;;  %19765 = vst [vmem:[#allocation47_spill] sm:$0xff] %v12236_v30  ;;  %v12270_v55 = vsub.f32 %v358_v14, %v2884_v1  ;;  %v12272_v20 = vpack.c.bf16 %v747_v3, %v743_v11  ;;  %v12274_v30 = vsub.f32 %v347_v21, %v743_v11  ;;  %v373_v21 = vld [vmem:[%s18494_s2 + $0x2d0] sm:$0xff]  ;;  %v388_v45 = vld [vmem:[%s18494_s2 + $0x348] sm:$0xff]  ;;  %v755_v24 = vand.u32 4294901760, %v371_v28 }
  0x2c   : > { %19766 = vst [vmem:[#allocation48_spill] sm:$0xff] %v12238_v31  ;;  %19767 = vst [vmem:[#allocation49_spill] sm:$0xff] %v12249_v59  ;;  %v12285_v8 = vsub.f32 %v355_v9, %v747_v3  ;;  %v12287_v14 = vpack.c.bf16 %v2886_v42, %v2882_v5  ;;  %v12289_v1 = vsub.f32 %v349_v26, %v2882_v5  ;;  %10040 = vmatprep.subr.bf16.mxu1 %v12268_v19 }
  0x2d   : > { %19768 = vst [vmem:[#allocation50_spill] sm:$0xff] %v12251_v36  ;;  %19769 = vst [vmem:[#allocation51_spill] sm:$0xff] %v12253_v0  ;;  %v363_v36 = vld [vmem:[%s18494_s2 + $0x280] sm:$0xff]  ;;  %v12291_v11 = vsub.f32 %v357_v57, %v2886_v42  ;;  %9466 = vmatpush1.bf16.msra.mxu0 %v12272_v20  ;;  %v12304_v3 = vpack.c.bf16 %v753_v60, %v749_v2  ;;  %v12306_v5 = vsub.f32 %v364_v35, %v749_v2  ;;  %v382_v35 = vld [vmem:[%s18494_s2 + $0x318] sm:$0xff] }
  0x2e   : > { %19770 = vst [vmem:[#allocation52_spill] sm:$0xff] %v12255_v37  ;;  %19771 = vst [vmem:[#allocation53_spill] sm:$0xff] %v12259_v32  ;;  %v12308_v57 = vsub.f32 %v372_v49, %v753_v60  ;;  %v2888_v9 = vand.u32 4294901760, %v366_v53  ;;  %10042 = vmatpush1.bf16.msra.mxu1 %v12287_v14  ;;  %v2892_v26 = vand.u32 4294901760, %v374_v54  ;;  %v751_v42 = vand.u32 4294901760, %v363_v36  ;;  %v390_v60 = vld [vmem:[%s18494_s2 + $0x358] sm:$0xff] }
  0x2f   : > { %19772 = vst [vmem:[#allocation54_spill] sm:$0xff] %v12268_v19  ;;  %19773 = vst [vmem:[#allocation55_spill] sm:$0xff] %v12270_v55  ;;  %v2890_v22 = vand.u32 4294901760, %v365_v47  ;;  %9468 = vmatprep.subr.bf16.mxu0 %v12304_v3  ;;  %v2894_v19 = vand.u32 4294901760, %v373_v21 }
  0x30   : > { %19774 = vst [vmem:[#allocation56_spill] sm:$0xff] %v12272_v20  ;;  %19775 = vst [vmem:[#allocation57_spill] sm:$0xff] %v12274_v30  ;;  %v12312_v15 = vsub.f32 %v366_v53, %v2888_v9  ;;  %v761_v20 = vand.u32 4294901760, %v388_v45  ;;  %v12320_v49 = vpack.c.bf16 %v2892_v26, %v2888_v9  ;;  %v12322_v2 = vsub.f32 %v374_v54, %v2892_v26  ;;  %v379_v53 = vld [vmem:[%s18494_s2 + $0x300] sm:$0xff] }
  0x31   : > { %19776 = vst [vmem:[#allocation58_spill] sm:$0xff] %v12285_v8  ;;  %19777 = vst [vmem:[#allocation59_spill] sm:$0xff] %v12287_v14  ;;  %v12324_v14 = vpack.c.bf16 %v755_v24, %v751_v42  ;;  %v12337_v9 = vsub.f32 %v371_v28, %v755_v24  ;;  %v12339_v54 = vpack.c.bf16 %v2894_v19, %v2890_v22  ;;  %v2896_v28 = vand.u32 4294901760, %v382_v35 }
  0x32   : > { %19778 = vst [vmem:[#allocation60_spill] sm:$0xff] %v12289_v1  ;;  %19779 = vst [vmem:[#allocation61_spill] sm:$0xff] %v12291_v11  ;;  %v757_v11 = vand.u32 4294901760, %v380_v38  ;;  %v12341_v26 = vsub.f32 %v365_v47, %v2890_v22  ;;  %10044 = vmatprep.subr.bf16.mxu1 %v12320_v49  ;;  %v12360_v47 = vsub.f32 %v388_v45, %v761_v20  ;;  %v406_v45 = vld [vmem:[%s18494_s2 + $0x3d8] sm:$0xff] }
  0x33   : > { %19780 = vst [vmem:[#allocation62_spill] sm:$0xff] %v12304_v3  ;;  %19781 = vst [vmem:[#allocation63_spill] sm:$0xff] %v12306_v5  ;;  %v12326_v3 = vsub.f32 %v363_v36, %v751_v42  ;;  %v12343_v36 = vsub.f32 %v373_v21, %v2894_v19  ;;  %v389_v42 = vld [vmem:[%s18494_s2 + $0x350] sm:$0xff]  ;;  %9470 = vmatpush1.bf16.msra.mxu0 %v12324_v14  ;;  %10046 = vmatpush1.bf16.msra.mxu1 %v12339_v54  ;;  %v2900_v19 = vand.u32 4294901760, %v390_v60 }
  0x34   : > { %19782 = vst [vmem:[#allocation64_spill] sm:$0xff] %v12308_v57  ;;  %19783 = vst [vmem:[#allocation65_spill] sm:$0xff] %v12312_v15  ;;  %v387_v15 = vld [vmem:[%s18494_s2 + $0x340] sm:$0xff]  ;;  %v381_v57 = vld [vmem:[%s18494_s2 + $0x310] sm:$0xff]  ;;  %v12356_v22 = vpack.c.bf16 %v761_v20, %v757_v11  ;;  %v12358_v24 = vsub.f32 %v380_v38, %v757_v11  ;;  %v759_v21 = vand.u32 4294901760, %v379_v53 }
  0x35   : > { %19784 = vst [vmem:[#allocation66_spill] sm:$0xff] %v12320_v49  ;;  %19785 = vst [vmem:[#allocation67_spill] sm:$0xff] %v12322_v2  ;;  %v404_v2 = vld [vmem:[%s18494_s2 + $0x3c8] sm:$0xff]  ;;  %v2902_v49 = vand.u32 4294901760, %v389_v42  ;;  %v398_v38 = vld [vmem:[%s18494_s2 + $0x398] sm:$0xff]  ;;  %v12372_v20 = vpack.c.bf16 %v2900_v19, %v2896_v28  ;;  %v12374_v11 = vsub.f32 %v390_v60, %v2900_v19 }
  0x36   : > { %19786 = vst [vmem:[#allocation68_spill] sm:$0xff] %v12324_v14  ;;  %19787 = vst [vmem:[#allocation69_spill] sm:$0xff] %v12326_v3  ;;  %v396_v3 = vld [vmem:[%s18494_s2 + $0x388] sm:$0xff]  ;;  %9472 = vmatprep.subr.bf16.mxu0 %v12356_v22  ;;  %v769_v14 = vand.u32 4294901760, %v404_v2 }
  0x37   : > { %19788 = vst [vmem:[#allocation70_spill] sm:$0xff] %v12337_v9  ;;  %19789 = vst [vmem:[#allocation71_spill] sm:$0xff] %v12339_v54  ;;  %v12364_v9 = vsub.f32 %v382_v35, %v2896_v28  ;;  %v765_v5 = vand.u32 4294901760, %v396_v3  ;;  %v395_v35 = vld [vmem:[%s18494_s2 + $0x380] sm:$0xff]  ;;  %10048 = vmatprep.subr.bf16.mxu1 %v12372_v20 }
  0x38   : > { %19790 = vst [vmem:[#allocation72_spill] sm:$0xff] %v12341_v26  ;;  %19791 = vst [vmem:[#allocation73_spill] sm:$0xff] %v12343_v36  ;;  %v763_v36 = vand.u32 4294901760, %v387_v15  ;;  %v2898_v26 = vand.u32 4294901760, %v381_v57 }
  0x39   : > { %19792 = vst [vmem:[#allocation74_spill] sm:$0xff] %v12356_v22  ;;  %19793 = vst [vmem:[#allocation75_spill] sm:$0xff] %v12358_v24  ;;  %v12378_v22 = vsub.f32 %v379_v53, %v759_v21  ;;  %v12395_v53 = vsub.f32 %v389_v42, %v2902_v49  ;;  %v767_v42 = vand.u32 4294901760, %v395_v35 }
  0x3a   : > { %19794 = vst [vmem:[#allocation76_spill] sm:$0xff] %v12360_v47  ;;  %19795 = vst [vmem:[#allocation77_spill] sm:$0xff] %v12364_v9  ;;  %v12376_v54 = vpack.c.bf16 %v763_v36, %v759_v21  ;;  %v403_v9 = vld [vmem:[%s18494_s2 + $0x3c0] sm:$0xff]  ;;  %v397_v47 = vld [vmem:[%s18494_s2 + $0x390] sm:$0xff]  ;;  %v12389_v28 = vsub.f32 %v387_v15, %v763_v36  ;;  %v12391_v60 = vpack.c.bf16 %v2902_v49, %v2898_v26  ;;  %v2908_v36 = vand.u32 4294901760, %v406_v45 }
  0x3b   : > { %19796 = vst [vmem:[#allocation78_spill] sm:$0xff] %v12372_v20  ;;  %19797 = vst [vmem:[#allocation79_spill] sm:$0xff] %v12374_v11  ;;  %v12393_v19 = vsub.f32 %v381_v57, %v2898_v26  ;;  %v405_v21 = vld [vmem:[%s18494_s2 + $0x3d0] sm:$0xff]  ;;  %v420_v11 = vld [vmem:[%s18494_s2 + $0x448] sm:$0xff]  ;;  %v12408_v15 = vpack.c.bf16 %v769_v14, %v765_v5  ;;  %v12410_v57 = vsub.f32 %v396_v3, %v765_v5  ;;  %v2904_v26 = vand.u32 4294901760, %v398_v38 }
  0x3c   : > { %19798 = vst [vmem:[#allocation80_spill] sm:$0xff] %v12376_v54  ;;  %19799 = vst [vmem:[#allocation81_spill] sm:$0xff] %v12378_v22  ;;  %v412_v22 = vld [vmem:[%s18494_s2 + $0x408] sm:$0xff]  ;;  %9474 = vmatpush1.bf16.msra.mxu0 %v12376_v54  ;;  %v12412_v49 = vsub.f32 %v404_v2, %v769_v14  ;;  %10050 = vmatpush1.bf16.msra.mxu1 %v12391_v60  ;;  %v2910_v20 = vand.u32 4294901760, %v405_v21  ;;  %v777_v54 = vand.u32 4294901760, %v420_v11  ;;  %v414_v3 = vld [vmem:[%s18494_s2 + $0x418] sm:$0xff] }
  0x3d   : > { %19800 = vst [vmem:[#allocation82_spill] sm:$0xff] %v12389_v28  ;;  %19801 = vst [vmem:[#allocation83_spill] sm:$0xff] %v12391_v60  ;;  %9476 = vmatprep.subr.bf16.mxu0 %v12408_v15  ;;  %v12416_v28 = vsub.f32 %v398_v38, %v2904_v26  ;;  %v773_v24 = vand.u32 4294901760, %v412_v22  ;;  %v422_v14 = vld [vmem:[%s18494_s2 + $0x458] sm:$0xff]  ;;  %v12424_v5 = vpack.c.bf16 %v2908_v36, %v2904_v26  ;;  %v411_v38 = vld [vmem:[%s18494_s2 + $0x400] sm:$0xff] }
  0x3e   : > { %19802 = vst [vmem:[#allocation84_spill] sm:$0xff] %v12393_v19  ;;  %19803 = vst [vmem:[#allocation85_spill] sm:$0xff] %v12395_v53  ;;  %v771_v53 = vand.u32 4294901760, %v403_v9  ;;  %v2906_v19 = vand.u32 4294901760, %v397_v47  ;;  %v12426_v2 = vsub.f32 %v406_v45, %v2908_v36 }
  0x3f   : > { %19804 = vst [vmem:[#allocation86_spill] sm:$0xff] %v12408_v15  ;;  %19805 = vst [vmem:[#allocation87_spill] sm:$0xff] %v12410_v57  ;;  %v12430_v15 = vsub.f32 %v395_v35, %v767_v42  ;;  %v12447_v35 = vsub.f32 %v405_v21, %v2910_v20  ;;  %10052 = vmatprep.subr.bf16.mxu1 %v12424_v5  ;;  %v775_v21 = vand.u32 4294901760, %v411_v38 }
  0x40   : > { %19806 = vst [vmem:[#allocation88_spill] sm:$0xff] %v12412_v49  ;;  %19807 = vst [vmem:[#allocation89_spill] sm:$0xff] %v12416_v28  ;;  %v12428_v60 = vpack.c.bf16 %v771_v53, %v767_v42  ;;  %v419_v28 = vld [vmem:[%s18494_s2 + $0x440] sm:$0xff]  ;;  %v413_v49 = vld [vmem:[%s18494_s2 + $0x410] sm:$0xff]  ;;  %v12441_v26 = vsub.f32 %v403_v9, %v771_v53  ;;  %v12443_v45 = vpack.c.bf16 %v2910_v20, %v2906_v19  ;;  %v2916_v53 = vand.u32 4294901760, %v422_v14 }
  0x41   : > { %19808 = vst [vmem:[#allocation90_spill] sm:$0xff] %v12424_v5  ;;  %19809 = vst [vmem:[#allocation91_spill] sm:$0xff] %v12426_v2  ;;  %v12445_v36 = vsub.f32 %v397_v47, %v2906_v19  ;;  %v421_v42 = vld [vmem:[%s18494_s2 + $0x450] sm:$0xff]  ;;  %v436_v2 = vld [vmem:[%s18494_s2 + $0x4c8] sm:$0xff]  ;;  %v12460_v9 = vpack.c.bf16 %v777_v54, %v773_v24  ;;  %v12462_v47 = vsub.f32 %v412_v22, %v773_v24  ;;  %v2912_v19 = vand.u32 4294901760, %v414_v3 }
  0x42   : > { %19810 = vst [vmem:[#allocation92_spill] sm:$0xff] %v12428_v60  ;;  %19811 = vst [vmem:[#allocation93_spill] sm:$0xff] %v12430_v15  ;;  %v428_v15 = vld [vmem:[%s18494_s2 + $0x488] sm:$0xff]  ;;  %9478 = vmatpush1.bf16.msra.mxu0 %v12428_v60  ;;  %v12464_v20 = vsub.f32 %v420_v11, %v777_v54  ;;  %10054 = vmatpush1.bf16.msra.mxu1 %v12443_v45  ;;  %v2918_v5 = vand.u32 4294901760, %v421_v42  ;;  %v785_v60 = vand.u32 4294901760, %v436_v2  ;;  %v430_v22 = vld [vmem:[%s18494_s2 + $0x498] sm:$0xff] }
  0x43   : > { %19812 = vst [vmem:[#allocation94_spill] sm:$0xff] %v12441_v26  ;;  %19813 = vst [vmem:[#allocation95_spill] sm:$0xff] %v12443_v45  ;;  %9480 = vmatprep.subr.bf16.mxu0 %v12460_v9  ;;  %v12468_v26 = vsub.f32 %v414_v3, %v2912_v19  ;;  %v781_v57 = vand.u32 4294901760, %v428_v15  ;;  %v438_v54 = vld [vmem:[%s18494_s2 + $0x4d8] sm:$0xff]  ;;  %v12476_v24 = vpack.c.bf16 %v2916_v53, %v2912_v19  ;;  %v427_v3 = vld [vmem:[%s18494_s2 + $0x480] sm:$0xff] }
  0x44   : > { %19814 = vst [vmem:[#allocation96_spill] sm:$0xff] %v12445_v36  ;;  %19815 = vst [vmem:[#allocation97_spill] sm:$0xff] %v12447_v35  ;;  %v779_v35 = vand.u32 4294901760, %v419_v28  ;;  %v2914_v36 = vand.u32 4294901760, %v413_v49  ;;  %v12478_v11 = vsub.f32 %v422_v14, %v2916_v53 }
  0x45   : > { %19816 = vst [vmem:[#allocation98_spill] sm:$0xff] %v12460_v9  ;;  %19817 = vst [vmem:[#allocation99_spill] sm:$0xff] %v12462_v47  ;;  %v12482_v9 = vsub.f32 %v411_v38, %v775_v21  ;;  %v12499_v38 = vsub.f32 %v421_v42, %v2918_v5  ;;  %10056 = vmatprep.subr.bf16.mxu1 %v12476_v24  ;;  %v783_v42 = vand.u32 4294901760, %v427_v3 }
  0x46   : > { %19818 = vst [vmem:[#allocation100_spill] sm:$0xff] %v12464_v20  ;;  %19819 = vst [vmem:[#allocation101_spill] sm:$0xff] %v12468_v26  ;;  %v12480_v45 = vpack.c.bf16 %v779_v35, %v775_v21  ;;  %v435_v26 = vld [vmem:[%s18494_s2 + $0x4c0] sm:$0xff]  ;;  %v429_v20 = vld [vmem:[%s18494_s2 + $0x490] sm:$0xff]  ;;  %v12493_v19 = vsub.f32 %v419_v28, %v779_v35  ;;  %v12495_v14 = vpack.c.bf16 %v2918_v5, %v2914_v36  ;;  %v2924_v35 = vand.u32 4294901760, %v438_v54 }
  0x47   : > { %19820 = vst [vmem:[#allocation102_spill] sm:$0xff] %v12476_v24  ;;  %19821 = vst [vmem:[#allocation103_spill] sm:$0xff] %v12478_v11  ;;  %v12497_v53 = vsub.f32 %v413_v49, %v2914_v36  ;;  %v437_v21 = vld [vmem:[%s18494_s2 + $0x4d0] sm:$0xff]  ;;  %v452_v11 = vld [vmem:[%s18494_s2 + $0x548] sm:$0xff]  ;;  %v12512_v28 = vpack.c.bf16 %v785_v60, %v781_v57  ;;  %v12514_v49 = vsub.f32 %v428_v15, %v781_v57  ;;  %v2920_v36 = vand.u32 4294901760, %v430_v22 }
  0x48   : > { %19822 = vst [vmem:[#allocation104_spill] sm:$0xff] %v12480_v45  ;;  %19823 = vst [vmem:[#allocation105_spill] sm:$0xff] %v12482_v9  ;;  %v444_v9 = vld [vmem:[%s18494_s2 + $0x508] sm:$0xff]  ;;  %9482 = vmatpush1.bf16.msra.mxu0 %v12480_v45  ;;  %v12516_v5 = vsub.f32 %v436_v2, %v785_v60  ;;  %10058 = vmatpush1.bf16.msra.mxu1 %v12495_v14  ;;  %v2926_v24 = vand.u32 4294901760, %v437_v21  ;;  %v793_v45 = vand.u32 4294901760, %v452_v11  ;;  %v446_v15 = vld [vmem:[%s18494_s2 + $0x518] sm:$0xff] }
  0x49   : > { %19824 = vst [vmem:[#allocation106_spill] sm:$0xff] %v12493_v19  ;;  %19825 = vst [vmem:[#allocation107_spill] sm:$0xff] %v12495_v14  ;;  %9484 = vmatprep.subr.bf16.mxu0 %v12512_v28  ;;  %v12520_v19 = vsub.f32 %v430_v22, %v2920_v36  ;;  %v789_v47 = vand.u32 4294901760, %v444_v9  ;;  %v454_v60 = vld [vmem:[%s18494_s2 + $0x558] sm:$0xff]  ;;  %v12528_v57 = vpack.c.bf16 %v2924_v35, %v2920_v36  ;;  %v443_v22 = vld [vmem:[%s18494_s2 + $0x500] sm:$0xff] }
  0x4a   : > { %19826 = vst [vmem:[#allocation108_spill] sm:$0xff] %v12497_v53  ;;  %19827 = vst [vmem:[#allocation109_spill] sm:$0xff] %v12499_v38  ;;  %v787_v38 = vand.u32 4294901760, %v435_v26  ;;  %v2922_v53 = vand.u32 4294901760, %v429_v20  ;;  %v12530_v2 = vsub.f32 %v438_v54, %v2924_v35 }
  0x4b   : > { %19828 = vst [vmem:[#allocation110_spill] sm:$0xff] %v12512_v28  ;;  %19829 = vst [vmem:[#allocation111_spill] sm:$0xff] %v12514_v49  ;;  %v12534_v28 = vsub.f32 %v427_v3, %v783_v42  ;;  %v12551_v3 = vsub.f32 %v437_v21, %v2926_v24  ;;  %10060 = vmatprep.subr.bf16.mxu1 %v12528_v57  ;;  %v791_v21 = vand.u32 4294901760, %v443_v22 }
  0x4c   : > { %19830 = vst [vmem:[#allocation112_spill] sm:$0xff] %v12516_v5  ;;  %19831 = vst [vmem:[#allocation113_spill] sm:$0xff] %v12520_v19  ;;  %v12532_v14 = vpack.c.bf16 %v787_v38, %v783_v42  ;;  %v451_v19 = vld [vmem:[%s18494_s2 + $0x540] sm:$0xff]  ;;  %v445_v5 = vld [vmem:[%s18494_s2 + $0x510] sm:$0xff]  ;;  %v12545_v36 = vsub.f32 %v435_v26, %v787_v38  ;;  %v12547_v54 = vpack.c.bf16 %v2926_v24, %v2922_v53  ;;  %v2932_v38 = vand.u32 4294901760, %v454_v60 }
  0x4d   : > { %19832 = vst [vmem:[#allocation114_spill] sm:$0xff] %v12528_v57  ;;  %19833 = vst [vmem:[#allocation115_spill] sm:$0xff] %v12530_v2  ;;  %v12549_v35 = vsub.f32 %v429_v20, %v2922_v53  ;;  %v453_v42 = vld [vmem:[%s18494_s2 + $0x550] sm:$0xff]  ;;  %v468_v2 = vld [vmem:[%s18494_s2 + $0x5c8] sm:$0xff]  ;;  %v12564_v26 = vpack.c.bf16 %v793_v45, %v789_v47  ;;  %v12566_v20 = vsub.f32 %v444_v9, %v789_v47  ;;  %v2928_v53 = vand.u32 4294901760, %v446_v15 }
  0x4e   : > { %19834 = vst [vmem:[#allocation116_spill] sm:$0xff] %v12532_v14  ;;  %19835 = vst [vmem:[#allocation117_spill] sm:$0xff] %v12534_v28  ;;  %v460_v28 = vld [vmem:[%s18494_s2 + $0x588] sm:$0xff]  ;;  %9486 = vmatpush1.bf16.msra.mxu0 %v12532_v14  ;;  %v12568_v24 = vsub.f32 %v452_v11, %v793_v45  ;;  %10062 = vmatpush1.bf16.msra.mxu1 %v12547_v54  ;;  %v2934_v57 = vand.u32 4294901760, %v453_v42  ;;  %v801_v49 = vand.u32 4294901760, %v468_v2  ;;  %v462_v9 = vld [vmem:[%s18494_s2 + $0x598] sm:$0xff] }
  0x4f   : > { %19836 = vst [vmem:[#allocation118_spill] sm:$0xff] %v12545_v36  ;;  %19837 = vst [vmem:[#allocation119_spill] sm:$0xff] %v12547_v54  ;;  %9488 = vmatprep.subr.bf16.mxu0 %v12564_v26  ;;  %v12572_v36 = vsub.f32 %v446_v15, %v2928_v53  ;;  %v797_v14 = vand.u32 4294901760, %v460_v28  ;;  %v470_v45 = vld [vmem:[%s18494_s2 + $0x5d8] sm:$0xff]  ;;  %v12581_v47 = vpack.c.bf16 %v2932_v38, %v2928_v53  ;;  %v461_v53 = vld [vmem:[%s18494_s2 + $0x590] sm:$0xff] }
  0x50   : > { %19838 = vst [vmem:[#allocation120_spill] sm:$0xff] %v12549_v35  ;;  %19839 = vst [vmem:[#allocation121_spill] sm:$0xff] %v12551_v3  ;;  %v795_v3 = vand.u32 4294901760, %v451_v19  ;;  %v2930_v35 = vand.u32 4294901760, %v445_v5  ;;  %v12583_v11 = vsub.f32 %v454_v60, %v2932_v38  ;;  %v12587_v15 = vsub.f32 %v443_v22, %v791_v21 }
  0x51   : > { %19840 = vst [vmem:[#allocation122_spill] sm:$0xff] %v12564_v26  ;;  %19841 = vst [vmem:[#allocation123_spill] sm:$0xff] %v12566_v20  ;;  %v459_v26 = vld [vmem:[%s18494_s2 + $0x580] sm:$0xff]  ;;  %v12604_v22 = vsub.f32 %v453_v42, %v2934_v57  ;;  %10064 = vmatprep.subr.bf16.mxu1 %v12581_v47  ;;  %v2940_v42 = vand.u32 4294901760, %v470_v45 }
  0x52   : > { %19842 = vst [vmem:[#allocation124_spill] sm:$0xff] %v12568_v24  ;;  %19843 = vst [vmem:[#allocation125_spill] sm:$0xff] %v12572_v36  ;;  %v12585_v54 = vpack.c.bf16 %v795_v3, %v791_v21  ;;  %v467_v36 = vld [vmem:[%s18494_s2 + $0x5c0] sm:$0xff]  ;;  %v12598_v24 = vsub.f32 %v451_v19, %v795_v3  ;;  %v12600_v60 = vpack.c.bf16 %v2934_v57, %v2930_v35  ;;  %v469_v21 = vld [vmem:[%s18494_s2 + $0x5d0] sm:$0xff]  ;;  %v2936_v3 = vand.u32 4294901760, %v462_v9 }
  0x53   : > { %19844 = vst [vmem:[#allocation126_spill] sm:$0xff] %v12581_v47  ;;  %19845 = vst [vmem:[#allocation127_spill] sm:$0xff] %v12583_v11  ;;  %v12602_v38 = vsub.f32 %v445_v5, %v2930_v35  ;;  %v484_v19 = vld [vmem:[%s18494_s2 + $0x648] sm:$0xff]  ;;  %v12618_v5 = vpack.c.bf16 %v801_v49, %v797_v14  ;;  %v12620_v57 = vsub.f32 %v460_v28, %v797_v14  ;;  %v2942_v14 = vand.u32 4294901760, %v469_v21 }
  0x54   : > { %19846 = vst [vmem:[#allocation128_spill] sm:$0xff] %v12585_v54  ;;  %19847 = vst [vmem:[#allocation129_spill] sm:$0xff] %v12587_v15  ;;  %v476_v15 = vld [vmem:[%s18494_s2 + $0x608] sm:$0xff]  ;;  %9490 = vmatpush1.bf16.msra.mxu0 %v12585_v54  ;;  %v12622_v35 = vsub.f32 %v468_v2, %v801_v49  ;;  %10066 = vmatpush1.bf16.msra.mxu1 %v12600_v60  ;;  %v12632_v54 = vsub.f32 %v462_v9, %v2936_v3  ;;  %v809_v49 = vand.u32 4294901760, %v484_v19  ;;  %v478_v2 = vld [vmem:[%s18494_s2 + $0x618] sm:$0xff] }
  0x55   : > { %19848 = vst [vmem:[#allocation130_spill] sm:$0xff] %v12598_v24  ;;  %19849 = vst [vmem:[#allocation131_spill] sm:$0xff] %v12600_v60  ;;  %v2938_v24 = vand.u32 4294901760, %v461_v53  ;;  %9492 = vmatprep.subr.bf16.mxu0 %v12618_v5  ;;  %v805_v28 = vand.u32 4294901760, %v476_v15  ;;  %v486_v60 = vld [vmem:[%s18494_s2 + $0x658] sm:$0xff]  ;;  %v12646_v9 = vpack.c.bf16 %v2940_v42, %v2936_v3  ;;  %v477_v3 = vld [vmem:[%s18494_s2 + $0x610] sm:$0xff] }
  0x56   : > { %19850 = vst [vmem:[#allocation132_spill] sm:$0xff] %v12602_v38  ;;  %19851 = vst [vmem:[#allocation133_spill] sm:$0xff] %v12604_v22  ;;  %v799_v22 = vand.u32 4294901760, %v459_v26  ;;  %v803_v38 = vand.u32 4294901760, %v467_v36 }
  0x57   : > { %19852 = vst [vmem:[#allocation134_spill] sm:$0xff] %v12618_v5  ;;  %19853 = vst [vmem:[#allocation135_spill] sm:$0xff] %v12620_v57  ;;  %v12648_v5 = vsub.f32 %v470_v45, %v2940_v42  ;;  %v483_v57 = vld [vmem:[%s18494_s2 + $0x640] sm:$0xff]  ;;  %v12665_v45 = vpack.c.bf16 %v2942_v14, %v2938_v24  ;;  %v12667_v42 = vsub.f32 %v461_v53, %v2938_v24  ;;  %10068 = vmatprep.subr.bf16.mxu1 %v12646_v9 }
  0x58   : > { %19854 = vst [vmem:[#allocation136_spill] sm:$0xff] %v12622_v35  ;;  %19855 = vst [vmem:[#allocation137_spill] sm:$0xff] %v12632_v54  ;;  %v12650_v47 = vpack.c.bf16 %v803_v38, %v799_v22  ;;  %v12652_v54 = vsub.f32 %v459_v26, %v799_v22  ;;  %v475_v35 = vld [vmem:[%s18494_s2 + $0x600] sm:$0xff]  ;;  %v12663_v11 = vsub.f32 %v467_v36, %v803_v38  ;;  %v485_v22 = vld [vmem:[%s18494_s2 + $0x650] sm:$0xff] }
  0x59   : > { %19857 = vst [vmem:[#allocation138_spill] sm:$0xff] %v12646_v9  ;;  %19858 = vst [vmem:[#allocation139_spill] sm:$0xff] %v12648_v5  ;;  %v12669_v26 = vsub.f32 %v469_v21, %v2942_v14  ;;  %v500_v36 = vld [vmem:[%s18494_s2 + $0x6c8] sm:$0xff]  ;;  %v12687_v24 = vpack.c.bf16 %v809_v49, %v805_v28  ;;  %v12689_v53 = vsub.f32 %v476_v15, %v805_v28  ;;  %v2944_v21 = vand.u32 4294901760, %v478_v2 }
  0x5a   : > { %19859 = vst [vmem:[#allocation140_spill] sm:$0xff] %v12650_v47  ;;  %19860 = vst [vmem:[#allocation141_spill] sm:$0xff] %v12652_v54  ;;  %v492_v54 = vld [vmem:[%s18494_s2 + $0x688] sm:$0xff]  ;;  %9494 = vmatpush1.bf16.msra.mxu0 %v12650_v47  ;;  %v12691_v38 = vsub.f32 %v484_v19, %v809_v49  ;;  %10070 = vmatpush1.bf16.msra.mxu1 %v12665_v45  ;;  %v2948_v14 = vand.u32 4294901760, %v486_v60  ;;  %v2950_v15 = vand.u32 4294901760, %v485_v22  ;;  %v817_v19 = vand.u32 4294901760, %v500_v36 }
  0x5b   : > { %19861 = vst [vmem:[#allocation142_spill] sm:$0xff] %v12663_v11  ;;  %19862 = vst [vmem:[#allocation143_spill] sm:$0xff] %v12665_v45  ;;  %v2946_v11 = vand.u32 4294901760, %v477_v3  ;;  %9496 = vmatprep.subr.bf16.mxu0 %v12687_v24  ;;  %v12702_v47 = vsub.f32 %v478_v2, %v2944_v21  ;;  %v813_v28 = vand.u32 4294901760, %v492_v54  ;;  %v494_v49 = vld [vmem:[%s18494_s2 + $0x698] sm:$0xff]  ;;  %v491_v2 = vld [vmem:[%s18494_s2 + $0x680] sm:$0xff] }
  0x5c   : > { %19863 = vst [vmem:[#allocation144_spill] sm:$0xff] %v12667_v42  ;;  %19864 = vst [vmem:[#allocation145_spill] sm:$0xff] %v12669_v26  ;;  %v807_v26 = vand.u32 4294901760, %v475_v35  ;;  %v811_v42 = vand.u32 4294901760, %v483_v57  ;;  %v502_v45 = vld [vmem:[%s18494_s2 + $0x6d8] sm:$0xff]  ;;  %v12710_v9 = vpack.c.bf16 %v2948_v14, %v2944_v21  ;;  %v516_v5 = vld [vmem:[%s18494_s2 + $0x748] sm:$0xff] }
  0x5d   : > { %19865 = vst [vmem:[#allocation146_spill] sm:$0xff] %v12687_v24  ;;  %19866 = vst [vmem:[#allocation147_spill] sm:$0xff] %v12689_v53 }
  0x5e   : > { %19867 = vst [vmem:[#allocation148_spill] sm:$0xff] %v12691_v38  ;;  %19868 = vst [vmem:[#allocation149_spill] sm:$0xff] %v12702_v47  ;;  %v12712_v38 = vsub.f32 %v486_v60, %v2948_v14  ;;  %v12714_v53 = vpack.c.bf16 %v811_v42, %v807_v26  ;;  %v12716_v24 = vsub.f32 %v475_v35, %v807_v26  ;;  %v499_v47 = vld [vmem:[%s18494_s2 + $0x6c0] sm:$0xff]  ;;  %v493_v60 = vld [vmem:[%s18494_s2 + $0x690] sm:$0xff]  ;;  %10072 = vmatprep.subr.bf16.mxu1 %v12710_v9 }
  0x5f   : > { %19869 = vst [vmem:[#allocation150_spill] sm:$0xff] %v12710_v9  ;;  %v12727_v21 = vsub.f32 %v483_v57, %v811_v42  ;;  %v12729_v35 = vpack.c.bf16 %v2950_v15, %v2946_v11  ;;  %v12731_v26 = vsub.f32 %v477_v3, %v2946_v11  ;;  %v12733_v14 = vsub.f32 %v485_v22, %v2950_v15 }
  0x60   : > { %19870 = vst [vmem:[#allocation151_spill] sm:$0xff] %v12712_v38  ;;  %19871 = vst [vmem:[#allocation152_spill] sm:$0xff] %v12714_v53  ;;  %v508_v38 = vld [vmem:[%s18494_s2 + $0x708] sm:$0xff]  ;;  %9498 = vmatpush1.bf16.msra.mxu0 %v12714_v53  ;;  %v12746_v11 = vpack.c.bf16 %v817_v19, %v813_v28  ;;  %v12748_v57 = vsub.f32 %v492_v54, %v813_v28  ;;  %v12750_v3 = vsub.f32 %v500_v36, %v817_v19 }
  0x61   : > { %19872 = vst [vmem:[#allocation153_spill] sm:$0xff] %v12716_v24  ;;  %19873 = vst [vmem:[#allocation154_spill] sm:$0xff] %v12727_v21  ;;  %v501_v24 = vld [vmem:[%s18494_s2 + $0x6d0] sm:$0xff]  ;;  %v2952_v42 = vand.u32 4294901760, %v494_v49  ;;  %10074 = vmatpush1.bf16.msra.mxu1 %v12729_v35  ;;  %v2956_v22 = vand.u32 4294901760, %v502_v45  ;;  %v815_v15 = vand.u32 4294901760, %v491_v2 }
  0x62   : > { %19874 = vst [vmem:[#allocation155_spill] sm:$0xff] %v12729_v35  ;;  %19875 = vst [vmem:[#allocation156_spill] sm:$0xff] %v12731_v26  ;;  %v819_v9 = vand.u32 4294901760, %v499_v47  ;;  %v2954_v53 = vand.u32 4294901760, %v493_v60  ;;  %9500 = vmatprep.subr.bf16.mxu0 %v12746_v11  ;;  %v2958_v36 = vand.u32 4294901760, %v501_v24  ;;  %v821_v28 = vand.u32 4294901760, %v508_v38 }
  0x63   : > { %19876 = vst [vmem:[#allocation157_spill] sm:$0xff] %v12733_v14  ;;  %19877 = vst [vmem:[#allocation158_spill] sm:$0xff] %v12746_v11  ;;  %v12764_v54 = vsub.f32 %v494_v49, %v2952_v42  ;;  %v825_v19 = vand.u32 4294901760, %v516_v5  ;;  %v518_v35 = vld [vmem:[%s18494_s2 + $0x758] sm:$0xff]  ;;  %v12774_v14 = vsub.f32 %v502_v45, %v2956_v22  ;;  %v12778_v11 = vsub.f32 %v491_v2, %v815_v15  ;;  %v507_v49 = vld [vmem:[%s18494_s2 + $0x700] sm:$0xff] }
  0x64   : > { %19878 = vst [vmem:[#allocation159_spill] sm:$0xff] %v12748_v57  ;;  %19879 = vst [vmem:[#allocation160_spill] sm:$0xff] %v12750_v3  ;;  %v510_v3 = vld [vmem:[%s18494_s2 + $0x718] sm:$0xff]  ;;  %v12772_v57 = vpack.c.bf16 %v2956_v22, %v2952_v42  ;;  %v12776_v26 = vpack.c.bf16 %v819_v9, %v815_v15  ;;  %v509_v21 = vld [vmem:[%s18494_s2 + $0x710] sm:$0xff]  ;;  %v12791_v45 = vsub.f32 %v499_v47, %v819_v9 }
  0x65   : > { %19880 = vst [vmem:[#allocation161_spill] sm:$0xff] %v12764_v54  ;;  %19882 = vst [vmem:[#allocation163_spill] sm:$0xff] %v12774_v14  ;;  %v515_v54 = vld [vmem:[%s18494_s2 + $0x740] sm:$0xff]  ;;  %v12793_v42 = vpack.c.bf16 %v2958_v36, %v2954_v53  ;;  %v12795_v2 = vsub.f32 %v493_v60, %v2954_v53  ;;  %v12797_v22 = vsub.f32 %v501_v24, %v2958_v36  ;;  %v517_v15 = vld [vmem:[%s18494_s2 + $0x750] sm:$0xff]  ;;  %v2960_v53 = vand.u32 4294901760, %v510_v3 }
  0x66   : > { %19881 = vst [vmem:[#allocation162_spill] sm:$0xff] %v12772_v57  ;;  %19883 = vst [vmem:[#allocation164_spill] sm:$0xff] %v12776_v26  ;;  %v532_v14 = vld [vmem:[%s18494_s2 + $0x7c8] sm:$0xff]  ;;  %10076 = vmatprep.subr.bf16.mxu1 %v12772_v57  ;;  %9502 = vmatpush1.bf16.msra.mxu0 %v12776_v26  ;;  %v12810_v47 = vpack.c.bf16 %v825_v19, %v821_v28  ;;  %v12812_v9 = vsub.f32 %v508_v38, %v821_v28  ;;  %v2964_v60 = vand.u32 4294901760, %v518_v35  ;;  %v534_v26 = vld [vmem:[%s18494_s2 + $0x7d8] sm:$0xff] }
  0x67   : > { %19884 = vst [vmem:[#allocation165_spill] sm:$0xff] %v12778_v11  ;;  %19885 = vst [vmem:[#allocation166_spill] sm:$0xff] %v12791_v45  ;;  %v524_v11 = vld [vmem:[%s18494_s2 + $0x788] sm:$0xff]  ;;  %v12814_v24 = vsub.f32 %v516_v5, %v825_v19  ;;  %10078 = vmatpush1.bf16.msra.mxu1 %v12793_v42  ;;  %v823_v36 = vand.u32 4294901760, %v507_v49  ;;  %v12828_v5 = vsub.f32 %v510_v3, %v2960_v53  ;;  %v2966_v38 = vand.u32 4294901760, %v517_v15  ;;  %v525_v45 = vld [vmem:[%s18494_s2 + $0x790] sm:$0xff] }
  0x68   : > { %19886 = vst [vmem:[#allocation167_spill] sm:$0xff] %v12793_v42  ;;  %19887 = vst [vmem:[#allocation168_spill] sm:$0xff] %v12795_v2  ;;  %v2962_v2 = vand.u32 4294901760, %v509_v21  ;;  %9504 = vmatprep.subr.bf16.mxu0 %v12810_v47  ;;  %v829_v28 = vand.u32 4294901760, %v524_v11  ;;  %v833_v19 = vand.u32 4294901760, %v532_v14  ;;  %v526_v42 = vld [vmem:[%s18494_s2 + $0x798] sm:$0xff]  ;;  %v12836_v57 = vpack.c.bf16 %v2964_v60, %v2960_v53 }
  0x69   : > { %19888 = vst [vmem:[#allocation169_spill] sm:$0xff] %v12797_v22  ;;  %19889 = vst [vmem:[#allocation170_spill] sm:$0xff] %v12810_v47  ;;  %v827_v22 = vand.u32 4294901760, %v515_v54  ;;  %v12842_v3 = vsub.f32 %v507_v49, %v823_v36  ;;  %v12859_v49 = vsub.f32 %v517_v15, %v2966_v38 }
  0x6a   : > { %19890 = vst [vmem:[#allocation171_spill] sm:$0xff] %v12812_v9  ;;  %19891 = vst [vmem:[#allocation172_spill] sm:$0xff] %v12814_v24  ;;  %v12838_v24 = vsub.f32 %v518_v35, %v2964_v60  ;;  %v531_v9 = vld [vmem:[%s18494_s2 + $0x7c0] sm:$0xff]  ;;  %v12855_v35 = vpack.c.bf16 %v2966_v38, %v2962_v2  ;;  %v12857_v60 = vsub.f32 %v509_v21, %v2962_v2  ;;  %10080 = vmatprep.subr.bf16.mxu1 %v12836_v57 }
  0x6b   : > { %19892 = vst [vmem:[#allocation173_spill] sm:$0xff] %v12828_v5  ;;  %19893 = vst [vmem:[#allocation174_spill] sm:$0xff] %v12836_v57  ;;  %v12840_v47 = vpack.c.bf16 %v827_v22, %v823_v36  ;;  %v523_v5 = vld [vmem:[%s18494_s2 + $0x780] sm:$0xff]  ;;  %v12853_v53 = vsub.f32 %v515_v54, %v827_v22  ;;  %v533_v36 = vld [vmem:[%s18494_s2 + $0x7d0] sm:$0xff]  ;;  %v12868_v20 = vpack.c.bf16 %v833_v19, %v829_v28  ;;  %v2968_v21 = vand.u32 4294901760, %v526_v42 }
  0x6c   : > { %19894 = vst [vmem:[#allocation175_spill] sm:$0xff] %v12838_v24  ;;  %19896 = vst [vmem:[#allocation177_spill] sm:$0xff] %v12842_v3  ;;  %v269_v3 = vld [vmem:[%s12820_s6] sm:$0xff]  ;;  %v12870_v54 = vsub.f32 %v524_v11, %v829_v28  ;;  %v12872_v22 = vsub.f32 %v532_v14, %v833_v19  ;;  %10082 = vmatpush1.bf16.msra.mxu1 %v12855_v35  ;;  %v2972_v2 = vand.u32 4294901760, %v534_v26  ;;  %v831_v15 = vand.u32 4294901760, %v523_v5 }
  0x6d   : > { %19895 = vst [vmem:[#allocation176_spill] sm:$0xff] %v12840_v47  ;;  %19897 = vst [vmem:[#allocation178_spill] sm:$0xff] %v12853_v53  ;;  %v270_v24 = vld [vmem:[%s12825_s8] sm:$0xff]  ;;  %9506 = vmatpush1.bf16.msra.mxu0 %v12840_v47  ;;  %v835_v38 = vand.u32 4294901760, %v531_v9  ;;  %v2974_v57 = vand.u32 4294901760, %v533_v36  ;;  %v274_v53 = vrot.slane %v269_v3, 1 }
  0x6e   : > { %19898 = vst [vmem:[#allocation179_spill] sm:$0xff] %v12855_v35  ;;  %19899 = vst [vmem:[#allocation180_spill] sm:$0xff] %v12857_v60  ;;  %9508 = vmatprep.subr.bf16.mxu0 %v12868_v20  ;;  %v12876_v60 = vsub.f32 %v526_v42, %v2968_v21  ;;  %v275_v47 = vrot.slane %v270_v24, 1  ;;  %v12878_v1 = vpack.c.bf16 %v2972_v2, %v2968_v21  ;;  %v18703_v24 = vand.u32 4294901760, %v12044_v16 }
  0x6f   : > { %19900 = vst [vmem:[#allocation181_spill] sm:$0xff] %v12859_v49  ;;  %19901 = vst [vmem:[#allocation182_spill] sm:$0xff] %v12868_v20  ;;  %v2970_v49 = vand.u32 4294901760, %v525_v45  ;;  %v12880_v11 = vsub.f32 %v534_v26, %v2972_v2  ;;  %v12882_v14 = vpack.c.bf16 %v835_v38, %v831_v15  ;;  %v12884_v28 = vsub.f32 %v523_v5, %v831_v15 }
  0x70   : > { %19902 = vst [vmem:[#allocation183_spill] sm:$0xff] %v12870_v54  ;;  %19903 = vst [vmem:[#allocation184_spill] sm:$0xff] %v12872_v22  ;;  %v12886_v19 = vsub.f32 %v531_v9, %v835_v38  ;;  %v12892_v20 = vsub.f32 %v533_v36, %v2974_v57  ;;  %10084 = vmatprep.subr.bf16.mxu1 %v12878_v1  ;;  %v276_v42 = vsel %vm273_vm0, %v274_v53, %v275_v47 }
  0x71   : > { %19904 = vst [vmem:[#allocation185_spill] sm:$0xff] %v12876_v60  ;;  %19905 = vst [vmem:[#allocation186_spill] sm:$0xff] %v12878_v1  ;;  %v12888_v35 = vpack.c.bf16 %v2974_v57, %v2970_v49  ;;  %v12890_v22 = vsub.f32 %v525_v45, %v2970_v49  ;;  %9510 = vmatpush1.bf16.msra.mxu0 %v12882_v14  ;;  %v12897_v26 = vand.u32 4294901760, %v269_v3  ;;  %v18702_v5 = vand.u32 4294901760, %v12046_v17 }
  0x72   : > { %19906 = vst [vmem:[#allocation187_spill] sm:$0xff] %v12880_v11  ;;  %19907 = vst [vmem:[#allocation188_spill] sm:$0xff] %v12882_v14  ;;  %v12902_v9 = vand.u32 4294901760, %v276_v42  ;;  %v18708_v45 = vand.u32 4294901760, %v12048_v18  ;;  %v18713_v57 = vand.u32 4294901760, %v12061_v23  ;;  %v18716_v49 = vand.u32 4294901760, %v12065_v25 }
  0x73   : > { %19908 = vst [vmem:[#allocation189_spill] sm:$0xff] %v12884_v28  ;;  %19909 = vst [vmem:[#allocation190_spill] sm:$0xff] %v12886_v19  ;;  %10086 = vmatpush1.bf16.msra.mxu1 %v12888_v35  ;;  %v857_v47 = vsub.f32 %v12044_v16, %v18703_v24  ;;  %v869_v53 = vsub.f32 %v12046_v17, %v18702_v5  ;;  %v12914_v36 = vsub.f32 %v269_v3, %v12897_v26 }
  0x74   : > { %19910 = vst [vmem:[#allocation191_spill] sm:$0xff] %v12888_v35  ;;  %19911 = vst [vmem:[#allocation192_spill] sm:$0xff] %v12890_v22  ;;  %v18721_v21 = vand.u32 4294901760, %v12071_v27  ;;  %v12918_v2 = vsub.f32 %v276_v42, %v12902_v9  ;;  %v2996_v15 = vsub.f32 %v12048_v18, %v18708_v45  ;;  %v3008_v38 = vsub.f32 %v12061_v23, %v18713_v57 }
  0x75   : > { %19912 = vst [vmem:[#allocation193_spill] sm:$0xff] %v12892_v20  ;;  %19913 = vst [vmem:[#allocation194_spill] sm:$0xff] %v12897_v26  ;;  %v863_v5 = vsub.f32 %v12065_v25, %v18716_v49  ;;  %v858_v24 = vand.u32 4294901760, %v857_v47  ;;  %v870_v3 = vand.u32 4294901760, %v869_v53  ;;  %v12930_v35 = vand.u32 4294901760, %v12914_v36 }
  0x76   : > { %19914 = vst [vmem:[#allocation195_spill] sm:$0xff] %v12902_v9  ;;  %19915 = vst [vmem:[#allocation196_spill] sm:$0xff] %v12914_v36  ;;  %v875_v42 = vsub.f32 %v12071_v27, %v18721_v21  ;;  %v12936_v14 = vand.u32 4294901760, %v12918_v2  ;;  %v2997_v45 = vand.u32 4294901760, %v2996_v15  ;;  %v3009_v1 = vand.u32 4294901760, %v3008_v38 }
  0x77   : > { %19916 = vst [vmem:[#allocation197_spill] sm:$0xff] %v12918_v2  ;;  %19917 = vst [vmem:[#allocation198_spill] sm:$0xff] %v12930_v35  ;;  %v864_v26 = vand.u32 4294901760, %v863_v5  ;;  %v9511_v57 = vpack.c.bf16 %v870_v3, %v858_v24  ;;  %v846_v23 = vsub.f32 %v12914_v36, %v12930_v35  ;;  %v18725_v47 = vand.u32 4294901760, %v12086_v39 }
  0x78   : > { %19918 = vst [vmem:[#allocation199_spill] sm:$0xff] %v12936_v14  ;;  %v876_v49 = vand.u32 4294901760, %v875_v42  ;;  %v840_v53 = vsub.f32 %v12918_v2, %v12936_v14  ;;  %v10087_v25 = vpack.c.bf16 %v3009_v1, %v2997_v45  ;;  %v18724_v18 = vand.u32 4294901760, %v12088_v40  ;;  %v19924_v14 = vld [vmem:[#allocation64_spill] sm:$0xff] }
  0x79   : > { %v18728_v21 = vand.u32 4294901760, %v12090_v41  ;;  %9512 = vmatprep.subr.bf16.mxu0 %v9511_v57  ;;  %v12945_v27 = vand.u32 4294901760, %v846_v23  ;;  %v3002_v24 = vsub.f32 %v12086_v39, %v18725_v47  ;;  %v18726_v5 = vand.u32 4294901760, %v12103_v46 }
  0x7a   : > { %v9513_v15 = vpack.c.bf16 %v876_v49, %v864_v26  ;;  %v12951_v38 = vand.u32 4294901760, %v840_v53  ;;  %10088 = vmatprep.subr.bf16.mxu1 %v10087_v25  ;;  %v3014_v1 = vsub.f32 %v12088_v40, %v18724_v18  ;;  %v18727_v23 = vand.u32 4294901760, %v12107_v48 }
  0x7b   : > { %19919 = vst [vmem:[#allocation200_spill] sm:$0xff] %v12945_v27  ;;  %v881_v45 = vsub.f32 %v12090_v41, %v18728_v21  ;;  %v3003_v26 = vand.u32 4294901760, %v3002_v24  ;;  %v893_v57 = vsub.f32 %v12103_v46, %v18726_v5  ;;  %v18733_v49 = vand.u32 4294901760, %v12113_v50 }
  0x7c   : > { %19920 = vst [vmem:[#allocation201_spill] sm:$0xff] %v12951_v38  ;;  %v18734_v3 = vand.u32 4294901760, %v12115_v52  ;;  %842 = vmatprep.mubr.f32.mxu0 %v12951_v38  ;;  %2981 = vmatprep.mubr.f32.mxu1 %v12951_v38  ;;  %v3015_v25 = vand.u32 4294901760, %v3014_v1  ;;  %v3020_v53 = vsub.f32 %v12107_v48, %v18727_v23  ;;  %v18736_v24 = vand.u32 4294901760, %v12127_v61 }
  0x7d   : > { %v882_v42 = vand.u32 4294901760, %v881_v45  ;;  %848 = vmatmul.mubr.f32.vlgmr.msra.gmra.mrb[0].mxu0 %v12945_v27  ;;  %2987 = vmatmul.mubr.f32.vlgmr.msra.gmra.mrb[0].mxu1 %v12945_v27  ;;  %v894_v18 = vand.u32 4294901760, %v893_v57  ;;  %v3032_v47 = vsub.f32 %v12113_v50, %v18733_v49  ;;  %v18735_v45 = vand.u32 4294901760, %v12129_v62 }
  0x7e   : > { %v887_v1 = vsub.f32 %v12115_v52, %v18734_v3  ;;  %9514 = vmatpush1.bf16.msra.mxu0 %v9513_v15  ;;  %v10089_v5 = vpack.c.bf16 %v3015_v25, %v3003_v26  ;;  %v3021_v23 = vand.u32 4294901760, %v3020_v53  ;;  %v899_v21 = vsub.f32 %v12127_v61, %v18736_v24  ;;  %1239 = vmatprep.mubr.f32.mxu0 %v12902_v9 }
  0x7f   : > { %v18737_v27 = vand.u32 4294901760, %v12142_v4  ;;  %v9515_v57 = vpack.c.bf16 %v894_v18, %v882_v42  ;;  %v3033_v38 = vand.u32 4294901760, %v3032_v47  ;;  %v3026_v3 = vsub.f32 %v12129_v62, %v18735_v45  ;;  %3378 = vmatprep.mubr.f32.mxu1 %v12902_v9 }
  0x80   : > { %v888_v49 = vand.u32 4294901760, %v887_v1  ;;  %10090 = vmatpush1.bf16.msra.mxu1 %v10089_v5  ;;  %v900_v15 = vand.u32 4294901760, %v899_v21  ;;  %v18741_v25 = vand.u32 4294901760, %v12146_v6  ;;  %v18738_v53 = vand.u32 4294901760, %v12158_v10 }
  0x81   : > { %v3038_v26 = vsub.f32 %v12142_v4, %v18737_v27  ;;  %9516 = vmatprep.subr.bf16.mxu0 %v9515_v57  ;;  %v10091_v18 = vpack.c.bf16 %v3033_v38, %v3021_v23  ;;  %v3027_v47 = vand.u32 4294901760, %v3026_v3  ;;  %v18739_v42 = vand.u32 4294901760, %v12162_v12 }
  0x82   : > { %v18740_v1 = vand.u32 4294901760, %v12164_v13  ;;  %v9517_v45 = vpack.c.bf16 %v900_v15, %v888_v49  ;;  %v905_v21 = vsub.f32 %v12146_v6, %v18741_v25  ;;  %v917_v5 = vsub.f32 %v12158_v10, %v18738_v53 }
  0x83   : > { %v3039_v24 = vand.u32 4294901760, %v3038_v26  ;;  %10092 = vmatprep.subr.bf16.mxu1 %v10091_v18  ;;  %v3044_v38 = vsub.f32 %v12162_v12, %v18739_v42  ;;  %v18742_v49 = vand.u32 4294901760, %v12174_v33  ;;  %v18748_v3 = vand.u32 4294901760, %v12176_v34 }
  0x84   : > { %v3056_v23 = vsub.f32 %v12164_v13, %v18740_v1  ;;  %9518 = vmatpush1.bf16.msra.mxu0 %v9517_v45  ;;  %v906_v15 = vand.u32 4294901760, %v905_v21  ;;  %v918_v26 = vand.u32 4294901760, %v917_v5  ;;  %v18743_v27 = vand.u32 4294901760, %v12189_v43 }
  0x85   : > { %v10093_v57 = vpack.c.bf16 %v3039_v24, %v3027_v47  ;;  %v3045_v53 = vand.u32 4294901760, %v3044_v38  ;;  %v911_v42 = vsub.f32 %v12174_v33, %v18742_v49  ;;  %v923_v1 = vsub.f32 %v12176_v34, %v18748_v3 }
  0x86   : > { %v3057_v18 = vand.u32 4294901760, %v3056_v23  ;;  %v9519_v25 = vpack.c.bf16 %v918_v26, %v906_v15  ;;  %v3050_v24 = vsub.f32 %v12189_v43, %v18743_v27  ;;  %v18744_v45 = vand.u32 4294901760, %v12191_v44 }
  0x87   : > { %10094 = vmatpush1.bf16.msra.mxu1 %v10093_v57  ;;  %v18745_v47 = vand.u32 4294901760, %v12195_v51  ;;  %v912_v5 = vand.u32 4294901760, %v911_v42  ;;  %v924_v38 = vand.u32 4294901760, %v923_v1  ;;  %v18747_v23 = vand.u32 4294901760, %v12208_v56 }
  0x88   : > { %v10095_v21 = vpack.c.bf16 %v3057_v18, %v3045_v53  ;;  %9520 = vmatprep.subr.bf16.mxu0 %v9519_v25  ;;  %v3051_v49 = vand.u32 4294901760, %v3050_v24  ;;  %v3062_v57 = vsub.f32 %v12191_v44, %v18744_v45  ;;  %v18746_v26 = vand.u32 4294901760, %v12212_v58 }
  0x89   : > { %v929_v15 = vsub.f32 %v12195_v51, %v18745_v47  ;;  %v9521_v27 = vpack.c.bf16 %v924_v38, %v912_v5  ;;  %v941_v53 = vsub.f32 %v12208_v56, %v18747_v23  ;;  %v18749_v42 = vand.u32 4294901760, %v12215_v63 }
  0x8a   : > { %10096 = vmatprep.subr.bf16.mxu1 %v10095_v21  ;;  %v18753_v25 = vand.u32 4294901760, %v12221_v7  ;;  %v3063_v1 = vand.u32 4294901760, %v3062_v57  ;;  %v3068_v24 = vsub.f32 %v12212_v58, %v18746_v26  ;;  %v18752_v45 = vand.u32 4294901760, %v12234_v29 }
  0x8b   : > { %v930_v18 = vand.u32 4294901760, %v929_v15  ;;  %9522 = vmatpush1.bf16.msra.mxu0 %v9521_v27  ;;  %v942_v47 = vand.u32 4294901760, %v941_v53  ;;  %v3080_v21 = vsub.f32 %v12215_v63, %v18749_v42  ;;  %v18755_v38 = vand.u32 4294901760, %v12238_v31 }
  0x8c   : > { %v935_v5 = vsub.f32 %v12221_v7, %v18753_v25  ;;  %v10097_v57 = vpack.c.bf16 %v3063_v1, %v3051_v49  ;;  %v3069_v15 = vand.u32 4294901760, %v3068_v24  ;;  %v947_v26 = vsub.f32 %v12234_v29, %v18752_v45 }
  0x8d   : > { %v18754_v23 = vand.u32 4294901760, %v12249_v59  ;;  %v9523_v27 = vpack.c.bf16 %v942_v47, %v930_v18  ;;  %v3081_v53 = vand.u32 4294901760, %v3080_v21  ;;  %v3074_v42 = vsub.f32 %v12238_v31, %v18755_v38 }
  0x8e   : > { %v936_v3 = vand.u32 4294901760, %v935_v5  ;;  %10098 = vmatpush1.bf16.msra.mxu1 %v10097_v57  ;;  %v948_v9 = vand.u32 4294901760, %v947_v26  ;;  %v18759_v1 = vand.u32 4294901760, %v12253_v0  ;;  %v18756_v24 = vand.u32 4294901760, %v12255_v37 }
  0x8f   : > { %v3086_v49 = vsub.f32 %v12249_v59, %v18754_v23  ;;  %9524 = vmatprep.subr.bf16.mxu0 %v9523_v27  ;;  %v10099_v45 = vpack.c.bf16 %v3081_v53, %v3069_v15  ;;  %v3075_v25 = vand.u32 4294901760, %v3074_v42  ;;  %v18757_v47 = vand.u32 4294901760, %v12259_v32  ;;  %v19921_v23 = vld [vmem:[#allocation60_spill] sm:$0xff]  ;;  %v19962_v59 = vld [vmem:[#allocation121_spill] sm:$0xff] }
  0x90   : > { %v18758_v18 = vand.u32 4294901760, %v12270_v55  ;;  %v9525_v21 = vpack.c.bf16 %v948_v9, %v936_v3  ;;  %v953_v26 = vsub.f32 %v12253_v0, %v18759_v1  ;;  %v965_v57 = vsub.f32 %v12255_v37, %v18756_v24 }
  0x91   : > { %v3087_v5 = vand.u32 4294901760, %v3086_v49  ;;  %10100 = vmatprep.subr.bf16.mxu1 %v10099_v45  ;;  %v3092_v15 = vsub.f32 %v12259_v32, %v18757_v47  ;;  %v18766_v9 = vand.u32 4294901760, %v12274_v30  ;;  %v18768_v3 = vand.u32 4294901760, %v12285_v8  ;;  %v19960_v32 = vld [vmem:[#allocation118_spill] sm:$0xff] }
  0x92   : > { %v3104_v42 = vsub.f32 %v12270_v55, %v18758_v18  ;;  %9526 = vmatpush1.bf16.msra.mxu0 %v9525_v21  ;;  %v954_v53 = vand.u32 4294901760, %v953_v26  ;;  %v966_v49 = vand.u32 4294901760, %v965_v57  ;;  %v18767_v38 = vand.u32 4294901760, %v19921_v23  ;;  %v19922_v21 = vld [vmem:[#allocation61_spill] sm:$0xff]  ;;  %v19923_v26 = vld [vmem:[#allocation63_spill] sm:$0xff] }
  0x93   : > { %v10101_v27 = vpack.c.bf16 %v3087_v5, %v3075_v25  ;;  %v3093_v24 = vand.u32 4294901760, %v3092_v15  ;;  %v959_v47 = vsub.f32 %v12274_v30, %v18766_v9  ;;  %v971_v18 = vsub.f32 %v12285_v8, %v18768_v3 }
  0x94   : > { %v3105_v45 = vand.u32 4294901760, %v3104_v42  ;;  %v9527_v1 = vpack.c.bf16 %v966_v49, %v954_v53  ;;  %v3098_v25 = vsub.f32 %v19921_v23, %v18767_v38  ;;  %v18770_v5 = vand.u32 4294901760, %v19922_v21  ;;  %v19925_v49 = vld [vmem:[#allocation65_spill] sm:$0xff] }
  0x95   : > { %10102 = vmatpush1.bf16.msra.mxu1 %v10101_v27  ;;  %v18772_v57 = vand.u32 4294901760, %v19923_v26  ;;  %v960_v42 = vand.u32 4294901760, %v959_v47  ;;  %v972_v35 = vand.u32 4294901760, %v971_v18  ;;  %v18774_v36 = vand.u32 4294901760, %v19924_v14  ;;  %v19926_v47 = vld [vmem:[#allocation67_spill] sm:$0xff] }
  0x96   : > { %v10103_v15 = vpack.c.bf16 %v3105_v45, %v3093_v24  ;;  %9528 = vmatprep.subr.bf16.mxu0 %v9527_v1  ;;  %v3099_v9 = vand.u32 4294901760, %v3098_v25  ;;  %v3110_v27 = vsub.f32 %v19922_v21, %v18770_v5  ;;  %v18775_v38 = vand.u32 4294901760, %v19925_v49  ;;  %v19927_v1 = vld [vmem:[#allocation69_spill] sm:$0xff]  ;;  %v19928_v21 = vld [vmem:[#allocation70_spill] sm:$0xff] }
  0x97   : > { %v977_v53 = vsub.f32 %v19923_v26, %v18772_v57  ;;  %v9529_v3 = vpack.c.bf16 %v972_v35, %v960_v42  ;;  %v989_v24 = vsub.f32 %v19924_v14, %v18774_v36  ;;  %v18780_v18 = vand.u32 4294901760, %v19926_v47  ;;  %v19929_v42 = vld [vmem:[#allocation72_spill] sm:$0xff] }
  0x98   : > { %10104 = vmatprep.subr.bf16.mxu1 %v10103_v15  ;;  %v18782_v45 = vand.u32 4294901760, %v19927_v1  ;;  %v3111_v25 = vand.u32 4294901760, %v3110_v27  ;;  %v3116_v5 = vsub.f32 %v19925_v49, %v18775_v38  ;;  %v18784_v57 = vand.u32 4294901760, %v19928_v21  ;;  %v19930_v49 = vld [vmem:[#allocation73_spill] sm:$0xff] }
  0x99   : > { %v978_v23 = vand.u32 4294901760, %v977_v53  ;;  %9530 = vmatpush1.bf16.msra.mxu0 %v9529_v3  ;;  %v990_v26 = vand.u32 4294901760, %v989_v24  ;;  %v3128_v35 = vsub.f32 %v19926_v47, %v18780_v18  ;;  %v18791_v36 = vand.u32 4294901760, %v19929_v42 }
  0x9a   : > { %v983_v15 = vsub.f32 %v19927_v1, %v18782_v45  ;;  %v10105_v27 = vpack.c.bf16 %v3111_v25, %v3099_v9  ;;  %v3117_v53 = vand.u32 4294901760, %v3116_v5  ;;  %v995_v38 = vsub.f32 %v19928_v21, %v18784_v57  ;;  %v19931_v5 = vld [vmem:[#allocation75_spill] sm:$0xff]  ;;  %v19932_v45 = vld [vmem:[#allocation76_spill] sm:$0xff] }
  0x9b   : > { %v18790_v14 = vand.u32 4294901760, %v19930_v49  ;;  %v9531_v3 = vpack.c.bf16 %v990_v26, %v978_v23  ;;  %v3129_v24 = vand.u32 4294901760, %v3128_v35  ;;  %v3122_v18 = vsub.f32 %v19929_v42, %v18791_v36  ;;  %v19933_v23 = vld [vmem:[#allocation77_spill] sm:$0xff]  ;;  %v19934_v35 = vld [vmem:[#allocation79_spill] sm:$0xff]  ;;  %v19940_v42 = vld [vmem:[#allocation88_spill] sm:$0xff] }
  0x9c   : > { %v984_v8 = vand.u32 4294901760, %v983_v15  ;;  %10106 = vmatpush1.bf16.msra.mxu1 %v10105_v27  ;;  %v996_v47 = vand.u32 4294901760, %v995_v38  ;;  %v18792_v25 = vand.u32 4294901760, %v19931_v5  ;;  %v18794_v1 = vand.u32 4294901760, %v19932_v45 }
  0x9d   : > { %v3134_v9 = vsub.f32 %v19930_v49, %v18790_v14  ;;  %9532 = vmatprep.subr.bf16.mxu0 %v9531_v3  ;;  %v10107_v57 = vpack.c.bf16 %v3129_v24, %v3117_v53  ;;  %v3123_v21 = vand.u32 4294901760, %v3122_v18  ;;  %v18795_v26 = vand.u32 4294901760, %v19933_v23  ;;  %v19935_v3 = vld [vmem:[#allocation81_spill] sm:$0xff] }
  0x9e   : > { %v18796_v15 = vand.u32 4294901760, %v19934_v35  ;;  %v9533_v30 = vpack.c.bf16 %v996_v47, %v984_v8  ;;  %v1001_v38 = vsub.f32 %v19931_v5, %v18792_v25  ;;  %v1013_v27 = vsub.f32 %v19932_v45, %v18794_v1  ;;  %v19936_v47 = vld [vmem:[#allocation82_spill] sm:$0xff]  ;;  %v19937_v25 = vld [vmem:[#allocation84_spill] sm:$0xff] }
  0x9f   : > { %v3135_v55 = vand.u32 4294901760, %v3134_v9  ;;  %10108 = vmatprep.subr.bf16.mxu1 %v10107_v57  ;;  %v3140_v53 = vsub.f32 %v19933_v23, %v18795_v26  ;;  %v18801_v8 = vand.u32 4294901760, %v19935_v3  ;;  %v18803_v24 = vand.u32 4294901760, %v19936_v47 }
  0xa0   : > { %v3152_v18 = vsub.f32 %v19934_v35, %v18796_v15  ;;  %9534 = vmatpush1.bf16.msra.mxu0 %v9533_v30  ;;  %v1002_v14 = vand.u32 4294901760, %v1001_v38  ;;  %v1014_v36 = vand.u32 4294901760, %v1013_v27  ;;  %v18802_v49 = vand.u32 4294901760, %v19937_v25  ;;  %v19939_v38 = vld [vmem:[#allocation87_spill] sm:$0xff] }
  0xa1   : > { %v10109_v9 = vpack.c.bf16 %v3135_v55, %v3123_v21  ;;  %v3141_v1 = vand.u32 4294901760, %v3140_v53  ;;  %v1007_v26 = vsub.f32 %v19935_v3, %v18801_v8  ;;  %v1019_v15 = vsub.f32 %v19936_v47, %v18803_v24  ;;  %v19938_v55 = vld [vmem:[#allocation85_spill] sm:$0xff] }
  0xa2   : > { %v3153_v57 = vand.u32 4294901760, %v3152_v18  ;;  %v9535_v35 = vpack.c.bf16 %v1014_v36, %v1002_v14  ;;  %v3146_v30 = vsub.f32 %v19937_v25, %v18802_v49  ;;  %v18805_v21 = vand.u32 4294901760, %v19938_v55  ;;  %v19941_v36 = vld [vmem:[#allocation89_spill] sm:$0xff] }
  0xa3   : > { %10110 = vmatpush1.bf16.msra.mxu1 %v10109_v9  ;;  %v18807_v27 = vand.u32 4294901760, %v19939_v38  ;;  %v1008_v18 = vand.u32 4294901760, %v1007_v26  ;;  %v1020_v23 = vand.u32 4294901760, %v1019_v15  ;;  %v18809_v45 = vand.u32 4294901760, %v19940_v42  ;;  %v19942_v26 = vld [vmem:[#allocation91_spill] sm:$0xff] }
  0xa4   : > { %v10111_v53 = vpack.c.bf16 %v3153_v57, %v3141_v1  ;;  %9536 = vmatprep.subr.bf16.mxu0 %v9535_v35  ;;  %v3147_v8 = vand.u32 4294901760, %v3146_v30  ;;  %v3158_v9 = vsub.f32 %v19938_v55, %v18805_v21  ;;  %v18810_v49 = vand.u32 4294901760, %v19941_v36  ;;  %v19943_v35 = vld [vmem:[#allocation93_spill] sm:$0xff]  ;;  %v19944_v55 = vld [vmem:[#allocation94_spill] sm:$0xff] }
  0xa5   : > { %v1025_v14 = vsub.f32 %v19939_v38, %v18807_v27  ;;  %v9537_v24 = vpack.c.bf16 %v1020_v23, %v1008_v18  ;;  %v1037_v1 = vsub.f32 %v19940_v42, %v18809_v45  ;;  %v18814_v15 = vand.u32 4294901760, %v19942_v26  ;;  %v19945_v18 = vld [vmem:[#allocation96_spill] sm:$0xff] }
  0xa6   : > { %10112 = vmatprep.subr.bf16.mxu1 %v10111_v53  ;;  %v18816_v57 = vand.u32 4294901760, %v19943_v35  ;;  %v3159_v30 = vand.u32 4294901760, %v3158_v9  ;;  %v3164_v21 = vsub.f32 %v19941_v36, %v18810_v49  ;;  %v18818_v27 = vand.u32 4294901760, %v19944_v55  ;;  %v19946_v36 = vld [vmem:[#allocation97_spill] sm:$0xff] }
  0xa7   : > { %v1026_v25 = vand.u32 4294901760, %v1025_v14  ;;  %9538 = vmatpush1.bf16.msra.mxu0 %v9537_v24  ;;  %v1038_v38 = vand.u32 4294901760, %v1037_v1  ;;  %v3176_v23 = vsub.f32 %v19942_v26, %v18814_v15  ;;  %v18823_v45 = vand.u32 4294901760, %v19945_v18 }
  0xa8   : > { %v1031_v53 = vsub.f32 %v19943_v35, %v18816_v57  ;;  %v10113_v9 = vpack.c.bf16 %v3159_v30, %v3147_v8  ;;  %v3165_v14 = vand.u32 4294901760, %v3164_v21  ;;  %v1043_v49 = vsub.f32 %v19944_v55, %v18818_v27  ;;  %v19947_v21 = vld [vmem:[#allocation99_spill] sm:$0xff]  ;;  %v19948_v57 = vld [vmem:[#allocation100_spill] sm:$0xff] }
  0xa9   : > { %v18822_v42 = vand.u32 4294901760, %v19946_v36  ;;  %v9539_v24 = vpack.c.bf16 %v1038_v38, %v1026_v25  ;;  %v3177_v1 = vand.u32 4294901760, %v3176_v23  ;;  %v3170_v15 = vsub.f32 %v19945_v18, %v18823_v45  ;;  %v19949_v25 = vld [vmem:[#allocation101_spill] sm:$0xff]  ;;  %v19950_v23 = vld [vmem:[#allocation103_spill] sm:$0xff]  ;;  %v19956_v18 = vld [vmem:[#allocation112_spill] sm:$0xff] }
  0xaa   : > { %v1032_v47 = vand.u32 4294901760, %v1031_v53  ;;  %10114 = vmatpush1.bf16.msra.mxu1 %v10113_v9  ;;  %v1044_v26 = vand.u32 4294901760, %v1043_v49  ;;  %v18824_v30 = vand.u32 4294901760, %v19947_v21  ;;  %v18826_v35 = vand.u32 4294901760, %v19948_v57 }
  0xab   : > { %v3182_v8 = vsub.f32 %v19946_v36, %v18822_v42  ;;  %9540 = vmatprep.subr.bf16.mxu0 %v9539_v24  ;;  %v10115_v27 = vpack.c.bf16 %v3177_v1, %v3165_v14  ;;  %v3171_v55 = vand.u32 4294901760, %v3170_v15  ;;  %v18827_v38 = vand.u32 4294901760, %v19949_v25  ;;  %v19951_v24 = vld [vmem:[#allocation105_spill] sm:$0xff] }
  0xac   : > { %v18828_v53 = vand.u32 4294901760, %v19950_v23  ;;  %v9541_v3 = vpack.c.bf16 %v1044_v26, %v1032_v47  ;;  %v1049_v49 = vsub.f32 %v19947_v21, %v18824_v30  ;;  %v1061_v9 = vsub.f32 %v19948_v57, %v18826_v35  ;;  %v19952_v26 = vld [vmem:[#allocation106_spill] sm:$0xff]  ;;  %v19953_v30 = vld [vmem:[#allocation108_spill] sm:$0xff] }
  0xad   : > { %v3183_v5 = vand.u32 4294901760, %v3182_v8  ;;  %10116 = vmatprep.subr.bf16.mxu1 %v10115_v27  ;;  %v3188_v14 = vsub.f32 %v19949_v25, %v18827_v38  ;;  %v18833_v47 = vand.u32 4294901760, %v19951_v24  ;;  %v18835_v1 = vand.u32 4294901760, %v19952_v26 }
  0xae   : > { %v3200_v15 = vsub.f32 %v19950_v23, %v18828_v53  ;;  %9542 = vmatpush1.bf16.msra.mxu0 %v9541_v3  ;;  %v1050_v42 = vand.u32 4294901760, %v1049_v49  ;;  %v1062_v45 = vand.u32 4294901760, %v1061_v9  ;;  %v18834_v36 = vand.u32 4294901760, %v19953_v30  ;;  %v19954_v3 = vld [vmem:[#allocation109_spill] sm:$0xff]  ;;  %v19955_v49 = vld [vmem:[#allocation111_spill] sm:$0xff] }
  0xaf   : > { %v10117_v8 = vpack.c.bf16 %v3183_v5, %v3171_v55  ;;  %v3189_v35 = vand.u32 4294901760, %v3188_v14  ;;  %v1055_v38 = vsub.f32 %v19951_v24, %v18833_v47  ;;  %v1067_v53 = vsub.f32 %v19952_v26, %v18835_v1 }
  0xb0   : > { %v3201_v27 = vand.u32 4294901760, %v3200_v15  ;;  %v9543_v23 = vpack.c.bf16 %v1062_v45, %v1050_v42  ;;  %v3194_v5 = vsub.f32 %v19953_v30, %v18834_v36  ;;  %v18837_v55 = vand.u32 4294901760, %v19954_v3  ;;  %v19957_v42 = vld [vmem:[#allocation113_spill] sm:$0xff] }
  0xb1   : > { %10118 = vmatpush1.bf16.msra.mxu1 %v10117_v8  ;;  %v18840_v9 = vand.u32 4294901760, %v19955_v49  ;;  %v1056_v15 = vand.u32 4294901760, %v1055_v38  ;;  %v1068_v25 = vand.u32 4294901760, %v1067_v53  ;;  %v18843_v57 = vand.u32 4294901760, %v19956_v18  ;;  %v19958_v38 = vld [vmem:[#allocation115_spill] sm:$0xff] }
  0xb2   : > { %v10119_v14 = vpack.c.bf16 %v3201_v27, %v3189_v35  ;;  %9544 = vmatprep.subr.bf16.mxu0 %v9543_v23  ;;  %v3195_v47 = vand.u32 4294901760, %v3194_v5  ;;  %v3206_v8 = vsub.f32 %v19954_v3, %v18837_v55  ;;  %v18844_v36 = vand.u32 4294901760, %v19957_v42  ;;  %v19959_v23 = vld [vmem:[#allocation117_spill] sm:$0xff] }
  0xb3   : > { %v1073_v45 = vsub.f32 %v19955_v49, %v18840_v9  ;;  %v9545_v1 = vpack.c.bf16 %v1068_v25, %v1056_v15  ;;  %v1085_v35 = vsub.f32 %v19956_v18, %v18843_v57  ;;  %v18850_v53 = vand.u32 4294901760, %v19958_v38  ;;  %v19961_v15 = vld [vmem:[#allocation120_spill] sm:$0xff] }
  0xb4   : > { %10120 = vmatprep.subr.bf16.mxu1 %v10119_v14  ;;  %v18852_v27 = vand.u32 4294901760, %v19959_v23  ;;  %v3207_v5 = vand.u32 4294901760, %v3206_v8  ;;  %v3212_v55 = vsub.f32 %v19957_v42, %v18844_v36  ;;  %v18854_v9 = vand.u32 4294901760, %v19960_v32 }
  0xb5   : > { %v1074_v21 = vand.u32 4294901760, %v1073_v45  ;;  %9546 = vmatpush1.bf16.msra.mxu0 %v9545_v1  ;;  %v1086_v2 = vand.u32 4294901760, %v1085_v35  ;;  %v3224_v25 = vsub.f32 %v19958_v38, %v18850_v53  ;;  %v18859_v57 = vand.u32 4294901760, %v19961_v15 }
  0xb6   : > { %v1079_v14 = vsub.f32 %v19959_v23, %v18852_v27  ;;  %v10121_v8 = vpack.c.bf16 %v3207_v5, %v3195_v47  ;;  %v3213_v45 = vand.u32 4294901760, %v3212_v55  ;;  %v1091_v36 = vsub.f32 %v19960_v32, %v18854_v9  ;;  %v19963_v55 = vld [vmem:[#allocation123_spill] sm:$0xff]  ;;  %v19964_v27 = vld [vmem:[#allocation124_spill] sm:$0xff] }
  0xb7   : > { %v18858_v31 = vand.u32 4294901760, %v19962_v59  ;;  %v9547_v1 = vpack.c.bf16 %v1086_v2, %v1074_v21  ;;  %v3225_v35 = vand.u32 4294901760, %v3224_v25  ;;  %v3218_v53 = vsub.f32 %v19961_v15, %v18859_v57  ;;  %v19965_v2 = vld [vmem:[#allocation125_spill] sm:$0xff]  ;;  %v19966_v25 = vld [vmem:[#allocation127_spill] sm:$0xff] }
  0xb8   : > { %v1080_v42 = vand.u32 4294901760, %v1079_v14  ;;  %10122 = vmatpush1.bf16.msra.mxu1 %v10121_v8  ;;  %v1092_v38 = vand.u32 4294901760, %v1091_v36  ;;  %v18860_v5 = vand.u32 4294901760, %v19963_v55  ;;  %v18862_v23 = vand.u32 4294901760, %v19964_v27 }
  0xb9   : > { %v3230_v47 = vsub.f32 %v19962_v59, %v18858_v31  ;;  %9548 = vmatprep.subr.bf16.mxu0 %v9547_v1  ;;  %v10123_v9 = vpack.c.bf16 %v3225_v35, %v3213_v45  ;;  %v3219_v32 = vand.u32 4294901760, %v3218_v53  ;;  %v18863_v21 = vand.u32 4294901760, %v19965_v2  ;;  %v19967_v1 = vld [vmem:[#allocation129_spill] sm:$0xff] }
  0xba   : > { %v18864_v14 = vand.u32 4294901760, %v19966_v25  ;;  %v9549_v18 = vpack.c.bf16 %v1092_v38, %v1080_v42  ;;  %v1097_v36 = vsub.f32 %v19963_v55, %v18860_v5  ;;  %v1109_v8 = vsub.f32 %v19964_v27, %v18862_v23  ;;  %v19968_v38 = vld [vmem:[#allocation130_spill] sm:$0xff]  ;;  %v19969_v5 = vld [vmem:[#allocation132_spill] sm:$0xff] }
  0xbb   : > { %v3231_v49 = vand.u32 4294901760, %v3230_v47  ;;  %10124 = vmatprep.subr.bf16.mxu1 %v10123_v9  ;;  %v3236_v45 = vsub.f32 %v19965_v2, %v18863_v21  ;;  %v18869_v42 = vand.u32 4294901760, %v19967_v1  ;;  %v18871_v35 = vand.u32 4294901760, %v19968_v38  ;;  %v19972_v27 = vld [vmem:[#allocation136_spill] sm:$0xff] }
  0xbc   : > { %v3248_v53 = vsub.f32 %v19966_v25, %v18864_v14  ;;  %9550 = vmatpush1.bf16.msra.mxu0 %v9549_v18  ;;  %v1098_v31 = vand.u32 4294901760, %v1097_v36  ;;  %v1110_v57 = vand.u32 4294901760, %v1109_v8  ;;  %v18870_v55 = vand.u32 4294901760, %v19969_v5  ;;  %v19970_v18 = vld [vmem:[#allocation133_spill] sm:$0xff]  ;;  %v19971_v36 = vld [vmem:[#allocation135_spill] sm:$0xff] }
  0xbd   : > { %v10125_v47 = vpack.c.bf16 %v3231_v49, %v3219_v32  ;;  %v3237_v23 = vand.u32 4294901760, %v3236_v45  ;;  %v1103_v21 = vsub.f32 %v19967_v1, %v18869_v42  ;;  %v1115_v14 = vsub.f32 %v19968_v38, %v18871_v35 }
  0xbe   : > { %v3249_v9 = vand.u32 4294901760, %v3248_v53  ;;  %v9551_v25 = vpack.c.bf16 %v1110_v57, %v1098_v31  ;;  %v3242_v32 = vsub.f32 %v19969_v5, %v18870_v55  ;;  %v18873_v49 = vand.u32 4294901760, %v19970_v18  ;;  %v19973_v57 = vld [vmem:[#allocation137_spill] sm:$0xff] }
  0xbf   : > { %10126 = vmatpush1.bf16.msra.mxu1 %v10125_v47  ;;  %v18875_v8 = vand.u32 4294901760, %v19971_v36  ;;  %v1104_v53 = vand.u32 4294901760, %v1103_v21  ;;  %v1116_v2 = vand.u32 4294901760, %v1115_v14  ;;  %v18877_v59 = vand.u32 4294901760, %v19972_v27  ;;  %v19974_v21 = vld [vmem:[#allocation139_spill] sm:$0xff] }
  0xc0   : > { %v10127_v45 = vpack.c.bf16 %v3249_v9, %v3237_v23  ;;  %9552 = vmatprep.subr.bf16.mxu0 %v9551_v25  ;;  %v3243_v42 = vand.u32 4294901760, %v3242_v32  ;;  %v3254_v47 = vsub.f32 %v19970_v18, %v18873_v49  ;;  %v18878_v55 = vand.u32 4294901760, %v19973_v57  ;;  %v19975_v25 = vld [vmem:[#allocation141_spill] sm:$0xff]  ;;  %v19976_v18 = vld [vmem:[#allocation142_spill] sm:$0xff] }
  0xc1   : > { %v1121_v31 = vsub.f32 %v19971_v36, %v18875_v8  ;;  %v9553_v35 = vpack.c.bf16 %v1116_v2, %v1104_v53  ;;  %v1133_v23 = vsub.f32 %v19972_v27, %v18877_v59  ;;  %v18882_v14 = vand.u32 4294901760, %v19974_v21  ;;  %v19977_v53 = vld [vmem:[#allocation144_spill] sm:$0xff] }
  0xc2   : > { %10128 = vmatprep.subr.bf16.mxu1 %v10127_v45  ;;  %v18884_v9 = vand.u32 4294901760, %v19975_v25  ;;  %v3255_v32 = vand.u32 4294901760, %v3254_v47  ;;  %v3260_v49 = vsub.f32 %v19973_v57, %v18878_v55  ;;  %v18886_v8 = vand.u32 4294901760, %v19976_v18  ;;  %v19978_v57 = vld [vmem:[#allocation145_spill] sm:$0xff] }
  0xc3   : > { %v1122_v5 = vand.u32 4294901760, %v1121_v31  ;;  %9554 = vmatpush1.bf16.msra.mxu0 %v9553_v35  ;;  %v1134_v36 = vand.u32 4294901760, %v1133_v23  ;;  %v3272_v2 = vsub.f32 %v19974_v21, %v18882_v14  ;;  %v18891_v59 = vand.u32 4294901760, %v19977_v53 }
  0xc4   : > { %v1127_v45 = vsub.f32 %v19975_v25, %v18884_v9  ;;  %v10129_v47 = vpack.c.bf16 %v3255_v32, %v3243_v42  ;;  %v3261_v31 = vand.u32 4294901760, %v3260_v49  ;;  %v1139_v55 = vsub.f32 %v19976_v18, %v18886_v8  ;;  %v19979_v49 = vld [vmem:[#allocation147_spill] sm:$0xff]  ;;  %v19980_v9 = vld [vmem:[#allocation148_spill] sm:$0xff] }
  0xc5   : > { %v18890_v27 = vand.u32 4294901760, %v19978_v57  ;;  %v9555_v35 = vpack.c.bf16 %v1134_v36, %v1122_v5  ;;  %v3273_v23 = vand.u32 4294901760, %v3272_v2  ;;  %v3266_v14 = vsub.f32 %v19977_v53, %v18891_v59  ;;  %v19981_v5 = vld [vmem:[#allocation149_spill] sm:$0xff]  ;;  %v19982_v2 = vld [vmem:[#allocation151_spill] sm:$0xff] }
  0xc6   : > { %v1128_v38 = vand.u32 4294901760, %v1127_v45  ;;  %10130 = vmatpush1.bf16.msra.mxu1 %v10129_v47  ;;  %v1140_v21 = vand.u32 4294901760, %v1139_v55  ;;  %v18892_v32 = vand.u32 4294901760, %v19979_v49  ;;  %v18894_v25 = vand.u32 4294901760, %v19980_v9 }
  0xc7   : > { %v3278_v42 = vsub.f32 %v19978_v57, %v18890_v27  ;;  %9556 = vmatprep.subr.bf16.mxu0 %v9555_v35  ;;  %v10131_v8 = vpack.c.bf16 %v3273_v23, %v3261_v31  ;;  %v3267_v18 = vand.u32 4294901760, %v3266_v14  ;;  %v18895_v36 = vand.u32 4294901760, %v19981_v5  ;;  %v19983_v35 = vld [vmem:[#allocation153_spill] sm:$0xff] }
  0xc8   : > { %v18896_v45 = vand.u32 4294901760, %v19982_v2  ;;  %v9557_v1 = vpack.c.bf16 %v1140_v21, %v1128_v38  ;;  %v1145_v55 = vsub.f32 %v19979_v49, %v18892_v32  ;;  %v1157_v47 = vsub.f32 %v19980_v9, %v18894_v25  ;;  %v19984_v21 = vld [vmem:[#allocation154_spill] sm:$0xff]  ;;  %v19985_v32 = vld [vmem:[#allocation156_spill] sm:$0xff] }
  0xc9   : > { %v3279_v15 = vand.u32 4294901760, %v3278_v42  ;;  %10132 = vmatprep.subr.bf16.mxu1 %v10131_v8  ;;  %v3284_v31 = vsub.f32 %v19981_v5, %v18895_v36  ;;  %v18901_v38 = vand.u32 4294901760, %v19983_v35  ;;  %v18903_v23 = vand.u32 4294901760, %v19984_v21  ;;  %v19988_v9 = vld [vmem:[#allocation160_spill] sm:$0xff] }
  0xca   : > { %v3296_v14 = vsub.f32 %v19982_v2, %v18896_v45  ;;  %9558 = vmatpush1.bf16.msra.mxu0 %v9557_v1  ;;  %v1146_v27 = vand.u32 4294901760, %v1145_v55  ;;  %v1158_v59 = vand.u32 4294901760, %v1157_v47  ;;  %v18902_v49 = vand.u32 4294901760, %v19985_v32  ;;  %v19986_v1 = vld [vmem:[#allocation157_spill] sm:$0xff]  ;;  %v19987_v55 = vld [vmem:[#allocation159_spill] sm:$0xff] }
  0xcb   : > { %v10133_v42 = vpack.c.bf16 %v3279_v15, %v3267_v18  ;;  %v3285_v25 = vand.u32 4294901760, %v3284_v31  ;;  %v1151_v36 = vsub.f32 %v19983_v35, %v18901_v38  ;;  %v1163_v45 = vsub.f32 %v19984_v21, %v18903_v23 }
  0xcc   : > { %v3297_v8 = vand.u32 4294901760, %v3296_v14  ;;  %v9559_v2 = vpack.c.bf16 %v1158_v59, %v1146_v27  ;;  %v3290_v15 = vsub.f32 %v19985_v32, %v18902_v49  ;;  %v18905_v18 = vand.u32 4294901760, %v19986_v1  ;;  %v19989_v27 = vld [vmem:[#allocation161_spill] sm:$0xff] }
  0xcd   : > { %10134 = vmatpush1.bf16.msra.mxu1 %v10133_v42  ;;  %v18907_v47 = vand.u32 4294901760, %v19987_v55  ;;  %v1152_v14 = vand.u32 4294901760, %v1151_v36  ;;  %v1164_v5 = vand.u32 4294901760, %v1163_v45  ;;  %v18909_v57 = vand.u32 4294901760, %v19988_v9  ;;  %v19990_v36 = vld [vmem:[#allocation163_spill] sm:$0xff] }
  0xce   : > { %v10135_v31 = vpack.c.bf16 %v3297_v8, %v3285_v25  ;;  %9560 = vmatprep.subr.bf16.mxu0 %v9559_v2  ;;  %v3291_v38 = vand.u32 4294901760, %v3290_v15  ;;  %v3302_v42 = vsub.f32 %v19986_v1, %v18905_v18  ;;  %v18910_v49 = vand.u32 4294901760, %v19989_v27  ;;  %v19991_v2 = vld [vmem:[#allocation165_spill] sm:$0xff]  ;;  %v19992_v1 = vld [vmem:[#allocation166_spill] sm:$0xff] }
  0xcf   : > { %v1169_v59 = vsub.f32 %v19987_v55, %v18907_v47  ;;  %v9561_v23 = vpack.c.bf16 %v1164_v5, %v1152_v14  ;;  %v1181_v25 = vsub.f32 %v19988_v9, %v18909_v57  ;;  %v18914_v45 = vand.u32 4294901760, %v19990_v36  ;;  %v19993_v14 = vld [vmem:[#allocation168_spill] sm:$0xff] }
  0xd0   : > { %10136 = vmatprep.subr.bf16.mxu1 %v10135_v31  ;;  %v18916_v8 = vand.u32 4294901760, %v19991_v2  ;;  %v3303_v15 = vand.u32 4294901760, %v3302_v42  ;;  %v3308_v18 = vsub.f32 %v19989_v27, %v18910_v49  ;;  %v18918_v47 = vand.u32 4294901760, %v19992_v1  ;;  %v19994_v27 = vld [vmem:[#allocation169_spill] sm:$0xff] }
  0xd1   : > { %v1170_v32 = vand.u32 4294901760, %v1169_v59  ;;  %9562 = vmatpush1.bf16.msra.mxu0 %v9561_v23  ;;  %v1182_v55 = vand.u32 4294901760, %v1181_v25  ;;  %v3320_v5 = vsub.f32 %v19990_v36, %v18914_v45  ;;  %v18923_v57 = vand.u32 4294901760, %v19993_v14 }
  0xd2   : > { %v1175_v31 = vsub.f32 %v19991_v2, %v18916_v8  ;;  %v10137_v42 = vpack.c.bf16 %v3303_v15, %v3291_v38  ;;  %v3309_v59 = vand.u32 4294901760, %v3308_v18  ;;  %v1187_v49 = vsub.f32 %v19992_v1, %v18918_v47  ;;  %v19995_v18 = vld [vmem:[#allocation171_spill] sm:$0xff]  ;;  %v19996_v8 = vld [vmem:[#allocation172_spill] sm:$0xff] }
  0xd3   : > { %v18922_v9 = vand.u32 4294901760, %v19994_v27  ;;  %v9563_v23 = vpack.c.bf16 %v1182_v55, %v1170_v32  ;;  %v3321_v25 = vand.u32 4294901760, %v3320_v5  ;;  %v3314_v45 = vsub.f32 %v19993_v14, %v18923_v57  ;;  %v19997_v32 = vld [vmem:[#allocation173_spill] sm:$0xff]  ;;  %v19998_v5 = vld [vmem:[#allocation175_spill] sm:$0xff] }
  0xd4   : > { %v1176_v21 = vand.u32 4294901760, %v1175_v31  ;;  %10138 = vmatpush1.bf16.msra.mxu1 %v10137_v42  ;;  %v1188_v36 = vand.u32 4294901760, %v1187_v49  ;;  %v18924_v15 = vand.u32 4294901760, %v19995_v18  ;;  %v18926_v2 = vand.u32 4294901760, %v19996_v8  ;;  %v20053_v14 = vld [vmem:[#allocation49_spill] sm:$0xff] }
  0xd5   : > { %v3326_v38 = vsub.f32 %v19994_v27, %v18922_v9  ;;  %9564 = vmatprep.subr.bf16.mxu0 %v9563_v23  ;;  %v10139_v47 = vpack.c.bf16 %v3321_v25, %v3309_v59  ;;  %v3315_v1 = vand.u32 4294901760, %v3314_v45  ;;  %v18927_v55 = vand.u32 4294901760, %v19997_v32  ;;  %v19999_v23 = vld [vmem:[#allocation177_spill] sm:$0xff] }
  0xd6   : > { %v18928_v31 = vand.u32 4294901760, %v19998_v5  ;;  %v9565_v35 = vpack.c.bf16 %v1188_v36, %v1176_v21  ;;  %v1193_v49 = vsub.f32 %v19995_v18, %v18924_v15  ;;  %v1205_v42 = vsub.f32 %v19996_v8, %v18926_v2  ;;  %v20000_v36 = vld [vmem:[#allocation178_spill] sm:$0xff]  ;;  %v20001_v15 = vld [vmem:[#allocation180_spill] sm:$0xff] }
  0xd7   : > { %v3327_v53 = vand.u32 4294901760, %v3326_v38  ;;  %10140 = vmatprep.subr.bf16.mxu1 %v10139_v47  ;;  %v3332_v59 = vsub.f32 %v19997_v32, %v18927_v55  ;;  %v18932_v21 = vand.u32 4294901760, %v19999_v23  ;;  %v18938_v25 = vand.u32 4294901760, %v20000_v36  ;;  %v20003_v32 = vld [vmem:[#allocation184_spill] sm:$0xff] }
  0xd8   : > { %v3344_v45 = vsub.f32 %v19998_v5, %v18928_v31  ;;  %9566 = vmatpush1.bf16.msra.mxu0 %v9565_v35  ;;  %v1194_v9 = vand.u32 4294901760, %v1193_v49  ;;  %v1206_v57 = vand.u32 4294901760, %v1205_v42  ;;  %v18933_v18 = vand.u32 4294901760, %v20001_v15  ;;  %v20002_v35 = vld [vmem:[#allocation181_spill] sm:$0xff] }
  0xd9   : > { %v10141_v38 = vpack.c.bf16 %v3327_v53, %v3315_v1  ;;  %v3333_v2 = vand.u32 4294901760, %v3332_v59  ;;  %v1199_v55 = vsub.f32 %v19999_v23, %v18932_v21  ;;  %v1211_v31 = vsub.f32 %v20000_v36, %v18938_v25 }
  0xda   : > { %v3345_v47 = vand.u32 4294901760, %v3344_v45  ;;  %v9567_v5 = vpack.c.bf16 %v1206_v57, %v1194_v9  ;;  %v3338_v53 = vsub.f32 %v20001_v15, %v18933_v18  ;;  %v18934_v1 = vand.u32 4294901760, %v20002_v35  ;;  %v20057_v15 = vld [vmem:[#allocation55_spill] sm:$0xff] }
  0xdb   : > { %10142 = vmatpush1.bf16.msra.mxu1 %v10141_v38  ;;  %v18935_v49 = vand.u32 4294901760, %v12870_v54  ;;  %v1200_v59 = vand.u32 4294901760, %v1199_v55  ;;  %v1212_v45 = vand.u32 4294901760, %v1211_v31  ;;  %v18937_v8 = vand.u32 4294901760, %v20003_v32 }
  0xdc   : > { %v10143_v42 = vpack.c.bf16 %v3345_v47, %v3333_v2  ;;  %9568 = vmatprep.subr.bf16.mxu0 %v9567_v5  ;;  %v3339_v21 = vand.u32 4294901760, %v3338_v53  ;;  %v3350_v38 = vsub.f32 %v20002_v35, %v18934_v1  ;;  %v18936_v9 = vand.u32 4294901760, %v12876_v60 }
  0xdd   : > { %v1217_v57 = vsub.f32 %v12870_v54, %v18935_v49  ;;  %v9569_v18 = vpack.c.bf16 %v1212_v45, %v1200_v59  ;;  %v1229_v2 = vsub.f32 %v20003_v32, %v18937_v8  ;;  %v18939_v55 = vand.u32 4294901760, %v12880_v11 }
  0xde   : > { %10144 = vmatprep.subr.bf16.mxu1 %v10143_v42  ;;  %v18943_v5 = vand.u32 4294901760, %v12884_v28  ;;  %v3351_v31 = vand.u32 4294901760, %v3350_v38  ;;  %v3356_v53 = vsub.f32 %v12876_v60, %v18936_v9  ;;  %v18942_v1 = vand.u32 4294901760, %v12886_v19 }
  0xdf   : > { %v1218_v47 = vand.u32 4294901760, %v1217_v57  ;;  %9570 = vmatpush1.bf16.msra.mxu0 %v9569_v18  ;;  %v1230_v49 = vand.u32 4294901760, %v1229_v2  ;;  %v3368_v42 = vsub.f32 %v12880_v11, %v18939_v55  ;;  %v18944_v45 = vand.u32 4294901760, %v12890_v22 }
  0xe0   : > { %v1223_v59 = vsub.f32 %v12884_v28, %v18943_v5  ;;  %v10145_v38 = vpack.c.bf16 %v3351_v31, %v3339_v21  ;;  %v3357_v57 = vand.u32 4294901760, %v3356_v53  ;;  %v1235_v9 = vsub.f32 %v12886_v19, %v18942_v1  ;;  %v20069_v19 = vld [vmem:[#allocation76_spill] sm:$0xff] }
  0xe1   : > { %v18947_v8 = vand.u32 4294901760, %v12892_v20  ;;  %v9571_v18 = vpack.c.bf16 %v1230_v49, %v1218_v47  ;;  %v3369_v2 = vand.u32 4294901760, %v3368_v42  ;;  %v3362_v55 = vsub.f32 %v12890_v22, %v18944_v45  ;;  %v20004_v47 = vld [vmem:[#allocation5_spill] sm:$0xff]  ;;  %v20005_v42 = vld [vmem:[#allocation7_spill] sm:$0xff] }
  0xe2   : > { %v1224_v25 = vand.u32 4294901760, %v1223_v59  ;;  %10146 = vmatpush1.bf16.msra.mxu1 %v10145_v38  ;;  %v1236_v11 = vand.u32 4294901760, %v1235_v9  ;;  %v9575_v1 = vpack.c.bf16 %v12046_v17, %v12044_v16  ;;  %v10151_v59 = vpack.c.bf16 %v20005_v42, %v20004_v47  ;;  %v20006_v38 = vld [vmem:[#allocation9_spill] sm:$0xff]  ;;  %v20007_v9 = vld [vmem:[#allocation10_spill] sm:$0xff]  ;;  %v20041_v17 = vld [vmem:[#allocation159_spill] sm:$0xff] }
  0xe3   : > { %v3374_v21 = vsub.f32 %v12892_v20, %v18947_v8  ;;  %9572 = vmatprep.subr.bf16.mxu0 %v9571_v18  ;;  %v10147_v31 = vpack.c.bf16 %v3369_v2, %v3357_v57  ;;  %v3363_v53 = vand.u32 4294901760, %v3362_v55  ;;  %v9577_v22 = vpack.c.bf16 %v20007_v9, %v20006_v38  ;;  %v20009_v8 = vld [vmem:[#allocation111_spill] sm:$0xff]  ;;  %v20040_v47 = vld [vmem:[#allocation157_spill] sm:$0xff]  ;;  %v20042_v16 = vld [vmem:[#allocation160_spill] sm:$0xff] }
  0xe4   : > { %v9573_v5 = vpack.c.bf16 %v1236_v11, %v1224_v25  ;;  %v9579_v18 = vpack.c.bf16 %v12103_v46, %v12090_v41  ;;  %v10153_v55 = vpack.c.bf16 %v12088_v40, %v12086_v39  ;;  %v20008_v11 = vld [vmem:[#allocation194_spill] sm:$0xff]  ;;  %v10155_v25 = vpack.c.bf16 %v12113_v50, %v12107_v48  ;;  %v20033_v39 = vld [vmem:[#allocation147_spill] sm:$0xff]  ;;  %v20034_v46 = vld [vmem:[#allocation148_spill] sm:$0xff] }
  0xe5   : > { %v3375_v49 = vand.u32 4294901760, %v3374_v21  ;;  %10148 = vmatprep.subr.bf16.mxu1 %v10147_v31  ;;  %v9583_v57 = vpack.c.bf16 %v12158_v10, %v12146_v6  ;;  %v9585_v2 = vpack.c.bf16 %v12176_v34, %v12174_v33  ;;  %v9587_v21 = vpack.c.bf16 %v12208_v56, %v12195_v51  ;;  %v20018_v34 = vld [vmem:[#allocation124_spill] sm:$0xff]  ;;  %v20020_v33 = vld [vmem:[#allocation127_spill] sm:$0xff]  ;;  %v20056_v50 = vld [vmem:[#allocation53_spill] sm:$0xff] }
  0xe6   : > { %9574 = vmatpush1.bf16.msra.mxu0 %v9573_v5  ;;  %v9581_v5 = vpack.c.bf16 %v12127_v61, %v12115_v52  ;;  %v10163_v31 = vpack.c.bf16 %v12215_v63, %v12212_v58  ;;  %v20013_v63 = vld [vmem:[#allocation117_spill] sm:$0xff]  ;;  %v20014_v58 = vld [vmem:[#allocation118_spill] sm:$0xff]  ;;  %v20025_v10 = vld [vmem:[#allocation135_spill] sm:$0xff]  ;;  %v10167_v35 = vpack.c.bf16 %v20057_v15, %v20056_v50 }
  0xe7   : > { %v10149_v45 = vpack.c.bf16 %v3375_v49, %v3363_v53  ;;  %9576 = vmatprep.subr.bf16.mxu0 %v9575_v1  ;;  %v10157_v1 = vpack.c.bf16 %v12142_v4, %v12129_v62  ;;  %v9589_v53 = vpack.c.bf16 %v12234_v29, %v12221_v7  ;;  %v9591_v49 = vpack.c.bf16 %v12255_v37, %v12253_v0  ;;  %v20015_v29 = vld [vmem:[#allocation120_spill] sm:$0xff]  ;;  %v20016_v7 = vld [vmem:[#allocation121_spill] sm:$0xff]  ;;  %v20017_v0 = vld [vmem:[#allocation123_spill] sm:$0xff] }
  0xe8   : > { %v20024_v62 = vld [vmem:[#allocation133_spill] sm:$0xff]  ;;  %v20026_v6 = vld [vmem:[#allocation136_spill] sm:$0xff]  ;;  %v20028_v61 = vld [vmem:[#allocation139_spill] sm:$0xff] }
  0xe9   : > { %10150 = vmatpush1.bf16.msra.mxu1 %v10149_v45  ;;  %1241 = vmatmul.mubr.f32.vlgmr.msra.gmra.mrb[0].mxu0 %v20008_v11  ;;  %v10159_v45 = vpack.c.bf16 %v12164_v13, %v12162_v12  ;;  %v20022_v12 = vld [vmem:[#allocation130_spill] sm:$0xff]  ;;  %v20036_v41 = vld [vmem:[#allocation151_spill] sm:$0xff]  ;;  %v20039_v51 = vld [vmem:[#allocation156_spill] sm:$0xff] }
  0xea   : > { %10152 = vmatprep.subr.bf16.mxu1 %v10151_v59  ;;  %9578 = vmatpush1.bf16.msra.mxu0 %v9577_v22  ;;  %v10161_v22 = vpack.c.bf16 %v12191_v44, %v12189_v43  ;;  %v20012_v43 = vld [vmem:[#allocation115_spill] sm:$0xff]  ;;  %v20023_v44 = vld [vmem:[#allocation132_spill] sm:$0xff]  ;;  %v20045_v13 = vld [vmem:[#allocation165_spill] sm:$0xff] }
  0xeb   : > { %9580 = vmatprep.subr.bf16.mxu0 %v9579_v18  ;;  %v20021_v18 = vld [vmem:[#allocation129_spill] sm:$0xff]  ;;  %v20044_v37 = vld [vmem:[#allocation163_spill] sm:$0xff]  ;;  %v20046_v59 = vld [vmem:[#allocation166_spill] sm:$0xff] }
  0xec   : > { %3380 = vmatmul.mubr.f32.vlgmr.msra.gmra.mrb[0].mxu1 %v20008_v11  ;;  %v20010_v11 = vld [vmem:[#allocation112_spill] sm:$0xff]  ;;  %v20047_v4 = vld [vmem:[#allocation171_spill] sm:$0xff]  ;;  %v20058_v48 = vld [vmem:[#allocation57_spill] sm:$0xff] }
  0xed   : > { %10154 = vmatpush1.bf16.msra.mxu1 %v10153_v55  ;;  %v20011_v55 = vld [vmem:[#allocation113_spill] sm:$0xff]  ;;  %v20050_v56 = vld [vmem:[#allocation175_spill] sm:$0xff]  ;;  %v20052_v42 = vld [vmem:[#allocation48_spill] sm:$0xff] }
  0xee   : > { %10156 = vmatprep.subr.bf16.mxu1 %v10155_v25  ;;  %9582 = vmatpush1.bf16.msra.mxu0 %v9581_v5  ;;  %v20019_v25 = vld [vmem:[#allocation125_spill] sm:$0xff]  ;;  %v10165_v38 = vpack.c.bf16 %v20053_v14, %v20052_v42  ;;  %v20059_v40 = vld [vmem:[#allocation58_spill] sm:$0xff]  ;;  %v20061_v9 = vld [vmem:[#allocation64_spill] sm:$0xff] }
  0xef   : > { %9584 = vmatprep.subr.bf16.mxu0 %v9583_v57  ;;  %v20027_v5 = vld [vmem:[#allocation137_spill] sm:$0xff]  ;;  %v20048_v57 = vld [vmem:[#allocation172_spill] sm:$0xff]  ;;  %v9593_v60 = vpack.c.bf16 %v20059_v40, %v20058_v48  ;;  %v20067_v50 = vld [vmem:[#allocation70_spill] sm:$0xff] }
  0xf0   : > { %v20062_v14 = vld [vmem:[#allocation60_spill] sm:$0xff]  ;;  %v20063_v42 = vld [vmem:[#allocation61_spill] sm:$0xff] }
  0xf1   : > { %10158 = vmatpush1.bf16.msra.mxu1 %v10157_v1  ;;  %v20043_v1 = vld [vmem:[#allocation161_spill] sm:$0xff]  ;;  %v10169_v52 = vpack.c.bf16 %v20063_v42, %v20062_v14  ;;  %v20075_v14 = vld [vmem:[#allocation82_spill] sm:$0xff] }
  0xf2   : > { %10160 = vmatprep.subr.bf16.mxu1 %v10159_v45  ;;  %9586 = vmatpush1.bf16.msra.mxu0 %v9585_v2  ;;  %v20051_v2 = vld [vmem:[#allocation187_spill] sm:$0xff]  ;;  %v20064_v45 = vld [vmem:[#allocation65_spill] sm:$0xff] }
  0xf3   : > { %9588 = vmatprep.subr.bf16.mxu0 %v9587_v21  ;;  %v20055_v21 = vld [vmem:[#allocation197_spill] sm:$0xff] }
  0xf4   : > { %1441 = vmatprep.mubr.f32.mxu0 %v20055_v21  ;;  %3580 = vmatprep.mubr.f32.mxu1 %v20055_v21  ;;  %v20066_v15 = vld [vmem:[#allocation69_spill] sm:$0xff] }
  0xf5   : > { %10162 = vmatpush1.bf16.msra.mxu1 %v10161_v22  ;;  %v20060_v22 = vld [vmem:[#allocation63_spill] sm:$0xff]  ;;  %v9597_v21 = vpack.c.bf16 %v20067_v50, %v20066_v15  ;;  %v20071_v48 = vld [vmem:[#allocation73_spill] sm:$0xff] }
  0xf6   : > { %10164 = vmatprep.subr.bf16.mxu1 %v10163_v31  ;;  %9590 = vmatpush1.bf16.msra.mxu0 %v9589_v53  ;;  %v9595_v28 = vpack.c.bf16 %v20061_v9, %v20060_v22  ;;  %v20065_v31 = vld [vmem:[#allocation67_spill] sm:$0xff]  ;;  %v20079_v15 = vld [vmem:[#allocation85_spill] sm:$0xff] }
  0xf7   : > { %9592 = vmatprep.subr.bf16.mxu0 %v9591_v49  ;;  %v10171_v20 = vpack.c.bf16 %v20065_v31, %v20064_v45  ;;  %v20068_v53 = vld [vmem:[#allocation75_spill] sm:$0xff]  ;;  %v20070_v49 = vld [vmem:[#allocation72_spill] sm:$0xff] }
  0xf8   : > { %v9599_v40 = vpack.c.bf16 %v20069_v19, %v20068_v53  ;;  %v10173_v9 = vpack.c.bf16 %v20071_v48, %v20070_v49  ;;  %v20073_v22 = vld [vmem:[#allocation79_spill] sm:$0xff]  ;;  %v20077_v45 = vld [vmem:[#allocation88_spill] sm:$0xff]  ;;  %v20083_v49 = vld [vmem:[#allocation94_spill] sm:$0xff] }
  0xf9   : > { %10166 = vmatpush1.bf16.msra.mxu1 %v10165_v38  ;;  %v20072_v38 = vld [vmem:[#allocation77_spill] sm:$0xff]  ;;  %v20081_v53 = vld [vmem:[#allocation91_spill] sm:$0xff] }
  0xfa   : > { %10168 = vmatprep.subr.bf16.mxu1 %v10167_v35  ;;  %9594 = vmatpush1.bf16.msra.mxu0 %v9593_v60  ;;  %v10175_v42 = vpack.c.bf16 %v20073_v22, %v20072_v38  ;;  %v20074_v35 = vld [vmem:[#allocation81_spill] sm:$0xff]  ;;  %v20076_v60 = vld [vmem:[#allocation87_spill] sm:$0xff]  ;;  %v20085_v38 = vld [vmem:[#allocation100_spill] sm:$0xff] }
  0xfb   : > { %9596 = vmatprep.subr.bf16.mxu0 %v9595_v28  ;;  %v9601_v31 = vpack.c.bf16 %v20075_v14, %v20074_v35  ;;  %v9603_v50 = vpack.c.bf16 %v20077_v45, %v20076_v60  ;;  %v20078_v28 = vld [vmem:[#allocation84_spill] sm:$0xff]  ;;  %v20087_v35 = vld [vmem:[#allocation97_spill] sm:$0xff]  ;;  %v20089_v60 = vld [vmem:[#allocation103_spill] sm:$0xff] }
  0xfc   : > { %v10177_v19 = vpack.c.bf16 %v20079_v15, %v20078_v28 }
  0xfd   : > { %10170 = vmatpush1.bf16.msra.mxu1 %v10169_v52  ;;  %v20080_v52 = vld [vmem:[#allocation89_spill] sm:$0xff] }
  0xfe   : > { %10172 = vmatprep.subr.bf16.mxu1 %v10171_v20  ;;  %9598 = vmatpush1.bf16.msra.mxu0 %v9597_v21  ;;  %v10179_v48 = vpack.c.bf16 %v20081_v53, %v20080_v52  ;;  %v20082_v20 = vld [vmem:[#allocation93_spill] sm:$0xff]  ;;  %v20084_v21 = vld [vmem:[#allocation99_spill] sm:$0xff] }
  0xff   : > { %9600 = vmatprep.subr.bf16.mxu0 %v9599_v40  ;;  %v9605_v22 = vpack.c.bf16 %v20083_v49, %v20082_v20  ;;  %v9607_v14 = vpack.c.bf16 %v20085_v38, %v20084_v21  ;;  %v20086_v40 = vld [vmem:[#allocation96_spill] sm:$0xff] }
 0x100   : > { %v10181_v45 = vpack.c.bf16 %v20087_v35, %v20086_v40 }
 0x101   : > { %10174 = vmatpush1.bf16.msra.mxu1 %v10173_v9  ;;  %v20088_v9 = vld [vmem:[#allocation101_spill] sm:$0xff] }
 0x102   : > { %10176 = vmatprep.subr.bf16.mxu1 %v10175_v42  ;;  %9602 = vmatpush1.bf16.msra.mxu0 %v9601_v31  ;;  %v10183_v15 = vpack.c.bf16 %v20089_v60, %v20088_v9  ;;  %v20090_v42 = vpack.c.bf16 %v19952_v26, %v19951_v24  ;;  %v20098_v31 = vpack.c.bf16 %v20022_v12, %v20021_v18 }
 0x103   : > { %9604 = vmatprep.subr.bf16.mxu0 %v9603_v50  ;;  %v20091_v50 = vpack.c.bf16 %v20010_v11, %v20009_v8 }
 0x105   : > { %10178 = vmatpush1.bf16.msra.mxu1 %v10177_v19  ;;  %v20092_v19 = vpack.c.bf16 %v19954_v3, %v19953_v30 }
 0x106   : > { %10180 = vmatprep.subr.bf16.mxu1 %v10179_v48  ;;  %9606 = vmatpush1.bf16.msra.mxu0 %v9605_v22  ;;  %v20093_v48 = vpack.c.bf16 %v20012_v43, %v20011_v55  ;;  %v20097_v22 = vpack.c.bf16 %v20020_v33, %v20019_v25 }
 0x107   : > { %9608 = vmatprep.subr.bf16.mxu0 %v9607_v14  ;;  %v20094_v14 = vpack.c.bf16 %v20014_v58, %v20013_v63 }
 0x109   : > { %10182 = vmatpush1.bf16.msra.mxu1 %v10181_v45  ;;  %v20096_v45 = vpack.c.bf16 %v20016_v7, %v20015_v29 }
 0x10a   : > { %10184 = vmatprep.subr.bf16.mxu1 %v10183_v15  ;;  %9610 = vmatpush1.bf16.msra.mxu0 %v20090_v42  ;;  %v20095_v15 = vpack.c.bf16 %v20018_v34, %v20017_v0  ;;  %v20099_v42 = vpack.c.bf16 %v20026_v6, %v20025_v10 }
 0x10b   : > { %9612 = vmatprep.subr.bf16.mxu0 %v20091_v50  ;;  %v20100_v50 = vpack.c.bf16 %v20024_v62, %v20023_v44  ;;  %v20112_v44 = vld [vmem:[#allocation153_spill] sm:$0xff] }
 0x10d   : > { %10186 = vmatpush1.bf16.msra.mxu1 %v20092_v19  ;;  %v20101_v19 = vpack.c.bf16 %v20028_v61, %v20027_v5 }
 0x10e   : > { %10188 = vmatprep.subr.bf16.mxu1 %v20093_v48  ;;  %9614 = vmatpush1.bf16.msra.mxu0 %v20094_v14  ;;  %v20102_v48 = vld [vmem:[#allocation142_spill] sm:$0xff]  ;;  %v20103_v14 = vld [vmem:[#allocation141_spill] sm:$0xff] }
 0x10f   : > { %9616 = vmatprep.subr.bf16.mxu0 %v20095_v15  ;;  %v20104_v15 = vpack.c.bf16 %v20102_v48, %v20103_v14 }
 0x111   : > { %10190 = vmatpush1.bf16.msra.mxu1 %v20096_v45  ;;  %v20105_v45 = vpack.c.bf16 %v20034_v46, %v20033_v39 }
 0x112   : > { %10192 = vmatprep.subr.bf16.mxu1 %v20097_v22  ;;  %9618 = vmatpush1.bf16.msra.mxu0 %v20098_v31  ;;  %v20106_v22 = vld [vmem:[#allocation145_spill] sm:$0xff]  ;;  %v20107_v31 = vld [vmem:[#allocation144_spill] sm:$0xff] }
 0x113   : > { %9620 = vmatprep.subr.bf16.mxu0 %v20099_v42  ;;  %v20108_v6 = vpack.c.bf16 %v20106_v22, %v20107_v31  ;;  %v20109_v42 = vld [vmem:[#allocation149_spill] sm:$0xff] }
 0x114   : > { %v20110_v62 = vpack.c.bf16 %v20036_v41, %v20109_v42 }
 0x115   : > { %10194 = vmatpush1.bf16.msra.mxu1 %v20100_v50  ;;  %v20111_v50 = vld [vmem:[#allocation154_spill] sm:$0xff] }
 0x116   : > { %10196 = vmatprep.subr.bf16.mxu1 %v20101_v19  ;;  %9622 = vmatpush1.bf16.msra.mxu0 %v20104_v15  ;;  %v20113_v61 = vpack.c.bf16 %v20111_v50, %v20112_v44  ;;  %v20114_v19 = vpack.c.bf16 %v20042_v16, %v20041_v17  ;;  %v20115_v15 = vpack.c.bf16 %v20040_v47, %v20039_v51 }
 0x117   : > { %9624 = vmatprep.subr.bf16.mxu0 %v20105_v45  ;;  %v20116_v45 = vpack.c.bf16 %v20044_v37, %v20043_v1  ;;  %v20220_v37 = vld [vmem:[#allocation13_spill] sm:$0xff]  ;;  %v20246_v1 = vld [vmem:[#allocation34_spill] sm:$0xff] }
 0x119   : > { %10198 = vmatpush1.bf16.msra.mxu1 %v20108_v6  ;;  %v20117_v6 = vpack.c.bf16 %v20046_v59, %v20045_v13  ;;  %v20126_v59 = vld [vmem:[#allocation180_spill] sm:$0xff]  ;;  %v20217_v13 = vld [vmem:[#allocation191_spill] sm:$0xff] }
 0x11a   : > { %10200 = vmatprep.subr.bf16.mxu1 %v20110_v62  ;;  %9626 = vmatpush1.bf16.msra.mxu0 %v20113_v61  ;;  %v20118_v62 = vpack.c.bf16 %v20048_v57, %v20047_v4  ;;  %v20119_v61 = vld [vmem:[#allocation168_spill] sm:$0xff] }
 0x11b   : > { %9628 = vmatprep.subr.bf16.mxu0 %v20114_v19  ;;  %v20120_v16 = vpack.c.bf16 %v19994_v27, %v20119_v61  ;;  %v20121_v19 = vld [vmem:[#allocation173_spill] sm:$0xff] }
 0x11c   : > { %v20122_v47 = vpack.c.bf16 %v20050_v56, %v20121_v19  ;;  %v20131_v61 = vld [vmem:[#allocation189_spill] sm:$0xff]  ;;  %v20211_v19 = vld [vmem:[#allocation10_spill] sm:$0xff] }
 0x11d   : > { %10202 = vmatpush1.bf16.msra.mxu1 %v20115_v15  ;;  %v20123_v15 = vpack.c.bf16 %v20000_v36, %v19999_v23  ;;  %v20134_v36 = vld [vmem:[#allocation193_spill] sm:$0xff] }
 0x11e   : > { %10204 = vmatprep.subr.bf16.mxu1 %v20116_v45  ;;  %9630 = vmatpush1.bf16.msra.mxu0 %v20117_v6  ;;  %v20124_v45 = vpack.c.bf16 %v20003_v32, %v12870_v54  ;;  %v20125_v6 = vld [vmem:[#allocation181_spill] sm:$0xff]  ;;  %v20137_v32 = vld [vmem:[#allocation6_spill] sm:$0xff]  ;;  %v20208_v54 = vld [vmem:[#allocation188_spill] sm:$0xff] }
 0x11f   : > { %9632 = vmatprep.subr.bf16.mxu0 %v20118_v62  ;;  %v20127_v57 = vpack.c.bf16 %v20125_v6, %v20126_v59  ;;  %v20128_v62 = vld [vmem:[#allocation185_spill] sm:$0xff]  ;;  %v20139_v6 = vld [vmem:[#allocation8_spill] sm:$0xff] }
 0x120   : > { %v20129_v27 = vpack.c.bf16 %v20051_v2, %v20128_v62 }
 0x121   : > { %10206 = vmatpush1.bf16.msra.mxu1 %v20120_v16  ;;  %v20130_v16 = vld [vmem:[#allocation190_spill] sm:$0xff] }
 0x122   : > { %10208 = vmatprep.subr.bf16.mxu1 %v20122_v47  ;;  %9634 = vmatpush1.bf16.msra.mxu0 %v20123_v15  ;;  %v20132_v56 = vpack.c.bf16 %v20130_v16, %v20131_v61  ;;  %v20133_v47 = vld [vmem:[#allocation2_spill] sm:$0xff]  ;;  %v20135_v15 = vld [vmem:[#allocation192_spill] sm:$0xff]  ;;  %v20142_v16 = vld [vmem:[#allocation11_spill] sm:$0xff] }
 0x123   : > { %9636 = vmatprep.subr.bf16.mxu0 %v20124_v45  ;;  %v20136_v23 = vpack.c.bf16 %v20134_v36, %v20135_v15  ;;  %v20138_v45 = vld [vmem:[#allocation196_spill] sm:$0xff]  ;;  %v20147_v36 = vld [vmem:[#allocation29_spill] sm:$0xff]  ;;  %v20149_v15 = vld [vmem:[#allocation38_spill] sm:$0xff] }
 0x124   : > { %v20200_v61 = vld [vmem:[#allocation4_spill] sm:$0xff] }
 0x125   : > { %10210 = vmatpush1.bf16.msra.mxu1 %v20127_v57  ;;  %v20140_v57 = vld [vmem:[#allocation199_spill] sm:$0xff] }
 0x126   : > { %10212 = vmatprep.subr.bf16.mxu1 %v20129_v27  ;;  %9638 = vmatpush1.bf16.msra.mxu0 %v20132_v56  ;;  %v20141_v27 = vld [vmem:[#allocation15_spill] sm:$0xff]  ;;  %v20143_v56 = vld [vmem:[#allocation17_spill] sm:$0xff] }
 0x127   : > { %9640 = vmatprep.subr.bf16.mxu0 %v20133_v47  ;;  %v20144_v47 = vld [vmem:[#allocation21_spill] sm:$0xff] }
 0x129   : > { %10214 = vmatpush1.bf16.msra.mxu1 %v20136_v23  ;;  %1444 = vmatmul.mubr.f32.vlgmr.msra.gmra.mrb[0].mxu0 %v20138_v45  ;;  %v20145_v23 = vld [vmem:[#allocation26_spill] sm:$0xff] }
 0x12a   : > { %10216 = vmatprep.subr.bf16.mxu1 %v20137_v32  ;;  %9642 = vmatpush1.bf16.msra.mxu0 %v20139_v6  ;;  %v20146_v32 = vld [vmem:[#allocation24_spill] sm:$0xff] }
 0x12b   : > { %1581 = vmatprep.mubr.f32.mxu0 %v20140_v57  ;;  %9644 = vmatprep.subr.bf16.mxu0 %v20141_v27  ;;  %v20148_v6 = vld [vmem:[#allocation32_spill] sm:$0xff]  ;;  %v20151_v27 = vld [vmem:[#allocation41_spill] sm:$0xff] }
 0x12c   : > { %3583 = vmatmul.mubr.f32.vlgmr.msra.gmra.mrb[0].mxu1 %v20138_v45  ;;  %v20150_v45 = vld [vmem:[#allocation35_spill] sm:$0xff] }
 0x12d   : > { %10218 = vmatpush1.bf16.msra.mxu1 %v20142_v16  ;;  %3720 = vmatprep.mubr.f32.mxu1 %v20140_v57  ;;  %v20152_v16 = vld [vmem:[#allocation45_spill] sm:$0xff]  ;;  %v20153_v57 = vld [vmem:[#allocation50_spill] sm:$0xff] }
 0x12e   : > { %10220 = vmatprep.subr.bf16.mxu1 %v20143_v56  ;;  %9646 = vmatpush1.bf16.msra.mxu0 %v20144_v47  ;;  %v20154_v56 = vld [vmem:[#allocation47_spill] sm:$0xff]  ;;  %v20155_v47 = vld [vmem:[#allocation54_spill] sm:$0xff] }
 0x12f   : > { %9648 = vmatprep.subr.bf16.mxu0 %v20145_v23  ;;  %v20156_v23 = vld [vmem:[#allocation56_spill] sm:$0xff] }
 0x131   : > { %10222 = vmatpush1.bf16.msra.mxu1 %v20146_v32  ;;  %v20157_v32 = vld [vmem:[#allocation62_spill] sm:$0xff] }
 0x132   : > { %10224 = vmatprep.subr.bf16.mxu1 %v20147_v36  ;;  %9650 = vmatpush1.bf16.msra.mxu0 %v20148_v6  ;;  %v20158_v36 = vld [vmem:[#allocation59_spill] sm:$0xff]  ;;  %v20159_v6 = vld [vmem:[#allocation66_spill] sm:$0xff] }
 0x133   : > { %9652 = vmatprep.subr.bf16.mxu0 %v20149_v15  ;;  %v20160_v15 = vld [vmem:[#allocation68_spill] sm:$0xff] }
 0x135   : > { %10226 = vmatpush1.bf16.msra.mxu1 %v20150_v45  ;;  %v20161_v45 = vld [vmem:[#allocation74_spill] sm:$0xff] }
 0x136   : > { %10228 = vmatprep.subr.bf16.mxu1 %v20151_v27  ;;  %9654 = vmatpush1.bf16.msra.mxu0 %v20152_v16  ;;  %v20162_v27 = vld [vmem:[#allocation71_spill] sm:$0xff]  ;;  %v20163_v16 = vld [vmem:[#allocation78_spill] sm:$0xff] }
 0x137   : > { %9656 = vmatprep.subr.bf16.mxu0 %v20153_v57  ;;  %v20164_v57 = vld [vmem:[#allocation80_spill] sm:$0xff] }
 0x139   : > { %10230 = vmatpush1.bf16.msra.mxu1 %v20154_v56  ;;  %v20165_v56 = vld [vmem:[#allocation86_spill] sm:$0xff] }
 0x13a   : > { %10232 = vmatprep.subr.bf16.mxu1 %v20155_v47  ;;  %9658 = vmatpush1.bf16.msra.mxu0 %v20156_v23  ;;  %v20166_v47 = vld [vmem:[#allocation83_spill] sm:$0xff]  ;;  %v20167_v23 = vld [vmem:[#allocation90_spill] sm:$0xff] }
 0x13b   : > { %9660 = vmatprep.subr.bf16.mxu0 %v20157_v32  ;;  %v20168_v32 = vld [vmem:[#allocation92_spill] sm:$0xff] }
 0x13d   : > { %10234 = vmatpush1.bf16.msra.mxu1 %v20158_v36  ;;  %v20169_v36 = vld [vmem:[#allocation98_spill] sm:$0xff] }
 0x13e   : > { %10236 = vmatprep.subr.bf16.mxu1 %v20159_v6  ;;  %9662 = vmatpush1.bf16.msra.mxu0 %v20160_v15  ;;  %v20170_v6 = vld [vmem:[#allocation95_spill] sm:$0xff]  ;;  %v20171_v15 = vld [vmem:[#allocation102_spill] sm:$0xff] }
 0x13f   : > { %9664 = vmatprep.subr.bf16.mxu0 %v20161_v45  ;;  %v20172_v45 = vld [vmem:[#allocation104_spill] sm:$0xff] }
 0x141   : > { %10238 = vmatpush1.bf16.msra.mxu1 %v20162_v27  ;;  %v20173_v27 = vld [vmem:[#allocation110_spill] sm:$0xff] }
 0x142   : > { %10240 = vmatprep.subr.bf16.mxu1 %v20163_v16  ;;  %9666 = vmatpush1.bf16.msra.mxu0 %v20164_v57  ;;  %v20174_v16 = vld [vmem:[#allocation107_spill] sm:$0xff]  ;;  %v20175_v57 = vld [vmem:[#allocation114_spill] sm:$0xff] }
 0x143   : > { %9668 = vmatprep.subr.bf16.mxu0 %v20165_v56  ;;  %v20176_v56 = vld [vmem:[#allocation116_spill] sm:$0xff] }
 0x145   : > { %10242 = vmatpush1.bf16.msra.mxu1 %v20166_v47  ;;  %v20177_v47 = vld [vmem:[#allocation122_spill] sm:$0xff] }
 0x146   : > { %10244 = vmatprep.subr.bf16.mxu1 %v20167_v23  ;;  %9670 = vmatpush1.bf16.msra.mxu0 %v20168_v32  ;;  %v20178_v23 = vld [vmem:[#allocation119_spill] sm:$0xff]  ;;  %v20179_v32 = vld [vmem:[#allocation126_spill] sm:$0xff] }
 0x147   : > { %9672 = vmatprep.subr.bf16.mxu0 %v20169_v36  ;;  %v20180_v36 = vld [vmem:[#allocation128_spill] sm:$0xff] }
 0x149   : > { %10246 = vmatpush1.bf16.msra.mxu1 %v20170_v6  ;;  %v20181_v6 = vld [vmem:[#allocation134_spill] sm:$0xff] }
 0x14a   : > { %10248 = vmatprep.subr.bf16.mxu1 %v20171_v15  ;;  %9674 = vmatpush1.bf16.msra.mxu0 %v20172_v45  ;;  %v20182_v15 = vld [vmem:[#allocation131_spill] sm:$0xff]  ;;  %v20183_v45 = vld [vmem:[#allocation138_spill] sm:$0xff] }
 0x14b   : > { %9676 = vmatprep.subr.bf16.mxu0 %v20173_v27  ;;  %v20184_v27 = vld [vmem:[#allocation140_spill] sm:$0xff] }
 0x14d   : > { %10250 = vmatpush1.bf16.msra.mxu1 %v20174_v16  ;;  %v20185_v16 = vld [vmem:[#allocation146_spill] sm:$0xff] }
 0x14e   : > { %10252 = vmatprep.subr.bf16.mxu1 %v20175_v57  ;;  %9678 = vmatpush1.bf16.msra.mxu0 %v20176_v56  ;;  %v20186_v57 = vld [vmem:[#allocation143_spill] sm:$0xff]  ;;  %v20187_v56 = vld [vmem:[#allocation150_spill] sm:$0xff] }
 0x14f   : > { %9680 = vmatprep.subr.bf16.mxu0 %v20177_v47  ;;  %v20188_v47 = vld [vmem:[#allocation152_spill] sm:$0xff] }
 0x151   : > { %10254 = vmatpush1.bf16.msra.mxu1 %v20178_v23  ;;  %v20189_v23 = vld [vmem:[#allocation158_spill] sm:$0xff] }
 0x152   : > { %10256 = vmatprep.subr.bf16.mxu1 %v20179_v32  ;;  %9682 = vmatpush1.bf16.msra.mxu0 %v20180_v36  ;;  %v20190_v32 = vld [vmem:[#allocation155_spill] sm:$0xff]  ;;  %v20191_v36 = vld [vmem:[#allocation162_spill] sm:$0xff] }
 0x153   : > { %9684 = vmatprep.subr.bf16.mxu0 %v20181_v6  ;;  %v20192_v6 = vld [vmem:[#allocation164_spill] sm:$0xff] }
 0x155   : > { %10258 = vmatpush1.bf16.msra.mxu1 %v20182_v15  ;;  %v20193_v15 = vld [vmem:[#allocation170_spill] sm:$0xff] }
 0x156   : > { %10260 = vmatprep.subr.bf16.mxu1 %v20183_v45  ;;  %9686 = vmatpush1.bf16.msra.mxu0 %v20184_v27  ;;  %v20194_v45 = vld [vmem:[#allocation167_spill] sm:$0xff]  ;;  %v20195_v27 = vld [vmem:[#allocation174_spill] sm:$0xff] }
 0x157   : > { %9688 = vmatprep.subr.bf16.mxu0 %v20185_v16  ;;  %v20196_v16 = vld [vmem:[#allocation176_spill] sm:$0xff] }
 0x159   : > { %10262 = vmatpush1.bf16.msra.mxu1 %v20186_v57  ;;  %v20197_v57 = vld [vmem:[#allocation182_spill] sm:$0xff] }
 0x15a   : > { %10264 = vmatprep.subr.bf16.mxu1 %v20187_v56  ;;  %9690 = vmatpush1.bf16.msra.mxu0 %v20188_v47  ;;  %v20198_v56 = vld [vmem:[#allocation3_spill] sm:$0xff] }
 0x15b   : > { %9692 = vmatprep.subr.bf16.mxu0 %v20189_v23  ;;  %v20199_v47 = vand.u32 4294901760, %v20198_v56  ;;  %v20201_v23 = vand.u32 4294901760, %v20200_v61  ;;  %v20213_v56 = vld [vmem:[#allocation14_spill] sm:$0xff] }
 0x15c   : > { %v20214_v61 = vand.u32 4294901760, %v20213_v56 }
 0x15d   : > { %10266 = vmatpush1.bf16.msra.mxu1 %v20190_v32  ;;  %v9703_v2 = vpack.c.bf16 %v20201_v23, %v20199_v47  ;;  %v20202_v32 = vld [vmem:[#allocation179_spill] sm:$0xff]  ;;  %v20215_v47 = vld [vmem:[#allocation16_spill] sm:$0xff] }
 0x15e   : > { %10268 = vmatprep.subr.bf16.mxu1 %v20191_v36  ;;  %9694 = vmatpush1.bf16.msra.mxu0 %v20192_v6  ;;  %v20203_v36 = vld [vmem:[#allocation186_spill] sm:$0xff]  ;;  %v20204_v6 = vld [vmem:[#allocation5_spill] sm:$0xff]  ;;  %v20216_v23 = vand.u32 4294901760, %v20215_v47 }
 0x15f   : > { %9696 = vmatprep.subr.bf16.mxu0 %v20193_v15  ;;  %v20205_v62 = vand.u32 4294901760, %v20204_v6  ;;  %v20206_v15 = vld [vmem:[#allocation7_spill] sm:$0xff]  ;;  %v20229_v47 = vld [vmem:[#allocation22_spill] sm:$0xff] }
 0x160   : > { %v20207_v59 = vand.u32 4294901760, %v20206_v15  ;;  %v20221_v15 = vand.u32 4294901760, %v20220_v37  ;;  %v20232_v37 = vld [vmem:[#allocation27_spill] sm:$0xff] }
 0x161   : > { %10270 = vmatpush1.bf16.msra.mxu1 %v20194_v45 }
 0x162   : > { %10272 = vmatprep.subr.bf16.mxu1 %v20195_v27  ;;  %9698 = vmatpush1.bf16.msra.mxu0 %v20196_v16  ;;  %v10279_v45 = vpack.c.bf16 %v20207_v59, %v20205_v62  ;;  %v20209_v27 = vld [vmem:[#allocation9_spill] sm:$0xff]  ;;  %v20222_v62 = vld [vmem:[#allocation198_spill] sm:$0xff] }
 0x163   : > { %9700 = vmatprep.subr.bf16.mxu0 %v20197_v57  ;;  %v20210_v16 = vand.u32 4294901760, %v20209_v27  ;;  %v20212_v57 = vand.u32 4294901760, %v20211_v19  ;;  %v20223_v27 = vld [vmem:[#allocation18_spill] sm:$0xff]  ;;  %v20225_v19 = vld [vmem:[#allocation19_spill] sm:$0xff] }
 0x165   : > { %10274 = vmatpush1.bf16.msra.mxu1 %v20202_v32  ;;  %v9705_v4 = vpack.c.bf16 %v20212_v57, %v20210_v16  ;;  %v9707_v32 = vpack.c.bf16 %v20216_v23, %v20214_v61  ;;  %v20226_v16 = vand.u32 4294901760, %v20225_v19  ;;  %v20227_v57 = vld [vmem:[#allocation20_spill] sm:$0xff]  ;;  %v20230_v61 = vand.u32 4294901760, %v20229_v47  ;;  %v20242_v47 = vld [vmem:[#allocation31_spill] sm:$0xff] }
 0x166   : > { %10276 = vmatprep.subr.bf16.mxu1 %v20203_v36  ;;  %9702 = vmatpush1.bf16.msra.mxu0 %v20208_v54  ;;  %v20218_v36 = vld [vmem:[#allocation12_spill] sm:$0xff]  ;;  %v20224_v54 = vand.u32 4294901760, %v20223_v27  ;;  %v20228_v56 = vand.u32 4294901760, %v20227_v57  ;;  %v20236_v27 = vld [vmem:[#allocation23_spill] sm:$0xff]  ;;  %v20240_v57 = vld [vmem:[#allocation30_spill] sm:$0xff] }
 0x167   : > { %9704 = vmatprep.subr.bf16.mxu0 %v9703_v2  ;;  %v20219_v6 = vand.u32 4294901760, %v20218_v36  ;;  %v20233_v36 = vand.u32 4294901760, %v20232_v37  ;;  %v20237_v19 = vand.u32 4294901760, %v20236_v27  ;;  %v20250_v27 = vld [vmem:[#allocation40_spill] sm:$0xff] }
 0x168   : > { %v10283_v2 = vpack.c.bf16 %v20226_v16, %v20224_v54  ;;  %v9709_v23 = vpack.c.bf16 %v20230_v61, %v20228_v56  ;;  %v20238_v54 = vld [vmem:[#allocation25_spill] sm:$0xff]  ;;  %v20241_v56 = vand.u32 4294901760, %v20240_v57  ;;  %v20243_v61 = vand.u32 4294901760, %v20242_v47  ;;  %v20258_v47 = vld [vmem:[#allocation43_spill] sm:$0xff] }
 0x169   : > { %10278 = vmatpush1.bf16.msra.mxu1 %v20217_v13  ;;  %v10281_v59 = vpack.c.bf16 %v20221_v15, %v20219_v6  ;;  %1585 = vmatmul.mubr.f32.vlgmr.msra.gmra.mrb[0].mxu0 %v20222_v62  ;;  %v20231_v13 = vld [vmem:[#allocation195_spill] sm:$0xff] }
 0x16a   : > { %10280 = vmatprep.subr.bf16.mxu1 %v10279_v45  ;;  %9706 = vmatpush1.bf16.msra.mxu0 %v9705_v4  ;;  %v20234_v45 = vld [vmem:[#allocation28_spill] sm:$0xff]  ;;  %v20239_v4 = vand.u32 4294901760, %v20238_v54  ;;  %v20251_v54 = vand.u32 4294901760, %v20250_v27 }
 0x16b   : > { %1848 = vmatprep.mubr.f32.mxu0 %v20231_v13  ;;  %9708 = vmatprep.subr.bf16.mxu0 %v9707_v32  ;;  %v20235_v6 = vand.u32 4294901760, %v20234_v45  ;;  %v20244_v32 = vld [vmem:[#allocation33_spill] sm:$0xff]  ;;  %v20247_v45 = vand.u32 4294901760, %v20246_v1  ;;  %v20260_v1 = vld [vmem:[#allocation44_spill] sm:$0xff] }
 0x16c   : > { %3724 = vmatmul.mubr.f32.vlgmr.msra.gmra.mrb[0].mxu1 %v20222_v62  ;;  %v10285_v16 = vpack.c.bf16 %v20239_v4, %v20237_v19  ;;  %v10287_v62 = vpack.c.bf16 %v20243_v61, %v20241_v56  ;;  %v20245_v37 = vand.u32 4294901760, %v20244_v32  ;;  %v20252_v4 = vld [vmem:[#allocation36_spill] sm:$0xff]  ;;  %v20256_v56 = vld [vmem:[#allocation42_spill] sm:$0xff]  ;;  %v20259_v61 = vand.u32 4294901760, %v20258_v47  ;;  %v20274_v47 = vld [vmem:[#allocation55_spill] sm:$0xff] }
 0x16d   : > { %v9711_v15 = vpack.c.bf16 %v20235_v6, %v20233_v36  ;;  %10282 = vmatpush1.bf16.msra.mxu1 %v10281_v59  ;;  %3987 = vmatprep.mubr.f32.mxu1 %v20231_v13  ;;  %v20248_v59 = vld [vmem:[#allocation39_spill] sm:$0xff]  ;;  %v20254_v13 = vld [vmem:[#allocation37_spill] sm:$0xff]  ;;  %v20266_v27 = vld [vmem:[#allocation52_spill] sm:$0xff] }
 0x16e   : > { %10284 = vmatprep.subr.bf16.mxu1 %v10283_v2  ;;  %9710 = vmatpush1.bf16.msra.mxu0 %v9709_v23  ;;  %v9713_v36 = vpack.c.bf16 %v20247_v45, %v20245_v37  ;;  %v20249_v6 = vand.u32 4294901760, %v20248_v59  ;;  %v20253_v2 = vand.u32 4294901760, %v20252_v4  ;;  %v20255_v57 = vand.u32 4294901760, %v20254_v13  ;;  %v20262_v37 = vld [vmem:[#allocation46_spill] sm:$0xff]  ;;  %v20268_v13 = vld [vmem:[#allocation48_spill] sm:$0xff] }
 0x16f   : > { %9712 = vmatprep.subr.bf16.mxu0 %v9711_v15  ;;  %v20257_v23 = vand.u32 4294901760, %v20256_v56  ;;  %v20261_v15 = vand.u32 4294901760, %v20260_v1  ;;  %v20263_v45 = vand.u32 4294901760, %v20262_v37  ;;  %v20278_v37 = vld [vmem:[#allocation58_spill] sm:$0xff] }
 0x170   : > { %v9715_v19 = vpack.c.bf16 %v20251_v54, %v20249_v6  ;;  %v10289_v51 = vpack.c.bf16 %v20255_v57, %v20253_v2  ;;  %v20264_v6 = vld [vmem:[#allocation51_spill] sm:$0xff]  ;;  %v20267_v54 = vand.u32 4294901760, %v20266_v27  ;;  %v20270_v2 = vld [vmem:[#allocation49_spill] sm:$0xff]  ;;  %v20282_v27 = vld [vmem:[#allocation64_spill] sm:$0xff] }
 0x171   : > { %10286 = vmatpush1.bf16.msra.mxu1 %v10285_v16  ;;  %v10291_v32 = vpack.c.bf16 %v20259_v61, %v20257_v23  ;;  %v9717_v59 = vpack.c.bf16 %v20263_v45, %v20261_v15  ;;  %v20265_v16 = vand.u32 4294901760, %v20264_v6  ;;  %v20271_v57 = vand.u32 4294901760, %v20270_v2  ;;  %v20272_v23 = vld [vmem:[#allocation53_spill] sm:$0xff] }
 0x172   : > { %10288 = vmatprep.subr.bf16.mxu1 %v10287_v62  ;;  %9714 = vmatpush1.bf16.msra.mxu0 %v9713_v36  ;;  %v20269_v62 = vand.u32 4294901760, %v20268_v13  ;;  %v20273_v36 = vand.u32 4294901760, %v20272_v23  ;;  %v20275_v61 = vand.u32 4294901760, %v20274_v47  ;;  %v20276_v15 = vld [vmem:[#allocation57_spill] sm:$0xff]  ;;  %v20279_v45 = vand.u32 4294901760, %v20278_v37  ;;  %v20290_v47 = vld [vmem:[#allocation67_spill] sm:$0xff] }
 0x173   : > { %9716 = vmatprep.subr.bf16.mxu0 %v9715_v19  ;;  %v9719_v4 = vpack.c.bf16 %v20267_v54, %v20265_v16  ;;  %v20277_v19 = vand.u32 4294901760, %v20276_v15  ;;  %v20280_v16 = vld [vmem:[#allocation63_spill] sm:$0xff]  ;;  %v20283_v54 = vand.u32 4294901760, %v20282_v27  ;;  %v20286_v2 = vld [vmem:[#allocation61_spill] sm:$0xff]  ;;  %v20294_v37 = vld [vmem:[#allocation70_spill] sm:$0xff] }
 0x174   : > { %v10293_v56 = vpack.c.bf16 %v20271_v57, %v20269_v62  ;;  %v10295_v1 = vpack.c.bf16 %v20275_v61, %v20273_v36  ;;  %v20284_v62 = vld [vmem:[#allocation60_spill] sm:$0xff]  ;;  %v20287_v57 = vand.u32 4294901760, %v20286_v2  ;;  %v20288_v36 = vld [vmem:[#allocation65_spill] sm:$0xff]  ;;  %v20291_v61 = vand.u32 4294901760, %v20290_v47  ;;  %v20306_v47 = vld [vmem:[#allocation79_spill] sm:$0xff] }
 0x175   : > { %10290 = vmatpush1.bf16.msra.mxu1 %v10289_v51  ;;  %v9721_v6 = vpack.c.bf16 %v20279_v45, %v20277_v19  ;;  %v20281_v51 = vand.u32 4294901760, %v20280_v16  ;;  %v20292_v19 = vld [vmem:[#allocation69_spill] sm:$0xff]  ;;  %v20295_v45 = vand.u32 4294901760, %v20294_v37  ;;  %v20298_v27 = vld [vmem:[#allocation76_spill] sm:$0xff]  ;;  %v20310_v37 = vld [vmem:[#allocation82_spill] sm:$0xff] }
 0x176   : > { %10292 = vmatprep.subr.bf16.mxu1 %v10291_v32  ;;  %9718 = vmatpush1.bf16.msra.mxu0 %v9717_v59  ;;  %v20285_v32 = vand.u32 4294901760, %v20284_v62  ;;  %v20289_v59 = vand.u32 4294901760, %v20288_v36  ;;  %v20302_v2 = vld [vmem:[#allocation73_spill] sm:$0xff] }
 0x177   : > { %9720 = vmatprep.subr.bf16.mxu0 %v9719_v4  ;;  %v9723_v13 = vpack.c.bf16 %v20283_v54, %v20281_v51  ;;  %v20293_v4 = vand.u32 4294901760, %v20292_v19  ;;  %v20296_v51 = vld [vmem:[#allocation75_spill] sm:$0xff]  ;;  %v20299_v54 = vand.u32 4294901760, %v20298_v27  ;;  %v20314_v27 = vld [vmem:[#allocation88_spill] sm:$0xff] }
 0x178   : > { %v10297_v23 = vpack.c.bf16 %v20287_v57, %v20285_v32  ;;  %v10299_v15 = vpack.c.bf16 %v20291_v61, %v20289_v59  ;;  %v20300_v32 = vld [vmem:[#allocation72_spill] sm:$0xff]  ;;  %v20303_v57 = vand.u32 4294901760, %v20302_v2  ;;  %v20304_v59 = vld [vmem:[#allocation77_spill] sm:$0xff]  ;;  %v20307_v61 = vand.u32 4294901760, %v20306_v47 }
 0x179   : > { %10294 = vmatpush1.bf16.msra.mxu1 %v10293_v56  ;;  %v9725_v16 = vpack.c.bf16 %v20295_v45, %v20293_v4  ;;  %v20297_v56 = vand.u32 4294901760, %v20296_v51  ;;  %v20308_v4 = vld [vmem:[#allocation81_spill] sm:$0xff]  ;;  %v20311_v45 = vand.u32 4294901760, %v20310_v37  ;;  %v20322_v47 = vand.u32 4294901760, %v20083_v49 }
 0x17a   : > { %10296 = vmatprep.subr.bf16.mxu1 %v10295_v1  ;;  %9722 = vmatpush1.bf16.msra.mxu0 %v9721_v6  ;;  %v20301_v1 = vand.u32 4294901760, %v20300_v32  ;;  %v20305_v6 = vand.u32 4294901760, %v20304_v59  ;;  %v20320_v59 = vand.u32 4294901760, %v20081_v53  ;;  %v20327_v53 = vand.u32 4294901760, %v20088_v9 }
 0x17b   : > { %9724 = vmatprep.subr.bf16.mxu0 %v9723_v13  ;;  %v9727_v62 = vpack.c.bf16 %v20299_v54, %v20297_v56  ;;  %v20309_v13 = vand.u32 4294901760, %v20308_v4  ;;  %v20312_v56 = vld [vmem:[#allocation87_spill] sm:$0xff]  ;;  %v20315_v54 = vand.u32 4294901760, %v20314_v27  ;;  %v20329_v49 = vand.u32 4294901760, %v19951_v24 }
 0x17c   : > { %v10301_v36 = vpack.c.bf16 %v20303_v57, %v20301_v1  ;;  %v10303_v19 = vpack.c.bf16 %v20307_v61, %v20305_v6  ;;  %v20317_v1 = vld [vmem:[#allocation85_spill] sm:$0xff]  ;;  %v20334_v9 = vand.u32 4294901760, %v19954_v3  ;;  %v20336_v24 = vand.u32 4294901760, %v20012_v43 }
 0x17d   : > { %10298 = vmatpush1.bf16.msra.mxu1 %v10297_v23  ;;  %v9729_v51 = vpack.c.bf16 %v20311_v45, %v20309_v13  ;;  %v20313_v23 = vand.u32 4294901760, %v20312_v56  ;;  %v20318_v2 = vand.u32 4294901760, %v20317_v1  ;;  %v20341_v3 = vand.u32 4294901760, %v20015_v29 }
 0x17e   : > { %10300 = vmatprep.subr.bf16.mxu1 %v10299_v15  ;;  %9726 = vmatpush1.bf16.msra.mxu0 %v9725_v16  ;;  %v20316_v15 = vand.u32 4294901760, %v20078_v28  ;;  %v20319_v16 = vand.u32 4294901760, %v20080_v52  ;;  %v20324_v28 = vand.u32 4294901760, %v20085_v38  ;;  %v20326_v52 = vand.u32 4294901760, %v20087_v35 }
 0x17f   : > { %9728 = vmatprep.subr.bf16.mxu0 %v9727_v62  ;;  %v9731_v32 = vpack.c.bf16 %v20315_v54, %v20313_v23  ;;  %v20321_v62 = vand.u32 4294901760, %v20082_v20  ;;  %v20328_v20 = vand.u32 4294901760, %v20089_v60  ;;  %v20331_v38 = vand.u32 4294901760, %v20009_v8 }
 0x180   : > { %v10305_v57 = vpack.c.bf16 %v20318_v2, %v20316_v15  ;;  %v10307_v6 = vpack.c.bf16 %v20320_v59, %v20319_v16  ;;  %v20333_v35 = vand.u32 4294901760, %v19953_v30  ;;  %v20335_v60 = vand.u32 4294901760, %v20011_v55  ;;  %v20348_v2 = vld [vmem:[#allocation136_spill] sm:$0xff]  ;;  %v20352_v59 = vld [vmem:[#allocation133_spill] sm:$0xff] }
 0x181   : > { %10302 = vmatpush1.bf16.msra.mxu1 %v10301_v36  ;;  %v9733_v61 = vpack.c.bf16 %v20322_v47, %v20321_v62  ;;  %v20323_v36 = vand.u32 4294901760, %v20084_v21  ;;  %v10311_v37 = vpack.c.bf16 %v20328_v20, %v20327_v53  ;;  %v20330_v21 = vand.u32 4294901760, %v19952_v26  ;;  %v20355_v62 = vld [vmem:[#allocation139_spill] sm:$0xff] }
 0x182   : > { %10304 = vmatprep.subr.bf16.mxu1 %v10303_v19  ;;  %9730 = vmatpush1.bf16.msra.mxu0 %v9729_v51  ;;  %v20325_v19 = vand.u32 4294901760, %v20086_v40  ;;  %v20332_v40 = vand.u32 4294901760, %v20010_v11  ;;  %v10313_v56 = vpack.c.bf16 %v20334_v9, %v20333_v35  ;;  %v10315_v23 = vpack.c.bf16 %v20336_v24, %v20335_v60  ;;  %v20382_v24 = vld [vmem:[#allocation171_spill] sm:$0xff] }
 0x183   : > { %9732 = vmatprep.subr.bf16.mxu0 %v9731_v32  ;;  %v9735_v4 = vpack.c.bf16 %v20324_v28, %v20323_v36  ;;  %v9737_v45 = vpack.c.bf16 %v20330_v21, %v20329_v49  ;;  %v20337_v26 = vand.u32 4294901760, %v20013_v63  ;;  %v20338_v8 = vand.u32 4294901760, %v20014_v58 }
 0x184   : > { %v10309_v13 = vpack.c.bf16 %v20326_v52, %v20325_v19  ;;  %v9739_v51 = vpack.c.bf16 %v20332_v40, %v20331_v38  ;;  %v20339_v11 = vand.u32 4294901760, %v20017_v0  ;;  %v20340_v30 = vand.u32 4294901760, %v20018_v34 }
 0x185   : > { %10306 = vmatpush1.bf16.msra.mxu1 %v10305_v57  ;;  %v9741_v27 = vpack.c.bf16 %v20338_v8, %v20337_v26  ;;  %v20342_v55 = vand.u32 4294901760, %v20016_v7  ;;  %v20343_v43 = vand.u32 4294901760, %v20019_v25  ;;  %v20344_v63 = vand.u32 4294901760, %v20020_v33  ;;  %v20350_v7 = vld [vmem:[#allocation132_spill] sm:$0xff] }
 0x186   : > { %10308 = vmatprep.subr.bf16.mxu1 %v10307_v6  ;;  %9734 = vmatpush1.bf16.msra.mxu0 %v9733_v61  ;;  %v9743_v54 = vpack.c.bf16 %v20340_v30, %v20339_v11  ;;  %v20345_v58 = vand.u32 4294901760, %v20021_v18  ;;  %v20346_v0 = vand.u32 4294901760, %v20022_v12  ;;  %v20347_v34 = vand.u32 4294901760, %v20025_v10  ;;  %v20384_v26 = vld [vmem:[#allocation172_spill] sm:$0xff] }
 0x187   : > { %9736 = vmatprep.subr.bf16.mxu0 %v9735_v4  ;;  %v10317_v32 = vpack.c.bf16 %v20342_v55, %v20341_v3  ;;  %v10319_v15 = vpack.c.bf16 %v20344_v63, %v20343_v43  ;;  %v20349_v29 = vand.u32 4294901760, %v20348_v2  ;;  %v20351_v16 = vand.u32 4294901760, %v20350_v7  ;;  %v20386_v11 = vld [vmem:[#allocation168_spill] sm:$0xff]  ;;  %v20392_v63 = vld [vmem:[#allocation175_spill] sm:$0xff] }
 0x188   : > { %v9745_v1 = vpack.c.bf16 %v20346_v0, %v20345_v58  ;;  %v20353_v25 = vand.u32 4294901760, %v20352_v59  ;;  %v20354_v33 = vand.u32 4294901760, %v20027_v5  ;;  %v20356_v18 = vand.u32 4294901760, %v20355_v62  ;;  %v20394_v0 = vld [vmem:[#allocation177_spill] sm:$0xff] }
 0x189   : > { %10310 = vmatpush1.bf16.msra.mxu1 %v10309_v13  ;;  %v9747_v57 = vpack.c.bf16 %v20349_v29, %v20347_v34  ;;  %v20357_v12 = vand.u32 4294901760, %v20103_v14  ;;  %v20358_v10 = vand.u32 4294901760, %v20102_v48  ;;  %v20359_v36 = vand.u32 4294901760, %v20033_v39  ;;  %v20396_v34 = vld [vmem:[#allocation178_spill] sm:$0xff]  ;;  %v20404_v62 = vld [vmem:[#allocation181_spill] sm:$0xff] }
 0x18a   : > { %10312 = vmatprep.subr.bf16.mxu1 %v10311_v37  ;;  %9738 = vmatpush1.bf16.msra.mxu0 %v9737_v45  ;;  %v10321_v6 = vpack.c.bf16 %v20353_v25, %v20351_v16  ;;  %v10323_v47 = vpack.c.bf16 %v20356_v18, %v20354_v33  ;;  %v20360_v28 = vand.u32 4294901760, %v20034_v46  ;;  %v20361_v19 = vand.u32 4294901760, %v20107_v31  ;;  %v20368_v37 = vld [vmem:[#allocation160_spill] sm:$0xff]  ;;  %v20372_v45 = vld [vmem:[#allocation157_spill] sm:$0xff] }
 0x18b   : > { %9740 = vmatprep.subr.bf16.mxu0 %v9739_v51  ;;  %v9749_v61 = vpack.c.bf16 %v20358_v10, %v20357_v12  ;;  %v20362_v5 = vand.u32 4294901760, %v20106_v22  ;;  %v20363_v13 = vand.u32 4294901760, %v20109_v42  ;;  %v20364_v14 = vand.u32 4294901760, %v20036_v41  ;;  %v20370_v22 = vld [vmem:[#allocation156_spill] sm:$0xff]  ;;  %v20374_v41 = vld [vmem:[#allocation161_spill] sm:$0xff]  ;;  %v20376_v51 = vld [vmem:[#allocation163_spill] sm:$0xff] }
 0x18c   : > { %v9751_v4 = vpack.c.bf16 %v20360_v28, %v20359_v36  ;;  %v20365_v48 = vand.u32 4294901760, %v20112_v44  ;;  %v20366_v39 = vand.u32 4294901760, %v20111_v50  ;;  %v20367_v46 = vand.u32 4294901760, %v20041_v17  ;;  %v20378_v50 = vld [vmem:[#allocation165_spill] sm:$0xff]  ;;  %v20400_v16 = vld [vmem:[#allocation184_spill] sm:$0xff] }
 0x18d   : > { %10314 = vmatpush1.bf16.msra.mxu1 %v10313_v56  ;;  %v10325_v52 = vpack.c.bf16 %v20362_v5, %v20361_v19  ;;  %v10327_v53 = vpack.c.bf16 %v20364_v14, %v20363_v13  ;;  %v20369_v31 = vand.u32 4294901760, %v20368_v37  ;;  %v20371_v21 = vand.u32 4294901760, %v20370_v22  ;;  %v20380_v56 = vld [vmem:[#allocation166_spill] sm:$0xff]  ;;  %v20406_v12 = vld [vmem:[#allocation185_spill] sm:$0xff]  ;;  %v20414_v14 = vld [vmem:[#allocation192_spill] sm:$0xff] }
 0x18e   : > { %10316 = vmatprep.subr.bf16.mxu1 %v10315_v23  ;;  %9742 = vmatpush1.bf16.msra.mxu0 %v9741_v27  ;;  %v9753_v20 = vpack.c.bf16 %v20366_v39, %v20365_v48  ;;  %v20373_v42 = vand.u32 4294901760, %v20372_v45  ;;  %v20375_v40 = vand.u32 4294901760, %v20374_v41  ;;  %v20377_v44 = vand.u32 4294901760, %v20376_v51  ;;  %v20412_v5 = vld [vmem:[#allocation190_spill] sm:$0xff]  ;;  %v20416_v48 = vld [vmem:[#allocation193_spill] sm:$0xff]  ;;  %v20422_v22 = vld [vmem:[#allocation195_spill] sm:$0xff] }
 0x18f   : > { %9744 = vmatprep.subr.bf16.mxu0 %v9743_v54  ;;  %v9755_v49 = vpack.c.bf16 %v20369_v31, %v20367_v46  ;;  %v20379_v9 = vand.u32 4294901760, %v20378_v50  ;;  %v20381_v17 = vand.u32 4294901760, %v20380_v56  ;;  %v20383_v23 = vand.u32 4294901760, %v20382_v24  ;;  %v20388_v54 = vld [vmem:[#allocation169_spill] sm:$0xff]  ;;  %v20418_v46 = vld [vmem:[#allocation2_spill] sm:$0xff]  ;;  %v20424_v45 = vld [vmem:[#allocation11_spill] sm:$0xff] }
 0x190   : > { %v10329_v38 = vpack.c.bf16 %v20373_v42, %v20371_v21  ;;  %v10331_v35 = vpack.c.bf16 %v20377_v44, %v20375_v40  ;;  %v20385_v8 = vand.u32 4294901760, %v20384_v26  ;;  %v20387_v30 = vand.u32 4294901760, %v20386_v11  ;;  %v20419_v37 = vld [vmem:[#allocation6_spill] sm:$0xff]  ;;  %v20423_v21 = vld [vmem:[#allocation15_spill] sm:$0xff]  ;;  %v20425_v42 = vld [vmem:[#allocation17_spill] sm:$0xff] }
 0x191   : > { %10318 = vmatpush1.bf16.msra.mxu1 %v10317_v32  ;;  %v9757_v60 = vpack.c.bf16 %v20381_v17, %v20379_v9  ;;  %v20389_v3 = vand.u32 4294901760, %v20388_v54  ;;  %v20390_v32 = vld [vmem:[#allocation173_spill] sm:$0xff]  ;;  %v20397_v2 = vand.u32 4294901760, %v20396_v34  ;;  %v20401_v59 = vand.u32 4294901760, %v20400_v16  ;;  %v20420_v31 = vld [vmem:[#allocation194_spill] sm:$0xff]  ;;  %v20428_v40 = vld [vmem:[#allocation24_spill] sm:$0xff] }
 0x192   : > { %10320 = vmatprep.subr.bf16.mxu1 %v10319_v15  ;;  %9746 = vmatpush1.bf16.msra.mxu0 %v9745_v1  ;;  %v9759_v27 = vpack.c.bf16 %v20385_v8, %v20383_v23  ;;  %v20391_v43 = vand.u32 4294901760, %v20390_v32  ;;  %v20393_v15 = vand.u32 4294901760, %v20392_v63  ;;  %v20395_v1 = vand.u32 4294901760, %v20394_v0  ;;  %v20427_v41 = vld [vmem:[#allocation26_spill] sm:$0xff]  ;;  %v20429_v51 = vld [vmem:[#allocation29_spill] sm:$0xff]  ;;  %v20430_v44 = vld [vmem:[#allocation32_spill] sm:$0xff] }
 0x193   : > { %9748 = vmatprep.subr.bf16.mxu0 %v9747_v57  ;;  %v10333_v55 = vpack.c.bf16 %v20389_v3, %v20387_v30  ;;  %v20398_v57 = vld [vmem:[#allocation183_spill] sm:$0xff]  ;;  %v20405_v18 = vand.u32 4294901760, %v20404_v62  ;;  %v20407_v10 = vand.u32 4294901760, %v20406_v12  ;;  %v20417_v39 = vand.u32 4294901760, %v20416_v48  ;;  %v20433_v9 = vld [vmem:[#allocation41_spill] sm:$0xff]  ;;  %v20435_v17 = vld [vmem:[#allocation50_spill] sm:$0xff] }
 0x194   : > { %v10335_v58 = vpack.c.bf16 %v20393_v15, %v20391_v43  ;;  %v9761_v29 = vpack.c.bf16 %v20397_v2, %v20395_v1  ;;  %v20399_v7 = vand.u32 4294901760, %v20398_v57  ;;  %v20432_v50 = vld [vmem:[#allocation35_spill] sm:$0xff]  ;;  %v20434_v56 = vld [vmem:[#allocation45_spill] sm:$0xff]  ;;  %v20437_v26 = vld [vmem:[#allocation54_spill] sm:$0xff] }
 0x195   : > { %10322 = vmatpush1.bf16.msra.mxu1 %v10321_v6  ;;  %v20402_v6 = vld [vmem:[#allocation180_spill] sm:$0xff]  ;;  %v540_v24 = vld [vmem:[%s18494_s2 + $0x808] sm:$0xff]  ;;  %v542_v8 = vld [vmem:[%s18494_s2 + $0x818] sm:$0xff] }
 0x196   : > { %10324 = vmatprep.subr.bf16.mxu1 %v10323_v47  ;;  %9750 = vmatpush1.bf16.msra.mxu0 %v9749_v61  ;;  %v9763_v25 = vpack.c.bf16 %v20401_v59, %v20399_v7  ;;  %v20403_v33 = vand.u32 4294901760, %v20402_v6  ;;  %v20408_v61 = vld [vmem:[#allocation187_spill] sm:$0xff]  ;;  %v20438_v11 = vld [vmem:[#allocation56_spill] sm:$0xff]  ;;  %v539_v30 = vld [vmem:[%s18494_s2 + $0x800] sm:$0xff] }
 0x197   : > { %9752 = vmatprep.subr.bf16.mxu0 %v9751_v4  ;;  %v20409_v36 = vand.u32 4294901760, %v20408_v61  ;;  %v20410_v4 = vld [vmem:[#allocation189_spill] sm:$0xff]  ;;  %v548_v23 = vld [vmem:[%s18494_s2 + $0x848] sm:$0xff]  ;;  %v547_v54 = vld [vmem:[%s18494_s2 + $0x840] sm:$0xff] }
 0x198   : > { %v10337_v47 = vpack.c.bf16 %v20405_v18, %v20403_v33  ;;  %v20411_v19 = vand.u32 4294901760, %v20410_v4  ;;  %v20439_v3 = vld [vmem:[#allocation62_spill] sm:$0xff]  ;;  %v1997_v32 = vand.u32 4294901760, %v548_v23  ;;  %v541_v43 = vld [vmem:[%s18494_s2 + $0x810] sm:$0xff]  ;;  %v20440_v15 = vld [vmem:[#allocation59_spill] sm:$0xff]  ;;  %v1999_v57 = vand.u32 4294901760, %v547_v54 }
 0x199   : > { %10326 = vmatpush1.bf16.msra.mxu1 %v10325_v52  ;;  %v10339_v28 = vpack.c.bf16 %v20409_v36, %v20407_v10  ;;  %v20413_v52 = vand.u32 4294901760, %v20412_v5  ;;  %v549_v63 = vld [vmem:[%s18494_s2 + $0x850] sm:$0xff]  ;;  %v556_v1 = vld [vmem:[%s18494_s2 + $0x888] sm:$0xff]  ;;  %v20441_v2 = vld [vmem:[#allocation66_spill] sm:$0xff] }
 0x19a   : > { %10328 = vmatprep.subr.bf16.mxu1 %v10327_v53  ;;  %9754 = vmatpush1.bf16.msra.mxu0 %v9753_v20  ;;  %v20415_v53 = vand.u32 4294901760, %v20414_v14  ;;  %v564_v34 = vld [vmem:[%s18494_s2 + $0x8c8] sm:$0xff]  ;;  %v558_v7 = vld [vmem:[%s18494_s2 + $0x898] sm:$0xff]  ;;  %v20442_v59 = vld [vmem:[#allocation68_spill] sm:$0xff]  ;;  %v4138_v6 = vand.u32 4294901760, %v549_v63 }
 0x19b   : > { %9756 = vmatprep.subr.bf16.mxu0 %v9755_v49  ;;  %v9765_v13 = vpack.c.bf16 %v20413_v52, %v20411_v19  ;;  %v20421_v49 = vld [vmem:[#allocation8_spill] sm:$0xff]  ;;  %v566_v16 = vld [vmem:[%s18494_s2 + $0x8d8] sm:$0xff]  ;;  %v20443_v33 = vld [vmem:[#allocation74_spill] sm:$0xff]  ;;  %v2005_v12 = vand.u32 4294901760, %v564_v34  ;;  %v4140_v19 = vand.u32 4294901760, %v558_v7 }
 0x19c   : > { %v10341_v20 = vpack.c.bf16 %v20417_v39, %v20415_v53  ;;  %v555_v10 = vld [vmem:[%s18494_s2 + $0x880] sm:$0xff]  ;;  %v20446_v36 = vld [vmem:[#allocation71_spill] sm:$0xff]  ;;  %v4144_v5 = vand.u32 4294901760, %v566_v16  ;;  %v557_v39 = vld [vmem:[%s18494_s2 + $0x890] sm:$0xff] }
 0x19d   : > { %10330 = vmatpush1.bf16.msra.mxu1 %v10329_v38  ;;  %v20426_v38 = vld [vmem:[#allocation21_spill] sm:$0xff]  ;;  %v563_v61 = vld [vmem:[%s18494_s2 + $0x8c0] sm:$0xff] }
 0x19e   : > { %10332 = vmatprep.subr.bf16.mxu1 %v10331_v35  ;;  %9758 = vmatpush1.bf16.msra.mxu0 %v9757_v60  ;;  %v20431_v35 = vld [vmem:[#allocation38_spill] sm:$0xff]  ;;  %v20436_v60 = vld [vmem:[#allocation47_spill] sm:$0xff] }
 0x19f   : > { %9760 = vmatprep.subr.bf16.mxu0 %v9759_v27  ;;  %v550_v27 = vld [vmem:[%s18494_s2 + $0x858] sm:$0xff]  ;;  %v20449_v52 = vld [vmem:[#allocation78_spill] sm:$0xff] }
 0x1a0   : > { %v4136_v0 = vand.u32 4294901760, %v550_v27 }
 0x1a1   : > { %10334 = vmatpush1.bf16.msra.mxu1 %v10333_v55  ;;  %v1993_v55 = vand.u32 4294901760, %v540_v24 }
 0x1a2   : > { %10336 = vmatprep.subr.bf16.mxu1 %v10335_v58  ;;  %9762 = vmatpush1.bf16.msra.mxu0 %v9761_v29  ;;  %v4132_v58 = vand.u32 4294901760, %v542_v8  ;;  %v1995_v29 = vand.u32 4294901760, %v539_v30  ;;  %v14072_v14 = vsub.f32 %v550_v27, %v4136_v0  ;;  %v20464_v27 = vld [vmem:[#allocation90_spill] sm:$0xff] }
 0x1a3   : > { %9764 = vmatprep.subr.bf16.mxu0 %v9763_v25  ;;  %v4134_v25 = vand.u32 4294901760, %v541_v43  ;;  %v14054_v62 = vpack.c.bf16 %v1997_v32, %v1993_v55  ;;  %v14056_v18 = vsub.f32 %v540_v24, %v1993_v55  ;;  %v4142_v24 = vand.u32 4294901760, %v557_v39  ;;  %v573_v55 = vld [vmem:[%s18494_s2 + $0x910] sm:$0xff] }
 0x1a4   : > { %v14067_v4 = vpack.c.bf16 %v4136_v0, %v4132_v58  ;;  %20451 = vst [vmem:[#allocation112_spill] sm:$0xff] %v14072_v14  ;;  %v14074_v53 = vpack.c.bf16 %v1999_v57, %v1995_v29  ;;  %v14076_v48 = vsub.f32 %v539_v30, %v1995_v29  ;;  %v14124_v30 = vsub.f32 %v566_v16, %v4144_v5 }
 0x1a5   : > { %10338 = vmatpush1.bf16.msra.mxu1 %v10337_v47  ;;  %20444 = vst [vmem:[#allocation105_spill] sm:$0xff] %v14054_v62  ;;  %20445 = vst [vmem:[#allocation106_spill] sm:$0xff] %v14056_v18  ;;  %v2001_v47 = vand.u32 4294901760, %v556_v1 }
 0x1a6   : > { %10340 = vmatprep.subr.bf16.mxu1 %v10339_v28  ;;  %9766 = vmatpush1.bf16.msra.mxu0 %v9765_v13  ;;  %v14065_v28 = vsub.f32 %v548_v23, %v1997_v32  ;;  %20448 = vst [vmem:[#allocation109_spill] sm:$0xff] %v14067_v4  ;;  %v14070_v13 = vsub.f32 %v542_v8, %v4132_v58  ;;  %20452 = vst [vmem:[#allocation113_spill] sm:$0xff] %v14074_v53  ;;  %v579_v8 = vld [vmem:[%s18494_s2 + $0x940] sm:$0xff]  ;;  %v581_v32 = vld [vmem:[%s18494_s2 + $0x950] sm:$0xff] }
 0x1a7   : > { %9768 = vmatprep.subr.bf16.mxu0 %v20418_v46  ;;  %v20453_v46 = vld [vmem:[#allocation80_spill] sm:$0xff]  ;;  %20466 = vst [vmem:[#allocation129_spill] sm:$0xff] %v14124_v30  ;;  %v2015_v16 = vand.u32 4294901760, %v579_v8 }
 0x1a8   : > { %20447 = vst [vmem:[#allocation108_spill] sm:$0xff] %v14065_v28  ;;  %20450 = vst [vmem:[#allocation111_spill] sm:$0xff] %v14070_v13 }
 0x1a9   : > { %10342 = vmatpush1.bf16.msra.mxu1 %v10341_v20  ;;  %1850 = vmatmul.mubr.f32.vlgmr.msra.gmra.mrb[0].mxu0 %v20420_v31  ;;  %v565_v20 = vld [vmem:[%s18494_s2 + $0x8d0] sm:$0xff] }
 0x1aa   : > { %10344 = vmatprep.subr.bf16.mxu1 %v20419_v37  ;;  %9770 = vmatpush1.bf16.msra.mxu0 %v20421_v49  ;;  %v14085_v37 = vsub.f32 %v547_v54, %v1999_v57  ;;  %v14087_v49 = vpack.c.bf16 %v4138_v6, %v4134_v25  ;;  %v4146_v23 = vand.u32 4294901760, %v565_v20  ;;  %v14146_v57 = vsub.f32 %v557_v39, %v4142_v24  ;;  %v587_v39 = vld [vmem:[%s18494_s2 + $0x980] sm:$0xff] }
 0x1ab   : > { %1985 = vmatprep.mubr.f32.mxu0 %v20422_v22  ;;  %9772 = vmatprep.subr.bf16.mxu0 %v20423_v21  ;;  %v2003_v21 = vand.u32 4294901760, %v555_v10 }
 0x1ac   : > { %3989 = vmatmul.mubr.f32.vlgmr.msra.gmra.mrb[0].mxu1 %v20420_v31  ;;  %20454 = vst [vmem:[#allocation115_spill] sm:$0xff] %v14085_v37  ;;  %20455 = vst [vmem:[#allocation117_spill] sm:$0xff] %v14087_v49 }
 0x1ad   : > { %10346 = vmatpush1.bf16.msra.mxu1 %v20424_v45  ;;  %4124 = vmatprep.mubr.f32.mxu1 %v20422_v22  ;;  %v2007_v45 = vand.u32 4294901760, %v563_v61  ;;  %20472 = vst [vmem:[#allocation147_spill] sm:$0xff] %v14146_v57 }
 0x1ae   : > { %10348 = vmatprep.subr.bf16.mxu1 %v20425_v42  ;;  %9774 = vmatpush1.bf16.msra.mxu0 %v20426_v38  ;;  %v572_v42 = vld [vmem:[%s18494_s2 + $0x908] sm:$0xff] }
 0x1af   : > { %9776 = vmatprep.subr.bf16.mxu0 %v20427_v41  ;;  %v580_v38 = vld [vmem:[%s18494_s2 + $0x948] sm:$0xff]  ;;  %v20456_v41 = vld [vmem:[#allocation86_spill] sm:$0xff]  ;;  %v2009_v54 = vand.u32 4294901760, %v572_v42  ;;  %v14144_v29 = vsub.f32 %v563_v61, %v2007_v45 }
 0x1b0   : > { %v20476_v61 = vld [vmem:[#allocation102_spill] sm:$0xff] }
 0x1b1   : > { %10350 = vmatpush1.bf16.msra.mxu1 %v20428_v40  ;;  %v14096_v40 = vsub.f32 %v541_v43, %v4134_v25  ;;  %v20467_v43 = vld [vmem:[#allocation92_spill] sm:$0xff]  ;;  %20471 = vst [vmem:[#allocation137_spill] sm:$0xff] %v14144_v29  ;;  %v598_v25 = vld [vmem:[%s18494_s2 + $0x9d8] sm:$0xff] }
 0x1b2   : > { %10352 = vmatprep.subr.bf16.mxu1 %v20429_v51  ;;  %9778 = vmatpush1.bf16.msra.mxu0 %v20430_v44  ;;  %v14098_v51 = vsub.f32 %v549_v63, %v4138_v6  ;;  %v14100_v44 = vpack.c.bf16 %v2005_v12, %v2001_v47  ;;  %v14133_v63 = vpack.c.bf16 %v2007_v45, %v2003_v21  ;;  %v20473_v6 = vld [vmem:[#allocation95_spill] sm:$0xff] }
 0x1b3   : > { %9780 = vmatprep.subr.bf16.mxu0 %v20431_v35  ;;  %20457 = vst [vmem:[#allocation118_spill] sm:$0xff] %v14096_v40  ;;  %v14102_v35 = vsub.f32 %v556_v1, %v2001_v47  ;;  %v588_v1 = vld [vmem:[%s18494_s2 + $0x988] sm:$0xff]  ;;  %v14157_v47 = vsub.f32 %v565_v20, %v4146_v23  ;;  %v20479_v20 = vld [vmem:[#allocation104_spill] sm:$0xff] }
 0x1b4   : > { %20458 = vst [vmem:[#allocation120_spill] sm:$0xff] %v14098_v51  ;;  %20459 = vst [vmem:[#allocation121_spill] sm:$0xff] %v14100_v44 }
 0x1b5   : > { %10354 = vmatpush1.bf16.msra.mxu1 %v20432_v50  ;;  %20460 = vst [vmem:[#allocation123_spill] sm:$0xff] %v14102_v35  ;;  %v574_v50 = vld [vmem:[%s18494_s2 + $0x918] sm:$0xff]  ;;  %20468 = vst [vmem:[#allocation130_spill] sm:$0xff] %v14133_v63 }
 0x1b6   : > { %10356 = vmatprep.subr.bf16.mxu1 %v20433_v9  ;;  %9782 = vmatpush1.bf16.msra.mxu0 %v20434_v56  ;;  %v582_v9 = vld [vmem:[%s18494_s2 + $0x958] sm:$0xff]  ;;  %v20461_v56 = vld [vmem:[#allocation83_spill] sm:$0xff]  ;;  %v4148_v58 = vand.u32 4294901760, %v574_v50  ;;  %20475 = vst [vmem:[#allocation151_spill] sm:$0xff] %v14157_v47 }
 0x1b7   : > { %9784 = vmatprep.subr.bf16.mxu0 %v20435_v17  ;;  %v14111_v17 = vsub.f32 %v564_v34, %v2005_v12  ;;  %v4152_v0 = vand.u32 4294901760, %v582_v9  ;;  %v596_v34 = vld [vmem:[%s18494_s2 + $0x9c8] sm:$0xff]  ;;  %v4150_v12 = vand.u32 4294901760, %v573_v55 }
 0x1b9   : > { %10358 = vmatpush1.bf16.msra.mxu1 %v20436_v60  ;;  %20462 = vst [vmem:[#allocation124_spill] sm:$0xff] %v14111_v17  ;;  %v14113_v60 = vpack.c.bf16 %v4144_v5, %v4140_v19  ;;  %v2017_v5 = vand.u32 4294901760, %v588_v1  ;;  %v14173_v45 = vpack.c.bf16 %v4152_v0, %v4148_v58 }
 0x1ba   : > { %10360 = vmatprep.subr.bf16.mxu1 %v20437_v26  ;;  %9786 = vmatpush1.bf16.msra.mxu0 %v20438_v11  ;;  %v571_v26 = vld [vmem:[%s18494_s2 + $0x900] sm:$0xff]  ;;  %v14122_v11 = vsub.f32 %v558_v7, %v4140_v19  ;;  %v14162_v19 = vsub.f32 %v572_v42, %v2009_v54 }
 0x1bb   : > { %9788 = vmatprep.subr.bf16.mxu0 %v20439_v3  ;;  %20463 = vst [vmem:[#allocation125_spill] sm:$0xff] %v14113_v60  ;;  %v2013_v3 = vand.u32 4294901760, %v580_v38  ;;  %v2011_v7 = vand.u32 4294901760, %v571_v26  ;;  %20481 = vst [vmem:[#allocation91_spill] sm:$0xff] %v14173_v45  ;;  %v20482_v42 = vld [vmem:[#allocation110_spill] sm:$0xff] }
 0x1bc   : > { %20465 = vst [vmem:[#allocation127_spill] sm:$0xff] %v14122_v11  ;;  %20478 = vst [vmem:[#allocation84_spill] sm:$0xff] %v14162_v19 }
 0x1bd   : > { %10362 = vmatpush1.bf16.msra.mxu1 %v20440_v15  ;;  %v14135_v15 = vsub.f32 %v555_v10, %v2003_v21  ;;  %v4154_v10 = vand.u32 4294901760, %v581_v32  ;;  %v14171_v21 = vsub.f32 %v580_v38, %v2013_v3  ;;  %v597_v38 = vld [vmem:[%s18494_s2 + $0x9d0] sm:$0xff] }
 0x1be   : > { %10364 = vmatprep.subr.bf16.mxu1 %v20441_v2  ;;  %9790 = vmatpush1.bf16.msra.mxu0 %v20442_v59  ;;  %v20470_v2 = vld [vmem:[#allocation98_spill] sm:$0xff]  ;;  %v590_v59 = vld [vmem:[%s18494_s2 + $0x998] sm:$0xff] }
 0x1bf   : > { %9792 = vmatprep.subr.bf16.mxu0 %v20443_v33  ;;  %20469 = vst [vmem:[#allocation135_spill] sm:$0xff] %v14135_v15  ;;  %v14155_v33 = vpack.c.bf16 %v4146_v23, %v4142_v24  ;;  %20480 = vst [vmem:[#allocation89_spill] sm:$0xff] %v14171_v21  ;;  %v14176_v24 = vsub.f32 %v574_v50, %v4148_v58  ;;  %v14178_v23 = vsub.f32 %v582_v9, %v4152_v0  ;;  %v20487_v50 = vld [vmem:[#allocation107_spill] sm:$0xff] }
 0x1c0   : > { %v14194_v9 = vsub.f32 %v579_v8, %v2015_v16  ;;  %v14196_v58 = vpack.c.bf16 %v4154_v10, %v4150_v12  ;;  %v14208_v8 = vsub.f32 %v573_v55, %v4150_v12  ;;  %v611_v55 = vld [vmem:[%s18494_s2 + $0xa40] sm:$0xff] }
 0x1c1   : > { %10366 = vmatpush1.bf16.msra.mxu1 %v20446_v36  ;;  %20474 = vst [vmem:[#allocation148_spill] sm:$0xff] %v14155_v33  ;;  %v14160_v36 = vpack.c.bf16 %v2013_v3, %v2009_v54  ;;  %20483 = vst [vmem:[#allocation93_spill] sm:$0xff] %v14176_v24  ;;  %v14182_v54 = vsub.f32 %v571_v26, %v2011_v7  ;;  %v604_v3 = vld [vmem:[%s18494_s2 + $0xa08] sm:$0xff]  ;;  %v2019_v26 = vand.u32 4294901760, %v587_v39  ;;  %v2031_v24 = vand.u32 4294901760, %v611_v55 }
 0x1c2   : > { %10368 = vmatprep.subr.bf16.mxu1 %v20449_v52  ;;  %9794 = vmatpush1.bf16.msra.mxu0 %v20453_v46  ;;  %v2021_v52 = vand.u32 4294901760, %v596_v34  ;;  %v595_v46 = vld [vmem:[%s18494_s2 + $0x9c0] sm:$0xff]  ;;  %20484 = vst [vmem:[#allocation94_spill] sm:$0xff] %v14178_v23  ;;  %20488 = vst [vmem:[#allocation96_spill] sm:$0xff] %v14194_v9 }
 0x1c3   : > { %9796 = vmatprep.subr.bf16.mxu0 %v20456_v41  ;;  %20477 = vst [vmem:[#allocation159_spill] sm:$0xff] %v14160_v36  ;;  %v4156_v41 = vand.u32 4294901760, %v590_v59  ;;  %20486 = vst [vmem:[#allocation100_spill] sm:$0xff] %v14182_v54  ;;  %v2023_v0 = vand.u32 4294901760, %v595_v46  ;;  %v4162_v54 = vand.u32 4294901760, %v597_v38 }
 0x1c4   : > { %20489 = vst [vmem:[#allocation97_spill] sm:$0xff] %v14196_v58  ;;  %20491 = vst [vmem:[#allocation101_spill] sm:$0xff] %v14208_v8  ;;  %v14217_v22 = vsub.f32 %v596_v34, %v2021_v52  ;;  %v605_v34 = vld [vmem:[%s18494_s2 + $0xa10] sm:$0xff] }
 0x1c5   : > { %10370 = vmatpush1.bf16.msra.mxu1 %v20461_v56  ;;  %v4160_v56 = vand.u32 4294901760, %v598_v25  ;;  %v14244_v8 = vsub.f32 %v595_v46, %v2023_v0  ;;  %v4166_v46 = vand.u32 4294901760, %v605_v34 }
 0x1c6   : > { %10372 = vmatprep.subr.bf16.mxu1 %v20464_v27  ;;  %9798 = vmatpush1.bf16.msra.mxu0 %v20467_v43  ;;  %v14180_v27 = vpack.c.bf16 %v2015_v16, %v2011_v7  ;;  %v589_v43 = vld [vmem:[%s18494_s2 + $0x990] sm:$0xff]  ;;  %v606_v7 = vld [vmem:[%s18494_s2 + $0xa18] sm:$0xff]  ;;  %v14210_v16 = vsub.f32 %v581_v32, %v4154_v10  ;;  %20496 = vst [vmem:[#allocation145_spill] sm:$0xff] %v14217_v22  ;;  %v20498_v32 = vld [vmem:[#allocation122_spill] sm:$0xff] }
 0x1c7   : > { %9800 = vmatprep.subr.bf16.mxu0 %v20470_v2  ;;  %v612_v2 = vld [vmem:[%s18494_s2 + $0xa48] sm:$0xff]  ;;  %v14219_v58 = vpack.c.bf16 %v4160_v56, %v4156_v41  ;;  %v4158_v9 = vand.u32 4294901760, %v589_v43  ;;  %v4164_v10 = vand.u32 4294901760, %v606_v7  ;;  %v14237_v22 = vsub.f32 %v598_v25, %v4160_v56  ;;  %20505 = vst [vmem:[#allocation4_spill] sm:$0xff] %v14244_v8  ;;  %v20507_v25 = vld [vmem:[#allocation128_spill] sm:$0xff] }
 0x1c8   : > { %20485 = vst [vmem:[#allocation99_spill] sm:$0xff] %v14180_v27  ;;  %20492 = vst [vmem:[#allocation103_spill] sm:$0xff] %v14210_v16  ;;  %v2029_v12 = vand.u32 4294901760, %v612_v2  ;;  %v20504_v16 = vld [vmem:[#allocation126_spill] sm:$0xff] }
 0x1c9   : > { %10374 = vmatpush1.bf16.msra.mxu1 %v20473_v6  ;;  %v614_v6 = vld [vmem:[%s18494_s2 + $0xa58] sm:$0xff]  ;;  %20497 = vst [vmem:[#allocation144_spill] sm:$0xff] %v14219_v58  ;;  %v14235_v58 = vsub.f32 %v590_v59, %v4156_v41  ;;  %20501 = vst [vmem:[#allocation154_spill] sm:$0xff] %v14237_v22  ;;  %v628_v59 = vld [vmem:[%s18494_s2 + $0xac8] sm:$0xff]  ;;  %v14257_v41 = vsub.f32 %v597_v38, %v4162_v54  ;;  %v14281_v8 = vsub.f32 %v606_v7, %v4164_v10 }
 0x1ca   : > { %10376 = vmatprep.subr.bf16.mxu1 %v20476_v61  ;;  %9802 = vmatpush1.bf16.msra.mxu0 %v20479_v20  ;;  %v20490_v61 = vld [vmem:[#allocation114_spill] sm:$0xff]  ;;  %v14212_v20 = vpack.c.bf16 %v2021_v52, %v2017_v5  ;;  %v613_v52 = vld [vmem:[%s18494_s2 + $0xa50] sm:$0xff] }
 0x1cb   : > { %9804 = vmatprep.subr.bf16.mxu0 %v20482_v42  ;;  %v14214_v42 = vsub.f32 %v588_v1, %v2017_v5  ;;  %v2025_v1 = vand.u32 4294901760, %v604_v3  ;;  %v4168_v5 = vand.u32 4294901760, %v614_v6  ;;  %20500 = vst [vmem:[#allocation149_spill] sm:$0xff] %v14235_v58  ;;  %20509 = vst [vmem:[#allocation9_spill] sm:$0xff] %v14257_v41  ;;  %v4170_v56 = vand.u32 4294901760, %v613_v52  ;;  %v619_v38 = vld [vmem:[%s18494_s2 + $0xa80] sm:$0xff] }
 0x1cc   : > { %20493 = vst [vmem:[#allocation142_spill] sm:$0xff] %v14212_v20  ;;  %v14246_v20 = vsub.f32 %v589_v43, %v4158_v9  ;;  %v622_v43 = vld [vmem:[%s18494_s2 + $0xa98] sm:$0xff]  ;;  %v20515_v41 = vld [vmem:[#allocation131_spill] sm:$0xff]  ;;  %20516 = vst [vmem:[#allocation13_spill] sm:$0xff] %v14281_v8 }
 0x1cd   : > { %10378 = vmatpush1.bf16.msra.mxu1 %v20487_v50  ;;  %20494 = vst [vmem:[#allocation141_spill] sm:$0xff] %v14214_v42  ;;  %v20495_v50 = vld [vmem:[#allocation116_spill] sm:$0xff]  ;;  %v14239_v42 = vpack.c.bf16 %v2023_v0, %v2019_v26  ;;  %v20510_v0 = vld [vmem:[#allocation134_spill] sm:$0xff]  ;;  %v4172_v7 = vand.u32 4294901760, %v622_v43  ;;  %v14305_v8 = vpack.c.bf16 %v4170_v56, %v4166_v46  ;;  %v638_v58 = vld [vmem:[%s18494_s2 + $0xb18] sm:$0xff] }
 0x1ce   : > { %10380 = vmatprep.subr.bf16.mxu1 %v20490_v61  ;;  %9806 = vmatpush1.bf16.msra.mxu0 %v20495_v50  ;;  %v603_v61 = vld [vmem:[%s18494_s2 + $0xa00] sm:$0xff]  ;;  %v20499_v50 = vld [vmem:[#allocation119_spill] sm:$0xff]  ;;  %20506 = vst [vmem:[#allocation5_spill] sm:$0xff] %v14246_v20  ;;  %v14268_v20 = vsub.f32 %v604_v3, %v2025_v1 }
 0x1cf   : > { %9808 = vmatprep.subr.bf16.mxu0 %v20498_v32  ;;  %20502 = vst [vmem:[#allocation153_spill] sm:$0xff] %v14239_v42  ;;  %v14241_v32 = vsub.f32 %v587_v39, %v2019_v26  ;;  %v2027_v23 = vand.u32 4294901760, %v603_v61  ;;  %v14255_v39 = vpack.c.bf16 %v4162_v54, %v4158_v9  ;;  %v630_v26 = vld [vmem:[%s18494_s2 + $0xad8] sm:$0xff]  ;;  %v14270_v9 = vsub.f32 %v612_v2, %v2029_v12  ;;  %v621_v2 = vld [vmem:[%s18494_s2 + $0xa90] sm:$0xff] }
 0x1d0   : > { %20512 = vst [vmem:[#allocation14_spill] sm:$0xff] %v14268_v20  ;;  %v14272_v54 = vpack.c.bf16 %v4168_v5, %v4164_v10  ;;  %v4176_v10 = vand.u32 4294901760, %v630_v26  ;;  %20523 = vst [vmem:[#allocation27_spill] sm:$0xff] %v14305_v8 }
 0x1d1   : > { %10382 = vmatpush1.bf16.msra.mxu1 %v20499_v50  ;;  %20503 = vst [vmem:[#allocation3_spill] sm:$0xff] %v14241_v32  ;;  %v620_v50 = vld [vmem:[%s18494_s2 + $0xa88] sm:$0xff]  ;;  %20508 = vst [vmem:[#allocation7_spill] sm:$0xff] %v14255_v39  ;;  %v14292_v20 = vpack.c.bf16 %v2031_v24, %v2027_v23  ;;  %v14294_v32 = vsub.f32 %v603_v61, %v2027_v23  ;;  %v20524_v23 = vld [vmem:[#allocation146_spill] sm:$0xff]  ;;  %v14308_v61 = vsub.f32 %v605_v34, %v4166_v46 }
 0x1d2   : > { %10384 = vmatprep.subr.bf16.mxu1 %v20504_v16  ;;  %9810 = vmatpush1.bf16.msra.mxu0 %v20507_v25  ;;  %v14266_v16 = vpack.c.bf16 %v2029_v12, %v2025_v1  ;;  %20513 = vst [vmem:[#allocation16_spill] sm:$0xff] %v14270_v9  ;;  %20514 = vst [vmem:[#allocation12_spill] sm:$0xff] %v14272_v54  ;;  %v627_v25 = vld [vmem:[%s18494_s2 + $0xac0] sm:$0xff]  ;;  %v2033_v3 = vand.u32 4294901760, %v620_v50  ;;  %v2037_v1 = vand.u32 4294901760, %v628_v59  ;;  %v629_v12 = vld [vmem:[%s18494_s2 + $0xad0] sm:$0xff] }
 0x1d3   : > { %9812 = vmatprep.subr.bf16.mxu0 %v20510_v0  ;;  %v14283_v0 = vsub.f32 %v614_v6, %v4168_v5  ;;  %v20518_v9 = vld [vmem:[#allocation138_spill] sm:$0xff]  ;;  %20519 = vst [vmem:[#allocation19_spill] sm:$0xff] %v14292_v20  ;;  %20520 = vst [vmem:[#allocation20_spill] sm:$0xff] %v14294_v32  ;;  %v636_v6 = vld [vmem:[%s18494_s2 + $0xb08] sm:$0xff]  ;;  %v2039_v20 = vand.u32 4294901760, %v627_v25  ;;  %v14310_v32 = vsub.f32 %v613_v52, %v4170_v56  ;;  %v4174_v54 = vand.u32 4294901760, %v621_v2 }
 0x1d4   : > { %20511 = vst [vmem:[#allocation10_spill] sm:$0xff] %v14266_v16  ;;  %v644_v5 = vld [vmem:[%s18494_s2 + $0xb48] sm:$0xff]  ;;  %20525 = vst [vmem:[#allocation28_spill] sm:$0xff] %v14308_v61  ;;  %v4178_v22 = vand.u32 4294901760, %v629_v12  ;;  %v2041_v34 = vand.u32 4294901760, %v636_v6  ;;  %v20530_v52 = vld [vmem:[#allocation150_spill] sm:$0xff]  ;;  %v14324_v56 = vsub.f32 %v628_v59, %v2037_v1  ;;  %v14330_v61 = vsub.f32 %v630_v26, %v4176_v10 }
 0x1d5   : > { %10386 = vmatpush1.bf16.msra.mxu1 %v20515_v41  ;;  %20517 = vst [vmem:[#allocation18_spill] sm:$0xff] %v14283_v0  ;;  %v20521_v41 = vld [vmem:[#allocation140_spill] sm:$0xff]  ;;  %v14303_v0 = vsub.f32 %v611_v55, %v2031_v24  ;;  %20526 = vst [vmem:[#allocation23_spill] sm:$0xff] %v14310_v32  ;;  %v646_v24 = vld [vmem:[%s18494_s2 + $0xb58] sm:$0xff]  ;;  %v2045_v46 = vand.u32 4294901760, %v644_v5  ;;  %v14328_v32 = vsub.f32 %v622_v43, %v4172_v7 }
 0x1d6   : > { %10388 = vmatprep.subr.bf16.mxu1 %v20518_v9  ;;  %9814 = vmatpush1.bf16.msra.mxu0 %v20521_v41  ;;  %v2035_v9 = vand.u32 4294901760, %v619_v38  ;;  %v20527_v55 = vld [vmem:[#allocation143_spill] sm:$0xff]  ;;  %v14319_v41 = vpack.c.bf16 %v2037_v1, %v2033_v3  ;;  %20531 = vst [vmem:[#allocation31_spill] sm:$0xff] %v14324_v56  ;;  %20534 = vst [vmem:[#allocation39_spill] sm:$0xff] %v14330_v61  ;;  %v4180_v1 = vand.u32 4294901760, %v638_v58  ;;  %v637_v43 = vld [vmem:[%s18494_s2 + $0xb10] sm:$0xff] }
 0x1d7   : > { %20522 = vst [vmem:[#allocation22_spill] sm:$0xff] %v14303_v0  ;;  %9816 = vmatprep.subr.bf16.mxu0 %v20524_v23  ;;  %v14321_v0 = vsub.f32 %v620_v50, %v2033_v3  ;;  %v14326_v23 = vpack.c.bf16 %v4176_v10, %v4172_v7  ;;  %20533 = vst [vmem:[#allocation34_spill] sm:$0xff] %v14328_v32  ;;  %v643_v50 = vld [vmem:[%s18494_s2 + $0xb40] sm:$0xff]  ;;  %v20535_v3 = vld [vmem:[#allocation152_spill] sm:$0xff]  ;;  %v14350_v10 = vsub.f32 %v627_v25, %v2039_v20 }
 0x1d8   : > { %20528 = vst [vmem:[#allocation25_spill] sm:$0xff] %v14319_v41  ;;  %v14341_v59 = vsub.f32 %v619_v38, %v2035_v9  ;;  %v645_v26 = vld [vmem:[%s18494_s2 + $0xb50] sm:$0xff]  ;;  %v20538_v7 = vld [vmem:[#allocation158_spill] sm:$0xff]  ;;  %v14354_v61 = vsub.f32 %v621_v2, %v4174_v54  ;;  %v14356_v38 = vsub.f32 %v629_v12, %v4178_v22  ;;  %v14361_v32 = vsub.f32 %v636_v6, %v2041_v34  ;;  %v662_v6 = vld [vmem:[%s18494_s2 + $0xbd8] sm:$0xff] }
 0x1d9   : > { %10390 = vmatpush1.bf16.msra.mxu1 %v20527_v55  ;;  %20529 = vst [vmem:[#allocation30_spill] sm:$0xff] %v14321_v0  ;;  %20532 = vst [vmem:[#allocation33_spill] sm:$0xff] %v14326_v23  ;;  %v635_v55 = vld [vmem:[%s18494_s2 + $0xb00] sm:$0xff]  ;;  %v14339_v0 = vpack.c.bf16 %v2039_v20, %v2035_v9  ;;  %v20543_v9 = vld [vmem:[#allocation155_spill] sm:$0xff]  ;;  %v4182_v2 = vand.u32 4294901760, %v637_v43  ;;  %v4186_v12 = vand.u32 4294901760, %v645_v26 }
 0x1da   : > { %10392 = vmatprep.subr.bf16.mxu1 %v20530_v52  ;;  %9818 = vmatpush1.bf16.msra.mxu0 %v20535_v3  ;;  %20537 = vst [vmem:[#allocation36_spill] sm:$0xff] %v14341_v59  ;;  %v4184_v52 = vand.u32 4294901760, %v646_v24  ;;  %20539 = vst [vmem:[#allocation37_spill] sm:$0xff] %v14350_v10  ;;  %v14352_v3 = vpack.c.bf16 %v4178_v22, %v4174_v54  ;;  %v14359_v59 = vpack.c.bf16 %v2045_v46, %v2041_v34  ;;  %v652_v20 = vld [vmem:[%s18494_s2 + $0xb88] sm:$0xff]  ;;  %v654_v22 = vld [vmem:[%s18494_s2 + $0xb98] sm:$0xff] }
 0x1db   : > { %20536 = vst [vmem:[#allocation40_spill] sm:$0xff] %v14339_v0  ;;  %9820 = vmatprep.subr.bf16.mxu0 %v20538_v7  ;;  %20541 = vst [vmem:[#allocation43_spill] sm:$0xff] %v14354_v61  ;;  %v2043_v56 = vand.u32 4294901760, %v635_v55  ;;  %v2047_v0 = vand.u32 4294901760, %v643_v50  ;;  %v660_v54 = vld [vmem:[%s18494_s2 + $0xbc8] sm:$0xff]  ;;  %v20546_v25 = vld [vmem:[#allocation162_spill] sm:$0xff]  ;;  %v14379_v61 = vsub.f32 %v644_v5, %v2045_v46 }
 0x1dc   : > { %20540 = vst [vmem:[#allocation42_spill] sm:$0xff] %v14352_v3  ;;  %20542 = vst [vmem:[#allocation44_spill] sm:$0xff] %v14356_v38  ;;  %v11913_v34 = vld [vmem:[%s12820_s6] sm:$0xff]  ;;  %v20547_v38 = vld [vmem:[#allocation164_spill] sm:$0xff]  ;;  %v14381_v10 = vpack.c.bf16 %v4184_v52, %v4180_v1  ;;  %v14383_v3 = vsub.f32 %v638_v58, %v4180_v1  ;;  %v2049_v23 = vand.u32 4294901760, %v652_v20  ;;  %v2053_v8 = vand.u32 4294901760, %v660_v54 }
 0x1dd   : > { %10394 = vmatpush1.bf16.msra.mxu1 %v20543_v9  ;;  %20544 = vst [vmem:[#allocation46_spill] sm:$0xff] %v14359_v59  ;;  %20545 = vst [vmem:[#allocation51_spill] sm:$0xff] %v14361_v32  ;;  %v279_v7 = vrot.slane %v11913_v34, 2  ;;  %v11914_v9 = vld [vmem:[%s12825_s8] sm:$0xff]  ;;  %v14386_v59 = vsub.f32 %v646_v24, %v4184_v52  ;;  %v4188_v41 = vand.u32 4294901760, %v654_v22  ;;  %v20552_v39 = vld [vmem:[#allocation167_spill] sm:$0xff]  ;;  %v14389_v34 = vpack.c.bf16 %v2047_v0, %v2043_v56 }
 0x1de   : > { %10396 = vmatprep.subr.bf16.mxu1 %v20546_v25  ;;  %v280_v32 = vrot.slane %v11914_v9, 2  ;;  %9822 = vmatpush1.bf16.msra.mxu0 %v20547_v38  ;;  %20548 = vst [vmem:[#allocation52_spill] sm:$0xff] %v14379_v61  ;;  %20549 = vst [vmem:[#allocation48_spill] sm:$0xff] %v14381_v10  ;;  %v20550_v25 = vld [vmem:[#allocation170_spill] sm:$0xff]  ;;  %v14391_v9 = vsub.f32 %v635_v55, %v2043_v56  ;;  %v14393_v5 = vsub.f32 %v643_v50, %v2047_v0 }
 0x1df   : > { %9824 = vmatprep.subr.bf16.mxu0 %v20550_v25  ;;  %20551 = vst [vmem:[#allocation49_spill] sm:$0xff] %v14386_v59  ;;  %20553 = vst [vmem:[#allocation53_spill] sm:$0xff] %v14389_v34  ;;  %v4192_v46 = vand.u32 4294901760, %v662_v6  ;;  %v20554_v38 = vld [vmem:[#allocation174_spill] sm:$0xff]  ;;  %v14396_v58 = vpack.c.bf16 %v4186_v12, %v4182_v2  ;;  %v14398_v1 = vsub.f32 %v637_v43, %v4182_v2  ;;  %v19058_v24 = vand.u32 4294901760, %v14056_v18  ;;  %v20556_v25 = vld [vmem:[#allocation176_spill] sm:$0xff] }
 0x1e0   : > { %v281_v52 = vsel %vm278_vm1, %v279_v7, %v280_v32  ;;  %v20557_v55 = vld [vmem:[#allocation182_spill] sm:$0xff]  ;;  %v14407_v50 = vsub.f32 %v645_v26, %v4186_v12  ;;  %v19071_v43 = vand.u32 4294901760, %v14085_v37  ;;  %v20559_v7 = vld [vmem:[#allocation179_spill] sm:$0xff]  ;;  %v14417_v59 = vsub.f32 %v660_v54, %v2053_v8 }
 0x1e1   : > { %10398 = vmatpush1.bf16.msra.mxu1 %v20552_v39  ;;  %20555 = vst [vmem:[#allocation55_spill] sm:$0xff] %v14396_v58  ;;  %v19061_v39 = vand.u32 4294901760, %v14065_v28  ;;  %v14419_v56 = vand.u32 4294901760, %v281_v52  ;;  %v20563_v0 = vld [vmem:[#allocation186_spill] sm:$0xff]  ;;  %v14422_v26 = vpack.c.bf16 %v4192_v46, %v4188_v41  ;;  %v14424_v12 = vsub.f32 %v654_v22, %v4188_v41  ;;  %v661_v41 = vld [vmem:[%s18494_s2 + $0xbd0] sm:$0xff] }
 0x1e2   : > { %10400 = vmatprep.subr.bf16.mxu1 %v20554_v38  ;;  %9826 = vmatpush1.bf16.msra.mxu0 %v20556_v25  ;;  %20558 = vst [vmem:[#allocation57_spill] sm:$0xff] %v14407_v50  ;;  %v14413_v38 = vpack.c.bf16 %v2053_v8, %v2049_v23  ;;  %v14415_v25 = vsub.f32 %v652_v20, %v2049_v23  ;;  %20561 = vst [vmem:[#allocation63_spill] sm:$0xff] %v14417_v59  ;;  %v20566_v23 = vld [vmem:[#allocation188_spill] sm:$0xff]  ;;  %v659_v8 = vld [vmem:[%s18494_s2 + $0xbc0] sm:$0xff]  ;;  %v20567_v22 = vand.u32 4294901760, %v14070_v13 }
 0x1e3   : > { %9828 = vmatprep.subr.bf16.mxu0 %v20557_v55  ;;  %20562 = vst [vmem:[#allocation64_spill] sm:$0xff] %v14419_v56  ;;  %20564 = vst [vmem:[#allocation60_spill] sm:$0xff] %v14422_v26  ;;  %v651_v55 = vld [vmem:[%s18494_s2 + $0xb80] sm:$0xff]  ;;  %v653_v20 = vld [vmem:[%s18494_s2 + $0xb90] sm:$0xff]  ;;  %v2116_v54 = vsub.f32 %v14065_v28, %v19061_v39  ;;  %v20569_v32 = vand.u32 4294901760, %v14076_v48  ;;  %v20570_v39 = vand.u32 4294901760, %v14096_v40  ;;  %v14466_v50 = vsub.f32 %v662_v6, %v4192_v46 }
 0x1e4   : > { %20560 = vst [vmem:[#allocation58_spill] sm:$0xff] %v14413_v38  ;;  %20565 = vst [vmem:[#allocation61_spill] sm:$0xff] %v14424_v12 }
 0x1e5   : > { %10402 = vmatpush1.bf16.msra.mxu1 %v20559_v7  ;;  %v2104_v7 = vsub.f32 %v14056_v18, %v19058_v24  ;;  %v2110_v2 = vsub.f32 %v14076_v48, %v20569_v32  ;;  %v2122_v18 = vsub.f32 %v14085_v37, %v19071_v43  ;;  %v4249_v28 = vsub.f32 %v14096_v40, %v20570_v39 }
 0x1e6   : > { %10404 = vmatprep.subr.bf16.mxu1 %v20563_v0  ;;  %9830 = vmatpush1.bf16.msra.mxu0 %v20566_v23  ;;  %v4243_v0 = vsub.f32 %v14070_v13, %v20567_v22  ;;  %v20568_v23 = vand.u32 4294901760, %v14072_v14  ;;  %v20571_v22 = vand.u32 4294901760, %v14098_v51  ;;  %v2051_v32 = vand.u32 4294901760, %v651_v55 }
 0x1e7   : > { %9832 = vmatprep.subr.bf16.mxu0 %v14054_v62  ;;  %v14469_v62 = vsub.f32 %v281_v52, %v14419_v56  ;;  %v2055_v39 = vand.u32 4294901760, %v659_v8  ;;  %v4190_v40 = vand.u32 4294901760, %v653_v20  ;;  %v4194_v37 = vand.u32 4294901760, %v661_v41 }
 0x1e8   : > { %v4255_v24 = vsub.f32 %v14072_v14, %v20568_v23  ;;  %v4261_v13 = vsub.f32 %v14098_v51, %v20571_v22  ;;  %v20572_v14 = vld [vmem:[#allocation191_spill] sm:$0xff]  ;;  %v2105_v22 = vand.u32 4294901760, %v2104_v7  ;;  %v19082_v23 = vmov 0.0  }
 0x1e9   : > { %10406 = vmatpush1.bf16.msra.mxu1 %v20572_v14  ;;  %20573 = vst [vmem:[#allocation65_spill] sm:$0xff] %v14469_v62  ;;  %1987 = vmatmul.mubr.f32.vlgmr.msra.gmra.mrb[0].mxu0 %v20420_v31  ;;  %v2117_v14 = vand.u32 4294901760, %v2116_v54  ;;  %v4244_v6 = vand.u32 4294901760, %v4243_v0  ;;  %v2111_v52 = vand.u32 4294901760, %v2110_v2  ;;  %v2123_v43 = vand.u32 4294901760, %v2122_v18 }
 0x1ea   : > { %10408 = vmatprep.subr.bf16.mxu1 %v14067_v4  ;;  %9834 = vmatpush1.bf16.msra.mxu0 %v14074_v53  ;;  %v4256_v46 = vand.u32 4294901760, %v4255_v24  ;;  %v4250_v4 = vand.u32 4294901760, %v4249_v28  ;;  %v4262_v56 = vand.u32 4294901760, %v4261_v13  ;;  %v20574_v51 = vand.u32 4294901760, %v14102_v35 }
 0x1eb   : > { %2089 = vmatprep.mubr.f32.mxu0 %v19082_v23  ;;  %9836 = vmatprep.subr.bf16.mxu0 %v14100_v44  ;;  %v14486_v54 = vand.u32 4294901760, %v14469_v62  ;;  %v20576_v24 = vand.u32 4294901760, %v14111_v17  ;;  %v14496_v13 = vpack.c.bf16 %v2055_v39, %v2051_v32  ;;  %v14500_v0 = vsub.f32 %v659_v8, %v2055_v39 }
 0x1ec   : > { %4126 = vmatmul.mubr.f32.vlgmr.msra.gmra.mrb[0].mxu1 %v20420_v31  ;;  %v14481_v7 = vsub.f32 %v14102_v35, %v20574_v51  ;;  %v14498_v51 = vsub.f32 %v651_v55, %v2051_v32  ;;  %v14505_v31 = vsub.f32 %v653_v20, %v4190_v40  ;;  %v14511_v18 = vpack.c.bf16 %v4256_v46, %v4244_v6  ;;  %v20582_v46 = vld [vmem:[#allocation93_spill] sm:$0xff] }
 0x1ed   : > { %10410 = vmatpush1.bf16.msra.mxu1 %v14087_v49  ;;  %4228 = vmatprep.mubr.f32.mxu1 %v19082_v23  ;;  %20575 = vst [vmem:[#allocation67_spill] sm:$0xff] %v14486_v54  ;;  %v14491_v2 = vsub.f32 %v14111_v17, %v20576_v24  ;;  %20577 = vst [vmem:[#allocation69_spill] sm:$0xff] %v14496_v13  ;;  %v14502_v23 = vpack.c.bf16 %v4194_v37, %v4190_v40  ;;  %v19099_v32 = vand.u32 4294901760, %v14135_v15  ;;  %v20590_v6 = vld [vmem:[#allocation141_spill] sm:$0xff] }
 0x1ee   : > { %10412 = vmatprep.subr.bf16.mxu1 %v14113_v60  ;;  %20578 = vst [vmem:[#allocation70_spill] sm:$0xff] %v14498_v51  ;;  %9838 = vmatpush1.bf16.msra.mxu0 %v14133_v63  ;;  %v14507_v24 = vsub.f32 %v661_v41, %v4194_v37  ;;  %v14509_v49 = vpack.c.bf16 %v2117_v14, %v2105_v22  ;;  %v20580_v20 = vand.u32 4294901760, %v14122_v11  ;;  %v20585_v37 = vld [vmem:[#allocation142_spill] sm:$0xff]  ;;  %v20591_v63 = vld [vmem:[#allocation145_spill] sm:$0xff]  ;;  %v20592_v60 = vld [vmem:[#allocation144_spill] sm:$0xff]  ;;  %v20594_v14 = vand.u32 4294901760, %v14146_v57 }
 0x1ef   : > { %20579 = vst [vmem:[#allocation75_spill] sm:$0xff] %v14502_v23  ;;  %9840 = vmatprep.subr.bf16.mxu0 %v14160_v36  ;;  %v14514_v28 = vpack.c.bf16 %v2123_v43, %v2111_v52  ;;  %v14516_v55 = vpack.c.bf16 %v4262_v56, %v4250_v4  ;;  %v20581_v43 = vand.u32 4294901760, %v14124_v30  ;;  %v2134_v39 = vsub.f32 %v14135_v15, %v19099_v32  ;;  %v20586_v56 = vld [vmem:[#allocation96_spill] sm:$0xff]  ;;  %v20589_v36 = vld [vmem:[#allocation97_spill] sm:$0xff] }
 0x1f0   : > { %v14527_v41 = vsub.f32 %v14122_v11, %v20580_v20  ;;  %v20583_v20 = vld [vmem:[#allocation94_spill] sm:$0xff]  ;;  %v20593_v32 = vand.u32 4294901760, %v14144_v29 }
 0x1f1   : > { %10414 = vmatpush1.bf16.msra.mxu1 %v14155_v33  ;;  %v14532_v4 = vsub.f32 %v14124_v30, %v20581_v43  ;;  %v20584_v43 = vld [vmem:[#allocation100_spill] sm:$0xff]  ;;  %v20588_v33 = vld [vmem:[#allocation103_spill] sm:$0xff] }
 0x1f2   : > { %10416 = vmatprep.subr.bf16.mxu1 %v14173_v45  ;;  %9842 = vmatpush1.bf16.msra.mxu0 %v14180_v27  ;;  %v20587_v45 = vld [vmem:[#allocation101_spill] sm:$0xff]  ;;  %v4268_v52 = vand.u32 4294901760, %v14527_v41  ;;  %v2146_v22 = vsub.f32 %v14144_v29, %v20593_v32  ;;  %v4273_v27 = vsub.f32 %v14146_v57, %v20594_v14  ;;  %v20598_v32 = vand.u32 4294901760, %v20582_v46  ;;  %v20609_v29 = vld [vmem:[#allocation12_spill] sm:$0xff] }
 0x1f3   : > { %9844 = vmatprep.subr.bf16.mxu0 %v20585_v37  ;;  %v4280_v40 = vand.u32 4294901760, %v14532_v4  ;;  %v20596_v4 = vand.u32 4294901760, %v14162_v19  ;;  %v20597_v37 = vand.u32 4294901760, %v14171_v21  ;;  %v20599_v14 = vand.u32 4294901760, %v20583_v20 }
 0x1f4   : > { %v4291_v44 = vsub.f32 %v20582_v46, %v20598_v32  ;;  %v20603_v32 = vand.u32 4294901760, %v20588_v33 }
 0x1f5   : > { %10418 = vmatpush1.bf16.msra.mxu1 %v20589_v36  ;;  %v20595_v36 = vand.u32 4294901760, %v14157_v47  ;;  %v2152_v8 = vsub.f32 %v14162_v19, %v20596_v4  ;;  %v4303_v53 = vsub.f32 %v20583_v20, %v20599_v14  ;;  %v2135_v4 = vand.u32 4294901760, %v2134_v39  ;;  %v20604_v14 = vld [vmem:[#allocation7_spill] sm:$0xff] }
 0x1f6   : > { %10420 = vmatprep.subr.bf16.mxu1 %v20592_v60  ;;  %9846 = vmatpush1.bf16.msra.mxu0 %v14239_v42  ;;  %v2164_v60 = vsub.f32 %v14171_v21, %v20597_v37  ;;  %v20601_v42 = vand.u32 4294901760, %v20586_v56  ;;  %v20602_v37 = vand.u32 4294901760, %v20587_v45  ;;  %v4309_v46 = vsub.f32 %v20588_v33, %v20603_v32  ;;  %v20610_v33 = vld [vmem:[#allocation19_spill] sm:$0xff] }
 0x1f7   : > { %v4285_v41 = vsub.f32 %v14157_v47, %v20595_v36  ;;  %v20600_v36 = vand.u32 4294901760, %v20584_v43  ;;  %9848 = vmatprep.subr.bf16.mxu0 %v14266_v16  ;;  %v20605_v20 = vand.u32 4294901760, %v20590_v6  ;;  %v20606_v39 = vand.u32 4294901760, %v20591_v63  ;;  %v20613_v19 = vld [vmem:[#allocation27_spill] sm:$0xff] }
 0x1f8   : > { %v2170_v57 = vsub.f32 %v20586_v56, %v20601_v42  ;;  %v4297_v21 = vsub.f32 %v20587_v45, %v20602_v37  ;;  %v20608_v56 = vld [vmem:[#allocation154_spill] sm:$0xff]  ;;  %v2147_v37 = vand.u32 4294901760, %v2146_v22  ;;  %v4274_v45 = vand.u32 4294901760, %v4273_v27  ;;  %v20612_v42 = vld [vmem:[#allocation3_spill] sm:$0xff] }
 0x1f9   : > { %v2158_v47 = vsub.f32 %v20584_v43, %v20600_v36  ;;  %10422 = vmatpush1.bf16.msra.mxu1 %v20604_v14  ;;  %v2176_v36 = vsub.f32 %v20590_v6, %v20605_v20  ;;  %v2188_v16 = vsub.f32 %v20591_v63, %v20606_v39  ;;  %v20607_v43 = vld [vmem:[#allocation149_spill] sm:$0xff]  ;;  %v4286_v15 = vand.u32 4294901760, %v4285_v41  ;;  %v20621_v41 = vld [vmem:[#allocation4_spill] sm:$0xff] }
 0x1fa   : > { %10424 = vmatprep.subr.bf16.mxu1 %v20609_v29  ;;  %v2153_v32 = vand.u32 4294901760, %v2152_v8  ;;  %9850 = vmatpush1.bf16.msra.mxu0 %v20610_v33  ;;  %v2165_v14 = vand.u32 4294901760, %v2164_v60  ;;  %v4292_v30 = vand.u32 4294901760, %v4291_v44  ;;  %v4304_v11 = vand.u32 4294901760, %v4303_v53  ;;  %v20611_v6 = vld [vmem:[#allocation25_spill] sm:$0xff] }
 0x1fb   : > { %v2159_v20 = vand.u32 4294901760, %v2158_v47  ;;  %9852 = vmatprep.subr.bf16.mxu0 %v20611_v6  ;;  %v2171_v17 = vand.u32 4294901760, %v2170_v57  ;;  %v4298_v39 = vand.u32 4294901760, %v4297_v21  ;;  %v4310_v63 = vand.u32 4294901760, %v4309_v46  ;;  %v20616_v60 = vld [vmem:[#allocation33_spill] sm:$0xff] }
 0x1fc   : > { %v2177_v29 = vand.u32 4294901760, %v2176_v36  ;;  %v2189_v22 = vand.u32 4294901760, %v2188_v16  ;;  %v20614_v27 = vand.u32 4294901760, %v20607_v43  ;;  %v20615_v44 = vand.u32 4294901760, %v20608_v56 }
 0x1fd   : > { %10426 = vmatpush1.bf16.msra.mxu1 %v20613_v19  ;;  %v20617_v57 = vsub.f32 %v14469_v62, %v14486_v54  ;;  %v20619_v21 = vand.u32 4294901760, %v14481_v7  ;;  %v20620_v16 = vand.u32 4294901760, %v14491_v2  ;;  %v19138_v36 = vand.u32 4294901760, %v20621_v41  ;;  %v20623_v19 = vld [vmem:[#allocation40_spill] sm:$0xff]  ;;  %v20624_v54 = vld [vmem:[#allocation46_spill] sm:$0xff] }
 0x1fe   : > { %v14609_v8 = vsub.f32 %v20607_v43, %v20614_v27  ;;  %v14614_v53 = vsub.f32 %v20608_v56, %v20615_v44  ;;  %10428 = vmatprep.subr.bf16.mxu1 %v20616_v60  ;;  %v20622_v27 = vld [vmem:[#allocation5_spill] sm:$0xff]  ;;  %9854 = vmatpush1.bf16.msra.mxu0 %v20623_v19  ;;  %v14631_v44 = vpack.c.bf16 %v4280_v40, %v4268_v52  ;;  %v20626_v40 = vld [vmem:[#allocation42_spill] sm:$0xff] }
 0x1ff   : > { %v14620_v47 = vand.u32 4294901760, %v20617_v57  ;;  %v14626_v46 = vpack.c.bf16 %v20620_v16, %v20619_v21  ;;  %v14633_v60 = vpack.c.bf16 %v2147_v37, %v2135_v4  ;;  %v14635_v6 = vpack.c.bf16 %v4286_v15, %v4274_v45  ;;  %9856 = vmatprep.subr.bf16.mxu0 %v20624_v54  ;;  %v20627_v4 = vld [vmem:[#allocation9_spill] sm:$0xff]  ;;  %v20630_v37 = vld [vmem:[#allocation16_spill] sm:$0xff] }
 0x200   : > { %v14637_v57 = vpack.c.bf16 %v2165_v14, %v2153_v32  ;;  %v14640_v7 = vpack.c.bf16 %v4304_v11, %v4292_v30  ;;  %v14642_v2 = vpack.c.bf16 %v2171_v17, %v2159_v20  ;;  %v14644_v21 = vpack.c.bf16 %v4310_v63, %v4298_v39  ;;  %v20629_v63 = vld [vmem:[#allocation14_spill] sm:$0xff]  ;;  %v20631_v20 = vld [vmem:[#allocation13_spill] sm:$0xff] }
 0x201   : > { %20618 = vst [vmem:[#allocation76_spill] sm:$0xff] %v14620_v47  ;;  %v20625_v16 = vand.u32 4294901760, %v20612_v42  ;;  %10430 = vmatpush1.bf16.msra.mxu1 %v20626_v40  ;;  %v14650_v52 = vpack.c.bf16 %v2189_v22, %v2177_v29  ;;  %v4316_v15 = vand.u32 4294901760, %v14609_v8  ;;  %v4328_v45 = vand.u32 4294901760, %v14614_v53  ;;  %v20632_v22 = vld [vmem:[#allocation18_spill] sm:$0xff] }
 0x202   : > { %10432 = vmatprep.subr.bf16.mxu1 %v14381_v10  ;;  %v2194_v17 = vsub.f32 %v20621_v41, %v19138_v36  ;;  %v20628_v11 = vand.u32 4294901760, %v20622_v27  ;;  %9858 = vmatpush1.bf16.msra.mxu0 %v14389_v34  ;;  %v20633_v36 = vld [vmem:[#allocation20_spill] sm:$0xff]  ;;  %v20635_v39 = vand.u32 4294901760, %v20627_v4  ;;  %v20637_v14 = vand.u32 4294901760, %v14466_v50 }
 0x203   : > { %v2182_v35 = vsub.f32 %v20612_v42, %v20625_v16  ;;  %9860 = vmatprep.subr.bf16.mxu0 %v14413_v38  ;;  %v20636_v38 = vand.u32 4294901760, %v14424_v12  ;;  %v20639_v32 = vand.u32 4294901760, %v20629_v63  ;;  %v20641_v53 = vand.u32 4294901760, %v14498_v51 }
 0x204   : > { %v14662_v30 = vsub.f32 %v20622_v27, %v20628_v11  ;;  %v20634_v11 = vld [vmem:[#allocation22_spill] sm:$0xff]  ;;  %v4333_v8 = vsub.f32 %v20627_v4, %v20635_v39  ;;  %v20642_v16 = vand.u32 4294901760, %v14500_v0  ;;  %v20648_v54 = vand.u32 4294901760, %v14507_v24 }
 0x205   : > { %10434 = vmatpush1.bf16.msra.mxu1 %v14396_v58  ;;  %v14686_v34 = vpack.c.bf16 %v20637_v14, %v20636_v38  ;;  %v2183_v10 = vand.u32 4294901760, %v2182_v35  ;;  %v2200_v29 = vsub.f32 %v20629_v63, %v20639_v32  ;;  %v20640_v58 = vand.u32 4294901760, %v20630_v37 }
 0x206   : > { %10436 = vmatprep.subr.bf16.mxu1 %v14422_v26  ;;  %v14699_v40 = vpack.c.bf16 %v20642_v16, %v20641_v53  ;;  %9862 = vmatpush1.bf16.msra.mxu0 %v14496_v13  ;;  %v20644_v38 = vand.u32 4294901760, %v20631_v20  ;;  %v20645_v14 = vand.u32 4294901760, %v20632_v22  ;;  %v2195_v53 = vand.u32 4294901760, %v2194_v17 }
 0x207   : > { %20638 = vst [vmem:[#allocation72_spill] sm:$0xff] %v14686_v34  ;;  %v2212_v39 = vsub.f32 %v20630_v37, %v20640_v58  ;;  %v20646_v34 = vld [vmem:[#allocation28_spill] sm:$0xff]  ;;  %v20647_v58 = vand.u32 4294901760, %v14505_v31  ;;  %9864 = vmatprep.subr.bf16.mxu0 %v14509_v49  ;;  %v20650_v16 = vand.u32 4294901760, %v20633_v36  ;;  %v4322_v26 = vand.u32 4294901760, %v14662_v30 }
 0x208   : > { %20643 = vst [vmem:[#allocation73_spill] sm:$0xff] %v14699_v40  ;;  %v4339_v35 = vsub.f32 %v20631_v20, %v20644_v38  ;;  %v4351_v32 = vsub.f32 %v20632_v22, %v20645_v14  ;;  %v20651_v38 = vand.u32 4294901760, %v20634_v11  ;;  %v20652_v14 = vld [vmem:[#allocation23_spill] sm:$0xff]  ;;  %v4334_v62 = vand.u32 4294901760, %v4333_v8 }
 0x209   : > { %v14713_v19 = vpack.c.bf16 %v20648_v54, %v20647_v58  ;;  %v2206_v40 = vsub.f32 %v20633_v36, %v20650_v16  ;;  %10438 = vmatpush1.bf16.msra.mxu1 %v14502_v23  ;;  %v20653_v54 = vld [vmem:[#allocation30_spill] sm:$0xff]  ;;  %2095 = vmatmul.mubr.f32.vlgmr.msra.gmra.mrb[0].mxu0 %v14620_v47  ;;  %v2201_v17 = vand.u32 4294901760, %v2200_v29  ;;  %v2213_v16 = vand.u32 4294901760, %v2212_v39 }
 0x20a   : > { %v2218_v13 = vsub.f32 %v20634_v11, %v20651_v38  ;;  %10440 = vmatprep.subr.bf16.mxu1 %v14511_v18  ;;  %v20655_v36 = vld [vmem:[#allocation34_spill] sm:$0xff]  ;;  %v20656_v38 = vld [vmem:[#allocation39_spill] sm:$0xff]  ;;  %9866 = vmatpush1.bf16.msra.mxu0 %v14514_v28  ;;  %v10451_v33 = vpack.c.bf16 %v4328_v45, %v4316_v15  ;;  %v4340_v23 = vand.u32 4294901760, %v4339_v35  ;;  %v4352_v30 = vand.u32 4294901760, %v4351_v32 }
 0x20b   : > { %20649 = vst [vmem:[#allocation77_spill] sm:$0xff] %v14713_v19  ;;  %v20654_v19 = vld [vmem:[#allocation31_spill] sm:$0xff]  ;;  %v20657_v8 = vand.u32 4294901760, %v20646_v34  ;;  %v20658_v49 = vmov 0.0   ;;  %9868 = vmatprep.subr.bf16.mxu0 %v14626_v46  ;;  %v9877_v18 = vpack.c.bf16 %v2195_v53, %v2183_v10  ;;  %v2207_v29 = vand.u32 4294901760, %v2206_v40  ;;  %v20663_v46 = vld [vmem:[#allocation37_spill] sm:$0xff] }
 0x20c   : > { %2325 = vmatprep.mubr.f32.mxu0 %v20658_v49  ;;  %4234 = vmatmul.mubr.f32.vlgmr.msra.gmra.mrb[0].mxu1 %v14620_v47  ;;  %v2219_v39 = vand.u32 4294901760, %v2218_v13  ;;  %v20659_v11 = vand.u32 4294901760, %v20652_v14  ;;  %v20660_v15 = vand.u32 4294901760, %v20653_v54  ;;  %v20661_v35 = vand.u32 4294901760, %v20654_v19  ;;  %v20666_v47 = vld [vmem:[#allocation43_spill] sm:$0xff] }
 0x20d   : > { %v4345_v58 = vsub.f32 %v20646_v34, %v20657_v8  ;;  %10442 = vmatpush1.bf16.msra.mxu1 %v14516_v55  ;;  %v20662_v8 = vld [vmem:[#allocation36_spill] sm:$0xff]  ;;  %4464 = vmatprep.mubr.f32.mxu1 %v20658_v49  ;;  %v10453_v13 = vpack.c.bf16 %v4334_v62, %v4322_v26  ;;  %v9879_v40 = vpack.c.bf16 %v2213_v16, %v2201_v17  ;;  %v20664_v55 = vand.u32 4294901760, %v20655_v36 }
 0x20e   : > { %v4357_v28 = vsub.f32 %v20652_v14, %v20659_v11  ;;  %v2224_v45 = vsub.f32 %v20653_v54, %v20660_v15  ;;  %v2236_v32 = vsub.f32 %v20654_v19, %v20661_v35  ;;  %10444 = vmatprep.subr.bf16.mxu1 %v14631_v44  ;;  %v20665_v53 = vand.u32 4294901760, %v20656_v38  ;;  %9870 = vmatpush1.bf16.msra.mxu0 %v14633_v60  ;;  %v20667_v14 = vld [vmem:[#allocation44_spill] sm:$0xff]  ;;  %v20668_v44 = vld [vmem:[#allocation51_spill] sm:$0xff] }
 0x20f   : > { %v4363_v11 = vsub.f32 %v20655_v36, %v20664_v55  ;;  %v10455_v35 = vpack.c.bf16 %v4352_v30, %v4340_v23  ;;  %v4346_v22 = vand.u32 4294901760, %v4345_v58  ;;  %v19163_v10 = vand.u32 4294901760, %v20666_v47  ;;  %9872 = vmatprep.subr.bf16.mxu0 %v14637_v57 }
 0x210   : > { %v4375_v15 = vsub.f32 %v20656_v38, %v20665_v53  ;;  %v19162_v34 = vand.u32 4294901760, %v20667_v14  ;;  %v9881_v62 = vpack.c.bf16 %v2219_v39, %v2207_v29  ;;  %v4358_v26 = vand.u32 4294901760, %v4357_v28  ;;  %v20671_v28 = vld [vmem:[#allocation49_spill] sm:$0xff] }
 0x211   : > { %v19164_v17 = vand.u32 4294901760, %v20668_v44  ;;  %10446 = vmatpush1.bf16.msra.mxu1 %v14635_v6  ;;  %v2225_v55 = vand.u32 4294901760, %v2224_v45  ;;  %v2237_v53 = vand.u32 4294901760, %v2236_v32  ;;  %v20669_v60 = vand.u32 4294901760, %v20662_v8  ;;  %v20673_v32 = vld [vmem:[#allocation57_spill] sm:$0xff] }
 0x212   : > { %v20670_v58 = vand.u32 4294901760, %v20663_v46  ;;  %10448 = vmatprep.subr.bf16.mxu1 %v14640_v7  ;;  %v4364_v57 = vand.u32 4294901760, %v4363_v11  ;;  %v4376_v29 = vand.u32 4294901760, %v4375_v15  ;;  %9874 = vmatpush1.bf16.msra.mxu0 %v14642_v2  ;;  %v4369_v6 = vsub.f32 %v20666_v47, %v19163_v10 }
 0x213   : > { %v2230_v23 = vsub.f32 %v20662_v8, %v20669_v60  ;;  %v4381_v45 = vsub.f32 %v20667_v14, %v19162_v34  ;;  %9876 = vmatprep.subr.bf16.mxu0 %v14650_v52  ;;  %v2248_v11 = vsub.f32 %v20668_v44, %v19164_v17  ;;  %v20672_v2 = vand.u32 4294901760, %v14379_v61 }
 0x214   : > { %v2242_v30 = vsub.f32 %v20663_v46, %v20670_v58  ;;  %v19166_v7 = vand.u32 4294901760, %v14398_v1  ;;  %v10457_v16 = vpack.c.bf16 %v4358_v26, %v4346_v22  ;;  %v9883_v39 = vpack.c.bf16 %v2237_v53, %v2225_v55 }
 0x215   : > { %v2260_v15 = vsub.f32 %v14379_v61, %v20672_v2  ;;  %10450 = vmatpush1.bf16.msra.mxu1 %v14644_v21  ;;  %v2231_v34 = vand.u32 4294901760, %v2230_v23  ;;  %v20674_v17 = vand.u32 4294901760, %v14383_v3  ;;  %v20675_v2 = vand.u32 4294901760, %v20671_v28 }
 0x216   : > { %v2243_v10 = vand.u32 4294901760, %v2242_v30  ;;  %10452 = vmatprep.subr.bf16.mxu1 %v10451_v33  ;;  %9878 = vmatpush1.bf16.msra.mxu0 %v9877_v18  ;;  %v4370_v58 = vand.u32 4294901760, %v4369_v6  ;;  %v4382_v21 = vand.u32 4294901760, %v4381_v45  ;;  %v20676_v23 = vand.u32 4294901760, %v14391_v9 }
 0x217   : > { %v4387_v14 = vsub.f32 %v14383_v3, %v20674_v17  ;;  %v4399_v60 = vsub.f32 %v20671_v28, %v20675_v2  ;;  %v20677_v52 = vand.u32 4294901760, %v14393_v5  ;;  %9880 = vmatprep.subr.bf16.mxu0 %v9879_v40  ;;  %v2249_v22 = vand.u32 4294901760, %v2248_v11 }
 0x218   : > { %v2254_v30 = vsub.f32 %v14391_v9, %v20676_v23  ;;  %v2261_v26 = vand.u32 4294901760, %v2260_v15  ;;  %v20678_v17 = vand.u32 4294901760, %v14415_v25  ;;  %v20679_v53 = vand.u32 4294901760, %v14417_v59 }
 0x219   : > { %v2266_v33 = vsub.f32 %v14393_v5, %v20677_v52  ;;  %10454 = vmatpush1.bf16.msra.mxu1 %v10453_v13  ;;  %v10459_v6 = vpack.c.bf16 %v4376_v29, %v4364_v57  ;;  %v9885_v45 = vpack.c.bf16 %v2243_v10, %v2231_v34  ;;  %v4393_v2 = vsub.f32 %v14398_v1, %v19166_v7 }
 0x21a   : > { %v2272_v55 = vsub.f32 %v14415_v25, %v20678_v17  ;;  %v2284_v18 = vsub.f32 %v14417_v59, %v20679_v53  ;;  %v20680_v52 = vand.u32 4294901760, %v20673_v32  ;;  %10456 = vmatprep.subr.bf16.mxu1 %v10455_v35  ;;  %v4388_v11 = vand.u32 4294901760, %v4387_v14  ;;  %9882 = vmatpush1.bf16.msra.mxu0 %v9881_v62 }
 0x21b   : > { %v4400_v15 = vand.u32 4294901760, %v4399_v60  ;;  %v20681_v23 = vand.u32 4294901760, %v14424_v12  ;;  %v20682_v53 = vand.u32 4294901760, %v14466_v50  ;;  %v2255_v34 = vand.u32 4294901760, %v2254_v30  ;;  %9884 = vmatprep.subr.bf16.mxu0 %v9883_v39 }
 0x21c   : > { %v4405_v40 = vsub.f32 %v20673_v32, %v20680_v52  ;;  %v2267_v10 = vand.u32 4294901760, %v2266_v33  ;;  %v20683_v57 = vand.u32 4294901760, %v14498_v51  ;;  %v20684_v52 = vand.u32 4294901760, %v14500_v0 }
 0x21d   : > { %v4411_v17 = vsub.f32 %v14424_v12, %v20681_v23  ;;  %v4423_v13 = vsub.f32 %v14466_v50, %v20682_v53  ;;  %v10461_v35 = vpack.c.bf16 %v4382_v21, %v4370_v58  ;;  %v9887_v60 = vpack.c.bf16 %v2261_v26, %v2249_v22  ;;  %10458 = vmatpush1.bf16.msra.mxu1 %v10457_v16 }
 0x21e   : > { %v2278_v29 = vsub.f32 %v14498_v51, %v20683_v57  ;;  %v2290_v14 = vsub.f32 %v14500_v0, %v20684_v52  ;;  %v2273_v7 = vand.u32 4294901760, %v2272_v55  ;;  %v2285_v23 = vand.u32 4294901760, %v2284_v18  ;;  %10460 = vmatprep.subr.bf16.mxu1 %v10459_v6  ;;  %9886 = vmatpush1.bf16.msra.mxu0 %v9885_v45  ;;  %v20688_v6 = vld [vmem:[#allocation108_spill] sm:$0xff]  ;;  %v20689_v45 = vld [vmem:[#allocation111_spill] sm:$0xff] }
 0x21f   : > { %v4394_v12 = vand.u32 4294901760, %v4393_v2  ;;  %v4406_v32 = vand.u32 4294901760, %v4405_v40  ;;  %v20685_v62 = vand.u32 4294901760, %v14505_v31  ;;  %v20686_v33 = vand.u32 4294901760, %v14507_v24  ;;  %9888 = vmatprep.subr.bf16.mxu0 %v9887_v60  ;;  %v20687_v40 = vld [vmem:[#allocation106_spill] sm:$0xff]  ;;  %v20697_v60 = vld [vmem:[#allocation127_spill] sm:$0xff] }
 0x220   : > { %v10463_v57 = vpack.c.bf16 %v4400_v15, %v4388_v11  ;;  %v4412_v51 = vand.u32 4294901760, %v4411_v17  ;;  %v4424_v52 = vand.u32 4294901760, %v4423_v13  ;;  %v9889_v39 = vpack.c.bf16 %v2267_v10, %v2255_v34  ;;  %v20690_v17 = vld [vmem:[#allocation112_spill] sm:$0xff]  ;;  %v20694_v10 = vld [vmem:[#allocation118_spill] sm:$0xff] }
 0x221   : > { %v4417_v30 = vsub.f32 %v14505_v31, %v20685_v62  ;;  %v4429_v53 = vsub.f32 %v14507_v24, %v20686_v33  ;;  %v2279_v58 = vand.u32 4294901760, %v2278_v29  ;;  %v2291_v21 = vand.u32 4294901760, %v2290_v14  ;;  %10462 = vmatpush1.bf16.msra.mxu1 %v10461_v35  ;;  %v20693_v34 = vld [vmem:[#allocation124_spill] sm:$0xff]  ;;  %v20700_v33 = vld [vmem:[#allocation137_spill] sm:$0xff] }
 0x222   : > { %v9891_v16 = vpack.c.bf16 %v2285_v23, %v2273_v7  ;;  %v10465_v22 = vpack.c.bf16 %v4406_v32, %v4394_v12  ;;  %10464 = vmatprep.subr.bf16.mxu1 %v10463_v57  ;;  %v10467_v18 = vpack.c.bf16 %v4424_v52, %v4412_v51  ;;  %9890 = vmatpush1.bf16.msra.mxu0 %v9889_v39  ;;  %v20691_v7 = vld [vmem:[#allocation115_spill] sm:$0xff]  ;;  %v20695_v29 = vld [vmem:[#allocation120_spill] sm:$0xff]  ;;  %v20698_v23 = vld [vmem:[#allocation129_spill] sm:$0xff] }
 0x223   : > { %v4418_v26 = vand.u32 4294901760, %v4417_v30  ;;  %v4430_v55 = vand.u32 4294901760, %v4429_v53  ;;  %v9893_v2 = vpack.c.bf16 %v2291_v21, %v2279_v58  ;;  %v9895_v11 = vpack.c.bf16 %v20688_v6, %v20687_v40  ;;  %v20692_v32 = vld [vmem:[#allocation123_spill] sm:$0xff]  ;;  %v20696_v35 = vld [vmem:[#allocation64_spill] sm:$0xff]  ;;  %v20702_v52 = vld [vmem:[#allocation89_spill] sm:$0xff] }
 0x224   : > { %9892 = vmatprep.subr.bf16.mxu0 %v9891_v16  ;;  %v10471_v13 = vpack.c.bf16 %v20690_v17, %v20689_v45  ;;  %v9897_v12 = vpack.c.bf16 %v20691_v7, %v14076_v48  ;;  %v9899_v51 = vpack.c.bf16 %v20693_v34, %v20692_v32  ;;  %v10473_v14 = vpack.c.bf16 %v20695_v29, %v20694_v10  ;;  %v20699_v30 = vld [vmem:[#allocation135_spill] sm:$0xff]  ;;  %v20701_v57 = vld [vmem:[#allocation84_spill] sm:$0xff] }
 0x225   : > { %10466 = vmatpush1.bf16.msra.mxu1 %v10465_v22  ;;  %v10469_v15 = vpack.c.bf16 %v4430_v55, %v4418_v26  ;;  %v10475_v62 = vpack.c.bf16 %v20698_v23, %v20697_v60  ;;  %v9901_v53 = vpack.c.bf16 %v20700_v33, %v20699_v30  ;;  %v9903_v39 = vpack.c.bf16 %v20702_v52, %v20701_v57  ;;  %v20703_v58 = vld [vmem:[#allocation147_spill] sm:$0xff]  ;;  %v20705_v22 = vld [vmem:[#allocation93_spill] sm:$0xff]  ;;  %v20706_v26 = vld [vmem:[#allocation94_spill] sm:$0xff] }
 0x226   : > { %10468 = vmatprep.subr.bf16.mxu1 %v10467_v18  ;;  %9894 = vmatpush1.bf16.msra.mxu0 %v9893_v2  ;;  %v20704_v21 = vld [vmem:[#allocation151_spill] sm:$0xff]  ;;  %v10479_v55 = vpack.c.bf16 %v20706_v26, %v20705_v22  ;;  %v20707_v18 = vld [vmem:[#allocation100_spill] sm:$0xff]  ;;  %v10483_v52 = vpack.c.bf16 %v20608_v56, %v20607_v43 }
 0x227   : > { %9896 = vmatprep.subr.bf16.mxu0 %v9895_v11  ;;  %v10477_v16 = vpack.c.bf16 %v20704_v21, %v20703_v58  ;;  %v20708_v2 = vld [vmem:[#allocation96_spill] sm:$0xff] }
 0x228   : > { %v9905_v11 = vpack.c.bf16 %v20708_v2, %v20707_v18 }
 0x229   : > { %10470 = vmatpush1.bf16.msra.mxu1 %v10469_v15  ;;  %2327 = vmatmul.mubr.f32.vlgmr.msra.gmra.mrb[0].mxu0 %v20696_v35  ;;  %v20709_v15 = vld [vmem:[#allocation141_spill] sm:$0xff] }
 0x22a   : > { %10472 = vmatprep.subr.bf16.mxu1 %v10471_v13  ;;  %9898 = vmatpush1.bf16.msra.mxu0 %v9897_v12  ;;  %v20710_v13 = vld [vmem:[#allocation145_spill] sm:$0xff] }
 0x22b   : > { %2461 = vmatprep.mubr.f32.mxu0 %v20658_v49  ;;  %9900 = vmatprep.subr.bf16.mxu0 %v9899_v51  ;;  %v9907_v12 = vpack.c.bf16 %v20710_v13, %v20709_v15  ;;  %v20711_v51 = vld [vmem:[#allocation101_spill] sm:$0xff]  ;;  %v20715_v15 = vld [vmem:[#allocation22_spill] sm:$0xff] }
 0x22c   : > { %4466 = vmatmul.mubr.f32.vlgmr.msra.gmra.mrb[0].mxu1 %v20696_v35 }
 0x22d   : > { %10474 = vmatpush1.bf16.msra.mxu1 %v10473_v14  ;;  %4600 = vmatprep.mubr.f32.mxu1 %v20658_v49  ;;  %v20712_v14 = vld [vmem:[#allocation103_spill] sm:$0xff] }
 0x22e   : > { %10476 = vmatprep.subr.bf16.mxu1 %v10475_v62  ;;  %9902 = vmatpush1.bf16.msra.mxu0 %v9901_v53  ;;  %v10481_v35 = vpack.c.bf16 %v20712_v14, %v20711_v51  ;;  %v9909_v62 = vpack.c.bf16 %v20621_v41, %v20612_v42  ;;  %v9911_v53 = vpack.c.bf16 %v20630_v37, %v20629_v63  ;;  %v20717_v41 = vld [vmem:[#allocation23_spill] sm:$0xff] }
 0x22f   : > { %9904 = vmatprep.subr.bf16.mxu0 %v9903_v39  ;;  %v10485_v39 = vpack.c.bf16 %v20627_v4, %v20622_v27 }
 0x231   : > { %10478 = vmatpush1.bf16.msra.mxu1 %v10477_v16  ;;  %v20713_v16 = vld [vmem:[#allocation18_spill] sm:$0xff] }
 0x232   : > { %10480 = vmatprep.subr.bf16.mxu1 %v10479_v55  ;;  %9906 = vmatpush1.bf16.msra.mxu0 %v9905_v11  ;;  %v10487_v13 = vpack.c.bf16 %v20713_v16, %v20631_v20  ;;  %v20714_v55 = vld [vmem:[#allocation20_spill] sm:$0xff]  ;;  %v9915_v11 = vpack.c.bf16 %v20654_v19, %v20653_v54 }
 0x233   : > { %9908 = vmatprep.subr.bf16.mxu0 %v9907_v12  ;;  %v9913_v56 = vpack.c.bf16 %v20715_v15, %v20714_v55  ;;  %v20716_v12 = vld [vmem:[#allocation28_spill] sm:$0xff] }
 0x234   : > { %v10489_v37 = vpack.c.bf16 %v20717_v41, %v20716_v12 }
 0x235   : > { %10482 = vmatpush1.bf16.msra.mxu1 %v10481_v35  ;;  %v10491_v35 = vpack.c.bf16 %v20656_v38, %v20655_v36 }
 0x236   : > { %10484 = vmatprep.subr.bf16.mxu1 %v10483_v52  ;;  %9910 = vmatpush1.bf16.msra.mxu0 %v9909_v62  ;;  %v9917_v52 = vpack.c.bf16 %v20663_v46, %v20662_v8  ;;  %v9919_v62 = vpack.c.bf16 %v14379_v61, %v20668_v44 }
 0x237   : > { %9912 = vmatprep.subr.bf16.mxu0 %v9911_v53  ;;  %v20718_v53 = vld [vmem:[#allocation44_spill] sm:$0xff] }
 0x238   : > { %v10493_v19 = vpack.c.bf16 %v20718_v53, %v20666_v47 }
 0x239   : > { %10486 = vmatpush1.bf16.msra.mxu1 %v10485_v39  ;;  %v10495_v39 = vpack.c.bf16 %v20671_v28, %v14383_v3 }
 0x23a   : > { %10488 = vmatprep.subr.bf16.mxu1 %v10487_v13  ;;  %9914 = vmatpush1.bf16.msra.mxu0 %v9913_v56  ;;  %v9921_v13 = vpack.c.bf16 %v14393_v5, %v14391_v9  ;;  %v9923_v56 = vpack.c.bf16 %v14417_v59, %v14415_v25  ;;  %v20725_v59 = vld [vmem:[#allocation113_spill] sm:$0xff] }
 0x23b   : > { %9916 = vmatprep.subr.bf16.mxu0 %v9915_v11  ;;  %v20719_v11 = vld [vmem:[#allocation57_spill] sm:$0xff] }
 0x23c   : > { %v10497_v61 = vpack.c.bf16 %v20719_v11, %v14398_v1 }
 0x23d   : > { %10490 = vmatpush1.bf16.msra.mxu1 %v10489_v37  ;;  %v20720_v37 = vld [vmem:[#allocation61_spill] sm:$0xff] }
 0x23e   : > { %10492 = vmatprep.subr.bf16.mxu1 %v10491_v35  ;;  %9918 = vmatpush1.bf16.msra.mxu0 %v9917_v52  ;;  %v10499_v44 = vpack.c.bf16 %v14466_v50, %v20720_v37  ;;  %v20721_v35 = vld [vmem:[#allocation70_spill] sm:$0xff]  ;;  %v10501_v52 = vpack.c.bf16 %v14507_v24, %v14505_v31  ;;  %v20726_v50 = vld [vmem:[#allocation121_spill] sm:$0xff]  ;;  %v20730_v24 = vld [vmem:[#allocation159_spill] sm:$0xff]  ;;  %v20734_v37 = vand.u32 4294901760, %v20689_v45  ;;  %v20741_v45 = vand.u32 4294901760, %v20692_v32 }
 0x23f   : > { %9920 = vmatprep.subr.bf16.mxu0 %v9919_v62  ;;  %v9925_v28 = vpack.c.bf16 %v14500_v0, %v20721_v35  ;;  %v20722_v62 = vld [vmem:[#allocation105_spill] sm:$0xff]  ;;  %v20729_v0 = vld [vmem:[#allocation130_spill] sm:$0xff]  ;;  %v20735_v35 = vand.u32 4294901760, %v20690_v17  ;;  %v20742_v17 = vand.u32 4294901760, %v20693_v34  ;;  %v20748_v32 = vand.u32 4294901760, %v20703_v58  ;;  %v296_v58 = vld [vmem:[%s18494_s2 + $0x68] sm:$0xff] }
 0x240   : > { %v20728_v31 = vld [vmem:[#allocation125_spill] sm:$0xff]  ;;  %v20749_v34 = vand.u32 4294901760, %v20704_v21  ;;  %v20755_v21 = vld [vmem:[#allocation142_spill] sm:$0xff] }
 0x241   : > { %10494 = vmatpush1.bf16.msra.mxu1 %v10493_v19  ;;  %v20723_v19 = vld [vmem:[#allocation109_spill] sm:$0xff] }
 0x242   : > { %10496 = vmatprep.subr.bf16.mxu1 %v10495_v39  ;;  %9922 = vmatpush1.bf16.msra.mxu0 %v9921_v13  ;;  %v20724_v39 = vld [vmem:[#allocation65_spill] sm:$0xff]  ;;  %v20733_v13 = vand.u32 4294901760, %v20688_v6  ;;  %v20740_v6 = vand.u32 4294901760, %v20695_v29  ;;  %v20747_v29 = vand.u32 4294901760, %v20700_v33  ;;  %v288_v33 = vld [vmem:[%s18494_s2 + $0x28] sm:$0xff] }
 0x243   : > { %9924 = vmatprep.subr.bf16.mxu0 %v9923_v56 }
 0x245   : > { %10498 = vmatpush1.bf16.msra.mxu1 %v10497_v61  ;;  %v20727_v61 = vld [vmem:[#allocation117_spill] sm:$0xff] }
 0x246   : > { %10500 = vmatprep.subr.bf16.mxu1 %v10499_v44  ;;  %9926 = vmatpush1.bf16.msra.mxu0 %v9925_v28  ;;  %v20731_v44 = vld [vmem:[#allocation148_spill] sm:$0xff]  ;;  %v20732_v28 = vand.u32 4294901760, %v20687_v40  ;;  %v20739_v40 = vand.u32 4294901760, %v20694_v10  ;;  %v20746_v10 = vand.u32 4294901760, %v20699_v30  ;;  %v20754_v30 = vand.u32 4294901760, %v20706_v26 }
 0x247   : > { %9928 = vmatprep.subr.bf16.mxu0 %v20722_v62  ;;  %v20757_v26 = vand.u32 4294901760, %v20708_v2  ;;  %v298_v2 = vld [vmem:[%s18494_s2 + $0x78] sm:$0xff] }
 0x248   : > { %v14922_v56 = vpack.c.bf16 %v20733_v13, %v20732_v28  ;;  %v14941_v28 = vpack.c.bf16 %v20740_v6, %v20739_v40  ;;  %v14947_v13 = vpack.c.bf16 %v20742_v17, %v20741_v45  ;;  %v20751_v40 = vld [vmem:[#allocation89_spill] sm:$0xff]  ;;  %v20753_v45 = vand.u32 4294901760, %v20705_v22 }
 0x249   : > { %10502 = vmatpush1.bf16.msra.mxu1 %v10501_v52  ;;  %2464 = vmatmul.mubr.f32.vlgmr.msra.gmra.mrb[0].mxu0 %v20724_v39  ;;  %v14928_v52 = vpack.c.bf16 %v20735_v35, %v20734_v37  ;;  %v20743_v37 = vand.u32 4294901760, %v20697_v60  ;;  %v20750_v60 = vand.u32 4294901760, %v20701_v57  ;;  %v290_v57 = vld [vmem:[%s18494_s2 + $0x38] sm:$0xff]  ;;  %v20756_v22 = vand.u32 4294901760, %v20707_v18 }
 0x24a   : > { %10504 = vmatprep.subr.bf16.mxu1 %v20723_v19  ;;  %9930 = vmatpush1.bf16.msra.mxu0 %v20725_v59  ;;  %v14978_v17 = vpack.c.bf16 %v20754_v30, %v20753_v45  ;;  %v20764_v45 = vand.u32 4294901760, %v20607_v43  ;;  %v20765_v30 = vld [vmem:[#allocation154_spill] sm:$0xff]  ;;  %v20768_v43 = vand.u32 4294901760, %v20612_v42  ;;  %v20777_v42 = vand.u32 4294901760, %v20713_v16  ;;  %v305_v19 = vld [vmem:[%s18494_s2 + $0xb0] sm:$0xff] }
 0x24b   : > { %2566 = vmatprep.mubr.f32.mxu0 %v20658_v49  ;;  %9932 = vmatprep.subr.bf16.mxu0 %v20726_v50  ;;  %v20766_v18 = vand.u32 4294901760, %v20765_v30  ;;  %v7126_v16 = vand.u32 4294901760, %v290_v57 }
 0x24c   : > { %4603 = vmatmul.mubr.f32.vlgmr.msra.gmra.mrb[0].mxu1 %v20724_v39  ;;  %v20736_v39 = vld [vmem:[#allocation91_spill] sm:$0xff] }
 0x24d   : > { %10506 = vmatpush1.bf16.msra.mxu1 %v20727_v61  ;;  %4705 = vmatprep.mubr.f32.mxu1 %v20658_v49 }
 0x24e   : > { %10508 = vmatprep.subr.bf16.mxu1 %v20728_v31  ;;  %9934 = vmatpush1.bf16.msra.mxu0 %v20729_v0  ;;  %v20737_v0 = vand.u32 4294901760, %v14076_v48  ;;  %v20744_v48 = vand.u32 4294901760, %v20698_v23  ;;  %v20752_v23 = vand.u32 4294901760, %v20751_v40 }
 0x24f   : > { %9936 = vmatprep.subr.bf16.mxu0 %v20730_v24  ;;  %v20738_v24 = vand.u32 4294901760, %v20691_v7  ;;  %v20745_v7 = vld [vmem:[#allocation99_spill] sm:$0xff] }
 0x250   : > { %v14953_v35 = vpack.c.bf16 %v20744_v48, %v20743_v37  ;;  %v14972_v6 = vpack.c.bf16 %v20752_v23, %v20750_v60  ;;  %v14994_v37 = vpack.c.bf16 %v20757_v26, %v20756_v22  ;;  %v20758_v48 = vand.u32 4294901760, %v20711_v51  ;;  %v20762_v60 = vld [vmem:[#allocation145_spill] sm:$0xff]  ;;  %v287_v51 = vld [vmem:[%s18494_s2 + $0x20] sm:$0xff]  ;;  %v20769_v26 = vld [vmem:[#allocation4_spill] sm:$0xff] }
 0x251   : > { %10510 = vmatpush1.bf16.msra.mxu1 %v20731_v44  ;;  %v14935_v31 = vpack.c.bf16 %v20738_v24, %v20737_v0  ;;  %v14960_v0 = vpack.c.bf16 %v20747_v29, %v20746_v10  ;;  %v14966_v24 = vpack.c.bf16 %v20749_v34, %v20748_v32  ;;  %v20759_v10 = vand.u32 4294901760, %v20712_v14  ;;  %v20760_v32 = vld [vmem:[#allocation141_spill] sm:$0xff]  ;;  %v295_v14 = vld [vmem:[%s18494_s2 + $0x60] sm:$0xff] }
 0x252   : > { %10512 = vmatprep.subr.bf16.mxu1 %v20736_v39  ;;  %9938 = vmatpush1.bf16.msra.mxu0 %v20745_v7  ;;  %v20761_v34 = vand.u32 4294901760, %v20760_v32  ;;  %v20763_v40 = vand.u32 4294901760, %v20762_v60  ;;  %v20767_v22 = vld [vmem:[#allocation97_spill] sm:$0xff]  ;;  %v20771_v32 = vand.u32 4294901760, %v20622_v27  ;;  %v20779_v27 = vand.u32 4294901760, %v20714_v55  ;;  %v297_v55 = vld [vmem:[%s18494_s2 + $0x70] sm:$0xff] }
 0x253   : > { %9940 = vmatprep.subr.bf16.mxu0 %v20755_v21  ;;  %v15000_v29 = vpack.c.bf16 %v20759_v10, %v20758_v48  ;;  %v15012_v21 = vpack.c.bf16 %v20766_v18, %v20764_v45  ;;  %v20770_v48 = vand.u32 4294901760, %v20769_v26  ;;  %v20774_v45 = vld [vmem:[#allocation16_spill] sm:$0xff]  ;;  %v20791_v39 = vand.u32 4294901760, %v20663_v46 }
 0x254   : > { %v15006_v23 = vpack.c.bf16 %v20763_v40, %v20761_v34  ;;  %v20772_v34 = vand.u32 4294901760, %v20627_v4  ;;  %v20773_v40 = vand.u32 4294901760, %v20629_v63  ;;  %v20775_v30 = vand.u32 4294901760, %v20774_v45 }
 0x255   : > { %10514 = vmatpush1.bf16.msra.mxu1 %v20767_v22  ;;  %v15028_v10 = vpack.c.bf16 %v20770_v48, %v20768_v43  ;;  %v20776_v22 = vand.u32 4294901760, %v20631_v20  ;;  %v20778_v43 = vld [vmem:[#allocation144_spill] sm:$0xff]  ;;  %v20780_v4 = vand.u32 4294901760, %v20715_v15  ;;  %v20781_v63 = vand.u32 4294901760, %v20716_v12  ;;  %v20784_v12 = vld [vmem:[#allocation10_spill] sm:$0xff] }
 0x256   : > { %v15034_v60 = vpack.c.bf16 %v20772_v34, %v20771_v32  ;;  %v15040_v18 = vpack.c.bf16 %v20775_v30, %v20773_v40  ;;  %10516 = vmatprep.subr.bf16.mxu1 %v20778_v43  ;;  %v20782_v48 = vand.u32 4294901760, %v20717_v41  ;;  %v4987_v34 = vand.u32 4294901760, %v288_v33  ;;  %v20783_v40 = vld [vmem:[#allocation153_spill] sm:$0xff]  ;;  %v289_v15 = vld [vmem:[%s18494_s2 + $0x30] sm:$0xff] }
 0x257   : > { %v15046_v7 = vpack.c.bf16 %v20777_v42, %v20776_v22  ;;  %v15053_v26 = vpack.c.bf16 %v20780_v4, %v20779_v27  ;;  %v4991_v20 = vand.u32 4294901760, %v296_v58  ;;  %9942 = vmatpush1.bf16.msra.mxu0 %v20783_v40  ;;  %v7130_v22 = vand.u32 4294901760, %v298_v2  ;;  %v20786_v42 = vld [vmem:[#allocation31_spill] sm:$0xff] }
 0x258   : > { %v15059_v32 = vpack.c.bf16 %v20782_v48, %v20781_v63  ;;  %v4989_v45 = vand.u32 4294901760, %v287_v51  ;;  %v4993_v30 = vand.u32 4294901760, %v295_v14  ;;  %9944 = vmatprep.subr.bf16.mxu0 %v20784_v12  ;;  %v20785_v41 = vand.u32 4294901760, %v20653_v54 }
 0x259   : > { %v20787_v27 = vand.u32 4294901760, %v20786_v42  ;;  %v20788_v63 = vand.u32 4294901760, %v20655_v36  ;;  %v20789_v48 = vand.u32 4294901760, %v20656_v38  ;;  %v20790_v43 = vand.u32 4294901760, %v20662_v8  ;;  %v304_v36 = vld [vmem:[%s18494_s2 + $0xa8] sm:$0xff] }
 0x25a   : > { %v20792_v12 = vand.u32 4294901760, %v20666_v47  ;;  %v20793_v54 = vand.u32 4294901760, %v20718_v53  ;;  %v20795_v38 = vld [vmem:[#allocation51_spill] sm:$0xff]  ;;  %v20799_v46 = vand.u32 4294901760, %v14383_v3  ;;  %v20802_v53 = vand.u32 4294901760, %v14391_v9  ;;  %v314_v9 = vld [vmem:[%s18494_s2 + $0xf8] sm:$0xff] }
 0x25b   : > { %v15073_v4 = vpack.c.bf16 %v20787_v27, %v20785_v41  ;;  %v15079_v40 = vpack.c.bf16 %v20789_v48, %v20788_v63  ;;  %v15085_v44 = vpack.c.bf16 %v20791_v39, %v20790_v43  ;;  %v20794_v41 = vld [vmem:[#allocation7_spill] sm:$0xff]  ;;  %v20796_v42 = vand.u32 4294901760, %v20795_v38  ;;  %v20797_v27 = vld [vmem:[#allocation52_spill] sm:$0xff]  ;;  %v20800_v39 = vld [vmem:[#allocation49_spill] sm:$0xff] }
 0x25c   : > { %v15091_v61 = vpack.c.bf16 %v20793_v54, %v20792_v12  ;;  %10518 = vmatpush1.bf16.msra.mxu1 %v20794_v41  ;;  %v20798_v8 = vand.u32 4294901760, %v20797_v27  ;;  %v20801_v47 = vand.u32 4294901760, %v20800_v39  ;;  %v20803_v12 = vand.u32 4294901760, %v14393_v5  ;;  %v312_v3 = vld [vmem:[%s18494_s2 + $0xe8] sm:$0xff]  ;;  %v20806_v5 = vld [vmem:[#allocation12_spill] sm:$0xff] }
 0x25d   : > { %v20804_v54 = vand.u32 4294901760, %v14398_v1  ;;  %v20805_v38 = vand.u32 4294901760, %v20719_v11  ;;  %10520 = vmatprep.subr.bf16.mxu1 %v20806_v5  ;;  %v20807_v1 = vand.u32 4294901760, %v14415_v25  ;;  %v20808_v27 = vld [vmem:[#allocation63_spill] sm:$0xff]  ;;  %v7128_v39 = vand.u32 4294901760, %v289_v15 }
 0x25e   : > { %v15101_v63 = vpack.c.bf16 %v20798_v8, %v20796_v42  ;;  %v15107_v43 = vpack.c.bf16 %v20801_v47, %v20799_v46  ;;  %v15113_v48 = vpack.c.bf16 %v20803_v12, %v20802_v53  ;;  %v306_v42 = vld [vmem:[%s18494_s2 + $0xb8] sm:$0xff]  ;;  %v20809_v11 = vand.u32 4294901760, %v20808_v27  ;;  %v303_v53 = vld [vmem:[%s18494_s2 + $0xa0] sm:$0xff] }
 0x25f   : > { %v15119_v41 = vpack.c.bf16 %v20805_v38, %v20804_v54  ;;  %v15137_v46 = vpack.c.bf16 %v4991_v20, %v4987_v34  ;;  %v7132_v47 = vand.u32 4294901760, %v297_v55  ;;  %v311_v12 = vld [vmem:[%s18494_s2 + $0xe0] sm:$0xff]  ;;  %v20811_v54 = vld [vmem:[#allocation19_spill] sm:$0xff]  ;;  %v15146_v38 = vsub.f32 %v288_v33, %v4987_v34  ;;  %v313_v33 = vld [vmem:[%s18494_s2 + $0xf0] sm:$0xff] }
 0x260   : > { %v15135_v8 = vpack.c.bf16 %v20809_v11, %v20807_v1  ;;  %9946 = vmatpush1.bf16.msra.mxu0 %v20811_v54  ;;  %v15148_v25 = vsub.f32 %v296_v58, %v4991_v20  ;;  %v15150_v1 = vpack.c.bf16 %v7130_v22, %v7126_v16  ;;  %v15152_v27 = vpack.c.bf16 %v4993_v30, %v4989_v45  ;;  %v20816_v11 = vld [vmem:[#allocation25_spill] sm:$0xff]  ;;  %v20817_v58 = vld [vmem:[#allocation27_spill] sm:$0xff] }
 0x261   : > { %20810 = vst [vmem:[#allocation79_spill] sm:$0xff] %v15137_v46  ;;  %20812 = vst [vmem:[#allocation81_spill] sm:$0xff] %v15146_v38  ;;  %9948 = vmatprep.subr.bf16.mxu0 %v20816_v11  ;;  %v4995_v46 = vand.u32 4294901760, %v304_v36  ;;  %v4999_v5 = vand.u32 4294901760, %v312_v3  ;;  %v7134_v50 = vand.u32 4294901760, %v306_v42  ;;  %v7138_v59 = vand.u32 4294901760, %v314_v9  ;;  %10522 = vmatpush1.bf16.msra.mxu1 %v20817_v58 }
 0x262   : > { %20813 = vst [vmem:[#allocation82_spill] sm:$0xff] %v15148_v25  ;;  %20814 = vst [vmem:[#allocation87_spill] sm:$0xff] %v15150_v1  ;;  %v15162_v34 = vsub.f32 %v290_v57, %v7126_v16  ;;  %v15164_v20 = vsub.f32 %v298_v2, %v7130_v22  ;;  %v5001_v1 = vand.u32 4294901760, %v311_v12  ;;  %v20820_v25 = vld [vmem:[#allocation33_spill] sm:$0xff]  ;;  %v15167_v38 = vsub.f32 %v287_v51, %v4989_v45  ;;  %v320_v58 = vld [vmem:[%s18494_s2 + $0x128] sm:$0xff] }
 0x263   : > { %20815 = vst [vmem:[#allocation88_spill] sm:$0xff] %v15152_v27  ;;  %v4997_v27 = vand.u32 4294901760, %v303_v53  ;;  %10524 = vmatprep.subr.bf16.mxu1 %v20820_v25  ;;  %v15169_v11 = vsub.f32 %v295_v14, %v4993_v30  ;;  %v15171_v54 = vpack.c.bf16 %v7132_v47, %v7128_v39  ;;  %v15173_v62 = vsub.f32 %v289_v15, %v7128_v39  ;;  %v328_v57 = vld [vmem:[%s18494_s2 + $0x168] sm:$0xff]  ;;  %v20825_v2 = vld [vmem:[#allocation40_spill] sm:$0xff]  ;;  %v322_v45 = vld [vmem:[%s18494_s2 + $0x138] sm:$0xff] }
 0x264   : > { %20818 = vst [vmem:[#allocation85_spill] sm:$0xff] %v15162_v34  ;;  %20819 = vst [vmem:[#allocation136_spill] sm:$0xff] %v15164_v20  ;;  %9950 = vmatpush1.bf16.msra.mxu0 %v20825_v2  ;;  %v15182_v16 = vsub.f32 %v297_v55, %v7132_v47  ;;  %v15184_v51 = vsub.f32 %v304_v36, %v4995_v46  ;;  %v7136_v14 = vand.u32 4294901760, %v305_v19  ;;  %v7140_v22 = vand.u32 4294901760, %v313_v33  ;;  %v330_v30 = vld [vmem:[%s18494_s2 + $0x178] sm:$0xff]  ;;  %v20828_v15 = vld [vmem:[#allocation46_spill] sm:$0xff] }
 0x265   : > { %20821 = vst [vmem:[#allocation132_spill] sm:$0xff] %v15167_v38  ;;  %20822 = vst [vmem:[#allocation133_spill] sm:$0xff] %v15169_v11  ;;  %9952 = vmatprep.subr.bf16.mxu0 %v20828_v15  ;;  %v15193_v39 = vpack.c.bf16 %v4999_v5, %v4995_v46  ;;  %v15197_v55 = vpack.c.bf16 %v7138_v59, %v7134_v50  ;;  %v15199_v36 = vsub.f32 %v306_v42, %v7134_v50  ;;  %v319_v47 = vld [vmem:[%s18494_s2 + $0x120] sm:$0xff]  ;;  %v321_v50 = vld [vmem:[%s18494_s2 + $0x130] sm:$0xff] }
 0x266   : > { %20823 = vst [vmem:[#allocation139_spill] sm:$0xff] %v15171_v54  ;;  %20824 = vst [vmem:[#allocation160_spill] sm:$0xff] %v15173_v62  ;;  %v15195_v54 = vsub.f32 %v312_v3, %v4999_v5  ;;  %v15208_v62 = vsub.f32 %v314_v9, %v7138_v59  ;;  %v15210_v46 = vpack.c.bf16 %v5001_v1, %v4997_v27  ;;  %v5003_v3 = vand.u32 4294901760, %v320_v58  ;;  %v329_v42 = vld [vmem:[%s18494_s2 + $0x170] sm:$0xff] }
 0x267   : > { %20826 = vst [vmem:[#allocation156_spill] sm:$0xff] %v15182_v16  ;;  %20827 = vst [vmem:[#allocation157_spill] sm:$0xff] %v15184_v51  ;;  %v327_v51 = vld [vmem:[%s18494_s2 + $0x160] sm:$0xff]  ;;  %v5007_v5 = vand.u32 4294901760, %v328_v57  ;;  %v7142_v59 = vand.u32 4294901760, %v322_v45  ;;  %v7146_v9 = vand.u32 4294901760, %v330_v30  ;;  %v15230_v11 = vpack.c.bf16 %v7140_v22, %v7136_v14 }
 0x268   : > { %20829 = vst [vmem:[#allocation161_spill] sm:$0xff] %v15193_v39  ;;  %20830 = vst [vmem:[#allocation163_spill] sm:$0xff] %v15195_v54  ;;  %v20833_v16 = vld [vmem:[#allocation42_spill] sm:$0xff]  ;;  %v15221_v54 = vsub.f32 %v311_v12, %v5001_v1  ;;  %v20839_v39 = vld [vmem:[#allocation53_spill] sm:$0xff]  ;;  %v15232_v38 = vsub.f32 %v305_v19, %v7136_v14  ;;  %v15243_v20 = vsub.f32 %v320_v58, %v5003_v3  ;;  %v7144_v34 = vand.u32 4294901760, %v321_v50 }
 0x269   : > { %20831 = vst [vmem:[#allocation165_spill] sm:$0xff] %v15197_v55  ;;  %20832 = vst [vmem:[#allocation166_spill] sm:$0xff] %v15199_v36  ;;  %10526 = vmatpush1.bf16.msra.mxu1 %v20833_v16  ;;  %v20836_v36 = vld [vmem:[#allocation48_spill] sm:$0xff]  ;;  %v15219_v55 = vsub.f32 %v303_v53, %v4997_v27  ;;  %9954 = vmatpush1.bf16.msra.mxu0 %v20839_v39  ;;  %v5005_v53 = vand.u32 4294901760, %v319_v47  ;;  %v5009_v27 = vand.u32 4294901760, %v327_v51  ;;  %v338_v12 = vld [vmem:[%s18494_s2 + $0x1b8] sm:$0xff] }
 0x26a   : > { %20834 = vst [vmem:[#allocation171_spill] sm:$0xff] %v15208_v62  ;;  %20835 = vst [vmem:[#allocation172_spill] sm:$0xff] %v15210_v46  ;;  %10528 = vmatprep.subr.bf16.mxu1 %v20836_v36  ;;  %v336_v46 = vld [vmem:[%s18494_s2 + $0x1a8] sm:$0xff]  ;;  %v346_v1 = vld [vmem:[%s18494_s2 + $0x1f8] sm:$0xff]  ;;  %v15246_v14 = vpack.c.bf16 %v5007_v5, %v5003_v3  ;;  %v7150_v3 = vand.u32 4294901760, %v338_v12 }
 0x26b   : > { %20837 = vst [vmem:[#allocation168_spill] sm:$0xff] %v15219_v55  ;;  %20838 = vst [vmem:[#allocation169_spill] sm:$0xff] %v15221_v54  ;;  %v344_v62 = vld [vmem:[%s18494_s2 + $0x1e8] sm:$0xff]  ;;  %v20842_v54 = vld [vmem:[#allocation58_spill] sm:$0xff]  ;;  %v15241_v55 = vsub.f32 %v313_v33, %v7140_v22  ;;  %v5011_v39 = vand.u32 4294901760, %v336_v46  ;;  %v15257_v22 = vpack.c.bf16 %v7146_v9, %v7142_v59 }
 0x26c   : > { %20840 = vst [vmem:[#allocation173_spill] sm:$0xff] %v15230_v11  ;;  %20841 = vst [vmem:[#allocation175_spill] sm:$0xff] %v15232_v38  ;;  %9956 = vmatprep.subr.bf16.mxu0 %v20842_v54  ;;  %v7148_v11 = vand.u32 4294901760, %v329_v42  ;;  %v20845_v19 = vld [vmem:[#allocation55_spill] sm:$0xff]  ;;  %v15248_v38 = vsub.f32 %v328_v57, %v5007_v5  ;;  %v5015_v36 = vand.u32 4294901760, %v344_v62  ;;  %v335_v16 = vld [vmem:[%s18494_s2 + $0x1a0] sm:$0xff]  ;;  %v15271_v54 = vsub.f32 %v327_v51, %v5009_v27 }
 0x26d   : > { %20843 = vst [vmem:[#allocation177_spill] sm:$0xff] %v15241_v55  ;;  %20844 = vst [vmem:[#allocation178_spill] sm:$0xff] %v15243_v20  ;;  %10530 = vmatpush1.bf16.msra.mxu1 %v20845_v19  ;;  %v343_v33 = vld [vmem:[%s18494_s2 + $0x1e0] sm:$0xff]  ;;  %v20848_v58 = vld [vmem:[#allocation60_spill] sm:$0xff]  ;;  %v15259_v20 = vsub.f32 %v322_v45, %v7142_v59  ;;  %v15267_v55 = vpack.c.bf16 %v5009_v27, %v5005_v53  ;;  %v15269_v19 = vsub.f32 %v319_v47, %v5005_v53 }
 0x26e   : > { %20846 = vst [vmem:[#allocation183_spill] sm:$0xff] %v15246_v14  ;;  %20847 = vst [vmem:[#allocation184_spill] sm:$0xff] %v15248_v38  ;;  %10532 = vmatprep.subr.bf16.mxu1 %v20848_v58  ;;  %v7154_v14 = vand.u32 4294901760, %v346_v1  ;;  %v337_v57 = vld [vmem:[%s18494_s2 + $0x1b0] sm:$0xff]  ;;  %v20851_v5 = vld [vmem:[#allocation69_spill] sm:$0xff]  ;;  %v15265_v38 = vsub.f32 %v330_v30, %v7146_v9  ;;  %v15282_v30 = vsub.f32 %v321_v50, %v7144_v34  ;;  %v5013_v9 = vand.u32 4294901760, %v335_v16 }
 0x26f   : > { %20849 = vst [vmem:[#allocation180_spill] sm:$0xff] %v15257_v22  ;;  %20850 = vst [vmem:[#allocation181_spill] sm:$0xff] %v15259_v20  ;;  %9958 = vmatpush1.bf16.msra.mxu0 %v20851_v5  ;;  %v345_v45 = vld [vmem:[%s18494_s2 + $0x1f0] sm:$0xff]  ;;  %v352_v59 = vld [vmem:[%s18494_s2 + $0x228] sm:$0xff]  ;;  %v15280_v20 = vpack.c.bf16 %v7148_v11, %v7144_v34  ;;  %v15296_v34 = vpack.c.bf16 %v5015_v36, %v5011_v39  ;;  %v15298_v50 = vsub.f32 %v336_v46, %v5011_v39 }
 0x270   : > { %20852 = vst [vmem:[#allocation185_spill] sm:$0xff] %v15265_v38  ;;  %20853 = vst [vmem:[#allocation187_spill] sm:$0xff] %v15267_v55  ;;  %9960 = vmatprep.subr.bf16.mxu0 %v14922_v56  ;;  %v5017_v38 = vand.u32 4294901760, %v343_v33  ;;  %v360_v51 = vld [vmem:[%s18494_s2 + $0x268] sm:$0xff]  ;;  %v354_v47 = vld [vmem:[%s18494_s2 + $0x238] sm:$0xff]  ;;  %v15294_v56 = vsub.f32 %v329_v42, %v7148_v11  ;;  %v15306_v55 = vsub.f32 %v338_v12, %v7150_v3  ;;  %v7156_v22 = vand.u32 4294901760, %v345_v45 }
 0x271   : > { %20854 = vst [vmem:[#allocation189_spill] sm:$0xff] %v15269_v19  ;;  %20855 = vst [vmem:[#allocation190_spill] sm:$0xff] %v15271_v54  ;;  %v362_v53 = vld [vmem:[%s18494_s2 + $0x278] sm:$0xff]  ;;  %v20858_v27 = vld [vmem:[#allocation75_spill] sm:$0xff]  ;;  %v15304_v19 = vpack.c.bf16 %v7154_v14, %v7150_v3  ;;  %v15324_v3 = vsub.f32 %v346_v1, %v7154_v14 }
 0x272   : > { %20856 = vst [vmem:[#allocation192_spill] sm:$0xff] %v15280_v20  ;;  %20857 = vst [vmem:[#allocation193_spill] sm:$0xff] %v15282_v30  ;;  %10534 = vmatpush1.bf16.msra.mxu1 %v20858_v27  ;;  %v7152_v30 = vand.u32 4294901760, %v337_v57  ;;  %v20862_v54 = vld [vmem:[#allocation67_spill] sm:$0xff]  ;;  %v15302_v20 = vsub.f32 %v344_v62, %v5015_v36  ;;  %v351_v11 = vld [vmem:[%s18494_s2 + $0x220] sm:$0xff]  ;;  %v5023_v62 = vand.u32 4294901760, %v360_v51 }
 0x273   : > { %20859 = vst [vmem:[#allocation2_spill] sm:$0xff] %v15294_v56  ;;  %20860 = vst [vmem:[#allocation6_spill] sm:$0xff] %v15296_v34  ;;  %10536 = vmatprep.subr.bf16.mxu1 %v14928_v52  ;;  %2570 = vmatmul.mubr.f32.vlgmr.msra.gmra.mrb[0].mxu0 %v20862_v54  ;;  %v359_v39 = vld [vmem:[%s18494_s2 + $0x260] sm:$0xff]  ;;  %v5019_v52 = vand.u32 4294901760, %v352_v59  ;;  %v7158_v36 = vand.u32 4294901760, %v354_v47  ;;  %v7162_v46 = vand.u32 4294901760, %v362_v53 }
 0x274   : > { %20861 = vst [vmem:[#allocation8_spill] sm:$0xff] %v15298_v50  ;;  %20863 = vst [vmem:[#allocation15_spill] sm:$0xff] %v15302_v20  ;;  %9962 = vmatpush1.bf16.msra.mxu0 %v14935_v31  ;;  %2736 = vmatprep.mubr.f32.mxu0 %v20658_v49  ;;  %v353_v42 = vld [vmem:[%s18494_s2 + $0x230] sm:$0xff]  ;;  %v15326_v31 = vpack.c.bf16 %v5017_v38, %v5013_v9  ;;  %v15332_v20 = vsub.f32 %v343_v33, %v5017_v38  ;;  %v5021_v56 = vand.u32 4294901760, %v351_v11  ;;  %v376_v1 = vld [vmem:[%s18494_s2 + $0x2e8] sm:$0xff] }
 0x275   : > { %20864 = vst [vmem:[#allocation11_spill] sm:$0xff] %v15304_v19  ;;  %20865 = vst [vmem:[#allocation17_spill] sm:$0xff] %v15306_v55  ;;  %v361_v12 = vld [vmem:[%s18494_s2 + $0x270] sm:$0xff]  ;;  %4709 = vmatmul.mubr.f32.vlgmr.msra.gmra.mrb[0].mxu1 %v20862_v54  ;;  %9964 = vmatprep.subr.bf16.mxu0 %v14947_v13  ;;  %v15328_v55 = vsub.f32 %v335_v16, %v5013_v9  ;;  %v15334_v50 = vsub.f32 %v337_v57, %v7152_v30  ;;  %v5025_v19 = vand.u32 4294901760, %v359_v39  ;;  %v368_v13 = vld [vmem:[%s18494_s2 + $0x2a8] sm:$0xff] }
 0x276   : > { %20866 = vst [vmem:[#allocation21_spill] sm:$0xff] %v15324_v3  ;;  %20867 = vst [vmem:[#allocation26_spill] sm:$0xff] %v15326_v31  ;;  %10538 = vmatpush1.bf16.msra.mxu1 %v14941_v28  ;;  %4875 = vmatprep.mubr.f32.mxu1 %v20658_v49  ;;  %v15343_v16 = vpack.c.bf16 %v7156_v22, %v7152_v30  ;;  %v15345_v28 = vsub.f32 %v345_v45, %v7156_v22  ;;  %v7160_v38 = vand.u32 4294901760, %v353_v42  ;;  %v370_v33 = vld [vmem:[%s18494_s2 + $0x2b8] sm:$0xff]  ;;  %v367_v45 = vld [vmem:[%s18494_s2 + $0x2a0] sm:$0xff] }
 0x277   : > { %20868 = vst [vmem:[#allocation24_spill] sm:$0xff] %v15328_v55  ;;  %20869 = vst [vmem:[#allocation29_spill] sm:$0xff] %v15332_v20  ;;  %10540 = vmatprep.subr.bf16.mxu1 %v14953_v35  ;;  %v7164_v14 = vand.u32 4294901760, %v361_v12  ;;  %v378_v57 = vld [vmem:[%s18494_s2 + $0x2f8] sm:$0xff]  ;;  %v15354_v9 = vpack.c.bf16 %v5023_v62, %v5019_v52  ;;  %v15356_v54 = vsub.f32 %v352_v59, %v5019_v52  ;;  %v375_v30 = vld [vmem:[%s18494_s2 + $0x2e0] sm:$0xff]  ;;  %v5027_v59 = vand.u32 4294901760, %v368_v13 }
 0x278   : > { %20870 = vst [vmem:[#allocation32_spill] sm:$0xff] %v15334_v50  ;;  %20871 = vst [vmem:[#allocation38_spill] sm:$0xff] %v15343_v16  ;;  %9966 = vmatpush1.bf16.msra.mxu0 %v14960_v0  ;;  %v15358_v35 = vsub.f32 %v360_v51, %v5023_v62  ;;  %v15360_v22 = vpack.c.bf16 %v7162_v46, %v7158_v36  ;;  %v15371_v0 = vsub.f32 %v362_v53, %v7162_v46  ;;  %v369_v51 = vld [vmem:[%s18494_s2 + $0x2b0] sm:$0xff]  ;;  %v384_v53 = vld [vmem:[%s18494_s2 + $0x328] sm:$0xff] }
 0x279   : > { %20872 = vst [vmem:[#allocation35_spill] sm:$0xff] %v15345_v28  ;;  %20873 = vst [vmem:[#allocation41_spill] sm:$0xff] %v15354_v9  ;;  %9968 = vmatprep.subr.bf16.mxu0 %v14972_v6  ;;  %v15369_v28 = vsub.f32 %v354_v47, %v7158_v36  ;;  %v5031_v52 = vand.u32 4294901760, %v376_v1  ;;  %v377_v62 = vld [vmem:[%s18494_s2 + $0x2f0] sm:$0xff]  ;;  %v7166_v6 = vand.u32 4294901760, %v370_v33  ;;  %v7170_v47 = vand.u32 4294901760, %v378_v57 }
 0x27a   : > { %20874 = vst [vmem:[#allocation45_spill] sm:$0xff] %v15356_v54  ;;  %20875 = vst [vmem:[#allocation50_spill] sm:$0xff] %v15358_v35  ;;  %10542 = vmatpush1.bf16.msra.mxu1 %v14966_v24  ;;  %v15380_v35 = vpack.c.bf16 %v5025_v19, %v5021_v56  ;;  %v15382_v54 = vsub.f32 %v351_v11, %v5021_v56  ;;  %v392_v36 = vld [vmem:[%s18494_s2 + $0x368] sm:$0xff]  ;;  %v15391_v46 = vsub.f32 %v359_v39, %v5025_v19  ;;  %v386_v56 = vld [vmem:[%s18494_s2 + $0x338] sm:$0xff] }
 0x27b   : > { %20876 = vst [vmem:[#allocation47_spill] sm:$0xff] %v15360_v22  ;;  %20877 = vst [vmem:[#allocation54_spill] sm:$0xff] %v15369_v28  ;;  %10544 = vmatprep.subr.bf16.mxu1 %v14978_v17  ;;  %v5029_v24 = vand.u32 4294901760, %v367_v45  ;;  %v5033_v28 = vand.u32 4294901760, %v375_v30  ;;  %v394_v11 = vld [vmem:[%s18494_s2 + $0x378] sm:$0xff]  ;;  %v15404_v50 = vsub.f32 %v361_v12, %v7164_v14  ;;  %v7168_v17 = vand.u32 4294901760, %v369_v51 }
 0x27c   : > { %20878 = vst [vmem:[#allocation56_spill] sm:$0xff] %v15371_v0  ;;  %20879 = vst [vmem:[#allocation62_spill] sm:$0xff] %v15380_v35  ;;  %v15393_v0 = vpack.c.bf16 %v7164_v14, %v7160_v38  ;;  %9970 = vmatpush1.bf16.msra.mxu0 %v14994_v37  ;;  %v7172_v19 = vand.u32 4294901760, %v377_v62  ;;  %v15407_v39 = vpack.c.bf16 %v5031_v52, %v5027_v59  ;;  %v5035_v20 = vand.u32 4294901760, %v384_v53  ;;  %v383_v3 = vld [vmem:[%s18494_s2 + $0x320] sm:$0xff] }
 0x27d   : > { %20880 = vst [vmem:[#allocation59_spill] sm:$0xff] %v15382_v54  ;;  %20881 = vst [vmem:[#allocation66_spill] sm:$0xff] %v15391_v46  ;;  %v15402_v54 = vsub.f32 %v353_v42, %v7160_v38  ;;  %9972 = vmatprep.subr.bf16.mxu0 %v15006_v23  ;;  %v15409_v46 = vsub.f32 %v368_v13, %v5027_v59  ;;  %v5039_v55 = vand.u32 4294901760, %v392_v36  ;;  %v391_v37 = vld [vmem:[%s18494_s2 + $0x360] sm:$0xff]  ;;  %v7174_v23 = vand.u32 4294901760, %v386_v56 }
 0x27e   : > { %20882 = vst [vmem:[#allocation68_spill] sm:$0xff] %v15393_v0  ;;  %20884 = vst [vmem:[#allocation71_spill] sm:$0xff] %v15404_v50  ;;  %10546 = vmatpush1.bf16.msra.mxu1 %v15000_v29  ;;  %v15418_v42 = vsub.f32 %v376_v1, %v5031_v52  ;;  %v15420_v12 = vpack.c.bf16 %v7170_v47, %v7166_v6  ;;  %v7178_v38 = vand.u32 4294901760, %v394_v11  ;;  %v385_v29 = vld [vmem:[%s18494_s2 + $0x330] sm:$0xff]  ;;  %v5041_v52 = vand.u32 4294901760, %v391_v37 }
 0x27f   : > { %20883 = vst [vmem:[#allocation74_spill] sm:$0xff] %v15402_v54  ;;  %20885 = vst [vmem:[#allocation78_spill] sm:$0xff] %v15407_v39  ;;  %10548 = vmatprep.subr.bf16.mxu1 %v15012_v21  ;;  %v15423_v13 = vsub.f32 %v370_v33, %v7166_v6  ;;  %v15425_v14 = vsub.f32 %v378_v57, %v7170_v47  ;;  %v15427_v59 = vpack.c.bf16 %v5033_v28, %v5029_v24  ;;  %v393_v1 = vld [vmem:[%s18494_s2 + $0x370] sm:$0xff]  ;;  %v400_v21 = vld [vmem:[%s18494_s2 + $0x3a8] sm:$0xff] }
 0x280   : > { %20886 = vst [vmem:[#allocation80_spill] sm:$0xff] %v15409_v46  ;;  %20887 = vst [vmem:[#allocation86_spill] sm:$0xff] %v15418_v42  ;;  %v15429_v46 = vsub.f32 %v367_v45, %v5029_v24  ;;  %9974 = vmatpush1.bf16.msra.mxu0 %v15028_v10  ;;  %v15441_v33 = vsub.f32 %v375_v30, %v5033_v28  ;;  %v15443_v57 = vpack.c.bf16 %v7172_v19, %v7168_v17  ;;  %v408_v6 = vld [vmem:[%s18494_s2 + $0x3e8] sm:$0xff]  ;;  %v402_v47 = vld [vmem:[%s18494_s2 + $0x3b8] sm:$0xff] }
 0x281   : > { %20888 = vst [vmem:[#allocation83_spill] sm:$0xff] %v15420_v12  ;;  %20889 = vst [vmem:[#allocation90_spill] sm:$0xff] %v15423_v13  ;;  %v5037_v45 = vand.u32 4294901760, %v383_v3  ;;  %v410_v24 = vld [vmem:[%s18494_s2 + $0x3f8] sm:$0xff]  ;;  %9976 = vmatprep.subr.bf16.mxu0 %v15040_v18  ;;  %v15455_v10 = vsub.f32 %v369_v51, %v7168_v17  ;;  %v15457_v28 = vsub.f32 %v377_v62, %v7172_v19  ;;  %v7176_v13 = vand.u32 4294901760, %v385_v29  ;;  %v399_v18 = vld [vmem:[%s18494_s2 + $0x3a0] sm:$0xff] }
 0x282   : > { %20890 = vst [vmem:[#allocation92_spill] sm:$0xff] %v15425_v14  ;;  %20891 = vst [vmem:[#allocation98_spill] sm:$0xff] %v15427_v59  ;;  %v15459_v30 = vpack.c.bf16 %v5039_v55, %v5035_v20  ;;  %10550 = vmatpush1.bf16.msra.mxu1 %v15034_v60  ;;  %v15466_v14 = vpack.c.bf16 %v7178_v38, %v7174_v23  ;;  %v7180_v42 = vand.u32 4294901760, %v393_v1  ;;  %v407_v51 = vld [vmem:[%s18494_s2 + $0x3e0] sm:$0xff]  ;;  %v5047_v62 = vand.u32 4294901760, %v408_v6 }
 0x283   : > { %20892 = vst [vmem:[#allocation95_spill] sm:$0xff] %v15429_v46  ;;  %20893 = vst [vmem:[#allocation102_spill] sm:$0xff] %v15441_v33  ;;  %v15461_v33 = vsub.f32 %v384_v53, %v5035_v20  ;;  %v15464_v46 = vsub.f32 %v392_v36, %v5039_v55  ;;  %10552 = vmatprep.subr.bf16.mxu1 %v15046_v7  ;;  %v5043_v20 = vand.u32 4294901760, %v400_v21  ;;  %v7182_v53 = vand.u32 4294901760, %v402_v47  ;;  %v401_v55 = vld [vmem:[%s18494_s2 + $0x3b0] sm:$0xff] }
 0x284   : > { %20894 = vst [vmem:[#allocation104_spill] sm:$0xff] %v15443_v57  ;;  %20895 = vst [vmem:[#allocation110_spill] sm:$0xff] %v15455_v10  ;;  %v7186_v60 = vand.u32 4294901760, %v410_v24  ;;  %v409_v36 = vld [vmem:[%s18494_s2 + $0x3f0] sm:$0xff]  ;;  %9978 = vmatpush1.bf16.msra.mxu0 %v15053_v26  ;;  %v15482_v17 = vsub.f32 %v386_v56, %v7174_v23  ;;  %v15484_v19 = vsub.f32 %v394_v11, %v7178_v38  ;;  %v5045_v50 = vand.u32 4294901760, %v399_v18  ;;  %v424_v56 = vld [vmem:[%s18494_s2 + $0x468] sm:$0xff] }
 0x285   : > { %20896 = vst [vmem:[#allocation107_spill] sm:$0xff] %v15457_v28  ;;  %20897 = vst [vmem:[#allocation114_spill] sm:$0xff] %v15459_v30  ;;  %v15488_v7 = vsub.f32 %v383_v3, %v5037_v45  ;;  %9980 = vmatprep.subr.bf16.mxu0 %v15073_v4  ;;  %v15494_v28 = vsub.f32 %v391_v37, %v5041_v52  ;;  %v15496_v10 = vsub.f32 %v385_v29, %v7176_v13  ;;  %v418_v3 = vld [vmem:[%s18494_s2 + $0x438] sm:$0xff] }
 0x286   : > { %20898 = vst [vmem:[#allocation116_spill] sm:$0xff] %v15461_v33  ;;  %20899 = vst [vmem:[#allocation122_spill] sm:$0xff] %v15464_v46  ;;  %v15486_v46 = vpack.c.bf16 %v5041_v52, %v5037_v45  ;;  %v416_v33 = vld [vmem:[%s18494_s2 + $0x428] sm:$0xff]  ;;  %v5049_v26 = vand.u32 4294901760, %v407_v51  ;;  %v426_v11 = vld [vmem:[%s18494_s2 + $0x478] sm:$0xff]  ;;  %10554 = vmatpush1.bf16.msra.mxu1 %v15059_v32  ;;  %v15508_v4 = vpack.c.bf16 %v7180_v42, %v7176_v13  ;;  %v7184_v23 = vand.u32 4294901760, %v401_v55 }
 0x287   : > { %20900 = vst [vmem:[#allocation119_spill] sm:$0xff] %v15466_v14  ;;  %20901 = vst [vmem:[#allocation126_spill] sm:$0xff] %v15482_v17  ;;  %v15510_v37 = vsub.f32 %v393_v1, %v7180_v42  ;;  %v7188_v38 = vand.u32 4294901760, %v409_v36  ;;  %10556 = vmatprep.subr.bf16.mxu1 %v15079_v40  ;;  %v15513_v29 = vpack.c.bf16 %v5047_v62, %v5043_v20  ;;  %v415_v32 = vld [vmem:[%s18494_s2 + $0x420] sm:$0xff]  ;;  %v5051_v13 = vand.u32 4294901760, %v416_v33 }
 0x288   : > { %20902 = vst [vmem:[#allocation128_spill] sm:$0xff] %v15484_v19  ;;  %20903 = vst [vmem:[#allocation134_spill] sm:$0xff] %v15486_v46  ;;  %v15515_v45 = vsub.f32 %v400_v21, %v5043_v20  ;;  %v15517_v52 = vsub.f32 %v408_v6, %v5047_v62  ;;  %v423_v42 = vld [vmem:[%s18494_s2 + $0x460] sm:$0xff]  ;;  %9982 = vmatpush1.bf16.msra.mxu0 %v15085_v44  ;;  %v5055_v40 = vand.u32 4294901760, %v424_v56  ;;  %v7190_v1 = vand.u32 4294901760, %v418_v3  ;;  %v417_v21 = vld [vmem:[%s18494_s2 + $0x430] sm:$0xff] }
 0x289   : > { %20904 = vst [vmem:[#allocation131_spill] sm:$0xff] %v15488_v7  ;;  %20905 = vst [vmem:[#allocation138_spill] sm:$0xff] %v15494_v28  ;;  %v425_v6 = vld [vmem:[%s18494_s2 + $0x470] sm:$0xff]  ;;  %9984 = vmatprep.subr.bf16.mxu0 %v15101_v63  ;;  %v15535_v20 = vsub.f32 %v402_v47, %v7182_v53  ;;  %v15537_v62 = vsub.f32 %v410_v24, %v7186_v60  ;;  %v15541_v44 = vsub.f32 %v399_v18, %v5045_v50  ;;  %v432_v63 = vld [vmem:[%s18494_s2 + $0x4a8] sm:$0xff] }
 0x28a   : > { %20906 = vst [vmem:[#allocation140_spill] sm:$0xff] %v15496_v10  ;;  %20907 = vst [vmem:[#allocation146_spill] sm:$0xff] %v15508_v4  ;;  %v15519_v10 = vpack.c.bf16 %v7186_v60, %v7182_v53  ;;  %10558 = vmatpush1.bf16.msra.mxu1 %v15091_v61  ;;  %v15546_v28 = vpack.c.bf16 %v7188_v38, %v7184_v23  ;;  %v5053_v7 = vand.u32 4294901760, %v415_v32  ;;  %v5057_v19 = vand.u32 4294901760, %v423_v42  ;;  %v440_v47 = vld [vmem:[%s18494_s2 + $0x4e8] sm:$0xff]  ;;  %v442_v53 = vld [vmem:[%s18494_s2 + $0x4f8] sm:$0xff] }
 0x28b   : > { %20908 = vst [vmem:[#allocation143_spill] sm:$0xff] %v15510_v37  ;;  %20909 = vst [vmem:[#allocation150_spill] sm:$0xff] %v15513_v29  ;;  %v7194_v37 = vand.u32 4294901760, %v426_v11  ;;  %10560 = vmatprep.subr.bf16.mxu1 %v15107_v43  ;;  %v15557_v24 = vsub.f32 %v409_v36, %v7188_v38  ;;  %v7192_v61 = vand.u32 4294901760, %v417_v21  ;;  %v7196_v18 = vand.u32 4294901760, %v425_v6  ;;  %v431_v36 = vld [vmem:[%s18494_s2 + $0x4a0] sm:$0xff] }
 0x28c   : > { %20910 = vst [vmem:[#allocation152_spill] sm:$0xff] %v15515_v45  ;;  %20911 = vst [vmem:[#allocation158_spill] sm:$0xff] %v15517_v52  ;;  %v15539_v52 = vpack.c.bf16 %v5049_v26, %v5045_v50  ;;  %v15544_v45 = vsub.f32 %v407_v51, %v5049_v26  ;;  %v15555_v50 = vsub.f32 %v401_v55, %v7184_v23  ;;  %v434_v51 = vld [vmem:[%s18494_s2 + $0x4b8] sm:$0xff]  ;;  %9986 = vmatpush1.bf16.msra.mxu0 %v15113_v48  ;;  %v439_v23 = vld [vmem:[%s18494_s2 + $0x4e0] sm:$0xff] }
 0x28d   : > { %20912 = vst [vmem:[#allocation155_spill] sm:$0xff] %v15519_v10  ;;  %20913 = vst [vmem:[#allocation162_spill] sm:$0xff] %v15535_v20  ;;  %v15566_v60 = vpack.c.bf16 %v5055_v40, %v5051_v13  ;;  %v15568_v26 = vsub.f32 %v416_v33, %v5051_v13  ;;  %v15570_v43 = vsub.f32 %v424_v56, %v5055_v40  ;;  %9988 = vmatprep.subr.bf16.mxu0 %v15135_v8  ;;  %v433_v56 = vld [vmem:[%s18494_s2 + $0x4b0] sm:$0xff] }
 0x28e   : > { %20914 = vst [vmem:[#allocation164_spill] sm:$0xff] %v15537_v62  ;;  %20915 = vst [vmem:[#allocation170_spill] sm:$0xff] %v15539_v52  ;;  %v15572_v55 = vpack.c.bf16 %v7194_v37, %v7190_v1  ;;  %v15581_v38 = vsub.f32 %v418_v3, %v7190_v1  ;;  %v15583_v48 = vsub.f32 %v426_v11, %v7194_v37  ;;  %v5059_v33 = vand.u32 4294901760, %v432_v63  ;;  %v441_v40 = vld [vmem:[%s18494_s2 + $0x4f0] sm:$0xff]  ;;  %v448_v11 = vld [vmem:[%s18494_s2 + $0x528] sm:$0xff] }
 0x28f   : > { %20916 = vst [vmem:[#allocation167_spill] sm:$0xff] %v15541_v44  ;;  %20917 = vst [vmem:[#allocation174_spill] sm:$0xff] %v15544_v45  ;;  %v5063_v13 = vand.u32 4294901760, %v440_v47  ;;  %10562 = vmatpush1.bf16.msra.mxu1 %v15119_v41  ;;  %v7198_v8 = vand.u32 4294901760, %v434_v51  ;;  %v7202_v3 = vand.u32 4294901760, %v442_v53  ;;  %v456_v37 = vld [vmem:[%s18494_s2 + $0x568] sm:$0xff] }
 0x290   : > { %20918 = vst [vmem:[#allocation176_spill] sm:$0xff] %v15546_v28  ;;  %20919 = vst [vmem:[#allocation182_spill] sm:$0xff] %v15555_v50  ;;  %v20929_v1 = vld [vmem:[#allocation72_spill] sm:$0xff]  ;;  %v5061_v41 = vand.u32 4294901760, %v431_v36  ;;  %v7200_v50 = vand.u32 4294901760, %v433_v56  ;;  %v7204_v45 = vand.u32 4294901760, %v441_v40 }
 0x291   : > { %20920 = vst [vmem:[#allocation179_spill] sm:$0xff] %v15557_v24  ;;  %20921 = vst [vmem:[#allocation186_spill] sm:$0xff] %v15566_v60  ;;  %10564 = vmatprep.subr.bf16.mxu1 %v20929_v1  ;;  %v5065_v24 = vand.u32 4294901760, %v439_v23  ;;  %v450_v44 = vld [vmem:[%s18494_s2 + $0x538] sm:$0xff]  ;;  %v15619_v1 = vpack.c.bf16 %v5063_v13, %v5059_v33  ;;  %v20944_v62 = vld [vmem:[#allocation64_spill] sm:$0xff] }
 0x292   : > { %20922 = vst [vmem:[#allocation188_spill] sm:$0xff] %v15568_v26  ;;  %20923 = vst [vmem:[#allocation191_spill] sm:$0xff] %v15570_v43  ;;  %v15592_v43 = vpack.c.bf16 %v5057_v19, %v5053_v7  ;;  %v15594_v26 = vsub.f32 %v415_v32, %v5053_v7  ;;  %v20932_v7 = vld [vmem:[#allocation73_spill] sm:$0xff]  ;;  %v15608_v32 = vsub.f32 %v417_v21, %v7192_v61  ;;  %v5067_v21 = vand.u32 4294901760, %v448_v11 }
 0x293   : > { %20924 = vst [vmem:[#allocation149_spill] sm:$0xff] %v15572_v55  ;;  %20925 = vst [vmem:[#allocation3_spill] sm:$0xff] %v15581_v38  ;;  %v15605_v38 = vpack.c.bf16 %v7196_v18, %v7192_v61  ;;  %9990 = vmatpush1.bf16.msra.mxu0 %v20932_v7  ;;  %v5071_v61 = vand.u32 4294901760, %v456_v37  ;;  %v20938_v7 = vld [vmem:[#allocation77_spill] sm:$0xff]  ;;  %v15643_v20 = vpack.c.bf16 %v5065_v24, %v5061_v41 }
 0x294   : > { %20926 = vst [vmem:[#allocation5_spill] sm:$0xff] %v15583_v48  ;;  %20927 = vst [vmem:[#allocation9_spill] sm:$0xff] %v15592_v43  ;;  %v15603_v48 = vsub.f32 %v423_v42, %v5057_v19  ;;  %v458_v19 = vld [vmem:[%s18494_s2 + $0x578] sm:$0xff]  ;;  %10566 = vmatpush1.bf16.msra.mxu1 %v20938_v7  ;;  %v15645_v17 = vsub.f32 %v431_v36, %v5061_v41  ;;  %v15658_v36 = vsub.f32 %v439_v23, %v5065_v24 }
 0x295   : > { %20928 = vst [vmem:[#allocation14_spill] sm:$0xff] %v15594_v26  ;;  %20931 = vst [vmem:[#allocation30_spill] sm:$0xff] %v15605_v38  ;;  %v15610_v26 = vsub.f32 %v425_v6, %v7196_v18  ;;  %v20935_v42 = vld [vmem:[#allocation105_spill] sm:$0xff]  ;;  %v447_v6 = vld [vmem:[%s18494_s2 + $0x520] sm:$0xff] }
 0x296   : > { %20930 = vst [vmem:[#allocation13_spill] sm:$0xff] %v15603_v48  ;;  %20933 = vst [vmem:[#allocation34_spill] sm:$0xff] %v15608_v32  ;;  %9992 = vmatprep.subr.bf16.mxu0 %v20935_v42  ;;  %v15621_v48 = vsub.f32 %v432_v63, %v5059_v33  ;;  %v455_v18 = vld [vmem:[%s18494_s2 + $0x560] sm:$0xff]  ;;  %v15632_v32 = vpack.c.bf16 %v7202_v3, %v7198_v8  ;;  %v15634_v42 = vsub.f32 %v434_v51, %v7198_v8  ;;  %v449_v33 = vld [vmem:[%s18494_s2 + $0x530] sm:$0xff] }
 0x297   : > { %20934 = vst [vmem:[#allocation39_spill] sm:$0xff] %v15610_v26  ;;  %20936 = vst [vmem:[#allocation36_spill] sm:$0xff] %v15619_v1  ;;  %v15630_v26 = vsub.f32 %v440_v47, %v5063_v13  ;;  %v15636_v63 = vsub.f32 %v442_v53, %v7202_v3  ;;  %2738 = vmatmul.mubr.f32.vlgmr.msra.gmra.mrb[0].mxu0 %v20944_v62  ;;  %v7206_v47 = vand.u32 4294901760, %v450_v44  ;;  %v7210_v13 = vand.u32 4294901760, %v458_v19  ;;  %v457_v51 = vld [vmem:[%s18494_s2 + $0x570] sm:$0xff]  ;;  %v464_v53 = vld [vmem:[%s18494_s2 + $0x5a8] sm:$0xff] }
 0x298   : > { %20937 = vst [vmem:[#allocation37_spill] sm:$0xff] %v15621_v48  ;;  %20940 = vst [vmem:[#allocation106_spill] sm:$0xff] %v15632_v32  ;;  %v20943_v48 = vld [vmem:[#allocation109_spill] sm:$0xff]  ;;  %2840 = vmatprep.mubr.f32.mxu0 %v20658_v49  ;;  %v15660_v3 = vpack.c.bf16 %v7204_v45, %v7200_v50  ;;  %v5069_v41 = vand.u32 4294901760, %v447_v6  ;;  %v5073_v7 = vand.u32 4294901760, %v455_v18  ;;  %4877 = vmatmul.mubr.f32.vlgmr.msra.gmra.mrb[0].mxu1 %v20944_v62 }
 0x299   : > { %20939 = vst [vmem:[#allocation43_spill] sm:$0xff] %v15630_v26  ;;  %20941 = vst [vmem:[#allocation108_spill] sm:$0xff] %v15634_v42  ;;  %10568 = vmatprep.subr.bf16.mxu1 %v20943_v48  ;;  %v472_v48 = vld [vmem:[%s18494_s2 + $0x5e8] sm:$0xff]  ;;  %v20947_v8 = vld [vmem:[#allocation113_spill] sm:$0xff]  ;;  %v15666_v42 = vsub.f32 %v441_v40, %v7204_v45  ;;  %v15668_v26 = vpack.c.bf16 %v5071_v61, %v5067_v21  ;;  %4979 = vmatprep.mubr.f32.mxu1 %v20658_v49 }
 0x29a   : > { %20942 = vst [vmem:[#allocation111_spill] sm:$0xff] %v15636_v63  ;;  %20945 = vst [vmem:[#allocation112_spill] sm:$0xff] %v15643_v20  ;;  %9994 = vmatpush1.bf16.msra.mxu0 %v20947_v8  ;;  %v15664_v63 = vsub.f32 %v433_v56, %v7200_v50  ;;  %v466_v8 = vld [vmem:[%s18494_s2 + $0x5b8] sm:$0xff]  ;;  %v5075_v50 = vand.u32 4294901760, %v464_v53  ;;  %v5079_v56 = vand.u32 4294901760, %v472_v48  ;;  %v463_v45 = vld [vmem:[%s18494_s2 + $0x5a0] sm:$0xff]  ;;  %v15691_v49 = vsub.f32 %v450_v44, %v7206_v47 }
 0x29b   : > { %20946 = vst [vmem:[#allocation115_spill] sm:$0xff] %v15645_v17  ;;  %20948 = vst [vmem:[#allocation123_spill] sm:$0xff] %v15658_v36  ;;  %v20950_v17 = vld [vmem:[#allocation121_spill] sm:$0xff]  ;;  %v7208_v36 = vand.u32 4294901760, %v449_v33  ;;  %v471_v40 = vld [vmem:[%s18494_s2 + $0x5e0] sm:$0xff]  ;;  %v15697_v32 = vsub.f32 %v458_v19, %v7210_v13  ;;  %v15699_v38 = vpack.c.bf16 %v5073_v7, %v5069_v41  ;;  %v7214_v1 = vand.u32 4294901760, %v466_v8 }
 0x29c   : > { %20949 = vst [vmem:[#allocation124_spill] sm:$0xff] %v15660_v3  ;;  %9996 = vmatprep.subr.bf16.mxu0 %v20950_v17  ;;  %20951 = vst [vmem:[#allocation118_spill] sm:$0xff] %v15664_v63  ;;  %v474_v24 = vld [vmem:[%s18494_s2 + $0x5f8] sm:$0xff]  ;;  %v7212_v17 = vand.u32 4294901760, %v457_v51  ;;  %v15685_v63 = vsub.f32 %v448_v11, %v5067_v21  ;;  %v15687_v3 = vsub.f32 %v456_v37, %v5071_v61  ;;  %v20960_v20 = vld [vmem:[#allocation130_spill] sm:$0xff]  ;;  %v5077_v61 = vand.u32 4294901760, %v463_v45 }
 0x29d   : > { %20952 = vst [vmem:[#allocation120_spill] sm:$0xff] %v15666_v42  ;;  %20953 = vst [vmem:[#allocation127_spill] sm:$0xff] %v15668_v26  ;;  %v20954_v23 = vld [vmem:[#allocation117_spill] sm:$0xff]  ;;  %v465_v26 = vld [vmem:[%s18494_s2 + $0x5b0] sm:$0xff]  ;;  %v15713_v19 = vsub.f32 %v455_v18, %v5073_v7 }
 0x29e   : > { %10570 = vmatpush1.bf16.msra.mxu1 %v20954_v23  ;;  %v20955_v42 = vld [vmem:[#allocation125_spill] sm:$0xff]  ;;  %20956 = vst [vmem:[#allocation129_spill] sm:$0xff] %v15685_v63  ;;  %20957 = vst [vmem:[#allocation135_spill] sm:$0xff] %v15687_v3  ;;  %v15689_v23 = vpack.c.bf16 %v7210_v13, %v7206_v47  ;;  %9998 = vmatpush1.bf16.msra.mxu0 %v20960_v20  ;;  %v473_v11 = vld [vmem:[%s18494_s2 + $0x5f0] sm:$0xff]  ;;  %v15711_v20 = vsub.f32 %v447_v6, %v5069_v41  ;;  %v5081_v47 = vand.u32 4294901760, %v471_v40 }
 0x29f   : > { %10572 = vmatprep.subr.bf16.mxu1 %v20955_v42  ;;  %20959 = vst [vmem:[#allocation84_spill] sm:$0xff] %v15691_v49  ;;  %20961 = vst [vmem:[#allocation147_spill] sm:$0xff] %v15697_v32  ;;  %v7218_v42 = vand.u32 4294901760, %v474_v24  ;;  %v480_v44 = vld [vmem:[%s18494_s2 + $0x628] sm:$0xff]  ;;  %v20966_v13 = vld [vmem:[#allocation148_spill] sm:$0xff]  ;;  %v15716_v32 = vpack.c.bf16 %v7212_v17, %v7208_v36  ;;  %v15718_v49 = vsub.f32 %v449_v33, %v7208_v36  ;;  %v7216_v41 = vand.u32 4294901760, %v465_v26 }
 0x2a0   : > { %20958 = vst [vmem:[#allocation137_spill] sm:$0xff] %v15689_v23  ;;  %20962 = vst [vmem:[#allocation151_spill] sm:$0xff] %v15699_v38  ;;  %v488_v37 = vld [vmem:[%s18494_s2 + $0x668] sm:$0xff]  ;;  %v15720_v3 = vsub.f32 %v457_v51, %v7212_v17  ;;  %v15722_v63 = vpack.c.bf16 %v5079_v56, %v5075_v50  ;;  %v490_v6 = vld [vmem:[%s18494_s2 + $0x678] sm:$0xff]  ;;  %v7220_v7 = vand.u32 4294901760, %v473_v11  ;;  %v15738_v17 = vsub.f32 %v464_v53, %v5075_v50 }
 0x2a1   : > { %v20963_v21 = vld [vmem:[#allocation159_spill] sm:$0xff]  ;;  %20964 = vst [vmem:[#allocation93_spill] sm:$0xff] %v15711_v20  ;;  %20965 = vst [vmem:[#allocation94_spill] sm:$0xff] %v15713_v19  ;;  %v5087_v19 = vand.u32 4294901760, %v488_v37  ;;  %v479_v33 = vld [vmem:[%s18494_s2 + $0x620] sm:$0xff]  ;;  %v7226_v23 = vand.u32 4294901760, %v490_v6 }
 0x2a2   : > { %10000 = vmatprep.subr.bf16.mxu0 %v20963_v21  ;;  %10574 = vmatpush1.bf16.msra.mxu1 %v20966_v13  ;;  %20967 = vst [vmem:[#allocation100_spill] sm:$0xff] %v15716_v32  ;;  %20968 = vst [vmem:[#allocation96_spill] sm:$0xff] %v15718_v49  ;;  %v482_v21 = vld [vmem:[%s18494_s2 + $0x638] sm:$0xff]  ;;  %v20971_v18 = vld [vmem:[#allocation91_spill] sm:$0xff]  ;;  %v5083_v13 = vand.u32 4294901760, %v480_v44  ;;  %v15742_v49 = vpack.c.bf16 %v7218_v42, %v7214_v1  ;;  %v15747_v32 = vsub.f32 %v474_v24, %v7218_v42 }
 0x2a3   : > { %20969 = vst [vmem:[#allocation101_spill] sm:$0xff] %v15720_v3  ;;  %20970 = vst [vmem:[#allocation103_spill] sm:$0xff] %v15722_v63  ;;  %10576 = vmatprep.subr.bf16.mxu1 %v20971_v18  ;;  %v487_v51 = vld [vmem:[%s18494_s2 + $0x660] sm:$0xff]  ;;  %v20972_v36 = vld [vmem:[#allocation99_spill] sm:$0xff]  ;;  %v15740_v3 = vsub.f32 %v472_v48, %v5079_v56  ;;  %v15744_v18 = vsub.f32 %v466_v8, %v7214_v1  ;;  %v15749_v63 = vpack.c.bf16 %v5081_v47, %v5077_v61 }
 0x2a4   : > { %10002 = vmatpush1.bf16.msra.mxu0 %v20972_v36  ;;  %20973 = vst [vmem:[#allocation18_spill] sm:$0xff] %v15738_v17  ;;  %20975 = vst [vmem:[#allocation22_spill] sm:$0xff] %v15742_v49  ;;  %v20977_v20 = vld [vmem:[#allocation142_spill] sm:$0xff]  ;;  %v7222_v38 = vand.u32 4294901760, %v482_v21  ;;  %v481_v36 = vld [vmem:[%s18494_s2 + $0x630] sm:$0xff]  ;;  %v15758_v1 = vsub.f32 %v463_v45, %v5077_v61  ;;  %v15760_v8 = vsub.f32 %v471_v40, %v5081_v47  ;;  %v5085_v24 = vand.u32 4294901760, %v479_v33 }
 0x2a5   : > { %20974 = vst [vmem:[#allocation20_spill] sm:$0xff] %v15740_v3  ;;  %20976 = vst [vmem:[#allocation28_spill] sm:$0xff] %v15744_v18  ;;  %10004 = vmatprep.subr.bf16.mxu0 %v20977_v20  ;;  %v489_v53 = vld [vmem:[%s18494_s2 + $0x670] sm:$0xff]  ;;  %v20980_v48 = vld [vmem:[#allocation97_spill] sm:$0xff]  ;;  %v5089_v50 = vand.u32 4294901760, %v487_v51  ;;  %v15771_v18 = vsub.f32 %v465_v26, %v7216_v41  ;;  %v15773_v45 = vsub.f32 %v473_v11, %v7220_v7  ;;  %v7224_v26 = vand.u32 4294901760, %v481_v36 }
 0x2a6   : > { %20978 = vst [vmem:[#allocation23_spill] sm:$0xff] %v15747_v32  ;;  %20979 = vst [vmem:[#allocation44_spill] sm:$0xff] %v15749_v63  ;;  %10578 = vmatpush1.bf16.msra.mxu1 %v20980_v48  ;;  %v496_v56 = vld [vmem:[%s18494_s2 + $0x6a8] sm:$0xff]  ;;  %v20983_v20 = vld [vmem:[#allocation144_spill] sm:$0xff]  ;;  %v15769_v32 = vpack.c.bf16 %v7220_v7, %v7216_v41  ;;  %v15775_v40 = vpack.c.bf16 %v5087_v19, %v5083_v13  ;;  %v7228_v41 = vand.u32 4294901760, %v489_v53 }
 0x2a7   : > { %20981 = vst [vmem:[#allocation57_spill] sm:$0xff] %v15758_v1  ;;  %20982 = vst [vmem:[#allocation61_spill] sm:$0xff] %v15760_v8  ;;  %v504_v42 = vld [vmem:[%s18494_s2 + $0x6e8] sm:$0xff]  ;;  %10580 = vmatprep.subr.bf16.mxu1 %v20983_v20  ;;  %v498_v61 = vld [vmem:[%s18494_s2 + $0x6b8] sm:$0xff]  ;;  %v15784_v8 = vsub.f32 %v480_v44, %v5083_v13  ;;  %v15786_v20 = vsub.f32 %v488_v37, %v5087_v19  ;;  %v15797_v1 = vsub.f32 %v482_v21, %v7222_v38 }
 0x2a8   : > { %20984 = vst [vmem:[#allocation70_spill] sm:$0xff] %v15769_v32  ;;  %20985 = vst [vmem:[#allocation89_spill] sm:$0xff] %v15771_v18  ;;  %v506_v47 = vld [vmem:[%s18494_s2 + $0x6f8] sm:$0xff]  ;;  %v495_v11 = vld [vmem:[%s18494_s2 + $0x6a0] sm:$0xff]  ;;  %v15795_v18 = vpack.c.bf16 %v7226_v23, %v7222_v38  ;;  %v5091_v44 = vand.u32 4294901760, %v496_v56  ;;  %v5095_v13 = vand.u32 4294901760, %v504_v42  ;;  %v15811_v21 = vsub.f32 %v479_v33, %v5085_v24 }
 0x2a9   : > { %20986 = vst [vmem:[#allocation141_spill] sm:$0xff] %v15773_v45  ;;  %20987 = vst [vmem:[#allocation145_spill] sm:$0xff] %v15775_v40  ;;  %v20988_v48 = vld [vmem:[#allocation153_spill] sm:$0xff]  ;;  %v503_v7 = vld [vmem:[%s18494_s2 + $0x6e0] sm:$0xff]  ;;  %v7234_v3 = vand.u32 4294901760, %v506_v47  ;;  %v5093_v17 = vand.u32 4294901760, %v495_v11  ;;  %v15826_v33 = vsub.f32 %v489_v53, %v7228_v41 }
 0x2aa   : > { %10006 = vmatpush1.bf16.msra.mxu0 %v20988_v48  ;;  %20989 = vst [vmem:[#allocation154_spill] sm:$0xff] %v15784_v8  ;;  %20990 = vst [vmem:[#allocation4_spill] sm:$0xff] %v15786_v20  ;;  %v20991_v45 = vld [vmem:[#allocation10_spill] sm:$0xff]  ;;  %v497_v37 = vld [vmem:[%s18494_s2 + $0x6b0] sm:$0xff]  ;;  %v15803_v48 = vsub.f32 %v490_v6, %v7226_v23  ;;  %v15805_v20 = vpack.c.bf16 %v5089_v50, %v5085_v24  ;;  %v7230_v8 = vand.u32 4294901760, %v498_v61 }
 0x2ab   : > { %10008 = vmatprep.subr.bf16.mxu0 %v20991_v45  ;;  %20992 = vst [vmem:[#allocation16_spill] sm:$0xff] %v15795_v18  ;;  %20993 = vst [vmem:[#allocation31_spill] sm:$0xff] %v15797_v1  ;;  %v20994_v19 = vld [vmem:[#allocation7_spill] sm:$0xff]  ;;  %v505_v45 = vld [vmem:[%s18494_s2 + $0x6f0] sm:$0xff]  ;;  %v15813_v1 = vsub.f32 %v487_v51, %v5089_v50  ;;  %v5097_v18 = vand.u32 4294901760, %v503_v7  ;;  %v7232_v51 = vand.u32 4294901760, %v497_v37 }
 0x2ac   : > { %10582 = vmatpush1.bf16.msra.mxu1 %v20994_v19  ;;  %20995 = vst [vmem:[#allocation51_spill] sm:$0xff] %v15803_v48  ;;  %20996 = vst [vmem:[#allocation52_spill] sm:$0xff] %v15805_v20  ;;  %v20997_v38 = vld [vmem:[#allocation12_spill] sm:$0xff]  ;;  %v512_v23 = vld [vmem:[%s18494_s2 + $0x728] sm:$0xff]  ;;  %v15822_v48 = vpack.c.bf16 %v7228_v41, %v7224_v26  ;;  %v15824_v20 = vsub.f32 %v481_v36, %v7224_v26  ;;  %v7236_v36 = vand.u32 4294901760, %v505_v45 }
 0x2ad   : > { %10584 = vmatprep.subr.bf16.mxu1 %v20997_v38  ;;  %20998 = vst [vmem:[#allocation49_spill] sm:$0xff] %v15811_v21  ;;  %20999 = vst [vmem:[#allocation63_spill] sm:$0xff] %v15813_v1  ;;  %v520_v6 = vld [vmem:[%s18494_s2 + $0x768] sm:$0xff]  ;;  %v514_v24 = vld [vmem:[%s18494_s2 + $0x738] sm:$0xff]  ;;  %v15835_v1 = vpack.c.bf16 %v5095_v13, %v5091_v44  ;;  %v15839_v21 = vsub.f32 %v504_v42, %v5095_v13  ;;  %v15859_v13 = vsub.f32 %v506_v47, %v7234_v3 }
 0x2ae   : > { %v21000_v19 = vld [vmem:[#allocation19_spill] sm:$0xff]  ;;  %21001 = vst [vmem:[#allocation33_spill] sm:$0xff] %v15822_v48  ;;  %21002 = vst [vmem:[#allocation40_spill] sm:$0xff] %v15824_v20  ;;  %v522_v50 = vld [vmem:[%s18494_s2 + $0x778] sm:$0xff]  ;;  %v5099_v20 = vand.u32 4294901760, %v512_v23  ;;  %v15877_v47 = vsub.f32 %v497_v37, %v7232_v51 }
 0x2af   : > { %10010 = vmatpush1.bf16.msra.mxu0 %v21000_v19  ;;  %21003 = vst [vmem:[#allocation46_spill] sm:$0xff] %v15826_v33  ;;  %v21004_v38 = vld [vmem:[#allocation25_spill] sm:$0xff]  ;;  %21005 = vst [vmem:[#allocation60_spill] sm:$0xff] %v15835_v1  ;;  %v15837_v19 = vsub.f32 %v496_v56, %v5091_v44  ;;  %v511_v53 = vld [vmem:[%s18494_s2 + $0x720] sm:$0xff]  ;;  %v15848_v33 = vpack.c.bf16 %v7234_v3, %v7230_v8  ;;  %v5103_v56 = vand.u32 4294901760, %v520_v6 }
 0x2b0   : > { %10012 = vmatprep.subr.bf16.mxu0 %v21004_v38  ;;  %21007 = vst [vmem:[#allocation75_spill] sm:$0xff] %v15839_v21  ;;  %v519_v26 = vld [vmem:[%s18494_s2 + $0x760] sm:$0xff]  ;;  %v21008_v41 = vld [vmem:[#allocation27_spill] sm:$0xff]  ;;  %v15850_v38 = vsub.f32 %v498_v61, %v7230_v8  ;;  %v513_v42 = vld [vmem:[%s18494_s2 + $0x730] sm:$0xff]  ;;  %v15861_v21 = vpack.c.bf16 %v5097_v18, %v5093_v17  ;;  %v15864_v8 = vsub.f32 %v495_v11, %v5093_v17 }
 0x2b1   : > { %21006 = vst [vmem:[#allocation69_spill] sm:$0xff] %v15837_v19  ;;  %10586 = vmatpush1.bf16.msra.mxu1 %v21008_v41  ;;  %21009 = vst [vmem:[#allocation72_spill] sm:$0xff] %v15848_v33  ;;  %v521_v44 = vld [vmem:[%s18494_s2 + $0x770] sm:$0xff]  ;;  %v7238_v41 = vand.u32 4294901760, %v514_v24  ;;  %v7242_v19 = vand.u32 4294901760, %v522_v50  ;;  %v15866_v61 = vsub.f32 %v503_v7, %v5097_v18  ;;  %v5105_v33 = vand.u32 4294901760, %v519_v26 }
 0x2b2   : > { %21010 = vst [vmem:[#allocation73_spill] sm:$0xff] %v15850_v38  ;;  %10588 = vmatprep.subr.bf16.mxu1 %v20820_v25  ;;  %21011 = vst [vmem:[#allocation105_spill] sm:$0xff] %v15859_v13  ;;  %v5101_v38 = vand.u32 4294901760, %v511_v53  ;;  %v528_v48 = vld [vmem:[%s18494_s2 + $0x7a8] sm:$0xff]  ;;  %v15875_v3 = vpack.c.bf16 %v7236_v36, %v7232_v51  ;;  %v7244_v17 = vand.u32 4294901760, %v521_v44  ;;  %v21017_v18 = vld [vmem:[#allocation42_spill] sm:$0xff]  ;;  %v15880_v11 = vsub.f32 %v505_v45, %v7236_v36 }
 0x2b3   : > { %21012 = vst [vmem:[#allocation77_spill] sm:$0xff] %v15861_v21  ;;  %10014 = vmatpush1.bf16.msra.mxu0 %v20825_v2  ;;  %21013 = vst [vmem:[#allocation109_spill] sm:$0xff] %v15864_v8  ;;  %v536_v25 = vld [vmem:[%s18494_s2 + $0x7e8] sm:$0xff]  ;;  %v7240_v2 = vand.u32 4294901760, %v513_v42  ;;  %v15882_v7 = vpack.c.bf16 %v5103_v56, %v5099_v20  ;;  %v15886_v8 = vsub.f32 %v520_v6, %v5103_v56  ;;  %v21022_v13 = vld [vmem:[#allocation48_spill] sm:$0xff] }
 0x2b4   : > { %21014 = vst [vmem:[#allocation113_spill] sm:$0xff] %v15866_v61  ;;  %10016 = vmatprep.subr.bf16.mxu0 %v20828_v15  ;;  %21015 = vst [vmem:[#allocation121_spill] sm:$0xff] %v15875_v3  ;;  %v15884_v61 = vsub.f32 %v512_v23, %v5099_v20  ;;  %v530_v15 = vld [vmem:[%s18494_s2 + $0x7b8] sm:$0xff]  ;;  %v15892_v37 = vpack.c.bf16 %v7242_v19, %v7238_v41  ;;  %v15894_v51 = vsub.f32 %v514_v24, %v7238_v41  ;;  %v527_v20 = vld [vmem:[%s18494_s2 + $0x7a0] sm:$0xff] }
 0x2b5   : > { %21016 = vst [vmem:[#allocation117_spill] sm:$0xff] %v15877_v47  ;;  %10590 = vmatpush1.bf16.msra.mxu1 %v21017_v18  ;;  %21018 = vst [vmem:[#allocation125_spill] sm:$0xff] %v15880_v11  ;;  %v5107_v47 = vand.u32 4294901760, %v528_v48  ;;  %v5111_v18 = vand.u32 4294901760, %v536_v25  ;;  %v538_v45 = vld [vmem:[%s18494_s2 + $0x7f8] sm:$0xff]  ;;  %v535_v23 = vld [vmem:[%s18494_s2 + $0x7e0] sm:$0xff]  ;;  %v15906_v36 = vsub.f32 %v522_v50, %v7242_v19  ;;  %v15908_v24 = vpack.c.bf16 %v5105_v33, %v5101_v38 }
 0x2b6   : > { %21019 = vst [vmem:[#allocation130_spill] sm:$0xff] %v15882_v7  ;;  %21020 = vst [vmem:[#allocation159_spill] sm:$0xff] %v15884_v61  ;;  %10592 = vmatprep.subr.bf16.mxu1 %v21022_v13  ;;  %v21025_v6 = vld [vmem:[#allocation53_spill] sm:$0xff]  ;;  %v15910_v56 = vsub.f32 %v511_v53, %v5101_v38  ;;  %v15912_v13 = vsub.f32 %v519_v26, %v5105_v33  ;;  %v529_v41 = vld [vmem:[%s18494_s2 + $0x7b0] sm:$0xff]  ;;  %v15920_v61 = vsub.f32 %v513_v42, %v7240_v2 }
 0x2b7   : > { %21021 = vst [vmem:[#allocation148_spill] sm:$0xff] %v15886_v8  ;;  %21023 = vst [vmem:[#allocation91_spill] sm:$0xff] %v15892_v37  ;;  %10018 = vmatpush1.bf16.msra.mxu0 %v21025_v6  ;;  %v15918_v8 = vpack.c.bf16 %v7244_v17, %v7240_v2  ;;  %v7246_v11 = vand.u32 4294901760, %v530_v15  ;;  %v15925_v50 = vld [vmem:[%s18494_s2 + $0x7f0] sm:$0xff]  ;;  %v21033_v19 = vld [vmem:[#allocation81_spill] sm:$0xff]  ;;  %v7250_v26 = vand.u32 4294901760, %v538_v45  ;;  %v15933_v42 = vpack.c.bf16 %v5111_v18, %v5107_v47 }
 0x2b8   : > { %21024 = vst [vmem:[#allocation99_spill] sm:$0xff] %v15894_v51  ;;  %21026 = vst [vmem:[#allocation142_spill] sm:$0xff] %v15906_v36  ;;  %v21030_v51 = vld [vmem:[#allocation58_spill] sm:$0xff]  ;;  %v21034_v33 = vld [vmem:[#allocation55_spill] sm:$0xff]  ;;  %v5109_v38 = vand.u32 4294901760, %v527_v20  ;;  %v5113_v6 = vand.u32 4294901760, %v535_v23  ;;  %v15935_v2 = vsub.f32 %v528_v48, %v5107_v47  ;;  %v15938_v36 = vsub.f32 %v536_v25, %v5111_v18 }
 0x2b9   : > { %21027 = vst [vmem:[#allocation97_spill] sm:$0xff] %v15908_v24  ;;  %21028 = vst [vmem:[#allocation144_spill] sm:$0xff] %v15910_v56  ;;  %10020 = vmatprep.subr.bf16.mxu0 %v21030_v51  ;;  %10594 = vmatpush1.bf16.msra.mxu1 %v21034_v33  ;;  %v15931_v51 = vsub.f32 %v521_v44, %v7244_v17  ;;  %v21040_v53 = vld [vmem:[#allocation85_spill] sm:$0xff]  ;;  %v21041_v24 = vld [vmem:[#allocation136_spill] sm:$0xff]  ;;  %v21044_v44 = vand.u32 4294901760, %v21033_v19  ;;  %v15954_v18 = vpack.c.bf16 %v7250_v26, %v7246_v11 }
 0x2ba   : > { %21029 = vst [vmem:[#allocation153_spill] sm:$0xff] %v15912_v13  ;;  %21031 = vst [vmem:[#allocation10_spill] sm:$0xff] %v15918_v8  ;;  %v21035_v13 = vld [vmem:[#allocation82_spill] sm:$0xff]  ;;  %10596 = vmatprep.subr.bf16.mxu1 %v20848_v58  ;;  %v21042_v56 = vld [vmem:[#allocation79_spill] sm:$0xff]  ;;  %v15944_v58 = vsub.f32 %v530_v15, %v7246_v11  ;;  %v15956_v8 = vsub.f32 %v538_v45, %v7250_v26  ;;  %v15958_v37 = vpack.c.bf16 %v5113_v6, %v5109_v38 }
 0x2bb   : > { %21032 = vst [vmem:[#allocation7_spill] sm:$0xff] %v15920_v61  ;;  %21036 = vst [vmem:[#allocation12_spill] sm:$0xff] %v15931_v51  ;;  %v7248_v61 = vand.u32 4294901760, %v529_v41  ;;  %10022 = vmatpush1.bf16.msra.mxu0 %v20851_v5  ;;  %v15949_v48 = vsub.f32 %v21033_v19, %v21044_v44  ;;  %v21045_v47 = vld [vmem:[#allocation132_spill] sm:$0xff]  ;;  %v21046_v5 = vld [vmem:[#allocation133_spill] sm:$0xff]  ;;  %v21050_v15 = vand.u32 4294901760, %v21035_v13  ;;  %v15967_v17 = vsub.f32 %v527_v20, %v5109_v38 }
 0x2bc   : > { %21037 = vst [vmem:[#allocation19_spill] sm:$0xff] %v15933_v42  ;;  %21038 = vst [vmem:[#allocation25_spill] sm:$0xff] %v15935_v2  ;;  %10600 = vmatprep.subr.bf16.mxu0 %v21042_v56  ;;  %v21051_v44 = vld [vmem:[#allocation87_spill] sm:$0xff]  ;;  %v15969_v25 = vsub.f32 %v535_v23, %v5113_v6  ;;  %v21055_v11 = vld [vmem:[#allocation88_spill] sm:$0xff]  ;;  %v21056_v45 = vand.u32 4294901760, %v15925_v50  ;;  %v21060_v20 = vand.u32 4294901760, %v21041_v24 }
 0x2bd   : > { %21039 = vst [vmem:[#allocation27_spill] sm:$0xff] %v15938_v36  ;;  %21043 = vst [vmem:[#allocation42_spill] sm:$0xff] %v15944_v58  ;;  %10598 = vmatpush1.bf16.msra.mxu1 %v20858_v27  ;;  %v15963_v33 = vsub.f32 %v21035_v13, %v21050_v15  ;;  %v15971_v27 = vsub.f32 %v529_v41, %v7248_v61  ;;  %v21058_v56 = vld [vmem:[#allocation201_spill] sm:$0xff]  ;;  %v21059_v15 = vand.u32 4294901760, %v21040_v53  ;;  %v21068_v19 = vld [vmem:[#allocation163_spill] sm:$0xff] }
 0x2be   : > { %21047 = vst [vmem:[#allocation48_spill] sm:$0xff] %v15954_v18  ;;  %21048 = vst [vmem:[#allocation53_spill] sm:$0xff] %v15956_v8  ;;  %2842 = vmatmul.mubr.f32.vlgmr.msra.gmra.mrb[0].mxu0 %v20944_v62  ;;  %11176 = vmatprep.subr.bf16.mxu1 %v21051_v44  ;;  %v15976_v26 = vpack.c.bf16 %v21056_v45, %v7248_v61  ;;  %v15987_v23 = vsub.f32 %v21041_v24, %v21060_v20  ;;  %v21061_v41 = vld [vmem:[#allocation161_spill] sm:$0xff]  ;;  %v21062_v61 = vand.u32 4294901760, %v21045_v47  ;;  %v21065_v20 = vld [vmem:[#allocation139_spill] sm:$0xff] }
 0x2bf   : > { %21049 = vst [vmem:[#allocation58_spill] sm:$0xff] %v15958_v37  ;;  %21052 = vst [vmem:[#allocation55_spill] sm:$0xff] %v15967_v17  ;;  %10602 = vmatpush1.bf16.msra.mxu0 %v21055_v11  ;;  %5120 = vmatprep.mubr.f32.mxu0 %v21058_v56  ;;  %v15982_v13 = vsub.f32 %v21040_v53, %v21059_v15  ;;  %v21063_v45 = vand.u32 4294901760, %v21046_v5  ;;  %v21064_v11 = vld [vmem:[#allocation160_spill] sm:$0xff]  ;;  %v21067_v24 = vld [vmem:[#allocation157_spill] sm:$0xff] }
 0x2c0   : > { %21053 = vst [vmem:[#allocation202_spill] sm:$0xff] %v15969_v25  ;;  %21054 = vst [vmem:[#allocation203_spill] sm:$0xff] %v15971_v27  ;;  %4981 = vmatmul.mubr.f32.vlgmr.msra.gmra.mrb[0].mxu1 %v20944_v62  ;;  %10604 = vmatprep.subr.bf16.mxu0 %v21061_v41  ;;  %v15995_v6 = vsub.f32 %v21045_v47, %v21062_v61  ;;  %v5148_v62 = vand.u32 4294901760, %v15963_v33  ;;  %v21066_v41 = vld [vmem:[#allocation156_spill] sm:$0xff]  ;;  %v21069_v47 = vld [vmem:[#allocation165_spill] sm:$0xff] }
 0x2c1   : > { %21057 = vst [vmem:[#allocation204_spill] sm:$0xff] %v15976_v26  ;;  %v16000_v15 = vsub.f32 %v21046_v5, %v21063_v45  ;;  %11178 = vmatpush1.bf16.msra.mxu1 %v21065_v20  ;;  %7259 = vmatprep.mubr.f32.mxu1 %v21058_v56  ;;  %v21070_v27 = vld [vmem:[#allocation166_spill] sm:$0xff]  ;;  %v21071_v45 = vld [vmem:[#allocation171_spill] sm:$0xff]  ;;  %v21072_v17 = vld [vmem:[#allocation168_spill] sm:$0xff]  ;;  %v7275_v25 = vand.u32 4294901760, %v15982_v13  ;;  %v7287_v5 = vand.u32 4294901760, %v15987_v23 }
 0x2c2   : > { %11180 = vmatprep.subr.bf16.mxu1 %v21069_v47  ;;  %v21073_v8 = vld [vmem:[#allocation169_spill] sm:$0xff]  ;;  %v21074_v58 = vld [vmem:[#allocation172_spill] sm:$0xff]  ;;  %v21075_v33 = vld [vmem:[#allocation175_spill] sm:$0xff]  ;;  %v5142_v44 = vand.u32 4294901760, %v15995_v6  ;;  %v21080_v20 = vand.u32 4294901760, %v21064_v11  ;;  %v21082_v53 = vand.u32 4294901760, %v21066_v41 }
 0x2c3   : > { %10606 = vmatpush1.bf16.msra.mxu0 %v21074_v58  ;;  %v21076_v36 = vld [vmem:[#allocation177_spill] sm:$0xff]  ;;  %v21077_v2 = vld [vmem:[#allocation178_spill] sm:$0xff]  ;;  %v21078_v51 = vld [vmem:[#allocation184_spill] sm:$0xff]  ;;  %v5154_v38 = vand.u32 4294901760, %v16000_v15  ;;  %v21083_v56 = vand.u32 4294901760, %v21067_v24  ;;  %v21084_v23 = vand.u32 4294901760, %v21068_v19 }
 0x2c4   : > { %v21079_v26 = vld [vmem:[#allocation183_spill] sm:$0xff]  ;;  %v7280_v58 = vsub.f32 %v21064_v11, %v21080_v20  ;;  %v21081_v47 = vld [vmem:[#allocation173_spill] sm:$0xff]  ;;  %v7292_v61 = vsub.f32 %v21066_v41, %v21082_v53  ;;  %v21086_v20 = vand.u32 4294901760, %v21070_v27  ;;  %v21087_v15 = vand.u32 4294901760, %v21071_v45  ;;  %v21098_v42 = vld [vmem:[#allocation192_spill] sm:$0xff] }
 0x2c5   : > { %10608 = vmatprep.subr.bf16.mxu0 %v21079_v26  ;;  %11182 = vmatpush1.bf16.msra.mxu1 %v21081_v47  ;;  %v5159_v13 = vsub.f32 %v21067_v24, %v21083_v56  ;;  %v5171_v6 = vsub.f32 %v21068_v19, %v21084_v23  ;;  %v21085_v26 = vld [vmem:[#allocation180_spill] sm:$0xff]  ;;  %v21088_v53 = vand.u32 4294901760, %v21072_v17  ;;  %v21089_v56 = vand.u32 4294901760, %v21073_v8  ;;  %v21090_v37 = vld [vmem:[#allocation187_spill] sm:$0xff]  ;;  %v21096_v19 = vld [vmem:[#allocation185_spill] sm:$0xff] }
 0x2c6   : > { %11184 = vmatprep.subr.bf16.mxu1 %v21085_v26  ;;  %v7298_v47 = vsub.f32 %v21070_v27, %v21086_v20  ;;  %v7310_v11 = vsub.f32 %v21071_v45, %v21087_v15  ;;  %v21091_v23 = vand.u32 4294901760, %v21075_v33  ;;  %v21092_v20 = vand.u32 4294901760, %v21076_v36  ;;  %v21099_v7 = vld [vmem:[#allocation190_spill] sm:$0xff] }
 0x2c7   : > { %v5165_v41 = vsub.f32 %v21072_v17, %v21088_v53  ;;  %v5177_v24 = vsub.f32 %v21073_v8, %v21089_v56  ;;  %10610 = vmatpush1.bf16.msra.mxu0 %v21090_v37  ;;  %v21093_v15 = vand.u32 4294901760, %v21077_v2  ;;  %v21094_v53 = vand.u32 4294901760, %v21078_v51  ;;  %v21095_v37 = vld [vmem:[#allocation181_spill] sm:$0xff] }
 0x2c8   : > { %v7304_v26 = vsub.f32 %v21075_v33, %v21091_v23  ;;  %v7316_v27 = vsub.f32 %v21076_v36, %v21092_v20  ;;  %10612 = vmatprep.subr.bf16.mxu0 %v15296_v34  ;;  %v7281_v56 = vand.u32 4294901760, %v7280_v58  ;;  %v21097_v23 = vld [vmem:[#allocation189_spill] sm:$0xff]  ;;  %v7293_v20 = vand.u32 4294901760, %v7292_v61 }
 0x2c9   : > { %v5183_v45 = vsub.f32 %v21077_v2, %v21093_v15  ;;  %v5195_v17 = vsub.f32 %v21078_v51, %v21094_v53  ;;  %v19367_v33 = vand.u32 4294901760, %v21097_v23  ;;  %11186 = vmatpush1.bf16.msra.mxu1 %v21098_v42  ;;  %v5160_v36 = vand.u32 4294901760, %v5159_v13  ;;  %v21100_v2 = vld [vmem:[#allocation11_spill] sm:$0xff] }
 0x2ca   : > { %v5172_v3 = vand.u32 4294901760, %v5171_v6  ;;  %v19372_v15 = vand.u32 4294901760, %v21099_v7  ;;  %11188 = vmatprep.subr.bf16.mxu1 %v21100_v2  ;;  %v7299_v21 = vand.u32 4294901760, %v7298_v47  ;;  %v7311_v53 = vand.u32 4294901760, %v7310_v11 }
 0x2cb   : > { %v5166_v51 = vand.u32 4294901760, %v5165_v41  ;;  %v5178_v34 = vand.u32 4294901760, %v5177_v24  ;;  %10614 = vmatpush1.bf16.msra.mxu0 %v15326_v31  ;;  %v7305_v58 = vand.u32 4294901760, %v7304_v26  ;;  %v7317_v8 = vand.u32 4294901760, %v7316_v27  ;;  %v21103_v27 = vld [vmem:[#allocation193_spill] sm:$0xff] }
 0x2cc   : > { %v5184_v18 = vand.u32 4294901760, %v5183_v45  ;;  %v5196_v1 = vand.u32 4294901760, %v5195_v17  ;;  %10616 = vmatprep.subr.bf16.mxu0 %v15354_v9  ;;  %v21101_v61 = vand.u32 4294901760, %v21095_v37  ;;  %v21102_v6 = vand.u32 4294901760, %v21096_v19 }
 0x2cd   : > { %v16085_v24 = vsub.f32 %v21097_v23, %v19367_v33  ;;  %11190 = vmatpush1.bf16.msra.mxu1 %v15343_v16  ;;  %v21104_v17 = vand.u32 4294901760, %v15925_v50  ;;  %v21106_v41 = vand.u32 4294901760, %v15949_v48  ;;  %v16105_v11 = vpack.c.bf16 %v7287_v5, %v7275_v25 }
 0x2ce   : > { %v16075_v13 = vsub.f32 %v21095_v37, %v21101_v61  ;;  %v16080_v47 = vsub.f32 %v21096_v19, %v21102_v6  ;;  %v16101_v61 = vsub.f32 %v21099_v7, %v19372_v15  ;;  %v21107_v6 = vld [vmem:[#allocation2_spill] sm:$0xff]  ;;  %11192 = vmatprep.subr.bf16.mxu1 %v15360_v22  ;;  %v16107_v16 = vpack.c.bf16 %v5154_v38, %v5142_v44  ;;  %v21111_v38 = vld [vmem:[#allocation17_spill] sm:$0xff]  ;;  %v21121_v22 = vld [vmem:[#allocation59_spill] sm:$0xff] }
 0x2cf   : > { %v16092_v26 = vsub.f32 %v15925_v50, %v21104_v17  ;;  %v16096_v45 = vpack.c.bf16 %v5148_v62, %v21106_v41  ;;  %v19373_v33 = vand.u32 4294901760, %v21107_v6  ;;  %v16109_v9 = vpack.c.bf16 %v7293_v20, %v7281_v56  ;;  %10618 = vmatpush1.bf16.msra.mxu0 %v15380_v35  ;;  %v21112_v20 = vld [vmem:[#allocation21_spill] sm:$0xff]  ;;  %v21120_v35 = vld [vmem:[#allocation56_spill] sm:$0xff]  ;;  %v21242_v7 = vld [vmem:[#allocation115_spill] sm:$0xff] }
 0x2d0   : > { %v16111_v50 = vpack.c.bf16 %v5172_v3, %v5160_v36  ;;  %v16114_v62 = vpack.c.bf16 %v7311_v53, %v7299_v21  ;;  %v16116_v48 = vpack.c.bf16 %v5178_v34, %v5166_v51  ;;  %v16118_v17 = vpack.c.bf16 %v7317_v8, %v7305_v58  ;;  %10620 = vmatprep.subr.bf16.mxu0 %v15407_v39  ;;  %v21109_v21 = vld [vmem:[#allocation8_spill] sm:$0xff]  ;;  %v21110_v51 = vld [vmem:[#allocation15_spill] sm:$0xff]  ;;  %v21114_v15 = vld [vmem:[#allocation29_spill] sm:$0xff] }
 0x2d1   : > { %21105 = vst [vmem:[#allocation201_spill] sm:$0xff] %v16092_v26  ;;  %v16120_v41 = vpack.c.bf16 %v5196_v1, %v5184_v18  ;;  %v21108_v3 = vand.u32 4294901760, %v21103_v27  ;;  %11194 = vmatpush1.bf16.msra.mxu1 %v15393_v0  ;;  %v16136_v1 = vsub.f32 %v21107_v6, %v19373_v33  ;;  %v21113_v58 = vld [vmem:[#allocation24_spill] sm:$0xff]  ;;  %v21116_v33 = vld [vmem:[#allocation35_spill] sm:$0xff]  ;;  %v21117_v0 = vld [vmem:[#allocation45_spill] sm:$0xff]  ;;  %v21122_v5 = vand.u32 4294901760, %v21109_v21 }
 0x2d2   : > { %11196 = vmatprep.subr.bf16.mxu1 %v15420_v12  ;;  %v21115_v34 = vld [vmem:[#allocation32_spill] sm:$0xff]  ;;  %v21118_v39 = vld [vmem:[#allocation50_spill] sm:$0xff]  ;;  %v21123_v18 = vand.u32 4294901760, %v21110_v51  ;;  %v21126_v53 = vand.u32 4294901760, %v21112_v20  ;;  %v21128_v31 = vand.u32 4294901760, %v21114_v15 }
 0x2d3   : > { %v16129_v36 = vsub.f32 %v21103_v27, %v21108_v3  ;;  %10622 = vmatpush1.bf16.msra.mxu0 %v15427_v59  ;;  %v21119_v12 = vld [vmem:[#allocation54_spill] sm:$0xff]  ;;  %v7341_v25 = vand.u32 4294901760, %v16136_v1  ;;  %v5207_v8 = vsub.f32 %v21109_v21, %v21122_v5  ;;  %v21125_v3 = vand.u32 4294901760, %v21111_v38  ;;  %v21241_v21 = vld [vmem:[#allocation111_spill] sm:$0xff] }
 0x2d4   : > { %10624 = vmatprep.subr.bf16.mxu0 %v15459_v30  ;;  %v5219_v30 = vsub.f32 %v21110_v51, %v21123_v18  ;;  %v21124_v59 = vld [vmem:[#allocation66_spill] sm:$0xff]  ;;  %v7358_v1 = vsub.f32 %v21112_v20, %v21126_v53  ;;  %v5225_v18 = vsub.f32 %v21114_v15, %v21128_v31  ;;  %v21131_v53 = vand.u32 4294901760, %v21117_v0  ;;  %v21137_v15 = vld [vmem:[#allocation71_spill] sm:$0xff]  ;;  %v21224_v51 = vld [vmem:[#allocation97_spill] sm:$0xff] }
 0x2d5   : > { %v7329_v56 = vand.u32 4294901760, %v16129_v36  ;;  %11198 = vmatpush1.bf16.msra.mxu1 %v15443_v57  ;;  %v7346_v44 = vsub.f32 %v21111_v38, %v21125_v3  ;;  %v21127_v57 = vand.u32 4294901760, %v21113_v58  ;;  %v21129_v36 = vand.u32 4294901760, %v21115_v34  ;;  %v21243_v19 = vld [vmem:[#allocation58_spill] sm:$0xff] }
 0x2d6   : > { %11200 = vmatprep.subr.bf16.mxu1 %v15466_v14  ;;  %v21130_v3 = vand.u32 4294901760, %v21116_v33  ;;  %v5231_v42 = vsub.f32 %v21117_v0, %v21131_v53  ;;  %v21133_v31 = vand.u32 4294901760, %v21119_v12  ;;  %v5208_v0 = vand.u32 4294901760, %v5207_v8 }
 0x2d7   : > { %v5213_v5 = vsub.f32 %v21113_v58, %v21127_v57  ;;  %10626 = vmatpush1.bf16.msra.mxu0 %v15486_v46  ;;  %v7352_v14 = vsub.f32 %v21115_v34, %v21129_v36  ;;  %v21132_v57 = vand.u32 4294901760, %v21118_v39  ;;  %v21134_v36 = vand.u32 4294901760, %v21120_v35 }
 0x2d8   : > { %v7364_v2 = vsub.f32 %v21116_v33, %v21130_v3  ;;  %10628 = vmatprep.subr.bf16.mxu0 %v15513_v29  ;;  %v7370_v46 = vsub.f32 %v21119_v12, %v21133_v31  ;;  %v21135_v3 = vand.u32 4294901760, %v21121_v22  ;;  %v21136_v29 = vand.u32 4294901760, %v21124_v59 }
 0x2d9   : > { %v5243_v58 = vsub.f32 %v21118_v39, %v21132_v57  ;;  %v7382_v34 = vsub.f32 %v21120_v35, %v21134_v36  ;;  %11202 = vmatpush1.bf16.msra.mxu1 %v15508_v4  ;;  %v5220_v57 = vand.u32 4294901760, %v5219_v30  ;;  %v7347_v12 = vand.u32 4294901760, %v7346_v44 }
 0x2da   : > { %v5237_v33 = vsub.f32 %v21121_v22, %v21135_v3  ;;  %v5249_v39 = vsub.f32 %v21124_v59, %v21136_v29  ;;  %11204 = vmatprep.subr.bf16.mxu1 %v15519_v10  ;;  %v7359_v36 = vand.u32 4294901760, %v7358_v1  ;;  %v5214_v35 = vand.u32 4294901760, %v5213_v5  ;;  %v21163_v10 = vld [vmem:[#allocation131_spill] sm:$0xff]  ;;  %v21186_v59 = vld [vmem:[#allocation162_spill] sm:$0xff] }
 0x2db   : > { %v5226_v20 = vand.u32 4294901760, %v5225_v18  ;;  %10630 = vmatpush1.bf16.msra.mxu0 %v15539_v52  ;;  %v7353_v3 = vand.u32 4294901760, %v7352_v14  ;;  %v7365_v53 = vand.u32 4294901760, %v7364_v2  ;;  %v5232_v22 = vand.u32 4294901760, %v5231_v42  ;;  %v21140_v42 = vld [vmem:[#allocation80_spill] sm:$0xff] }
 0x2dc   : > { %v5244_v4 = vand.u32 4294901760, %v5243_v58  ;;  %10632 = vmatprep.subr.bf16.mxu0 %v15566_v60  ;;  %v7371_v30 = vand.u32 4294901760, %v7370_v46  ;;  %v7383_v8 = vand.u32 4294901760, %v7382_v34  ;;  %v5238_v38 = vand.u32 4294901760, %v5237_v33  ;;  %v21141_v58 = vld [vmem:[#allocation86_spill] sm:$0xff]  ;;  %v21147_v60 = vld [vmem:[#allocation92_spill] sm:$0xff] }
 0x2dd   : > { %v21138_v29 = vand.u32 4294901760, %v15402_v54  ;;  %11206 = vmatpush1.bf16.msra.mxu1 %v15546_v28  ;;  %v5250_v44 = vand.u32 4294901760, %v5249_v39  ;;  %v21139_v1 = vand.u32 4294901760, %v21137_v15  ;;  %v21142_v46 = vand.u32 4294901760, %v16075_v13 }
 0x2de   : > { %11208 = vmatprep.subr.bf16.mxu1 %v15572_v55  ;;  %v21143_v33 = vand.u32 4294901760, %v16080_v47  ;;  %v21144_v18 = vand.u32 4294901760, %v16085_v24  ;;  %v21145_v39 = vand.u32 4294901760, %v16101_v61  ;;  %v19420_v2 = vand.u32 4294901760, %v21147_v60 }
 0x2df   : > { %v16212_v31 = vsub.f32 %v15402_v54, %v21138_v29  ;;  %v16218_v14 = vsub.f32 %v21137_v15, %v21139_v1  ;;  %v21146_v1 = vld [vmem:[#allocation90_spill] sm:$0xff]  ;;  %10634 = vmatpush1.bf16.msra.mxu0 %v15592_v43  ;;  %v16238_v5 = vpack.c.bf16 %v7341_v25, %v7329_v56  ;;  %v16240_v55 = vpack.c.bf16 %v5220_v57, %v5208_v0  ;;  %v21158_v0 = vld [vmem:[#allocation116_spill] sm:$0xff]  ;;  %v21167_v15 = vld [vmem:[#allocation143_spill] sm:$0xff] }
 0x2e0   : > { %v16227_v34 = vpack.c.bf16 %v21143_v33, %v21142_v46  ;;  %v16233_v29 = vpack.c.bf16 %v21145_v39, %v21144_v18  ;;  %v19417_v28 = vand.u32 4294901760, %v21146_v1  ;;  %v16242_v13 = vpack.c.bf16 %v7359_v36, %v7347_v12  ;;  %v21148_v46 = vld [vmem:[#allocation36_spill] sm:$0xff]  ;;  %v21149_v39 = vld [vmem:[#allocation30_spill] sm:$0xff]  ;;  %v21168_v54 = vld [vmem:[#allocation137_spill] sm:$0xff] }
 0x2e1   : > { %v16244_v47 = vpack.c.bf16 %v5226_v20, %v5214_v35  ;;  %10636 = vmatprep.subr.bf16.mxu0 %v21148_v46  ;;  %v16247_v24 = vpack.c.bf16 %v7365_v53, %v7353_v3  ;;  %v16249_v61 = vpack.c.bf16 %v5244_v4, %v5232_v22  ;;  %v16251_v33 = vpack.c.bf16 %v7383_v8, %v7371_v30  ;;  %v21152_v4 = vld [vmem:[#allocation106_spill] sm:$0xff]  ;;  %v21153_v53 = vld [vmem:[#allocation95_spill] sm:$0xff]  ;;  %v21155_v30 = vld [vmem:[#allocation112_spill] sm:$0xff] }
 0x2e2   : > { %11210 = vmatpush1.bf16.msra.mxu1 %v21149_v39  ;;  %v16255_v25 = vpack.c.bf16 %v5250_v44, %v5238_v38  ;;  %v21150_v12 = vand.u32 4294901760, %v21140_v42  ;;  %v21151_v56 = vand.u32 4294901760, %v21141_v58  ;;  %v16272_v20 = vsub.f32 %v21146_v1, %v19417_v28  ;;  %v21154_v36 = vld [vmem:[#allocation102_spill] sm:$0xff]  ;;  %v21160_v39 = vld [vmem:[#allocation127_spill] sm:$0xff]  ;;  %v21165_v1 = vld [vmem:[#allocation124_spill] sm:$0xff] }
 0x2e3   : > { %11212 = vmatprep.subr.bf16.mxu1 %v21152_v4  ;;  %v16277_v38 = vsub.f32 %v21147_v60, %v19420_v2  ;;  %10638 = vmatpush1.bf16.msra.mxu0 %v21155_v30  ;;  %v21156_v8 = vld [vmem:[#allocation110_spill] sm:$0xff]  ;;  %v21162_v2 = vld [vmem:[#allocation128_spill] sm:$0xff]  ;;  %v21169_v57 = vand.u32 4294901760, %v21153_v53 }
 0x2e4   : > { %v16261_v35 = vsub.f32 %v21140_v42, %v21150_v12  ;;  %v16266_v22 = vsub.f32 %v21141_v58, %v21151_v56  ;;  %v21157_v12 = vld [vmem:[#allocation107_spill] sm:$0xff]  ;;  %v21159_v4 = vld [vmem:[#allocation122_spill] sm:$0xff]  ;;  %10640 = vmatprep.subr.bf16.mxu0 %v21160_v39  ;;  %v21166_v30 = vld [vmem:[#allocation140_spill] sm:$0xff]  ;;  %v7395_v43 = vand.u32 4294901760, %v16272_v20 }
 0x2e5   : > { %v21161_v46 = vld [vmem:[#allocation126_spill] sm:$0xff]  ;;  %v7407_v52 = vand.u32 4294901760, %v16277_v38  ;;  %v5261_v3 = vsub.f32 %v21153_v53, %v21169_v57  ;;  %v21171_v39 = vld [vmem:[#allocation151_spill] sm:$0xff]  ;;  %v21173_v18 = vand.u32 4294901760, %v21157_v12  ;;  %v21174_v38 = vand.u32 4294901760, %v21158_v0 }
 0x2e6   : > { %v21164_v60 = vld [vmem:[#allocation138_spill] sm:$0xff]  ;;  %11214 = vmatpush1.bf16.msra.mxu1 %v21165_v1  ;;  %v5256_v44 = vand.u32 4294901760, %v16261_v35  ;;  %v5268_v56 = vand.u32 4294901760, %v16266_v22  ;;  %v21170_v1 = vand.u32 4294901760, %v21154_v36  ;;  %v21172_v22 = vand.u32 4294901760, %v21156_v8  ;;  %v21176_v58 = vld [vmem:[#allocation103_spill] sm:$0xff] }
 0x2e7   : > { %11216 = vmatprep.subr.bf16.mxu1 %v21168_v54  ;;  %10642 = vmatpush1.bf16.msra.mxu0 %v21171_v39  ;;  %v7412_v20 = vsub.f32 %v21157_v12, %v21173_v18  ;;  %v5279_v54 = vsub.f32 %v21158_v0, %v21174_v38  ;;  %v21175_v57 = vand.u32 4294901760, %v21159_v4  ;;  %v21179_v18 = vand.u32 4294901760, %v21163_v10 }
 0x2e8   : > { %v5273_v35 = vsub.f32 %v21154_v36, %v21170_v1  ;;  %v7400_v28 = vsub.f32 %v21156_v8, %v21172_v22  ;;  %10644 = vmatprep.subr.bf16.mxu0 %v21176_v58  ;;  %v21177_v1 = vand.u32 4294901760, %v21161_v46  ;;  %v21178_v22 = vand.u32 4294901760, %v21162_v2  ;;  %v21181_v36 = vld [vmem:[#allocation100_spill] sm:$0xff] }
 0x2e9   : > { %v5291_v53 = vsub.f32 %v21159_v4, %v21175_v57  ;;  %v5285_v12 = vsub.f32 %v21163_v10, %v21179_v18  ;;  %v21180_v38 = vand.u32 4294901760, %v21164_v60  ;;  %v21182_v57 = vand.u32 4294901760, %v21166_v30  ;;  %v21184_v4 = vld [vmem:[#allocation152_spill] sm:$0xff] }
 0x2ea   : > { %v7418_v39 = vsub.f32 %v21161_v46, %v21177_v1  ;;  %v7430_v8 = vsub.f32 %v21162_v2, %v21178_v22  ;;  %11218 = vmatpush1.bf16.msra.mxu1 %v21181_v36  ;;  %v21183_v1 = vand.u32 4294901760, %v21167_v15  ;;  %v21185_v2 = vld [vmem:[#allocation158_spill] sm:$0xff]  ;;  %v5262_v18 = vand.u32 4294901760, %v5261_v3 }
 0x2eb   : > { %v5297_v0 = vsub.f32 %v21164_v60, %v21180_v38  ;;  %v7424_v58 = vsub.f32 %v21166_v30, %v21182_v57  ;;  %11220 = vmatprep.subr.bf16.mxu1 %v15742_v49  ;;  %v5274_v10 = vand.u32 4294901760, %v5273_v35  ;;  %v21187_v60 = vld [vmem:[#allocation164_spill] sm:$0xff]  ;;  %10646 = vmatpush1.bf16.msra.mxu0 %v15749_v63  ;;  %v7401_v6 = vand.u32 4294901760, %v7400_v28 }
 0x2ec   : > { %v7436_v46 = vsub.f32 %v21167_v15, %v21183_v1  ;;  %v7413_v57 = vand.u32 4294901760, %v7412_v20  ;;  %v5280_v30 = vand.u32 4294901760, %v5279_v54  ;;  %v5292_v27 = vand.u32 4294901760, %v5291_v53  ;;  %10648 = vmatprep.subr.bf16.mxu0 %v15775_v40  ;;  %v21190_v54 = vld [vmem:[#allocation16_spill] sm:$0xff] }
 0x2ed   : > { %v7419_v1 = vand.u32 4294901760, %v7418_v39  ;;  %v7431_v22 = vand.u32 4294901760, %v7430_v8  ;;  %v5286_v15 = vand.u32 4294901760, %v5285_v12  ;;  %v5298_v42 = vand.u32 4294901760, %v5297_v0  ;;  %v21194_v12 = vld [vmem:[#allocation174_spill] sm:$0xff] }
 0x2ee   : > { %11222 = vmatpush1.bf16.msra.mxu1 %v15769_v32  ;;  %v7425_v3 = vand.u32 4294901760, %v7424_v58  ;;  %v7437_v35 = vand.u32 4294901760, %v7436_v46  ;;  %v21188_v38 = vand.u32 4294901760, %v21184_v4  ;;  %v21189_v63 = vand.u32 4294901760, %v21185_v2  ;;  %v21193_v58 = vld [vmem:[#allocation167_spill] sm:$0xff]  ;;  %v21195_v32 = vld [vmem:[#allocation52_spill] sm:$0xff] }
 0x2ef   : > { %11224 = vmatprep.subr.bf16.mxu1 %v21190_v54  ;;  %v21191_v53 = vand.u32 4294901760, %v21186_v59  ;;  %v21192_v0 = vand.u32 4294901760, %v21187_v60  ;;  %10650 = vmatpush1.bf16.msra.mxu0 %v21195_v32  ;;  %v16368_v54 = vpack.c.bf16 %v5268_v56, %v5256_v44  ;;  %v16370_v49 = vpack.c.bf16 %v7407_v52, %v7395_v43  ;;  %v21204_v56 = vld [vmem:[#allocation72_spill] sm:$0xff] }
 0x2f0   : > { %v5303_v36 = vsub.f32 %v21184_v4, %v21188_v38  ;;  %v5315_v28 = vsub.f32 %v21185_v2, %v21189_v63  ;;  %v21196_v38 = vand.u32 4294901760, %v16212_v31  ;;  %v21197_v63 = vand.u32 4294901760, %v16218_v14  ;;  %v21199_v2 = vld [vmem:[#allocation60_spill] sm:$0xff]  ;;  %v21201_v31 = vld [vmem:[#allocation33_spill] sm:$0xff]  ;;  %v21223_v4 = vld [vmem:[#allocation43_spill] sm:$0xff] }
 0x2f1   : > { %v7442_v39 = vsub.f32 %v21186_v59, %v21191_v53  ;;  %v7454_v8 = vsub.f32 %v21187_v60, %v21192_v0  ;;  %v21198_v53 = vld [vmem:[#allocation182_spill] sm:$0xff]  ;;  %10652 = vmatprep.subr.bf16.mxu0 %v21199_v2  ;;  %v16374_v0 = vpack.c.bf16 %v5274_v10, %v5262_v18  ;;  %v16376_v46 = vpack.c.bf16 %v7413_v57, %v7401_v6  ;;  %v21209_v18 = vld [vmem:[#allocation188_spill] sm:$0xff]  ;;  %v21216_v2 = vld [vmem:[#allocation121_spill] sm:$0xff] }
 0x2f2   : > { %v16366_v40 = vpack.c.bf16 %v21197_v63, %v21196_v38  ;;  %v19457_v59 = vand.u32 4294901760, %v21198_v53  ;;  %v16378_v20 = vpack.c.bf16 %v5292_v27, %v5280_v30  ;;  %v16380_v32 = vpack.c.bf16 %v7431_v22, %v7419_v1  ;;  %11226 = vmatpush1.bf16.msra.mxu1 %v21201_v31  ;;  %v21207_v22 = vld [vmem:[#allocation77_spill] sm:$0xff]  ;;  %v21210_v1 = vld [vmem:[#allocation191_spill] sm:$0xff] }
 0x2f3   : > { %v16383_v14 = vpack.c.bf16 %v5298_v42, %v5286_v15  ;;  %v16385_v44 = vpack.c.bf16 %v7437_v35, %v7425_v3  ;;  %v5304_v52 = vand.u32 4294901760, %v5303_v36  ;;  %v5316_v43 = vand.u32 4294901760, %v5315_v28  ;;  %11228 = vmatprep.subr.bf16.mxu1 %v21204_v56  ;;  %10654 = vmatpush1.bf16.msra.mxu0 %v21207_v22  ;;  %v21208_v42 = vld [vmem:[#allocation179_spill] sm:$0xff]  ;;  %v21211_v35 = vld [vmem:[#allocation130_spill] sm:$0xff]  ;;  %v21215_v22 = vld [vmem:[#allocation13_spill] sm:$0xff] }
 0x2f4   : > { %21200 = vst [vmem:[#allocation205_spill] sm:$0xff] %v16380_v32  ;;  %v7443_v38 = vand.u32 4294901760, %v7442_v39  ;;  %v7455_v63 = vand.u32 4294901760, %v7454_v8  ;;  %v21205_v10 = vand.u32 4294901760, %v21193_v58  ;;  %v21206_v27 = vand.u32 4294901760, %v21194_v12  ;;  %10656 = vmatprep.subr.bf16.mxu0 %v21211_v35  ;;  %v21212_v28 = vld [vmem:[#allocation3_spill] sm:$0xff] }
 0x2f5   : > { %21202 = vst [vmem:[#allocation206_spill] sm:$0xff] %v16383_v14  ;;  %21203 = vst [vmem:[#allocation207_spill] sm:$0xff] %v16385_v44  ;;  %v16398_v15 = vsub.f32 %v21198_v53, %v19457_v59  ;;  %v21213_v8 = vld [vmem:[#allocation5_spill] sm:$0xff]  ;;  %v16409_v59 = vpack.c.bf16 %v5316_v43, %v5304_v52  ;;  %v21218_v53 = vld [vmem:[#allocation34_spill] sm:$0xff]  ;;  %v21225_v52 = vand.u32 4294901760, %v21208_v42  ;;  %v21226_v57 = vand.u32 4294901760, %v21209_v18 }
 0x2f6   : > { %v5309_v6 = vsub.f32 %v21193_v58, %v21205_v10  ;;  %v5321_v30 = vsub.f32 %v21194_v12, %v21206_v27  ;;  %v21214_v27 = vld [vmem:[#allocation14_spill] sm:$0xff]  ;;  %11230 = vmatpush1.bf16.msra.mxu1 %v21216_v2  ;;  %v21219_v12 = vld [vmem:[#allocation39_spill] sm:$0xff]  ;;  %v21220_v58 = vld [vmem:[#allocation37_spill] sm:$0xff]  ;;  %v16415_v35 = vpack.c.bf16 %v7455_v63, %v7443_v38  ;;  %v21227_v36 = vand.u32 4294901760, %v21210_v1 }
 0x2f7   : > { %21217 = vst [vmem:[#allocation208_spill] sm:$0xff] %v16409_v59  ;;  %v21221_v60 = vld [vmem:[#allocation91_spill] sm:$0xff]  ;;  %10658 = vmatpush1.bf16.msra.mxu0 %v21224_v51  ;;  %v7449_v31 = vand.u32 4294901760, %v16398_v15  ;;  %v7460_v43 = vsub.f32 %v21208_v42, %v21225_v52  ;;  %v5327_v3 = vsub.f32 %v21209_v18, %v21226_v57  ;;  %v21230_v15 = vand.u32 4294901760, %v21213_v8  ;;  %v21233_v2 = vld [vmem:[#allocation10_spill] sm:$0xff]  ;;  %v21237_v42 = vld [vmem:[#allocation108_spill] sm:$0xff] }
 0x2f8   : > { %11232 = vmatprep.subr.bf16.mxu1 %v21221_v60  ;;  %21222 = vst [vmem:[#allocation209_spill] sm:$0xff] %v16415_v35  ;;  %v5310_v39 = vand.u32 4294901760, %v5309_v6  ;;  %v5322_v10 = vand.u32 4294901760, %v5321_v30  ;;  %v5339_v38 = vsub.f32 %v21210_v1, %v21227_v36  ;;  %v21228_v63 = vld [vmem:[#allocation19_spill] sm:$0xff]  ;;  %v21229_v6 = vand.u32 4294901760, %v21212_v28  ;;  %v21238_v1 = vld [vmem:[#allocation48_spill] sm:$0xff] }
 0x2f9   : > { %10660 = vmatprep.subr.bf16.mxu0 %v21228_v63  ;;  %v7478_v56 = vsub.f32 %v21213_v8, %v21230_v15  ;;  %v21231_v52 = vand.u32 4294901760, %v21214_v27  ;;  %v21232_v57 = vand.u32 4294901760, %v21215_v22  ;;  %v21234_v36 = vand.u32 4294901760, %v21218_v53 }
 0x2fa   : > { %v7466_v30 = vsub.f32 %v21212_v28, %v21229_v6  ;;  %11234 = vmatpush1.bf16.msra.mxu1 %v21233_v2  ;;  %v21235_v6 = vand.u32 4294901760, %v21219_v12  ;;  %v21236_v15 = vand.u32 4294901760, %v21220_v58  ;;  %v16454_v18 = vpack.c.bf16 %v5322_v10, %v5310_v39 }
 0x2fb   : > { %v5333_v51 = vsub.f32 %v21214_v27, %v21231_v52  ;;  %v5345_v60 = vsub.f32 %v21215_v22, %v21232_v57  ;;  %v7472_v63 = vsub.f32 %v21218_v53, %v21234_v36  ;;  %11236 = vmatprep.subr.bf16.mxu1 %v21238_v1  ;;  %v21240_v57 = vand.u32 4294901760, %v21223_v4  ;;  %10662 = vmatpush1.bf16.msra.mxu0 %v21243_v19  ;;  %v21298_v27 = vld [vmem:[#allocation142_spill] sm:$0xff]  ;;  %v21299_v22 = vld [vmem:[#allocation144_spill] sm:$0xff]  ;;  %v21307_v53 = vld [vmem:[#allocation55_spill] sm:$0xff] }
 0x2fc   : > { %v7484_v28 = vsub.f32 %v21219_v12, %v21235_v6  ;;  %v5351_v8 = vsub.f32 %v21220_v58, %v21236_v15  ;;  %21239 = vst [vmem:[#allocation210_spill] sm:$0xff] %v16454_v18  ;;  %v7461_v6 = vand.u32 4294901760, %v7460_v43  ;;  %v5328_v37 = vand.u32 4294901760, %v5327_v3  ;;  %v21244_v15 = vld [vmem:[#allocation123_spill] sm:$0xff]  ;;  %10664 = vmatprep.subr.bf16.mxu0 %v16096_v45  ;;  %v21245_v18 = vld [vmem:[#allocation204_spill] sm:$0xff] }
 0x2fd   : > { %v5363_v2 = vsub.f32 %v21223_v4, %v21240_v57  ;;  %v5340_v35 = vand.u32 4294901760, %v5339_v38  ;;  %v19474_v44 = vand.u32 4294901760, %v21244_v15  ;;  %v7467_v52 = vand.u32 4294901760, %v7466_v30  ;;  %v21247_v3 = vld [vmem:[#allocation200_spill] sm:$0xff]  ;;  %v21252_v38 = vld [vmem:[#allocation129_spill] sm:$0xff]  ;;  %v21253_v30 = vld [vmem:[#allocation135_spill] sm:$0xff] }
 0x2fe   : > { %v7479_v39 = vand.u32 4294901760, %v7478_v56  ;;  %v5334_v10 = vand.u32 4294901760, %v5333_v51  ;;  %v5346_v1 = vand.u32 4294901760, %v5345_v60  ;;  %11238 = vmatpush1.bf16.msra.mxu1 %v21245_v18  ;;  %v7473_v57 = vand.u32 4294901760, %v7472_v63  ;;  %5126 = vmatmul.mubr.f32.vlgmr.msra.gmra.mrb[2].mxu0 %v21247_v3  ;;  %v21254_v18 = vld [vmem:[#allocation195_spill] sm:$0xff] }
 0x2ff   : > { %v7485_v59 = vand.u32 4294901760, %v7484_v28  ;;  %v5352_v36 = vand.u32 4294901760, %v5351_v8  ;;  %v21246_v23 = vand.u32 4294901760, %v21237_v42  ;;  %11240 = vmatprep.subr.bf16.mxu1 %v16105_v11  ;;  %v5364_v43 = vand.u32 4294901760, %v5363_v2  ;;  %v21250_v28 = vld [vmem:[#allocation118_spill] sm:$0xff]  ;;  %10666 = vmatpush1.bf16.msra.mxu0 %v16107_v16  ;;  %v21251_v11 = vld [vmem:[#allocation120_spill] sm:$0xff] }
 0x300   : > { %v21248_v45 = vand.u32 4294901760, %v21241_v21  ;;  %v21249_v60 = vand.u32 4294901760, %v21242_v7  ;;  %5517 = vmatprep.mubr.f32.mxu0 %v21254_v18  ;;  %10668 = vmatprep.subr.bf16.mxu0 %v16111_v50  ;;  %v16497_v16 = vpack.c.bf16 %v5340_v35, %v5328_v37  ;;  %v21257_v8 = vld [vmem:[#allocation84_spill] sm:$0xff]  ;;  %v16502_v2 = vpack.c.bf16 %v7479_v39, %v7467_v52  ;;  %v21278_v50 = vld [vmem:[#allocation141_spill] sm:$0xff]  ;;  %v21309_v58 = vld [vmem:[#allocation203_spill] sm:$0xff] }
 0x301   : > { %v16468_v19 = vsub.f32 %v21237_v42, %v21246_v23  ;;  %v16487_v23 = vsub.f32 %v21244_v15, %v19474_v44  ;;  %7265 = vmatmul.mubr.f32.vlgmr.msra.gmra.mrb[2].mxu1 %v21247_v3  ;;  %v19475_v14 = vand.u32 4294901760, %v21257_v8  ;;  %v21258_v44 = vld [vmem:[#allocation147_spill] sm:$0xff]  ;;  %v16504_v63 = vpack.c.bf16 %v5346_v1, %v5334_v10  ;;  %v21272_v3 = vld [vmem:[#allocation20_spill] sm:$0xff]  ;;  %v21290_v15 = vld [vmem:[#allocation105_spill] sm:$0xff] }
 0x302   : > { %v16475_v51 = vsub.f32 %v21241_v21, %v21248_v45  ;;  %v16480_v56 = vsub.f32 %v21242_v7, %v21249_v60  ;;  %v16495_v60 = vpack.c.bf16 %v7461_v6, %v7449_v31  ;;  %21256 = vst [vmem:[#allocation211_spill] sm:$0xff] %v16497_v16  ;;  %v19477_v32 = vand.u32 4294901760, %v21258_v44  ;;  %11242 = vmatpush1.bf16.msra.mxu1 %v16109_v9  ;;  %v21271_v31 = vld [vmem:[#allocation18_spill] sm:$0xff]  ;;  %v21304_v21 = vld [vmem:[#allocation27_spill] sm:$0xff] }
 0x303   : > { %21259 = vst [vmem:[#allocation212_spill] sm:$0xff] %v16502_v2  ;;  %21260 = vst [vmem:[#allocation213_spill] sm:$0xff] %v16504_v63  ;;  %v16506_v45 = vpack.c.bf16 %v7485_v59, %v7473_v57  ;;  %7656 = vmatprep.mubr.f32.mxu1 %v21254_v18  ;;  %11244 = vmatprep.subr.bf16.mxu1 %v16114_v62  ;;  %v16511_v37 = vpack.c.bf16 %v5364_v43, %v5352_v36  ;;  %v21263_v9 = vand.u32 4294901760, %v21250_v28  ;;  %v21267_v57 = vld [vmem:[#allocation93_spill] sm:$0xff]  ;;  %v21273_v18 = vld [vmem:[#allocation28_spill] sm:$0xff] }
 0x304   : > { %21255 = vst [vmem:[#allocation200_spill] sm:$0xff] %v16495_v60  ;;  %10670 = vmatpush1.bf16.msra.mxu0 %v16116_v48  ;;  %v21264_v1 = vand.u32 4294901760, %v21251_v11  ;;  %v21265_v62 = vand.u32 4294901760, %v21252_v38  ;;  %v21266_v6 = vand.u32 4294901760, %v21253_v30  ;;  %v16541_v48 = vsub.f32 %v21257_v8, %v19475_v14  ;;  %v21270_v59 = vld [vmem:[#allocation101_spill] sm:$0xff]  ;;  %v21281_v14 = vld [vmem:[#allocation31_spill] sm:$0xff] }
 0x305   : > { %21261 = vst [vmem:[#allocation214_spill] sm:$0xff] %v16506_v45  ;;  %21262 = vst [vmem:[#allocation215_spill] sm:$0xff] %v16511_v37  ;;  %v16518_v35 = vsub.f32 %v21250_v28, %v21263_v9  ;;  %10672 = vmatprep.subr.bf16.mxu0 %v16120_v41  ;;  %v16546_v10 = vsub.f32 %v21258_v44, %v19477_v32  ;;  %v21268_v9 = vld [vmem:[#allocation94_spill] sm:$0xff]  ;;  %v21274_v32 = vld [vmem:[#allocation23_spill] sm:$0xff]  ;;  %v21310_v7 = vand.u32 4294901760, %v21267_v57  ;;  %v21313_v12 = vand.u32 4294901760, %v21270_v59 }
 0x306   : > { %v16525_v52 = vsub.f32 %v21251_v11, %v21264_v1  ;;  %v16530_v36 = vsub.f32 %v21252_v38, %v21265_v62  ;;  %v16535_v39 = vsub.f32 %v21253_v30, %v21266_v6  ;;  %11246 = vmatpush1.bf16.msra.mxu1 %v16118_v17  ;;  %v21269_v62 = vld [vmem:[#allocation96_spill] sm:$0xff]  ;;  %v21275_v37 = vld [vmem:[#allocation57_spill] sm:$0xff]  ;;  %v21279_v17 = vld [vmem:[#allocation154_spill] sm:$0xff] }
 0x307   : > { %11248 = vmatprep.subr.bf16.mxu1 %v16227_v34  ;;  %v21276_v41 = vld [vmem:[#allocation61_spill] sm:$0xff]  ;;  %v21280_v6 = vld [vmem:[#allocation4_spill] sm:$0xff]  ;;  %v21282_v8 = vld [vmem:[#allocation51_spill] sm:$0xff]  ;;  %v21312_v42 = vand.u32 4294901760, %v21269_v62  ;;  %v7532_v4 = vsub.f32 %v21270_v59, %v21313_v12 }
 0x308   : > { %10674 = vmatpush1.bf16.msra.mxu0 %v16233_v29  ;;  %v21277_v45 = vld [vmem:[#allocation89_spill] sm:$0xff]  ;;  %v21284_v28 = vld [vmem:[#allocation63_spill] sm:$0xff]  ;;  %v21285_v11 = vld [vmem:[#allocation40_spill] sm:$0xff]  ;;  %v5376_v12 = vand.u32 4294901760, %v16530_v36 }
 0x309   : > { %10676 = vmatprep.subr.bf16.mxu0 %v16240_v55  ;;  %v21283_v44 = vld [vmem:[#allocation49_spill] sm:$0xff]  ;;  %v21286_v38 = vld [vmem:[#allocation46_spill] sm:$0xff]  ;;  %v21288_v30 = vld [vmem:[#allocation75_spill] sm:$0xff] }
 0x30a   : > { %11250 = vmatpush1.bf16.msra.mxu1 %v16238_v5  ;;  %v21287_v43 = vld [vmem:[#allocation69_spill] sm:$0xff]  ;;  %v21295_v34 = vld [vmem:[#allocation159_spill] sm:$0xff]  ;;  %v21305_v5 = vld [vmem:[#allocation42_spill] sm:$0xff] }
 0x30b   : > { %11252 = vmatprep.subr.bf16.mxu1 %v16242_v13  ;;  %v21289_v29 = vld [vmem:[#allocation73_spill] sm:$0xff]  ;;  %v21297_v55 = vld [vmem:[#allocation99_spill] sm:$0xff]  ;;  %v21308_v16 = vld [vmem:[#allocation202_spill] sm:$0xff]  ;;  %v5381_v13 = vsub.f32 %v21267_v57, %v21310_v7  ;;  %v21315_v57 = vand.u32 4294901760, %v21272_v3 }
 0x30c   : > { %10678 = vmatpush1.bf16.msra.mxu0 %v16244_v47  ;;  %v21300_v63 = vld [vmem:[#allocation153_spill] sm:$0xff]  ;;  %v21301_v2 = vld [vmem:[#allocation7_spill] sm:$0xff]  ;;  %v21314_v47 = vand.u32 4294901760, %v21271_v31 }
 0x30d   : > { %10680 = vmatprep.subr.bf16.mxu0 %v16249_v61  ;;  %v21303_v1 = vld [vmem:[#allocation25_spill] sm:$0xff]  ;;  %v7520_v61 = vsub.f32 %v21269_v62, %v21312_v42  ;;  %v7509_v42 = vand.u32 4294901760, %v16525_v52  ;;  %v7527_v62 = vand.u32 4294901760, %v16546_v10  ;;  %v5382_v36 = vand.u32 4294901760, %v5381_v13 }
 0x30e   : > { %11254 = vmatpush1.bf16.msra.mxu1 %v16247_v24  ;;  %v21311_v24 = vand.u32 4294901760, %v21268_v9  ;;  %v5399_v7 = vsub.f32 %v21271_v31, %v21314_v47  ;;  %v7515_v47 = vand.u32 4294901760, %v16541_v48  ;;  %v21318_v10 = vand.u32 4294901760, %v21275_v37 }
 0x30f   : > { %11256 = vmatprep.subr.bf16.mxu1 %v16251_v33  ;;  %v7497_v33 = vand.u32 4294901760, %v16518_v35  ;;  %v7521_v59 = vand.u32 4294901760, %v7520_v61  ;;  %v7533_v35 = vand.u32 4294901760, %v7532_v4  ;;  %v21321_v4 = vand.u32 4294901760, %v16480_v56 }
 0x310   : > { %v5393_v60 = vsub.f32 %v21268_v9, %v21311_v24  ;;  %10682 = vmatpush1.bf16.msra.mxu0 %v16255_v25  ;;  %v5411_v24 = vsub.f32 %v21272_v3, %v21315_v57  ;;  %v5388_v25 = vand.u32 4294901760, %v16535_v39  ;;  %v21316_v57 = vand.u32 4294901760, %v21273_v18 }
 0x311   : > { %10684 = vmatprep.subr.bf16.mxu0 %v16368_v54  ;;  %v21317_v54 = vand.u32 4294901760, %v21274_v32  ;;  %v5405_v31 = vsub.f32 %v21275_v37, %v21318_v10  ;;  %v16680_v61 = vpack.c.bf16 %v7509_v42, %v7497_v33  ;;  %v19502_v10 = vand.u32 4294901760, %v21279_v17 }
 0x312   : > { %11258 = vmatpush1.bf16.msra.mxu1 %v16366_v40  ;;  %v7538_v9 = vsub.f32 %v21273_v18, %v21316_v57  ;;  %v5394_v39 = vand.u32 4294901760, %v5393_v60  ;;  %v5400_v40 = vand.u32 4294901760, %v5399_v7  ;;  %v5412_v48 = vand.u32 4294901760, %v5411_v24 }
 0x313   : > { %v7550_v52 = vsub.f32 %v21274_v32, %v21317_v54  ;;  %11260 = vmatprep.subr.bf16.mxu1 %v16370_v49  ;;  %v19500_v57 = vand.u32 4294901760, %v21277_v45  ;;  %v21319_v54 = vand.u32 4294901760, %v16468_v19  ;;  %v21320_v49 = vand.u32 4294901760, %v16475_v51 }
 0x314   : > { %10686 = vmatpush1.bf16.msra.mxu0 %v16374_v0  ;;  %v21322_v0 = vand.u32 4294901760, %v16487_v23  ;;  %v21323_v7 = vand.u32 4294901760, %v21276_v41  ;;  %v19499_v51 = vand.u32 4294901760, %v21278_v50  ;;  %v16689_v56 = vpack.c.bf16 %v5388_v25, %v5376_v12 }
 0x315   : > { %10688 = vmatprep.subr.bf16.mxu0 %v16378_v20  ;;  %v16672_v13 = vpack.c.bf16 %v21320_v49, %v21319_v54  ;;  %v7539_v20 = vand.u32 4294901760, %v7538_v9  ;;  %v7551_v19 = vand.u32 4294901760, %v7550_v52  ;;  %v21324_v54 = vld [vmem:[#allocation205_spill] sm:$0xff]  ;;  %v16691_v23 = vpack.c.bf16 %v7527_v62, %v7515_v47  ;;  %v21325_v49 = vld [vmem:[#allocation206_spill] sm:$0xff] }
 0x316   : > { %v16678_v60 = vpack.c.bf16 %v21322_v0, %v21321_v4  ;;  %v5417_v24 = vsub.f32 %v21276_v41, %v21323_v7  ;;  %11262 = vmatpush1.bf16.msra.mxu1 %v16376_v46  ;;  %v16693_v33 = vpack.c.bf16 %v5394_v39, %v5382_v36  ;;  %v16695_v42 = vpack.c.bf16 %v7533_v35, %v7521_v59  ;;  %v21326_v0 = vld [vmem:[#allocation208_spill] sm:$0xff]  ;;  %v21327_v35 = vld [vmem:[#allocation207_spill] sm:$0xff] }
 0x317   : > { %11264 = vmatprep.subr.bf16.mxu1 %v21324_v54  ;;  %v16698_v4 = vpack.c.bf16 %v5412_v48, %v5400_v40  ;;  %v5406_v46 = vand.u32 4294901760, %v5405_v31  ;;  %v7544_v9 = vsub.f32 %v21277_v45, %v19500_v57  ;;  %v19501_v52 = vand.u32 4294901760, %v21280_v6  ;;  %v21328_v40 = vld [vmem:[#allocation209_spill] sm:$0xff] }
 0x318   : > { %10690 = vmatpush1.bf16.msra.mxu0 %v21325_v49  ;;  %v5418_v12 = vand.u32 4294901760, %v5417_v24  ;;  %v19503_v62 = vand.u32 4294901760, %v21281_v14  ;;  %v19504_v25 = vand.u32 4294901760, %v21282_v8  ;;  %v19505_v59 = vand.u32 4294901760, %v21283_v44 }
 0x319   : > { %10692 = vmatprep.subr.bf16.mxu0 %v21326_v0  ;;  %v16709_v47 = vpack.c.bf16 %v7551_v19, %v7539_v20  ;;  %v7556_v31 = vsub.f32 %v21278_v50, %v19499_v51  ;;  %v5423_v36 = vsub.f32 %v21279_v17, %v19502_v10  ;;  %v19506_v39 = vand.u32 4294901760, %v21284_v28  ;;  %v21329_v19 = vld [vmem:[#allocation210_spill] sm:$0xff] }
 0x31a   : > { %11266 = vmatpush1.bf16.msra.mxu1 %v21327_v35  ;;  %v19507_v48 = vand.u32 4294901760, %v21285_v11  ;;  %v19509_v7 = vand.u32 4294901760, %v21286_v38  ;;  %v19512_v24 = vand.u32 4294901760, %v21287_v43  ;;  %v19516_v20 = vand.u32 4294901760, %v21288_v30  ;;  %v21333_v35 = vld [vmem:[#allocation113_spill] sm:$0xff] }
 0x31b   : > { %11268 = vmatprep.subr.bf16.mxu1 %v21328_v40  ;;  %v7545_v54 = vand.u32 4294901760, %v7544_v9  ;;  %v5435_v49 = vsub.f32 %v21280_v6, %v19501_v52  ;;  %v21330_v40 = vld [vmem:[#allocation211_spill] sm:$0xff]  ;;  %v16730_v51 = vpack.c.bf16 %v5418_v12, %v5406_v46  ;;  %v7562_v57 = vsub.f32 %v21281_v14, %v19503_v62  ;;  %v21331_v52 = vld [vmem:[#allocation200_spill] sm:$0xff]  ;;  %v21332_v12 = vld [vmem:[#allocation109_spill] sm:$0xff] }
 0x31c   : > { %10694 = vmatpush1.bf16.msra.mxu0 %v21329_v19  ;;  %v7574_v9 = vsub.f32 %v21282_v8, %v19504_v25  ;;  %v5429_v19 = vsub.f32 %v21283_v44, %v19505_v59  ;;  %v7557_v10 = vand.u32 4294901760, %v7556_v31  ;;  %v5441_v46 = vsub.f32 %v21284_v28, %v19506_v39  ;;  %v21334_v62 = vld [vmem:[#allocation212_spill] sm:$0xff]  ;;  %v21335_v39 = vld [vmem:[#allocation213_spill] sm:$0xff] }
 0x31d   : > { %10696 = vmatprep.subr.bf16.mxu0 %v21330_v40  ;;  %v7568_v25 = vsub.f32 %v21285_v11, %v19507_v48  ;;  %v7580_v59 = vsub.f32 %v21286_v38, %v19509_v7  ;;  %v5459_v31 = vsub.f32 %v21288_v30, %v19516_v20  ;;  %v5424_v0 = vand.u32 4294901760, %v5423_v36  ;;  %v21338_v38 = vld [vmem:[#allocation215_spill] sm:$0xff]  ;;  %v21339_v28 = vld [vmem:[#allocation117_spill] sm:$0xff]  ;;  %v21340_v20 = vld [vmem:[#allocation214_spill] sm:$0xff] }
 0x31e   : > { %11270 = vmatpush1.bf16.msra.mxu1 %v21331_v52  ;;  %v5447_v52 = vsub.f32 %v21287_v43, %v19512_v24  ;;  %v21336_v40 = vand.u32 4294901760, %v21289_v29  ;;  %v21337_v11 = vand.u32 4294901760, %v21290_v15  ;;  %v7563_v44 = vand.u32 4294901760, %v7562_v57  ;;  %v21343_v30 = vld [vmem:[#allocation125_spill] sm:$0xff] }
 0x31f   : > { %11272 = vmatprep.subr.bf16.mxu1 %v21334_v62  ;;  %v5436_v62 = vand.u32 4294901760, %v5435_v49  ;;  %v7575_v24 = vand.u32 4294901760, %v7574_v9  ;;  %v5430_v43 = vand.u32 4294901760, %v5429_v19  ;;  %v21341_v36 = vand.u32 4294901760, %v21332_v12 }
 0x320   : > { %10698 = vmatpush1.bf16.msra.mxu0 %v21335_v39  ;;  %v7586_v48 = vsub.f32 %v21289_v29, %v21336_v40  ;;  %v7598_v7 = vsub.f32 %v21290_v15, %v21337_v11  ;;  %v5442_v39 = vand.u32 4294901760, %v5441_v46  ;;  %v21342_v40 = vand.u32 4294901760, %v21333_v35 }
 0x321   : > { %10700 = vmatprep.subr.bf16.mxu0 %v21338_v38  ;;  %v5453_v49 = vsub.f32 %v21332_v12, %v21341_v36  ;;  %v7569_v38 = vand.u32 4294901760, %v7568_v25  ;;  %v7581_v57 = vand.u32 4294901760, %v7580_v59  ;;  %v5448_v9 = vand.u32 4294901760, %v5447_v52 }
 0x322   : > { %11274 = vmatpush1.bf16.msra.mxu1 %v21340_v20  ;;  %v5465_v29 = vsub.f32 %v21333_v35, %v21342_v40  ;;  %v5460_v19 = vand.u32 4294901760, %v5459_v31  ;;  %v11285_v20 = vpack.c.bf16 %v7557_v10, %v7545_v54  ;;  %v7587_v46 = vand.u32 4294901760, %v7586_v48 }
 0x323   : > { %11276 = vmatprep.subr.bf16.mxu1 %v16672_v13  ;;  %v7599_v14 = vand.u32 4294901760, %v7598_v7  ;;  %v19536_v15 = vand.u32 4294901760, %v21295_v34  ;;  %v10711_v36 = vpack.c.bf16 %v5436_v62, %v5424_v0  ;;  %v11287_v12 = vpack.c.bf16 %v7575_v24, %v7563_v44  ;;  %v21345_v13 = vld [vmem:[#allocation148_spill] sm:$0xff] }
 0x324   : > { %10702 = vmatpush1.bf16.msra.mxu0 %v16678_v60  ;;  %v21344_v40 = vand.u32 4294901760, %v21339_v28  ;;  %v19530_v25 = vand.u32 4294901760, %v21345_v13  ;;  %v10713_v59 = vpack.c.bf16 %v5442_v39, %v5430_v43  ;;  %v5454_v52 = vand.u32 4294901760, %v5453_v49  ;;  %v21347_v49 = vld [vmem:[#allocation12_spill] sm:$0xff] }
 0x325   : > { %10704 = vmatprep.subr.bf16.mxu0 %v16689_v56  ;;  %v5466_v60 = vand.u32 4294901760, %v5465_v29  ;;  %v21346_v10 = vand.u32 4294901760, %v21343_v30  ;;  %v11289_v56 = vpack.c.bf16 %v7581_v57, %v7569_v38  ;;  %v10715_v7 = vpack.c.bf16 %v5460_v19, %v5448_v9  ;;  %v21348_v9 = vld [vmem:[#allocation53_spill] sm:$0xff] }
 0x326   : > { %v7592_v11 = vsub.f32 %v21339_v28, %v21344_v40  ;;  %11278 = vmatpush1.bf16.msra.mxu1 %v16680_v61  ;;  %v19529_v44 = vand.u32 4294901760, %v21297_v55  ;;  %v19527_v24 = vand.u32 4294901760, %v21298_v27  ;;  %v11291_v54 = vpack.c.bf16 %v7599_v14, %v7587_v46 }
 0x327   : > { %v7604_v48 = vsub.f32 %v21343_v30, %v21346_v10  ;;  %11280 = vmatprep.subr.bf16.mxu1 %v16691_v23  ;;  %v5471_v43 = vsub.f32 %v21295_v34, %v19536_v15  ;;  %v19525_v29 = vand.u32 4294901760, %v21299_v22  ;;  %v19521_v61 = vand.u32 4294901760, %v21300_v63  ;;  %v21375_v15 = vld [vmem:[#allocation193_spill] sm:$0xff] }
 0x328   : > { %10706 = vmatpush1.bf16.msra.mxu0 %v16693_v33  ;;  %v7593_v23 = vand.u32 4294901760, %v7592_v11  ;;  %v5483_v0 = vsub.f32 %v21345_v13, %v19530_v25  ;;  %v19522_v31 = vand.u32 4294901760, %v21303_v1  ;;  %v19523_v33 = vand.u32 4294901760, %v21304_v21 }
 0x329   : > { %10708 = vmatprep.subr.bf16.mxu0 %v16698_v4  ;;  %v10717_v14 = vpack.c.bf16 %v5466_v60, %v5454_v52  ;;  %v7605_v62 = vand.u32 4294901760, %v7604_v48  ;;  %v19524_v39 = vand.u32 4294901760, %v21301_v2  ;;  %v19526_v38 = vand.u32 4294901760, %v21347_v49 }
 0x32a   : > { %11282 = vmatpush1.bf16.msra.mxu1 %v16695_v42  ;;  %v7610_v4 = vsub.f32 %v21297_v55, %v19529_v44  ;;  %v7622_v11 = vsub.f32 %v21298_v27, %v19527_v24  ;;  %v19528_v57 = vand.u32 4294901760, %v21305_v5  ;;  %v19535_v42 = vand.u32 4294901760, %v21348_v9 }
 0x32b   : > { %11284 = vmatprep.subr.bf16.mxu1 %v16709_v47  ;;  %v5477_v19 = vsub.f32 %v21299_v22, %v19525_v29  ;;  %v5489_v47 = vsub.f32 %v21300_v63, %v19521_v61  ;;  %v19531_v46 = vand.u32 4294901760, %v21307_v53  ;;  %v19532_v40 = vand.u32 4294901760, %v21308_v16 }
 0x32c   : > { %10710 = vmatpush1.bf16.msra.mxu0 %v16730_v51  ;;  %v5472_v52 = vand.u32 4294901760, %v5471_v43  ;;  %v5484_v60 = vand.u32 4294901760, %v5483_v0  ;;  %v5495_v10 = vsub.f32 %v21303_v1, %v19522_v31  ;;  %v5507_v51 = vsub.f32 %v21304_v21, %v19523_v33 }
 0x32d   : > { %10712 = vmatprep.subr.bf16.mxu0 %v10711_v36  ;;  %v7616_v48 = vsub.f32 %v21301_v2, %v19524_v39  ;;  %v7628_v61 = vsub.f32 %v21347_v49, %v19526_v38  ;;  %v19534_v36 = vand.u32 4294901760, %v21309_v58  ;;  %v19533_v43 = vand.u32 4294901760, %v16092_v26 }
 0x32e   : > { %11286 = vmatpush1.bf16.msra.mxu1 %v11285_v20  ;;  %v7611_v0 = vand.u32 4294901760, %v7610_v4  ;;  %v7623_v31 = vand.u32 4294901760, %v7622_v11  ;;  %v7634_v33 = vsub.f32 %v21305_v5, %v19528_v57  ;;  %v7646_v20 = vsub.f32 %v21348_v9, %v19535_v42 }
 0x32f   : > { %11288 = vmatprep.subr.bf16.mxu1 %v11287_v12  ;;  %v5478_v39 = vand.u32 4294901760, %v5477_v19  ;;  %v5490_v29 = vand.u32 4294901760, %v5489_v47  ;;  %v5501_v38 = vsub.f32 %v21307_v53, %v19531_v46  ;;  %v5513_v12 = vsub.f32 %v21308_v16, %v19532_v40 }
 0x330   : > { %10714 = vmatpush1.bf16.msra.mxu0 %v10713_v59  ;;  %v11293_v4 = vpack.c.bf16 %v7605_v62, %v7593_v23  ;;  %v10719_v11 = vpack.c.bf16 %v5484_v60, %v5472_v52  ;;  %v5496_v24 = vand.u32 4294901760, %v5495_v10  ;;  %v5508_v57 = vand.u32 4294901760, %v5507_v51 }
 0x331   : > { %10716 = vmatprep.subr.bf16.mxu0 %v10715_v7  ;;  %v7617_v44 = vand.u32 4294901760, %v7616_v48  ;;  %v7629_v25 = vand.u32 4294901760, %v7628_v61  ;;  %v7640_v59 = vsub.f32 %v21309_v58, %v19534_v36  ;;  %v7652_v19 = vsub.f32 %v16092_v26, %v19533_v43  ;;  %v21349_v48 = vld [vmem:[#allocation81_spill] sm:$0xff]  ;;  %v21373_v36 = vld [vmem:[#allocation8_spill] sm:$0xff] }
 0x332   : > { %11290 = vmatpush1.bf16.msra.mxu1 %v11289_v56  ;;  %v11295_v47 = vpack.c.bf16 %v7623_v31, %v7611_v0  ;;  %v7635_v46 = vand.u32 4294901760, %v7634_v33  ;;  %v7647_v40 = vand.u32 4294901760, %v7646_v20  ;;  %v10721_v7 = vpack.c.bf16 %v5490_v29, %v5478_v39  ;;  %v21351_v29 = vld [vmem:[#allocation85_spill] sm:$0xff]  ;;  %v21358_v0 = vld [vmem:[#allocation156_spill] sm:$0xff] }
 0x333   : > { %11292 = vmatprep.subr.bf16.mxu1 %v11291_v54  ;;  %v5502_v23 = vand.u32 4294901760, %v5501_v38  ;;  %v5514_v62 = vand.u32 4294901760, %v5513_v12  ;;  %v10723_v56 = vpack.c.bf16 %v5508_v57, %v5496_v24  ;;  %v11297_v61 = vpack.c.bf16 %v7629_v25, %v7617_v44  ;;  %v21350_v54 = vld [vmem:[#allocation82_spill] sm:$0xff]  ;;  %v21353_v24 = vld [vmem:[#allocation132_spill] sm:$0xff]  ;;  %v21354_v38 = vld [vmem:[#allocation133_spill] sm:$0xff] }
 0x334   : > { %10718 = vmatpush1.bf16.msra.mxu0 %v10717_v14  ;;  %v7641_v52 = vand.u32 4294901760, %v7640_v59  ;;  %v7653_v60 = vand.u32 4294901760, %v7652_v19  ;;  %v11299_v10 = vpack.c.bf16 %v7647_v40, %v7635_v46  ;;  %v10727_v31 = vpack.c.bf16 %v21350_v54, %v21349_v48  ;;  %v21352_v14 = vld [vmem:[#allocation136_spill] sm:$0xff]  ;;  %v21355_v44 = vld [vmem:[#allocation157_spill] sm:$0xff]  ;;  %v21356_v57 = vld [vmem:[#allocation163_spill] sm:$0xff] }
 0x335   : > { %10720 = vmatprep.subr.bf16.mxu0 %v10719_v11  ;;  %v10725_v51 = vpack.c.bf16 %v5514_v62, %v5502_v23  ;;  %v11303_v39 = vpack.c.bf16 %v21352_v14, %v21351_v29  ;;  %v10729_v25 = vpack.c.bf16 %v21354_v38, %v21353_v24  ;;  %v10731_v46 = vpack.c.bf16 %v21356_v57, %v21355_v44  ;;  %v21357_v40 = vld [vmem:[#allocation160_spill] sm:$0xff]  ;;  %v21359_v12 = vld [vmem:[#allocation194_spill] sm:$0xff]  ;;  %v21361_v11 = vld [vmem:[#allocation171_spill] sm:$0xff] }
 0x336   : > { %11294 = vmatpush1.bf16.msra.mxu1 %v11293_v4  ;;  %v11301_v33 = vpack.c.bf16 %v7653_v60, %v7641_v52  ;;  %v11305_v20 = vpack.c.bf16 %v21358_v0, %v21357_v40  ;;  %v21360_v4 = vld [vmem:[#allocation166_spill] sm:$0xff]  ;;  %v21362_v19 = vld [vmem:[#allocation168_spill] sm:$0xff]  ;;  %v21364_v23 = vld [vmem:[#allocation197_spill] sm:$0xff] }
 0x337   : > { %11296 = vmatprep.subr.bf16.mxu1 %v11295_v47  ;;  %v11307_v59 = vpack.c.bf16 %v21361_v11, %v21360_v4  ;;  %v21363_v47 = vld [vmem:[#allocation169_spill] sm:$0xff]  ;;  %v21365_v62 = vld [vmem:[#allocation178_spill] sm:$0xff]  ;;  %v21367_v52 = vld [vmem:[#allocation175_spill] sm:$0xff] }
 0x338   : > { %10722 = vmatpush1.bf16.msra.mxu0 %v10721_v7  ;;  %v10733_v7 = vpack.c.bf16 %v21363_v47, %v21362_v19  ;;  %v21368_v60 = vld [vmem:[#allocation177_spill] sm:$0xff] }
 0x339   : > { %10724 = vmatprep.subr.bf16.mxu0 %v10723_v56  ;;  %v21366_v56 = vld [vmem:[#allocation184_spill] sm:$0xff] }
 0x33a   : > { %11298 = vmatpush1.bf16.msra.mxu1 %v11297_v61  ;;  %v10735_v61 = vpack.c.bf16 %v21366_v56, %v21365_v62  ;;  %v21380_v56 = vld [vmem:[#allocation29_spill] sm:$0xff] }
 0x33b   : > { %11300 = vmatprep.subr.bf16.mxu1 %v11299_v10  ;;  %v11309_v10 = vpack.c.bf16 %v21368_v60, %v21367_v52  ;;  %v21377_v60 = vld [vmem:[#allocation17_spill] sm:$0xff] }
 0x33c   : > { %10726 = vmatpush1.bf16.msra.mxu0 %v10725_v51  ;;  %v21369_v51 = vld [vmem:[#allocation181_spill] sm:$0xff] }
 0x33d   : > { %10728 = vmatprep.subr.bf16.mxu0 %v10727_v31  ;;  %v21370_v31 = vld [vmem:[#allocation185_spill] sm:$0xff] }
 0x33e   : > { %11302 = vmatpush1.bf16.msra.mxu1 %v11301_v33  ;;  %v11311_v33 = vpack.c.bf16 %v21370_v31, %v21369_v51  ;;  %v21378_v52 = vld [vmem:[#allocation21_spill] sm:$0xff]  ;;  %v21382_v51 = vld [vmem:[#allocation50_spill] sm:$0xff] }
 0x33f   : > { %11304 = vmatprep.subr.bf16.mxu1 %v11303_v39  ;;  %5519 = vmatmul.mubr.f32.vlgmr.msra.gmra.mrb[2].mxu0 %v21359_v12  ;;  %v21371_v39 = vld [vmem:[#allocation189_spill] sm:$0xff] }
 0x340   : > { %10730 = vmatpush1.bf16.msra.mxu0 %v10729_v25  ;;  %5719 = vmatprep.mubr.f32.mxu0 %v21364_v23  ;;  %v21372_v25 = vld [vmem:[#allocation190_spill] sm:$0xff] }
 0x341   : > { %7658 = vmatmul.mubr.f32.vlgmr.msra.gmra.mrb[2].mxu1 %v21359_v12  ;;  %10732 = vmatprep.subr.bf16.mxu0 %v10731_v46  ;;  %v10737_v43 = vpack.c.bf16 %v21372_v25, %v21371_v39  ;;  %v21374_v46 = vld [vmem:[#allocation15_spill] sm:$0xff] }
 0x342   : > { %11306 = vmatpush1.bf16.msra.mxu1 %v11305_v20  ;;  %7858 = vmatprep.mubr.f32.mxu1 %v21364_v23  ;;  %v10739_v42 = vpack.c.bf16 %v21374_v46, %v21373_v36  ;;  %v21376_v20 = vld [vmem:[#allocation2_spill] sm:$0xff]  ;;  %v11315_v23 = vpack.c.bf16 %v21378_v52, %v21377_v60  ;;  %v21384_v39 = vld [vmem:[#allocation35_spill] sm:$0xff]  ;;  %v21386_v36 = vld [vmem:[#allocation56_spill] sm:$0xff] }
 0x343   : > { %11308 = vmatprep.subr.bf16.mxu1 %v11307_v59  ;;  %v11313_v12 = vpack.c.bf16 %v21376_v20, %v21375_v15  ;;  %v21379_v59 = vld [vmem:[#allocation24_spill] sm:$0xff]  ;;  %v21388_v15 = vld [vmem:[#allocation66_spill] sm:$0xff] }
 0x344   : > { %10734 = vmatpush1.bf16.msra.mxu0 %v10733_v7  ;;  %v10741_v31 = vpack.c.bf16 %v21380_v56, %v21379_v59  ;;  %v21381_v7 = vld [vmem:[#allocation45_spill] sm:$0xff]  ;;  %v21390_v60 = vld [vmem:[#allocation86_spill] sm:$0xff]  ;;  %v21392_v59 = vld [vmem:[#allocation71_spill] sm:$0xff] }
 0x345   : > { %10736 = vmatprep.subr.bf16.mxu0 %v10735_v61  ;;  %v10743_v25 = vpack.c.bf16 %v21382_v51, %v21381_v7  ;;  %v21383_v61 = vld [vmem:[#allocation32_spill] sm:$0xff] }
 0x346   : > { %11310 = vmatpush1.bf16.msra.mxu1 %v11309_v10  ;;  %v11317_v46 = vpack.c.bf16 %v21384_v39, %v21383_v61  ;;  %v21385_v10 = vld [vmem:[#allocation54_spill] sm:$0xff]  ;;  %v21394_v7 = vld [vmem:[#allocation92_spill] sm:$0xff] }
 0x347   : > { %11312 = vmatprep.subr.bf16.mxu1 %v11311_v33  ;;  %v11319_v20 = vpack.c.bf16 %v21386_v36, %v21385_v10  ;;  %v21387_v33 = vld [vmem:[#allocation59_spill] sm:$0xff]  ;;  %v21396_v61 = vld [vmem:[#allocation102_spill] sm:$0xff] }
 0x348   : > { %10738 = vmatpush1.bf16.msra.mxu0 %v10737_v43  ;;  %v10745_v52 = vpack.c.bf16 %v21388_v15, %v21387_v33  ;;  %v21389_v43 = vld [vmem:[#allocation80_spill] sm:$0xff]  ;;  %v21398_v10 = vld [vmem:[#allocation122_spill] sm:$0xff]  ;;  %v21400_v33 = vld [vmem:[#allocation107_spill] sm:$0xff] }
 0x349   : > { %10740 = vmatprep.subr.bf16.mxu0 %v10739_v42  ;;  %v10747_v56 = vpack.c.bf16 %v21390_v60, %v21389_v43  ;;  %v21391_v42 = vld [vmem:[#allocation74_spill] sm:$0xff]  ;;  %v21402_v43 = vld [vmem:[#allocation128_spill] sm:$0xff] }
 0x34a   : > { %11314 = vmatpush1.bf16.msra.mxu1 %v11313_v12  ;;  %v11321_v51 = vpack.c.bf16 %v21392_v59, %v21391_v42  ;;  %v21393_v12 = vld [vmem:[#allocation90_spill] sm:$0xff] }
 0x34b   : > { %11316 = vmatprep.subr.bf16.mxu1 %v11315_v23  ;;  %v11323_v39 = vpack.c.bf16 %v21394_v7, %v21393_v12  ;;  %v21395_v23 = vld [vmem:[#allocation95_spill] sm:$0xff]  ;;  %v21404_v42 = vld [vmem:[#allocation138_spill] sm:$0xff] }
 0x34c   : > { %10742 = vmatpush1.bf16.msra.mxu0 %v10741_v31  ;;  %v10749_v36 = vpack.c.bf16 %v21396_v61, %v21395_v23  ;;  %v21397_v31 = vld [vmem:[#allocation116_spill] sm:$0xff]  ;;  %v21406_v12 = vld [vmem:[#allocation158_spill] sm:$0xff]  ;;  %v21408_v23 = vld [vmem:[#allocation143_spill] sm:$0xff] }
 0x34d   : > { %10744 = vmatprep.subr.bf16.mxu0 %v10743_v25  ;;  %v10751_v15 = vpack.c.bf16 %v21398_v10, %v21397_v31  ;;  %v21399_v25 = vld [vmem:[#allocation110_spill] sm:$0xff]  ;;  %v21410_v31 = vld [vmem:[#allocation164_spill] sm:$0xff] }
 0x34e   : > { %11318 = vmatpush1.bf16.msra.mxu1 %v11317_v46  ;;  %v11325_v60 = vpack.c.bf16 %v21400_v33, %v21399_v25  ;;  %v21401_v46 = vld [vmem:[#allocation126_spill] sm:$0xff] }
 0x34f   : > { %11320 = vmatprep.subr.bf16.mxu1 %v11319_v20  ;;  %v11327_v59 = vpack.c.bf16 %v21402_v43, %v21401_v46  ;;  %v21403_v20 = vld [vmem:[#allocation131_spill] sm:$0xff]  ;;  %v21412_v25 = vld [vmem:[#allocation174_spill] sm:$0xff] }
 0x350   : > { %10746 = vmatpush1.bf16.msra.mxu0 %v10745_v52  ;;  %v10753_v7 = vpack.c.bf16 %v21404_v42, %v21403_v20  ;;  %v21405_v52 = vld [vmem:[#allocation152_spill] sm:$0xff]  ;;  %v21414_v46 = vld [vmem:[#allocation191_spill] sm:$0xff] }
 0x351   : > { %10748 = vmatprep.subr.bf16.mxu0 %v10747_v56  ;;  %v10755_v61 = vpack.c.bf16 %v21406_v12, %v21405_v52  ;;  %v21407_v56 = vld [vmem:[#allocation140_spill] sm:$0xff]  ;;  %v21416_v20 = vld [vmem:[#allocation179_spill] sm:$0xff]  ;;  %v21418_v52 = vld [vmem:[#allocation5_spill] sm:$0xff] }
 0x352   : > { %11322 = vmatpush1.bf16.msra.mxu1 %v11321_v51  ;;  %v11329_v10 = vpack.c.bf16 %v21408_v23, %v21407_v56  ;;  %v21409_v51 = vld [vmem:[#allocation162_spill] sm:$0xff] }
 0x353   : > { %11324 = vmatprep.subr.bf16.mxu1 %v11323_v39  ;;  %v11331_v33 = vpack.c.bf16 %v21410_v31, %v21409_v51  ;;  %v21411_v39 = vld [vmem:[#allocation167_spill] sm:$0xff] }
 0x354   : > { %10750 = vmatpush1.bf16.msra.mxu0 %v10749_v36  ;;  %v10757_v43 = vpack.c.bf16 %v21412_v25, %v21411_v39  ;;  %v21413_v36 = vld [vmem:[#allocation188_spill] sm:$0xff]  ;;  %v21423_v25 = vld [vmem:[#allocation37_spill] sm:$0xff] }
 0x355   : > { %10752 = vmatprep.subr.bf16.mxu0 %v10751_v15  ;;  %v10759_v42 = vpack.c.bf16 %v21414_v46, %v21413_v36  ;;  %v21415_v15 = vld [vmem:[#allocation182_spill] sm:$0xff] }
 0x356   : > { %11326 = vmatpush1.bf16.msra.mxu1 %v11325_v60  ;;  %v11333_v12 = vpack.c.bf16 %v21416_v20, %v21415_v15  ;;  %v21417_v60 = vld [vmem:[#allocation3_spill] sm:$0xff]  ;;  %v21426_v46 = vld [vmem:[#allocation34_spill] sm:$0xff]  ;;  %v21429_v20 = vld [vmem:[#allocation108_spill] sm:$0xff] }
 0x357   : > { %11328 = vmatprep.subr.bf16.mxu1 %v11327_v59  ;;  %v11335_v23 = vpack.c.bf16 %v21418_v52, %v21417_v60  ;;  %v21419_v59 = vld [vmem:[#allocation13_spill] sm:$0xff] }
 0x358   : > { %10754 = vmatpush1.bf16.msra.mxu0 %v10753_v7  ;;  %v21420_v7 = vld [vmem:[#allocation14_spill] sm:$0xff]  ;;  %v21435_v52 = vld [vmem:[#allocation129_spill] sm:$0xff] }
 0x359   : > { %10756 = vmatprep.subr.bf16.mxu0 %v10755_v61  ;;  %v21421_v31 = vpack.c.bf16 %v21419_v59, %v21420_v7  ;;  %v21422_v61 = vld [vmem:[#allocation43_spill] sm:$0xff]  ;;  %v21438_v7 = vld [vmem:[#allocation118_spill] sm:$0xff] }
 0x35a   : > { %11330 = vmatpush1.bf16.msra.mxu1 %v11329_v10  ;;  %v21424_v39 = vpack.c.bf16 %v21422_v61, %v21423_v25  ;;  %v21425_v10 = vld [vmem:[#allocation39_spill] sm:$0xff]  ;;  %v21441_v25 = vld [vmem:[#allocation84_spill] sm:$0xff] }
 0x35b   : > { %11332 = vmatprep.subr.bf16.mxu1 %v11331_v33  ;;  %v21427_v36 = vpack.c.bf16 %v21425_v10, %v21426_v46  ;;  %v21428_v33 = vld [vmem:[#allocation111_spill] sm:$0xff]  ;;  %v21444_v46 = vld [vmem:[#allocation93_spill] sm:$0xff] }
 0x35c   : > { %10758 = vmatpush1.bf16.msra.mxu0 %v10757_v43  ;;  %v21430_v15 = vpack.c.bf16 %v21428_v33, %v21429_v20  ;;  %v21431_v43 = vld [vmem:[#allocation123_spill] sm:$0xff] }
 0x35d   : > { %10760 = vmatprep.subr.bf16.mxu0 %v10759_v42  ;;  %v21432_v42 = vld [vmem:[#allocation115_spill] sm:$0xff] }
 0x35e   : > { %11334 = vmatpush1.bf16.msra.mxu1 %v11333_v12  ;;  %v21433_v12 = vpack.c.bf16 %v21431_v43, %v21432_v42  ;;  %v21449_v42 = vld [vmem:[#allocation96_spill] sm:$0xff] }
 0x35f   : > { %11336 = vmatprep.subr.bf16.mxu1 %v11335_v23  ;;  %v21434_v23 = vld [vmem:[#allocation135_spill] sm:$0xff] }
 0x360   : > { %10762 = vmatpush1.bf16.msra.mxu0 %v21421_v31  ;;  %v21436_v59 = vpack.c.bf16 %v21434_v23, %v21435_v52  ;;  %v21437_v31 = vld [vmem:[#allocation120_spill] sm:$0xff] }
 0x361   : > { %10764 = vmatprep.subr.bf16.mxu0 %v21424_v39  ;;  %v21439_v61 = vpack.c.bf16 %v21437_v31, %v21438_v7  ;;  %v21440_v39 = vld [vmem:[#allocation147_spill] sm:$0xff] }
 0x362   : > { %11338 = vmatpush1.bf16.msra.mxu1 %v21427_v36  ;;  %v21442_v10 = vpack.c.bf16 %v21440_v39, %v21441_v25  ;;  %v21443_v36 = vld [vmem:[#allocation94_spill] sm:$0xff] }
 0x363   : > { %11340 = vmatprep.subr.bf16.mxu1 %v21430_v15  ;;  %v21445_v33 = vpack.c.bf16 %v21443_v36, %v21444_v46  ;;  %v21446_v15 = vld [vmem:[#allocation18_spill] sm:$0xff] }
 0x364   : > { %10766 = vmatpush1.bf16.msra.mxu0 %v21433_v12  ;;  %v21447_v43 = vpack.c.bf16 %v21272_v3, %v21446_v15  ;;  %v21448_v12 = vld [vmem:[#allocation101_spill] sm:$0xff] }
 0x365   : > { %10768 = vmatprep.subr.bf16.mxu0 %v21436_v59  ;;  %v21450_v23 = vpack.c.bf16 %v21448_v12, %v21449_v42  ;;  %v21451_v59 = vpack.c.bf16 %v21274_v32, %v21273_v18  ;;  %v21458_v42 = vld [vmem:[#allocation49_spill] sm:$0xff] }
 0x366   : > { %11342 = vmatpush1.bf16.msra.mxu1 %v21439_v61  ;;  %v21452_v61 = vpack.c.bf16 %v21276_v41, %v21275_v37  ;;  %v21461_v18 = vld [vmem:[#allocation69_spill] sm:$0xff]  ;;  %v21464_v37 = vld [vmem:[#allocation40_spill] sm:$0xff] }
 0x367   : > { %11344 = vmatprep.subr.bf16.mxu1 %v21442_v10  ;;  %v21453_v10 = vpack.c.bf16 %v21280_v6, %v21279_v17  ;;  %v21467_v17 = vld [vmem:[#allocation73_spill] sm:$0xff] }
 0x368   : > { %10770 = vmatpush1.bf16.msra.mxu0 %v21445_v33  ;;  %v21454_v33 = vpack.c.bf16 %v21278_v50, %v21277_v45 }
 0x369   : > { %10772 = vmatprep.subr.bf16.mxu0 %v21447_v43  ;;  %v21455_v43 = vld [vmem:[#allocation31_spill] sm:$0xff] }
 0x36a   : > { %11346 = vmatpush1.bf16.msra.mxu1 %v21450_v23  ;;  %v21456_v12 = vpack.c.bf16 %v21282_v8, %v21455_v43  ;;  %v21457_v23 = vld [vmem:[#allocation63_spill] sm:$0xff] }
 0x36b   : > { %11348 = vmatprep.subr.bf16.mxu1 %v21451_v59  ;;  %v21459_v32 = vpack.c.bf16 %v21457_v23, %v21458_v42  ;;  %v21460_v59 = vld [vmem:[#allocation75_spill] sm:$0xff] }
 0x36c   : > { %10774 = vmatpush1.bf16.msra.mxu0 %v21452_v61  ;;  %v21462_v41 = vpack.c.bf16 %v21460_v59, %v21461_v18  ;;  %v21463_v61 = vld [vmem:[#allocation46_spill] sm:$0xff] }
 0x36d   : > { %10776 = vmatprep.subr.bf16.mxu0 %v21453_v10  ;;  %v21465_v6 = vpack.c.bf16 %v21463_v61, %v21464_v37  ;;  %v21466_v10 = vld [vmem:[#allocation105_spill] sm:$0xff] }
 0x36e   : > { %11350 = vmatpush1.bf16.msra.mxu1 %v21454_v33  ;;  %v21468_v50 = vpack.c.bf16 %v21466_v10, %v21467_v17  ;;  %v21469_v33 = vld [vmem:[#allocation109_spill] sm:$0xff] }
 0x36f   : > { %11352 = vmatprep.subr.bf16.mxu1 %v21456_v12  ;;  %v21470_v8 = vpack.c.bf16 %v21333_v35, %v21469_v33  ;;  %v21471_v12 = vpack.c.bf16 %v21345_v13, %v21295_v34 }
 0x370   : > { %10778 = vmatpush1.bf16.msra.mxu0 %v21459_v32  ;;  %v21472_v32 = vpack.c.bf16 %v21343_v30, %v21339_v28 }
 0x371   : > { %10780 = vmatprep.subr.bf16.mxu0 %v21462_v41  ;;  %v21473_v41 = vpack.c.bf16 %v21298_v27, %v21297_v55 }
 0x372   : > { %11354 = vmatpush1.bf16.msra.mxu1 %v21465_v6  ;;  %v21474_v6 = vpack.c.bf16 %v21300_v63, %v21299_v22 }
 0x373   : > { %11356 = vmatprep.subr.bf16.mxu1 %v21468_v50  ;;  %v21475_v50 = vpack.c.bf16 %v21304_v21, %v21303_v1  ;;  %v21481_v21 = vld [vmem:[#allocation87_spill] sm:$0xff] }
 0x374   : > { %10782 = vmatpush1.bf16.msra.mxu0 %v21470_v8  ;;  %v21476_v8 = vpack.c.bf16 %v21347_v49, %v21301_v2  ;;  %v21483_v49 = vld [vmem:[#allocation88_spill] sm:$0xff] }
 0x375   : > { %10784 = vmatprep.subr.bf16.mxu0 %v21471_v12  ;;  %v21477_v12 = vpack.c.bf16 %v21348_v9, %v21305_v5 }
 0x376   : > { %11358 = vmatpush1.bf16.msra.mxu1 %v21472_v32  ;;  %v21478_v32 = vpack.c.bf16 %v21308_v16, %v21307_v53  ;;  %v21486_v16 = vld [vmem:[#allocation139_spill] sm:$0xff]  ;;  %v21552_v53 = vld [vmem:[#allocation58_spill] sm:$0xff] }
 0x377   : > { %11360 = vmatprep.subr.bf16.mxu1 %v21473_v41  ;;  %v21479_v41 = vld [vmem:[#allocation79_spill] sm:$0xff] }
 0x378   : > { %10786 = vmatpush1.bf16.msra.mxu0 %v21474_v6  ;;  %v21480_v6 = vpack.c.bf16 %v16092_v26, %v21309_v58  ;;  %v21491_v26 = vld [vmem:[#allocation180_spill] sm:$0xff]  ;;  %v21493_v58 = vld [vmem:[#allocation6_spill] sm:$0xff] }
 0x379   : > { %10788 = vmatprep.subr.bf16.mxu0 %v21475_v50  ;;  %v21482_v50 = vld [vmem:[#allocation196_spill] sm:$0xff] }
 0x37a   : > { %11362 = vmatpush1.bf16.msra.mxu1 %v21476_v8  ;;  %v21484_v8 = vld [vmem:[#allocation199_spill] sm:$0xff] }
 0x37b   : > { %11364 = vmatprep.subr.bf16.mxu1 %v21477_v12  ;;  %v21485_v12 = vld [vmem:[#allocation161_spill] sm:$0xff] }
 0x37c   : > { %10790 = vmatpush1.bf16.msra.mxu0 %v21478_v32  ;;  %v21487_v32 = vld [vmem:[#allocation165_spill] sm:$0xff] }
 0x37d   : > { %10792 = vmatprep.subr.bf16.mxu0 %v21479_v41  ;;  %v21488_v41 = vld [vmem:[#allocation172_spill] sm:$0xff] }
 0x37e   : > { %11366 = vmatpush1.bf16.msra.mxu1 %v21480_v6  ;;  %v21489_v6 = vld [vmem:[#allocation183_spill] sm:$0xff] }
 0x37f   : > { %11368 = vmatprep.subr.bf16.mxu1 %v21481_v21  ;;  %5722 = vmatmul.mubr.f32.vlgmr.msra.gmra.mrb[2].mxu0 %v21482_v50  ;;  %v21490_v21 = vld [vmem:[#allocation173_spill] sm:$0xff] }
 0x380   : > { %10794 = vmatpush1.bf16.msra.mxu0 %v21483_v49  ;;  %5859 = vmatprep.mubr.f32.mxu0 %v21484_v8  ;;  %v21492_v49 = vld [vmem:[#allocation187_spill] sm:$0xff] }
 0x381   : > { %7861 = vmatmul.mubr.f32.vlgmr.msra.gmra.mrb[2].mxu1 %v21482_v50  ;;  %10796 = vmatprep.subr.bf16.mxu0 %v21485_v12  ;;  %v21494_v50 = vld [vmem:[#allocation192_spill] sm:$0xff]  ;;  %v21495_v12 = vld [vmem:[#allocation11_spill] sm:$0xff] }
 0x382   : > { %11370 = vmatpush1.bf16.msra.mxu1 %v21486_v16  ;;  %7998 = vmatprep.mubr.f32.mxu1 %v21484_v8  ;;  %v21496_v16 = vld [vmem:[#allocation26_spill] sm:$0xff]  ;;  %v21497_v8 = vld [vmem:[#allocation41_spill] sm:$0xff] }
 0x383   : > { %11372 = vmatprep.subr.bf16.mxu1 %v21487_v32  ;;  %v21498_v32 = vld [vmem:[#allocation38_spill] sm:$0xff] }
 0x384   : > { %10798 = vmatpush1.bf16.msra.mxu0 %v21488_v41  ;;  %v21499_v41 = vld [vmem:[#allocation47_spill] sm:$0xff] }
 0x385   : > { %10800 = vmatprep.subr.bf16.mxu0 %v21489_v6  ;;  %v21500_v6 = vld [vmem:[#allocation62_spill] sm:$0xff] }
 0x386   : > { %11374 = vmatpush1.bf16.msra.mxu1 %v21490_v21  ;;  %v21501_v21 = vld [vmem:[#allocation78_spill] sm:$0xff] }
 0x387   : > { %11376 = vmatprep.subr.bf16.mxu1 %v21491_v26  ;;  %v21502_v26 = vld [vmem:[#allocation68_spill] sm:$0xff] }
 0x388   : > { %10802 = vmatpush1.bf16.msra.mxu0 %v21492_v49 }
 0x389   : > { %10804 = vmatprep.subr.bf16.mxu0 %v21493_v58 }
 0x38a   : > { %11378 = vmatpush1.bf16.msra.mxu1 %v21494_v50  ;;  %v21505_v50 = vld [vmem:[#allocation83_spill] sm:$0xff] }
 0x38b   : > { %11380 = vmatprep.subr.bf16.mxu1 %v21495_v12 }
 0x38c   : > { %10806 = vmatpush1.bf16.msra.mxu0 %v21496_v16  ;;  %v21507_v16 = vld [vmem:[#allocation98_spill] sm:$0xff] }
 0x38d   : > { %10808 = vmatprep.subr.bf16.mxu0 %v21497_v8 }
 0x38e   : > { %11382 = vmatpush1.bf16.msra.mxu1 %v21498_v32  ;;  %v21509_v32 = vld [vmem:[#allocation114_spill] sm:$0xff] }
 0x38f   : > { %11384 = vmatprep.subr.bf16.mxu1 %v21499_v41  ;;  %v21510_v41 = vld [vmem:[#allocation104_spill] sm:$0xff] }
 0x390   : > { %10810 = vmatpush1.bf16.msra.mxu0 %v21500_v6  ;;  %v21511_v6 = vld [vmem:[#allocation119_spill] sm:$0xff] }
 0x391   : > { %10812 = vmatprep.subr.bf16.mxu0 %v21501_v21  ;;  %v17044_v49 = vpop.f32.mrb[0].mxu0  ;;  %v21512_v21 = vld [vmem:[#allocation134_spill] sm:$0xff] }
 0x392   : > { %11386 = vmatpush1.bf16.msra.mxu1 %v21502_v26  ;;  %21503 = vst [vmem:[#allocation20_spill] sm:$0xff] %v17044_v49  ;;  %v17046_v58 = vpop.f32.mrb[1].mxu0  ;;  %v21513_v26 = vld [vmem:[#allocation150_spill] sm:$0xff] }
 0x393   : > { %21504 = vst [vmem:[#allocation89_spill] sm:$0xff] %v17046_v58  ;;  %11388 = vmatprep.subr.bf16.mxu1 %v21505_v50  ;;  %v17049_v12 = vpop.f32.mrb[0].mxu1  ;;  %v21514_v49 = vld [vmem:[#allocation146_spill] sm:$0xff]  ;;  %v21515_v58 = vld [vmem:[#allocation155_spill] sm:$0xff] }
 0x394   : > { %21506 = vst [vmem:[#allocation159_spill] sm:$0xff] %v17049_v12  ;;  %10814 = vmatpush1.bf16.msra.mxu0 %v21507_v16  ;;  %v17052_v8 = vpop.f32.mrb[1].mxu1  ;;  %v21516_v50 = vld [vmem:[#allocation170_spill] sm:$0xff]  ;;  %v21518_v16 = vld [vmem:[#allocation176_spill] sm:$0xff] }
 0x395   : > { %21508 = vst [vmem:[#allocation99_spill] sm:$0xff] %v17052_v8  ;;  %10816 = vmatprep.subr.bf16.mxu0 %v21509_v32  ;;  %v21517_v12 = vld [vmem:[#allocation186_spill] sm:$0xff]  ;;  %v21519_v8 = vld [vmem:[#allocation149_spill] sm:$0xff] }
 0x396   : > { %11390 = vmatpush1.bf16.msra.mxu1 %v21510_v41  ;;  %v21520_v32 = vld [vmem:[#allocation9_spill] sm:$0xff]  ;;  %v21521_v41 = vld [vmem:[#allocation36_spill] sm:$0xff] }
 0x397   : > { %11392 = vmatprep.subr.bf16.mxu1 %v21511_v6  ;;  %v21522_v6 = vld [vmem:[#allocation30_spill] sm:$0xff] }
 0x398   : > { %10818 = vmatpush1.bf16.msra.mxu0 %v21512_v21  ;;  %v21523_v21 = vld [vmem:[#allocation106_spill] sm:$0xff] }
 0x399   : > { %10820 = vmatprep.subr.bf16.mxu0 %v21513_v26  ;;  %v21524_v26 = vld [vmem:[#allocation112_spill] sm:$0xff] }
 0x39a   : > { %11394 = vmatpush1.bf16.msra.mxu1 %v21514_v49  ;;  %v21525_v49 = vld [vmem:[#allocation127_spill] sm:$0xff] }
 0x39b   : > { %11396 = vmatprep.subr.bf16.mxu1 %v21515_v58  ;;  %v21526_v58 = vld [vmem:[#allocation124_spill] sm:$0xff] }
 0x39c   : > { %10822 = vmatpush1.bf16.msra.mxu0 %v21516_v50  ;;  %v21527_v50 = vld [vmem:[#allocation137_spill] sm:$0xff] }
 0x39d   : > { %10824 = vmatprep.subr.bf16.mxu0 %v21517_v12  ;;  %v21528_v12 = vld [vmem:[#allocation151_spill] sm:$0xff] }
 0x39e   : > { %11398 = vmatpush1.bf16.msra.mxu1 %v21518_v16  ;;  %v21529_v16 = vld [vmem:[#allocation103_spill] sm:$0xff] }
 0x39f   : > { %11400 = vmatprep.subr.bf16.mxu1 %v21519_v8  ;;  %v21530_v8 = vld [vmem:[#allocation100_spill] sm:$0xff] }
 0x3a0   : > { %10826 = vmatpush1.bf16.msra.mxu0 %v21520_v32  ;;  %v21531_v32 = vld [vmem:[#allocation22_spill] sm:$0xff] }
 0x3a1   : > { %10828 = vmatprep.subr.bf16.mxu0 %v21521_v41  ;;  %v21532_v41 = vld [vmem:[#allocation44_spill] sm:$0xff] }
 0x3a2   : > { %11402 = vmatpush1.bf16.msra.mxu1 %v21522_v6  ;;  %v21533_v6 = vld [vmem:[#allocation145_spill] sm:$0xff] }
 0x3a3   : > { %11404 = vmatprep.subr.bf16.mxu1 %v21523_v21  ;;  %v21534_v21 = vld [vmem:[#allocation70_spill] sm:$0xff] }
 0x3a4   : > { %10830 = vmatpush1.bf16.msra.mxu0 %v21524_v26  ;;  %v21535_v26 = vld [vmem:[#allocation16_spill] sm:$0xff] }
 0x3a5   : > { %10832 = vmatprep.subr.bf16.mxu0 %v21525_v49  ;;  %v21536_v49 = vld [vmem:[#allocation52_spill] sm:$0xff] }
 0x3a6   : > { %11406 = vmatpush1.bf16.msra.mxu1 %v21526_v58  ;;  %v21537_v58 = vld [vmem:[#allocation60_spill] sm:$0xff] }
 0x3a7   : > { %11408 = vmatprep.subr.bf16.mxu1 %v21527_v50  ;;  %v21538_v50 = vld [vmem:[#allocation33_spill] sm:$0xff] }
 0x3a8   : > { %10834 = vmatpush1.bf16.msra.mxu0 %v21528_v12  ;;  %v21539_v12 = vld [vmem:[#allocation72_spill] sm:$0xff] }
 0x3a9   : > { %10836 = vmatprep.subr.bf16.mxu0 %v21529_v16  ;;  %v21540_v16 = vld [vmem:[#allocation77_spill] sm:$0xff] }
 0x3aa   : > { %11410 = vmatpush1.bf16.msra.mxu1 %v21530_v8  ;;  %v21541_v8 = vld [vmem:[#allocation130_spill] sm:$0xff] }
 0x3ab   : > { %11412 = vmatprep.subr.bf16.mxu1 %v21531_v32  ;;  %v21542_v32 = vld [vmem:[#allocation121_spill] sm:$0xff] }
 0x3ac   : > { %10838 = vmatpush1.bf16.msra.mxu0 %v21532_v41  ;;  %v21543_v41 = vld [vmem:[#allocation91_spill] sm:$0xff] }
 0x3ad   : > { %10840 = vmatprep.subr.bf16.mxu0 %v21533_v6  ;;  %v21544_v6 = vld [vmem:[#allocation97_spill] sm:$0xff] }
 0x3ae   : > { %11414 = vmatpush1.bf16.msra.mxu1 %v21534_v21  ;;  %v21545_v21 = vld [vmem:[#allocation19_spill] sm:$0xff] }
 0x3af   : > { %11416 = vmatprep.subr.bf16.mxu1 %v21535_v26 }
 0x3b0   : > { %10842 = vmatpush1.bf16.msra.mxu0 %v21536_v49  ;;  %v21546_v49 = vand.u32 4294901760, %v21349_v48  ;;  %v21555_v48 = vand.u32 4294901760, %v21355_v44  ;;  %v21564_v44 = vand.u32 4294901760, %v21363_v47 }
 0x3b1   : > { %10844 = vmatprep.subr.bf16.mxu0 %v21537_v58  ;;  %v21547_v58 = vand.u32 4294901760, %v21350_v54  ;;  %v21557_v54 = vld [vmem:[#allocation204_spill] sm:$0xff] }
 0x3b2   : > { %11418 = vmatpush1.bf16.msra.mxu1 %v21538_v50  ;;  %v21548_v50 = vld [vmem:[#allocation10_spill] sm:$0xff] }
 0x3b3   : > { %11420 = vmatprep.subr.bf16.mxu1 %v21539_v12  ;;  %v10855_v26 = vpack.c.bf16 %v21547_v58, %v21546_v49  ;;  %v21549_v12 = vld [vmem:[#allocation48_spill] sm:$0xff]  ;;  %v21556_v58 = vand.u32 4294901760, %v21356_v57 }
 0x3b4   : > { %10846 = vmatpush1.bf16.msra.mxu0 %v21540_v16  ;;  %v21550_v16 = vand.u32 4294901760, %v21351_v29  ;;  %v21558_v29 = vand.u32 4294901760, %v21357_v40  ;;  %v21566_v40 = vand.u32 4294901760, %v21365_v62 }
 0x3b5   : > { %10848 = vmatprep.subr.bf16.mxu0 %v21541_v8  ;;  %v21551_v8 = vand.u32 4294901760, %v21352_v14  ;;  %v10859_v49 = vpack.c.bf16 %v21556_v58, %v21555_v48  ;;  %v21559_v14 = vand.u32 4294901760, %v21358_v0  ;;  %v21567_v0 = vld [vmem:[#allocation184_spill] sm:$0xff]  ;;  %v21571_v58 = vld [vmem:[#allocation177_spill] sm:$0xff] }
 0x3b6   : > { %11422 = vmatpush1.bf16.msra.mxu1 %v21542_v32 }
 0x3b7   : > { %11424 = vmatprep.subr.bf16.mxu1 %v21543_v41  ;;  %v11431_v32 = vpack.c.bf16 %v21551_v8, %v21550_v16  ;;  %v11433_v16 = vpack.c.bf16 %v21559_v14, %v21558_v29  ;;  %v21560_v8 = vld [vmem:[#allocation198_spill] sm:$0xff]  ;;  %v21575_v14 = vld [vmem:[#allocation185_spill] sm:$0xff] }
 0x3b8   : > { %10850 = vmatpush1.bf16.msra.mxu0 %v21544_v6  ;;  %v21553_v6 = vand.u32 4294901760, %v21353_v24  ;;  %v21561_v24 = vand.u32 4294901760, %v21360_v4  ;;  %v21569_v4 = vld [vmem:[#allocation175_spill] sm:$0xff] }
 0x3b9   : > { %10852 = vmatprep.subr.bf16.mxu0 %v21545_v21  ;;  %v21554_v21 = vand.u32 4294901760, %v21354_v38  ;;  %v21563_v38 = vand.u32 4294901760, %v21362_v19  ;;  %v21573_v19 = vld [vmem:[#allocation181_spill] sm:$0xff] }
 0x3ba   : > { %11426 = vmatpush1.bf16.msra.mxu1 %v21548_v50  ;;  %v21574_v47 = vand.u32 4294901760, %v21573_v19 }
 0x3bb   : > { %11428 = vmatprep.subr.bf16.mxu1 %v21549_v12  ;;  %v10857_v41 = vpack.c.bf16 %v21554_v21, %v21553_v6  ;;  %v21562_v21 = vand.u32 4294901760, %v21361_v11  ;;  %v10861_v57 = vpack.c.bf16 %v21564_v44, %v21563_v38  ;;  %v21565_v6 = vld [vmem:[#allocation195_spill] sm:$0xff]  ;;  %v21570_v11 = vand.u32 4294901760, %v21569_v4 }
 0x3bc   : > { %10854 = vmatpush1.bf16.msra.mxu0 %v21552_v53 }
 0x3bd   : > { %10856 = vmatprep.subr.bf16.mxu0 %v10855_v26  ;;  %v11435_v26 = vpack.c.bf16 %v21562_v21, %v21561_v24  ;;  %v21576_v24 = vand.u32 4294901760, %v21575_v14  ;;  %v21579_v21 = vld [vmem:[#allocation190_spill] sm:$0xff]  ;;  %v21591_v14 = vld [vmem:[#allocation21_spill] sm:$0xff] }
 0x3be   : > { %11430 = vmatpush1.bf16.msra.mxu1 %v21557_v54  ;;  %v21580_v38 = vand.u32 4294901760, %v21579_v21  ;;  %v21595_v21 = vld [vmem:[#allocation29_spill] sm:$0xff] }
 0x3bf   : > { %11432 = vmatprep.subr.bf16.mxu1 %v11431_v32  ;;  %5863 = vmatmul.mubr.f32.vlgmr.msra.gmra.mrb[2].mxu0 %v21560_v8  ;;  %v21568_v32 = vand.u32 4294901760, %v21567_v0  ;;  %v21583_v0 = vld [vmem:[#allocation15_spill] sm:$0xff] }
 0x3c0   : > { %10858 = vmatpush1.bf16.msra.mxu0 %v10857_v41  ;;  %6126 = vmatprep.mubr.f32.mxu0 %v21565_v6  ;;  %v21572_v41 = vand.u32 4294901760, %v21571_v58  ;;  %v21587_v58 = vld [vmem:[#allocation2_spill] sm:$0xff] }
 0x3c1   : > { %8002 = vmatmul.mubr.f32.vlgmr.msra.gmra.mrb[2].mxu1 %v21560_v8  ;;  %10860 = vmatprep.subr.bf16.mxu0 %v10859_v49  ;;  %v10863_v48 = vpack.c.bf16 %v21568_v32, %v21566_v40  ;;  %v11439_v8 = vpack.c.bf16 %v21576_v24, %v21574_v47  ;;  %v21577_v49 = vld [vmem:[#allocation189_spill] sm:$0xff]  ;;  %v21584_v32 = vand.u32 4294901760, %v21583_v0  ;;  %v21592_v24 = vand.u32 4294901760, %v21591_v14  ;;  %v21599_v0 = vld [vmem:[#allocation50_spill] sm:$0xff]  ;;  %v21607_v14 = vld [vmem:[#allocation56_spill] sm:$0xff] }
 0x3c2   : > { %11434 = vmatpush1.bf16.msra.mxu1 %v11433_v16  ;;  %v11437_v29 = vpack.c.bf16 %v21572_v41, %v21570_v11  ;;  %8265 = vmatprep.mubr.f32.mxu1 %v21565_v6  ;;  %v21578_v62 = vand.u32 4294901760, %v21577_v49  ;;  %v21581_v16 = vld [vmem:[#allocation8_spill] sm:$0xff]  ;;  %v21585_v11 = vld [vmem:[#allocation193_spill] sm:$0xff]  ;;  %v21588_v41 = vand.u32 4294901760, %v21587_v58  ;;  %v21603_v58 = vld [vmem:[#allocation35_spill] sm:$0xff] }
 0x3c3   : > { %11436 = vmatprep.subr.bf16.mxu1 %v11435_v26  ;;  %v21582_v40 = vand.u32 4294901760, %v21581_v16  ;;  %v21586_v26 = vand.u32 4294901760, %v21585_v11  ;;  %v21589_v47 = vld [vmem:[#allocation17_spill] sm:$0xff] }
 0x3c4   : > { %10862 = vmatpush1.bf16.msra.mxu0 %v10861_v57  ;;  %v10865_v44 = vpack.c.bf16 %v21580_v38, %v21578_v62  ;;  %v21590_v57 = vand.u32 4294901760, %v21589_v47  ;;  %v21593_v62 = vld [vmem:[#allocation24_spill] sm:$0xff]  ;;  %v21596_v38 = vand.u32 4294901760, %v21595_v21  ;;  %v21611_v21 = vld [vmem:[#allocation66_spill] sm:$0xff] }
 0x3c5   : > { %10864 = vmatprep.subr.bf16.mxu0 %v10863_v48  ;;  %v10867_v4 = vpack.c.bf16 %v21584_v32, %v21582_v40  ;;  %v11441_v19 = vpack.c.bf16 %v21588_v41, %v21586_v26  ;;  %v21594_v48 = vand.u32 4294901760, %v21593_v62  ;;  %v21597_v40 = vld [vmem:[#allocation45_spill] sm:$0xff]  ;;  %v21600_v32 = vand.u32 4294901760, %v21599_v0  ;;  %v21601_v26 = vld [vmem:[#allocation32_spill] sm:$0xff]  ;;  %v21615_v0 = vld [vmem:[#allocation86_spill] sm:$0xff] }
 0x3c6   : > { %11438 = vmatpush1.bf16.msra.mxu1 %v11437_v29  ;;  %v11443_v49 = vpack.c.bf16 %v21592_v24, %v21590_v57  ;;  %v21598_v29 = vand.u32 4294901760, %v21597_v40  ;;  %v21604_v41 = vand.u32 4294901760, %v21603_v58  ;;  %v21605_v57 = vld [vmem:[#allocation54_spill] sm:$0xff]  ;;  %v21608_v24 = vand.u32 4294901760, %v21607_v14  ;;  %v21619_v58 = vld [vmem:[#allocation71_spill] sm:$0xff]  ;;  %v21623_v14 = vld [vmem:[#allocation92_spill] sm:$0xff] }
 0x3c7   : > { %11440 = vmatprep.subr.bf16.mxu1 %v11439_v8  ;;  %v10869_v16 = vpack.c.bf16 %v21596_v38, %v21594_v48  ;;  %v21602_v8 = vand.u32 4294901760, %v21601_v26  ;;  %v21609_v48 = vld [vmem:[#allocation59_spill] sm:$0xff]  ;;  %v21612_v38 = vand.u32 4294901760, %v21611_v21  ;;  %v21627_v21 = vld [vmem:[#allocation102_spill] sm:$0xff] }
 0x3c8   : > { %10866 = vmatpush1.bf16.msra.mxu0 %v10865_v44  ;;  %v10871_v11 = vpack.c.bf16 %v21600_v32, %v21598_v29  ;;  %v21606_v44 = vand.u32 4294901760, %v21605_v57  ;;  %v21613_v29 = vld [vmem:[#allocation80_spill] sm:$0xff]  ;;  %v21616_v32 = vand.u32 4294901760, %v21615_v0  ;;  %v21631_v0 = vld [vmem:[#allocation122_spill] sm:$0xff] }
 0x3c9   : > { %10868 = vmatprep.subr.bf16.mxu0 %v10867_v4  ;;  %v11445_v47 = vpack.c.bf16 %v21604_v41, %v21602_v8  ;;  %v21610_v4 = vand.u32 4294901760, %v21609_v48  ;;  %v21617_v8 = vld [vmem:[#allocation74_spill] sm:$0xff]  ;;  %v21620_v41 = vand.u32 4294901760, %v21619_v58  ;;  %v21635_v58 = vld [vmem:[#allocation107_spill] sm:$0xff] }
 0x3ca   : > { %11442 = vmatpush1.bf16.msra.mxu1 %v11441_v19  ;;  %v11447_v62 = vpack.c.bf16 %v21608_v24, %v21606_v44  ;;  %v21614_v19 = vand.u32 4294901760, %v21613_v29  ;;  %v21621_v44 = vld [vmem:[#allocation90_spill] sm:$0xff]  ;;  %v21624_v24 = vand.u32 4294901760, %v21623_v14  ;;  %v21639_v14 = vld [vmem:[#allocation128_spill] sm:$0xff] }
 0x3cb   : > { %11444 = vmatprep.subr.bf16.mxu1 %v11443_v49  ;;  %v10873_v40 = vpack.c.bf16 %v21612_v38, %v21610_v4  ;;  %v21618_v49 = vand.u32 4294901760, %v21617_v8  ;;  %v21625_v4 = vld [vmem:[#allocation95_spill] sm:$0xff]  ;;  %v21628_v38 = vand.u32 4294901760, %v21627_v21  ;;  %v21643_v21 = vld [vmem:[#allocation138_spill] sm:$0xff] }
 0x3cc   : > { %10870 = vmatpush1.bf16.msra.mxu0 %v10869_v16  ;;  %v10875_v26 = vpack.c.bf16 %v21616_v32, %v21614_v19  ;;  %v21622_v16 = vand.u32 4294901760, %v21621_v44  ;;  %v21629_v19 = vld [vmem:[#allocation116_spill] sm:$0xff]  ;;  %v21632_v32 = vand.u32 4294901760, %v21631_v0  ;;  %v21647_v0 = vld [vmem:[#allocation158_spill] sm:$0xff] }
 0x3cd   : > { %10872 = vmatprep.subr.bf16.mxu0 %v10871_v11  ;;  %v11449_v57 = vpack.c.bf16 %v21620_v41, %v21618_v49  ;;  %v21626_v11 = vand.u32 4294901760, %v21625_v4  ;;  %v21633_v49 = vld [vmem:[#allocation110_spill] sm:$0xff]  ;;  %v21636_v41 = vand.u32 4294901760, %v21635_v58 }
 0x3ce   : > { %11446 = vmatpush1.bf16.msra.mxu1 %v11445_v47  ;;  %v11451_v48 = vpack.c.bf16 %v21624_v24, %v21622_v16  ;;  %v21630_v47 = vand.u32 4294901760, %v21629_v19  ;;  %v21637_v16 = vld [vmem:[#allocation126_spill] sm:$0xff]  ;;  %v21640_v24 = vand.u32 4294901760, %v21639_v14 }
 0x3cf   : > { %11448 = vmatprep.subr.bf16.mxu1 %v11447_v62  ;;  %v10877_v29 = vpack.c.bf16 %v21628_v38, %v21626_v11  ;;  %v21634_v62 = vand.u32 4294901760, %v21633_v49  ;;  %v21641_v11 = vld [vmem:[#allocation131_spill] sm:$0xff]  ;;  %v21644_v38 = vand.u32 4294901760, %v21643_v21 }
 0x3d0   : > { %10874 = vmatpush1.bf16.msra.mxu0 %v10873_v40  ;;  %v10879_v8 = vpack.c.bf16 %v21632_v32, %v21630_v47  ;;  %v21638_v40 = vand.u32 4294901760, %v21637_v16  ;;  %v21645_v47 = vld [vmem:[#allocation152_spill] sm:$0xff]  ;;  %v21648_v32 = vand.u32 4294901760, %v21647_v0  ;;  %v21663_v0 = vld [vmem:[#allocation182_spill] sm:$0xff] }
 0x3d1   : > { %10876 = vmatprep.subr.bf16.mxu0 %v10875_v26  ;;  %v11453_v44 = vpack.c.bf16 %v21636_v41, %v21634_v62  ;;  %v21642_v26 = vand.u32 4294901760, %v21641_v11  ;;  %v21650_v62 = vld [vmem:[#allocation143_spill] sm:$0xff]  ;;  %v21653_v16 = vld [vmem:[#allocation164_spill] sm:$0xff]  ;;  %v21657_v11 = vld [vmem:[#allocation174_spill] sm:$0xff] }
 0x3d2   : > { %11450 = vmatpush1.bf16.msra.mxu1 %v11449_v57  ;;  %v11455_v4 = vpack.c.bf16 %v21640_v24, %v21638_v40  ;;  %v21646_v57 = vand.u32 4294901760, %v21645_v47  ;;  %v21651_v58 = vand.u32 4294901760, %v21650_v62  ;;  %v21654_v40 = vand.u32 4294901760, %v21653_v16  ;;  %v21655_v24 = vld [vmem:[#allocation167_spill] sm:$0xff]  ;;  %v21668_v62 = vld [vmem:[#allocation5_spill] sm:$0xff]  ;;  %v21670_v16 = vld [vmem:[#allocation14_spill] sm:$0xff] }
 0x3d3   : > { %11452 = vmatprep.subr.bf16.mxu1 %v11451_v48  ;;  %v10881_v19 = vpack.c.bf16 %v21644_v38, %v21642_v26  ;;  %v21649_v48 = vand.u32 4294901760, %v21407_v56  ;;  %v21658_v26 = vand.u32 4294901760, %v21657_v11  ;;  %v21659_v38 = vld [vmem:[#allocation188_spill] sm:$0xff]  ;;  %v21661_v47 = vld [vmem:[#allocation191_spill] sm:$0xff]  ;;  %v21674_v11 = vld [vmem:[#allocation37_spill] sm:$0xff] }
 0x3d4   : > { %10878 = vmatpush1.bf16.msra.mxu0 %v10877_v29  ;;  %v10883_v49 = vpack.c.bf16 %v21648_v32, %v21646_v57  ;;  %v21652_v29 = vand.u32 4294901760, %v21409_v51  ;;  %v21662_v56 = vand.u32 4294901760, %v21661_v47  ;;  %v21665_v32 = vld [vmem:[#allocation179_spill] sm:$0xff]  ;;  %v21678_v47 = vld [vmem:[#allocation34_spill] sm:$0xff] }
 0x3d5   : > { %10880 = vmatprep.subr.bf16.mxu0 %v10879_v8  ;;  %v11457_v41 = vpack.c.bf16 %v21651_v58, %v21649_v48  ;;  %v21656_v8 = vand.u32 4294901760, %v21655_v24  ;;  %v21666_v51 = vand.u32 4294901760, %v21665_v32  ;;  %v21669_v58 = vand.u32 4294901760, %v21668_v62  ;;  %v21687_v62 = vld [vmem:[#allocation123_spill] sm:$0xff] }
 0x3d6   : > { %11454 = vmatpush1.bf16.msra.mxu1 %v11453_v44  ;;  %v11459_v14 = vpack.c.bf16 %v21654_v40, %v21652_v29  ;;  %v21660_v44 = vand.u32 4294901760, %v21659_v38  ;;  %v21672_v40 = vld [vmem:[#allocation13_spill] sm:$0xff] }
 0x3d7   : > { %11456 = vmatprep.subr.bf16.mxu1 %v11455_v4  ;;  %v10885_v21 = vpack.c.bf16 %v21658_v26, %v21656_v8  ;;  %v21664_v4 = vand.u32 4294901760, %v21663_v0  ;;  %v21673_v24 = vand.u32 4294901760, %v21672_v40  ;;  %v21676_v26 = vld [vmem:[#allocation43_spill] sm:$0xff] }
 0x3d8   : > { %10882 = vmatpush1.bf16.msra.mxu0 %v10881_v19  ;;  %v10887_v57 = vpack.c.bf16 %v21662_v56, %v21660_v44  ;;  %v21667_v19 = vand.u32 4294901760, %v21417_v60  ;;  %v21677_v38 = vand.u32 4294901760, %v21676_v26  ;;  %v21680_v56 = vld [vmem:[#allocation39_spill] sm:$0xff] }
 0x3d9   : > { %10884 = vmatprep.subr.bf16.mxu0 %v10883_v49  ;;  %v11461_v48 = vpack.c.bf16 %v21666_v51, %v21664_v4  ;;  %v21671_v49 = vand.u32 4294901760, %v21670_v16  ;;  %v21681_v60 = vand.u32 4294901760, %v21680_v56  ;;  %v21683_v4 = vld [vmem:[#allocation111_spill] sm:$0xff] }
 0x3da   : > { %11458 = vmatpush1.bf16.msra.mxu1 %v11457_v41  ;;  %v11463_v29 = vpack.c.bf16 %v21669_v58, %v21667_v19  ;;  %v21675_v41 = vand.u32 4294901760, %v21674_v11  ;;  %v21684_v32 = vand.u32 4294901760, %v21683_v4  ;;  %v21685_v19 = vld [vmem:[#allocation115_spill] sm:$0xff]  ;;  %v21688_v58 = vand.u32 4294901760, %v21687_v62 }
 0x3db   : > { %11460 = vmatprep.subr.bf16.mxu1 %v11459_v14  ;;  %v10889_v8 = vpack.c.bf16 %v21673_v24, %v21671_v49  ;;  %v21679_v14 = vand.u32 4294901760, %v21678_v47  ;;  %v21690_v49 = vld [vmem:[#allocation135_spill] sm:$0xff]  ;;  %v21698_v47 = vand.u32 4294901760, %v21446_v15 }
 0x3dc   : > { %10886 = vmatpush1.bf16.msra.mxu0 %v10885_v21  ;;  %v10891_v44 = vpack.c.bf16 %v21677_v38, %v21675_v41  ;;  %v21682_v21 = vand.u32 4294901760, %v21429_v20  ;;  %v21691_v40 = vand.u32 4294901760, %v21690_v49  ;;  %v21693_v20 = vand.u32 4294901760, %v21437_v31  ;;  %v21700_v31 = vld [vmem:[#allocation96_spill] sm:$0xff]  ;;  %v21706_v4 = vld [vmem:[#allocation23_spill] sm:$0xff] }
 0x3dd   : > { %10888 = vmatprep.subr.bf16.mxu0 %v10887_v57  ;;  %v11465_v0 = vpack.c.bf16 %v21681_v60, %v21679_v14  ;;  %v21686_v57 = vand.u32 4294901760, %v21685_v19  ;;  %v21695_v41 = vand.u32 4294901760, %v21440_v39  ;;  %v21696_v38 = vand.u32 4294901760, %v21444_v46  ;;  %v21702_v60 = vld [vmem:[#allocation101_spill] sm:$0xff]  ;;  %v21704_v39 = vld [vmem:[#allocation28_spill] sm:$0xff] }
 0x3de   : > { %11462 = vmatpush1.bf16.msra.mxu1 %v11461_v48  ;;  %v11467_v51 = vpack.c.bf16 %v21684_v32, %v21682_v21  ;;  %v21689_v48 = vand.u32 4294901760, %v21435_v52  ;;  %v21697_v52 = vand.u32 4294901760, %v21443_v36  ;;  %v21701_v56 = vand.u32 4294901760, %v21700_v31  ;;  %v21708_v36 = vld [vmem:[#allocation57_spill] sm:$0xff] }
 0x3df   : > { %11464 = vmatprep.subr.bf16.mxu1 %v11463_v29  ;;  %v10893_v16 = vpack.c.bf16 %v21688_v58, %v21686_v57  ;;  %v21692_v29 = vand.u32 4294901760, %v21438_v7  ;;  %v21699_v7 = vand.u32 4294901760, %v21272_v3  ;;  %v21705_v21 = vand.u32 4294901760, %v21704_v39  ;;  %v21710_v19 = vld [vmem:[#allocation61_spill] sm:$0xff]  ;;  %v21712_v3 = vld [vmem:[#allocation154_spill] sm:$0xff]  ;;  %v21714_v58 = vld [vmem:[#allocation4_spill] sm:$0xff] }
 0x3e0   : > { %10890 = vmatpush1.bf16.msra.mxu0 %v10889_v8  ;;  %v10895_v24 = vpack.c.bf16 %v21691_v40, %v21689_v48  ;;  %v21694_v8 = vand.u32 4294901760, %v21441_v25  ;;  %v21703_v25 = vand.u32 4294901760, %v21702_v60  ;;  %v21707_v46 = vand.u32 4294901760, %v21706_v4  ;;  %v21717_v40 = vld [vmem:[#allocation141_spill] sm:$0xff]  ;;  %v21741_v4 = vld [vmem:[#allocation27_spill] sm:$0xff] }
 0x3e1   : > { %10892 = vmatprep.subr.bf16.mxu0 %v10891_v44  ;;  %v11469_v11 = vpack.c.bf16 %v21693_v20, %v21692_v29  ;;  %v10897_v44 = vpack.c.bf16 %v21697_v52, %v21696_v38  ;;  %v10899_v14 = vpack.c.bf16 %v21699_v7, %v21698_v47  ;;  %v21711_v15 = vand.u32 4294901760, %v21710_v19 }
 0x3e2   : > { %11466 = vmatpush1.bf16.msra.mxu1 %v11465_v0  ;;  %v11471_v26 = vpack.c.bf16 %v21695_v41, %v21694_v8  ;;  %v11473_v0 = vpack.c.bf16 %v21703_v25, %v21701_v56  ;;  %v11475_v32 = vpack.c.bf16 %v21707_v46, %v21705_v21  ;;  %v21713_v62 = vand.u32 4294901760, %v21712_v3  ;;  %v21752_v3 = vld [vmem:[#allocation203_spill] sm:$0xff] }
 0x3e3   : > { %11468 = vmatprep.subr.bf16.mxu1 %v11467_v51  ;;  %v21709_v51 = vand.u32 4294901760, %v21708_v36  ;;  %v21716_v49 = vand.u32 4294901760, %v21277_v45  ;;  %v21719_v20 = vand.u32 4294901760, %v21455_v43  ;;  %v21723_v38 = vand.u32 4294901760, %v21457_v23 }
 0x3e4   : > { %10894 = vmatpush1.bf16.msra.mxu0 %v10893_v16  ;;  %v21715_v16 = vand.u32 4294901760, %v21714_v58  ;;  %v21725_v45 = vand.u32 4294901760, %v21460_v59  ;;  %v21726_v7 = vand.u32 4294901760, %v21464_v37  ;;  %v21727_v43 = vand.u32 4294901760, %v21463_v61 }
 0x3e5   : > { %10896 = vmatprep.subr.bf16.mxu0 %v10895_v24  ;;  %v10901_v57 = vpack.c.bf16 %v21711_v15, %v21709_v51  ;;  %v21718_v24 = vand.u32 4294901760, %v21717_v40  ;;  %v21728_v31 = vand.u32 4294901760, %v21467_v17  ;;  %v21730_v23 = vand.u32 4294901760, %v21469_v33  ;;  %v21750_v15 = vld [vmem:[#allocation202_spill] sm:$0xff]  ;;  %v21760_v40 = vld [vmem:[#allocation161_spill] sm:$0xff] }
 0x3e6   : > { %11470 = vmatpush1.bf16.msra.mxu1 %v11469_v11  ;;  %v10903_v48 = vpack.c.bf16 %v21715_v16, %v21713_v62  ;;  %v21720_v11 = vld [vmem:[#allocation51_spill] sm:$0xff]  ;;  %v21732_v59 = vand.u32 4294901760, %v21295_v34  ;;  %v21733_v37 = vand.u32 4294901760, %v21345_v13  ;;  %v21734_v61 = vand.u32 4294901760, %v21339_v28 }
 0x3e7   : > { %11472 = vmatprep.subr.bf16.mxu1 %v11471_v26  ;;  %v11477_v29 = vpack.c.bf16 %v21718_v24, %v21716_v49  ;;  %v21721_v8 = vand.u32 4294901760, %v21720_v11  ;;  %v21722_v26 = vand.u32 4294901760, %v21458_v42  ;;  %v21729_v42 = vand.u32 4294901760, %v21466_v10  ;;  %v21759_v49 = vld [vmem:[#allocation88_spill] sm:$0xff]  ;;  %v21761_v24 = vld [vmem:[#allocation139_spill] sm:$0xff] }
 0x3e8   : > { %10898 = vmatpush1.bf16.msra.mxu0 %v10897_v44  ;;  %v21724_v44 = vand.u32 4294901760, %v21461_v18  ;;  %v21731_v18 = vand.u32 4294901760, %v21333_v35  ;;  %v10911_v25 = vpack.c.bf16 %v21733_v37, %v21732_v59  ;;  %v21735_v17 = vand.u32 4294901760, %v21343_v30  ;;  %v21764_v11 = vld [vmem:[#allocation183_spill] sm:$0xff]  ;;  %v543_v59 = vld [vmem:[%s18494_s2 + $0x820] sm:$0xff] }
 0x3e9   : > { %10900 = vmatprep.subr.bf16.mxu0 %v10899_v14  ;;  %v11479_v41 = vpack.c.bf16 %v21721_v8, %v21719_v20  ;;  %v10905_v52 = vpack.c.bf16 %v21723_v38, %v21722_v26  ;;  %v11481_v14 = vpack.c.bf16 %v21727_v43, %v21726_v7  ;;  %v11483_v56 = vpack.c.bf16 %v21729_v42, %v21728_v31  ;;  %v21763_v20 = vld [vmem:[#allocation172_spill] sm:$0xff]  ;;  %v21765_v8 = vld [vmem:[#allocation173_spill] sm:$0xff]  ;;  %v21767_v26 = vld [vmem:[#allocation187_spill] sm:$0xff] }
 0x3ea   : > { %11474 = vmatpush1.bf16.msra.mxu1 %v11473_v0  ;;  %v10907_v47 = vpack.c.bf16 %v21725_v45, %v21724_v44  ;;  %v10909_v60 = vpack.c.bf16 %v21731_v18, %v21730_v23  ;;  %v11485_v0 = vpack.c.bf16 %v21735_v17, %v21734_v61  ;;  %v21736_v10 = vand.u32 4294901760, %v21297_v55  ;;  %v21768_v38 = vld [vmem:[#allocation6_spill] sm:$0xff]  ;;  %v21770_v44 = vld [vmem:[#allocation11_spill] sm:$0xff]  ;;  %v546_v23 = vld [vmem:[%s18494_s2 + $0x838] sm:$0xff] }
 0x3eb   : > { %11476 = vmatprep.subr.bf16.mxu1 %v11475_v32  ;;  %v21737_v33 = vand.u32 4294901760, %v21298_v27  ;;  %v21738_v35 = vand.u32 4294901760, %v21299_v22  ;;  %v21739_v34 = vand.u32 4294901760, %v21300_v63  ;;  %v21740_v13 = vand.u32 4294901760, %v21303_v1  ;;  %v21744_v32 = vld [vmem:[#allocation12_spill] sm:$0xff]  ;;  %v21748_v63 = vld [vmem:[#allocation55_spill] sm:$0xff] }
 0x3ec   : > { %10902 = vmatpush1.bf16.msra.mxu0 %v10901_v57  ;;  %v21742_v28 = vand.u32 4294901760, %v21741_v4  ;;  %v21743_v30 = vand.u32 4294901760, %v21301_v2  ;;  %v21745_v55 = vand.u32 4294901760, %v21744_v32  ;;  %v21746_v27 = vand.u32 4294901760, %v21305_v5  ;;  %v21754_v2 = vld [vmem:[#allocation201_spill] sm:$0xff]  ;;  %v21757_v5 = vld [vmem:[#allocation87_spill] sm:$0xff] }
 0x3ed   : > { %10904 = vmatprep.subr.bf16.mxu0 %v10903_v48  ;;  %v11487_v39 = vpack.c.bf16 %v21737_v33, %v21736_v10  ;;  %v10913_v21 = vpack.c.bf16 %v21739_v34, %v21738_v35  ;;  %v21747_v22 = vand.u32 4294901760, %v21348_v9  ;;  %v21749_v19 = vand.u32 4294901760, %v21748_v63  ;;  %v21756_v48 = vld [vmem:[#allocation79_spill] sm:$0xff]  ;;  %v21758_v9 = vld [vmem:[#allocation194_spill] sm:$0xff]  ;;  %v554_v18 = vld [vmem:[%s18494_s2 + $0x878] sm:$0xff] }
 0x3ee   : > { %11478 = vmatpush1.bf16.msra.mxu1 %v11477_v29  ;;  %v10915_v46 = vpack.c.bf16 %v21742_v28, %v21740_v13  ;;  %v11489_v36 = vpack.c.bf16 %v21745_v55, %v21743_v30  ;;  %v21751_v1 = vand.u32 4294901760, %v21750_v15  ;;  %v21753_v62 = vand.u32 4294901760, %v21752_v3  ;;  %v21762_v29 = vld [vmem:[#allocation165_spill] sm:$0xff]  ;;  %v21771_v45 = vld [vmem:[#allocation26_spill] sm:$0xff]  ;;  %v21774_v7 = vld [vmem:[#allocation47_spill] sm:$0xff] }
 0x3ef   : > { %11480 = vmatprep.subr.bf16.mxu1 %v11479_v41  ;;  %v11491_v51 = vpack.c.bf16 %v21747_v22, %v21746_v27  ;;  %v21755_v58 = vand.u32 4294901760, %v21754_v2  ;;  %v21766_v41 = vld [vmem:[#allocation180_spill] sm:$0xff]  ;;  %v21775_v43 = vld [vmem:[#allocation62_spill] sm:$0xff]  ;;  %v544_v31 = vld [vmem:[%s18494_s2 + $0x828] sm:$0xff]  ;;  %v8414_v35 = vand.u32 4294901760, %v554_v18 }
 0x3f0   : > { %10906 = vmatpush1.bf16.msra.mxu0 %v10905_v52  ;;  %v10917_v57 = vpack.c.bf16 %v21751_v1, %v21749_v19  ;;  %v21769_v52 = vld [vmem:[#allocation192_spill] sm:$0xff]  ;;  %v552_v42 = vld [vmem:[%s18494_s2 + $0x868] sm:$0xff]  ;;  %v551_v37 = vld [vmem:[%s18494_s2 + $0x860] sm:$0xff]  ;;  %v6271_v61 = vand.u32 4294901760, %v544_v31 }
 0x3f1   : > { %10908 = vmatprep.subr.bf16.mxu0 %v10907_v47  ;;  %v11493_v16 = vpack.c.bf16 %v21755_v58, %v21753_v62  ;;  %v21773_v47 = vld [vmem:[#allocation38_spill] sm:$0xff]  ;;  %v6275_v17 = vand.u32 4294901760, %v552_v42  ;;  %v553_v10 = vld [vmem:[%s18494_s2 + $0x870] sm:$0xff]  ;;  %v6277_v13 = vand.u32 4294901760, %v551_v37  ;;  %v560_v4 = vld [vmem:[%s18494_s2 + $0x8a8] sm:$0xff] }
 0x3f2   : > { %11482 = vmatpush1.bf16.msra.mxu1 %v11481_v14  ;;  %v21776_v14 = vld [vmem:[#allocation78_spill] sm:$0xff]  ;;  %v21781_v34 = vld [vmem:[#allocation104_spill] sm:$0xff]  ;;  %v568_v28 = vld [vmem:[%s18494_s2 + $0x8e8] sm:$0xff]  ;;  %v8416_v32 = vand.u32 4294901760, %v553_v10 }
 0x3f3   : > { %11484 = vmatprep.subr.bf16.mxu1 %v11483_v56  ;;  %v21777_v56 = vld [vmem:[#allocation68_spill] sm:$0xff]  ;;  %v21780_v33 = vld [vmem:[#allocation114_spill] sm:$0xff]  ;;  %v562_v55 = vld [vmem:[%s18494_s2 + $0x8b8] sm:$0xff]  ;;  %v17422_v22 = vpack.c.bf16 %v6275_v17, %v6271_v61  ;;  %v17426_v63 = vsub.f32 %v552_v42, %v6275_v17  ;;  %v6283_v3 = vand.u32 4294901760, %v568_v28 }
 0x3f4   : > { %10910 = vmatpush1.bf16.msra.mxu0 %v10909_v60  ;;  %v21778_v60 = vld [vmem:[#allocation83_spill] sm:$0xff]  ;;  %v21783_v27 = vld [vmem:[#allocation134_spill] sm:$0xff] }
 0x3f5   : > { %10912 = vmatprep.subr.bf16.mxu0 %v10911_v25  ;;  %v21779_v25 = vld [vmem:[#allocation98_spill] sm:$0xff]  ;;  %21784 = vst [vmem:[#allocation142_spill] sm:$0xff] %v17422_v22  ;;  %21786 = vst [vmem:[#allocation153_spill] sm:$0xff] %v17426_v63 }
 0x3f6   : > { %11486 = vmatpush1.bf16.msra.mxu1 %v11485_v0  ;;  %v545_v0 = vld [vmem:[%s18494_s2 + $0x830] sm:$0xff]  ;;  %v21787_v19 = vld [vmem:[#allocation150_spill] sm:$0xff] }
 0x3f7   : > { %11488 = vmatprep.subr.bf16.mxu1 %v11487_v39  ;;  %v8410_v39 = vand.u32 4294901760, %v546_v23  ;;  %v8412_v30 = vand.u32 4294901760, %v545_v0  ;;  %v559_v62 = vld [vmem:[%s18494_s2 + $0x8a0] sm:$0xff] }
 0x3f8   : > { %10914 = vmatpush1.bf16.msra.mxu0 %v10913_v21  ;;  %v6273_v21 = vand.u32 4294901760, %v543_v59  ;;  %v567_v2 = vld [vmem:[%s18494_s2 + $0x8e0] sm:$0xff] }
 0x3f9   : > { %10916 = vmatprep.subr.bf16.mxu0 %v10915_v46  ;;  %v21782_v46 = vld [vmem:[#allocation119_spill] sm:$0xff]  ;;  %v17429_v15 = vpack.c.bf16 %v8414_v35, %v8410_v39  ;;  %v17431_v1 = vsub.f32 %v546_v23, %v8410_v39  ;;  %v21790_v58 = vld [vmem:[#allocation146_spill] sm:$0xff]  ;;  %v17485_v23 = vsub.f32 %v568_v28, %v6283_v3 }
 0x3fa   : > { %11490 = vmatpush1.bf16.msra.mxu1 %v11489_v36  ;;  %v570_v36 = vld [vmem:[%s18494_s2 + $0x8f8] sm:$0xff]  ;;  %v21801_v42 = vld [vmem:[#allocation186_spill] sm:$0xff] }
 0x3fb   : > { %11492 = vmatprep.subr.bf16.mxu1 %v11491_v51  ;;  %v17424_v51 = vsub.f32 %v544_v31, %v6271_v61  ;;  %21788 = vst [vmem:[#allocation7_spill] sm:$0xff] %v17429_v15  ;;  %21789 = vst [vmem:[#allocation25_spill] sm:$0xff] %v17431_v1  ;;  %v583_v31 = vld [vmem:[%s18494_s2 + $0x960] sm:$0xff] }
 0x3fc   : > { %10918 = vmatpush1.bf16.msra.mxu0 %v10917_v57  ;;  %v6279_v57 = vand.u32 4294901760, %v560_v4  ;;  %21803 = vst [vmem:[#allocation113_spill] sm:$0xff] %v17485_v23 }
 0x3fd   : > { %10920 = vmatprep.subr.bf16.mxu0 %v21756_v48  ;;  %21785 = vst [vmem:[#allocation144_spill] sm:$0xff] %v17424_v51  ;;  %v17442_v48 = vpack.c.bf16 %v6277_v13, %v6273_v21 }
 0x3fe   : > { %11494 = vmatpush1.bf16.msra.mxu1 %v11493_v16  ;;  %v17440_v16 = vsub.f32 %v554_v18, %v8414_v35 }
 0x3ff   : > { %11496 = vmatprep.subr.bf16.mxu1 %v21757_v5  ;;  %6128 = vmatmul.mubr.f32.vlgmr.msra.gmra.mrb[2].mxu0 %v21758_v9  ;;  %21792 = vst [vmem:[#allocation205_spill] sm:$0xff] %v17442_v48  ;;  %v8418_v5 = vand.u32 4294901760, %v562_v55 }
 0x400   : > { %10922 = vmatpush1.bf16.msra.mxu0 %v21759_v49  ;;  %6263 = vmatprep.mubr.f32.mxu0 %v21565_v6  ;;  %21791 = vst [vmem:[#allocation42_spill] sm:$0xff] %v17440_v16  ;;  %v8422_v49 = vand.u32 4294901760, %v570_v36 }
 0x401   : > { %8267 = vmatmul.mubr.f32.vlgmr.msra.gmra.mrb[2].mxu1 %v21758_v9  ;;  %10924 = vmatprep.subr.bf16.mxu0 %v21760_v40  ;;  %v561_v40 = vld [vmem:[%s18494_s2 + $0x8b0] sm:$0xff] }
 0x402   : > { %11498 = vmatpush1.bf16.msra.mxu1 %v21761_v24  ;;  %8402 = vmatprep.mubr.f32.mxu1 %v21565_v6  ;;  %v21772_v6 = vld [vmem:[#allocation41_spill] sm:$0xff]  ;;  %v569_v24 = vld [vmem:[%s18494_s2 + $0x8f0] sm:$0xff]  ;;  %v8420_v18 = vand.u32 4294901760, %v561_v40 }
 0x403   : > { %11500 = vmatprep.subr.bf16.mxu1 %v21762_v29  ;;  %v21793_v29 = vld [vmem:[#allocation155_spill] sm:$0xff] }
 0x404   : > { %10926 = vmatpush1.bf16.msra.mxu0 %v21763_v20  ;;  %v17451_v20 = vsub.f32 %v543_v59, %v6273_v21  ;;  %v21804_v59 = vld [vmem:[#allocation176_spill] sm:$0xff]  ;;  %v6293_v21 = vand.u32 4294901760, %v583_v31 }
 0x405   : > { %10928 = vmatprep.subr.bf16.mxu0 %v21764_v11  ;;  %v17453_v11 = vsub.f32 %v551_v37, %v6277_v13  ;;  %v17488_v37 = vpack.c.bf16 %v8422_v49, %v8418_v5  ;;  %v21808_v13 = vld [vmem:[#allocation9_spill] sm:$0xff] }
 0x406   : > { %11502 = vmatpush1.bf16.msra.mxu1 %v21765_v8  ;;  %21794 = vst [vmem:[#allocation206_spill] sm:$0xff] %v17451_v20  ;;  %v17455_v8 = vpack.c.bf16 %v8416_v32, %v8412_v30 }
 0x407   : > { %11504 = vmatprep.subr.bf16.mxu1 %v21766_v41  ;;  %21795 = vst [vmem:[#allocation208_spill] sm:$0xff] %v17453_v11  ;;  %v17457_v41 = vsub.f32 %v545_v0, %v8412_v30  ;;  %21805 = vst [vmem:[#allocation212_spill] sm:$0xff] %v17488_v37  ;;  %v577_v0 = vld [vmem:[%s18494_s2 + $0x930] sm:$0xff] }
 0x408   : > { %10930 = vmatpush1.bf16.msra.mxu0 %v21767_v26  ;;  %21796 = vst [vmem:[#allocation207_spill] sm:$0xff] %v17455_v8  ;;  %v576_v26 = vld [vmem:[%s18494_s2 + $0x928] sm:$0xff] }
 0x409   : > { %10932 = vmatprep.subr.bf16.mxu0 %v21768_v38  ;;  %21797 = vst [vmem:[#allocation209_spill] sm:$0xff] %v17457_v41  ;;  %v584_v38 = vld [vmem:[%s18494_s2 + $0x968] sm:$0xff]  ;;  %v6287_v61 = vand.u32 4294901760, %v576_v26 }
 0x40a   : > { %11506 = vmatpush1.bf16.msra.mxu1 %v21769_v52  ;;  %v578_v52 = vld [vmem:[%s18494_s2 + $0x938] sm:$0xff]  ;;  %v6291_v17 = vand.u32 4294901760, %v584_v38 }
 0x40b   : > { %11508 = vmatprep.subr.bf16.mxu1 %v21770_v44  ;;  %v21798_v44 = vld [vmem:[#allocation170_spill] sm:$0xff]  ;;  %v8426_v39 = vand.u32 4294901760, %v578_v52 }
 0x40c   : > { %10934 = vmatpush1.bf16.msra.mxu0 %v21771_v45  ;;  %v17469_v45 = vsub.f32 %v553_v10, %v8416_v32  ;;  %v585_v10 = vld [vmem:[%s18494_s2 + $0x970] sm:$0xff]  ;;  %v592_v32 = vld [vmem:[%s18494_s2 + $0x9a8] sm:$0xff] }
 0x40d   : > { %10936 = vmatprep.subr.bf16.mxu0 %v21772_v6  ;;  %v17471_v6 = vsub.f32 %v560_v4, %v6279_v57  ;;  %v17500_v4 = vsub.f32 %v570_v36, %v8422_v49  ;;  %v600_v36 = vld [vmem:[%s18494_s2 + $0x9e8] sm:$0xff]  ;;  %v17528_v49 = vpack.c.bf16 %v6291_v17, %v6287_v61 }
 0x40e   : > { %11510 = vmatpush1.bf16.msra.mxu1 %v21773_v47  ;;  %21799 = vst [vmem:[#allocation210_spill] sm:$0xff] %v17469_v45  ;;  %v6281_v47 = vand.u32 4294901760, %v559_v62 }
 0x40f   : > { %11512 = vmatprep.subr.bf16.mxu1 %v21774_v7  ;;  %21800 = vst [vmem:[#allocation211_spill] sm:$0xff] %v17471_v6  ;;  %v6285_v7 = vand.u32 4294901760, %v567_v2  ;;  %21809 = vst [vmem:[#allocation215_spill] sm:$0xff] %v17500_v4 }
 0x410   : > { %10938 = vmatpush1.bf16.msra.mxu0 %v21775_v43  ;;  %v586_v43 = vld [vmem:[%s18494_s2 + $0x978] sm:$0xff]  ;;  %21818 = vst [vmem:[#allocation82_spill] sm:$0xff] %v17528_v49 }
 0x411   : > { %10940 = vmatprep.subr.bf16.mxu0 %v21776_v14  ;;  %v575_v14 = vld [vmem:[%s18494_s2 + $0x920] sm:$0xff]  ;;  %v8430_v35 = vand.u32 4294901760, %v586_v43  ;;  %v17502_v28 = vpack.c.bf16 %v6285_v7, %v6281_v47  ;;  %v17506_v30 = vsub.f32 %v567_v2, %v6285_v7  ;;  %v602_v2 = vld [vmem:[%s18494_s2 + $0x9f8] sm:$0xff] }
 0x412   : > { %11514 = vmatpush1.bf16.msra.mxu1 %v21777_v56  ;;  %v17483_v56 = vpack.c.bf16 %v6283_v3, %v6279_v57  ;;  %v8428_v57 = vand.u32 4294901760, %v577_v0  ;;  %v8432_v3 = vand.u32 4294901760, %v585_v10 }
 0x413   : > { %11516 = vmatprep.subr.bf16.mxu1 %v21778_v60  ;;  %v8424_v60 = vand.u32 4294901760, %v569_v24  ;;  %21810 = vst [vmem:[#allocation117_spill] sm:$0xff] %v17502_v28  ;;  %21812 = vst [vmem:[#allocation125_spill] sm:$0xff] %v17506_v30  ;;  %v17538_v7 = vpack.c.bf16 %v8430_v35, %v8426_v39 }
 0x414   : > { %10942 = vmatpush1.bf16.msra.mxu0 %v21779_v25  ;;  %21802 = vst [vmem:[#allocation200_spill] sm:$0xff] %v17483_v56  ;;  %v17490_v25 = vsub.f32 %v562_v55, %v8418_v5  ;;  %v21813_v55 = vld [vmem:[#allocation36_spill] sm:$0xff] }
 0x415   : > { %10944 = vmatprep.subr.bf16.mxu0 %v21780_v33  ;;  %v21807_v33 = vld [vmem:[#allocation149_spill] sm:$0xff]  ;;  %v17526_v5 = vsub.f32 %v569_v24, %v8424_v60  ;;  %21822 = vst [vmem:[#allocation132_spill] sm:$0xff] %v17538_v7 }
 0x416   : > { %11518 = vmatpush1.bf16.msra.mxu1 %v21781_v34  ;;  %21806 = vst [vmem:[#allocation213_spill] sm:$0xff] %v17490_v25  ;;  %v6289_v34 = vand.u32 4294901760, %v575_v14 }
 0x417   : > { %11520 = vmatprep.subr.bf16.mxu1 %v21782_v46  ;;  %v17504_v46 = vsub.f32 %v559_v62, %v6281_v47  ;;  %v594_v62 = vld [vmem:[%s18494_s2 + $0x9b8] sm:$0xff]  ;;  %21817 = vst [vmem:[#allocation81_spill] sm:$0xff] %v17526_v5  ;;  %v21821_v47 = vld [vmem:[#allocation106_spill] sm:$0xff] }
 0x418   : > { %10946 = vmatpush1.bf16.msra.mxu0 %v21783_v27  ;;  %v17512_v27 = vpack.c.bf16 %v8424_v60, %v8420_v18  ;;  %v17544_v24 = vpack.c.bf16 %v6293_v21, %v6289_v34  ;;  %v601_v60 = vld [vmem:[%s18494_s2 + $0x9f0] sm:$0xff] }
 0x419   : > { %10948 = vmatprep.subr.bf16.mxu0 %v21787_v19  ;;  %21811 = vst [vmem:[#allocation214_spill] sm:$0xff] %v17504_v46  ;;  %v17514_v19 = vsub.f32 %v561_v40, %v8420_v18  ;;  %v17530_v40 = vsub.f32 %v576_v26, %v6287_v61  ;;  %v17542_v18 = vsub.f32 %v586_v43, %v8430_v35  ;;  %v599_v26 = vld [vmem:[%s18494_s2 + $0x9e0] sm:$0xff]  ;;  %v6299_v61 = vand.u32 4294901760, %v600_v36  ;;  %v21827_v35 = vld [vmem:[#allocation127_spill] sm:$0xff] }
 0x41a   : > { %11522 = vmatpush1.bf16.msra.mxu1 %v21790_v58  ;;  %21814 = vst [vmem:[#allocation148_spill] sm:$0xff] %v17512_v27  ;;  %v21816_v58 = vld [vmem:[#allocation30_spill] sm:$0xff]  ;;  %21825 = vst [vmem:[#allocation163_spill] sm:$0xff] %v17544_v24  ;;  %v8434_v43 = vand.u32 4294901760, %v594_v62 }
 0x41b   : > { %11524 = vmatprep.subr.bf16.mxu1 %v21793_v29  ;;  %21815 = vst [vmem:[#allocation53_spill] sm:$0xff] %v17514_v19  ;;  %21819 = vst [vmem:[#allocation85_spill] sm:$0xff] %v17530_v40  ;;  %v17532_v29 = vsub.f32 %v584_v38, %v6291_v17  ;;  %v593_v38 = vld [vmem:[%s18494_s2 + $0x9b0] sm:$0xff]  ;;  %v8438_v17 = vand.u32 4294901760, %v602_v2  ;;  %v6301_v40 = vand.u32 4294901760, %v599_v26 }
 0x41c   : > { %10950 = vmatpush1.bf16.msra.mxu0 %v21798_v44  ;;  %v591_v44 = vld [vmem:[%s18494_s2 + $0x9a0] sm:$0xff]  ;;  %21824 = vst [vmem:[#allocation157_spill] sm:$0xff] %v17542_v18  ;;  %v17570_v18 = vsub.f32 %v577_v0, %v8428_v57 }
 0x41d   : > { %10952 = vmatprep.subr.bf16.mxu0 %v21801_v42  ;;  %21820 = vst [vmem:[#allocation136_spill] sm:$0xff] %v17532_v29  ;;  %v17540_v42 = vsub.f32 %v578_v52, %v8426_v39  ;;  %v6295_v52 = vand.u32 4294901760, %v592_v32  ;;  %v616_v39 = vld [vmem:[%s18494_s2 + $0xa68] sm:$0xff] }
 0x41e   : > { %11526 = vmatpush1.bf16.msra.mxu1 %v21804_v59  ;;  %v21826_v59 = vld [vmem:[#allocation112_spill] sm:$0xff]  ;;  %21832 = vst [vmem:[#allocation171_spill] sm:$0xff] %v17570_v18  ;;  %v6307_v0 = vand.u32 4294901760, %v616_v39 }
 0x41f   : > { %11528 = vmatprep.subr.bf16.mxu1 %v21807_v33  ;;  %21823 = vst [vmem:[#allocation133_spill] sm:$0xff] %v17540_v42  ;;  %v608_v33 = vld [vmem:[%s18494_s2 + $0xa28] sm:$0xff]  ;;  %v17572_v42 = vsub.f32 %v585_v10, %v8432_v3  ;;  %v17574_v29 = vsub.f32 %v592_v32, %v6295_v52  ;;  %v607_v10 = vld [vmem:[%s18494_s2 + $0xa20] sm:$0xff]  ;;  %v609_v18 = vld [vmem:[%s18494_s2 + $0xa30] sm:$0xff] }
 0x420   : > { %10954 = vmatpush1.bf16.msra.mxu0 %v21808_v13  ;;  %v17563_v13 = vsub.f32 %v575_v14, %v6289_v34  ;;  %v618_v14 = vld [vmem:[%s18494_s2 + $0xa78] sm:$0xff]  ;;  %v8436_v34 = vand.u32 4294901760, %v593_v38  ;;  %v615_v32 = vld [vmem:[%s18494_s2 + $0xa60] sm:$0xff] }
 0x421   : > { %10956 = vmatprep.subr.bf16.mxu0 %v21813_v55  ;;  %v17565_v55 = vsub.f32 %v583_v31, %v6293_v21  ;;  %21833 = vst [vmem:[#allocation168_spill] sm:$0xff] %v17572_v42  ;;  %21834 = vst [vmem:[#allocation169_spill] sm:$0xff] %v17574_v29  ;;  %v21835_v31 = vld [vmem:[#allocation137_spill] sm:$0xff]  ;;  %v8440_v21 = vand.u32 4294901760, %v601_v60  ;;  %v17592_v29 = vsub.f32 %v600_v36, %v6299_v61  ;;  %v617_v36 = vld [vmem:[%s18494_s2 + $0xa70] sm:$0xff] }
 0x422   : > { %11530 = vmatpush1.bf16.msra.mxu1 %v21816_v58  ;;  %21828 = vst [vmem:[#allocation160_spill] sm:$0xff] %v17563_v13  ;;  %v17567_v58 = vpack.c.bf16 %v8432_v3, %v8428_v57  ;;  %v21836_v57 = vld [vmem:[#allocation151_spill] sm:$0xff]  ;;  %v17590_v3 = vpack.c.bf16 %v6299_v61, %v6295_v52  ;;  %v17594_v42 = vpack.c.bf16 %v8438_v17, %v8434_v43  ;;  %v21844_v61 = vld [vmem:[#allocation100_spill] sm:$0xff] }
 0x423   : > { %11532 = vmatprep.subr.bf16.mxu1 %v21821_v47  ;;  %21829 = vst [vmem:[#allocation156_spill] sm:$0xff] %v17565_v55  ;;  %v6297_v47 = vand.u32 4294901760, %v591_v44  ;;  %21838 = vst [vmem:[#allocation178_spill] sm:$0xff] %v17592_v29  ;;  %v21841_v55 = vld [vmem:[#allocation103_spill] sm:$0xff]  ;;  %v17602_v13 = vsub.f32 %v602_v2, %v8438_v17  ;;  %v6309_v17 = vand.u32 4294901760, %v615_v32 }
 0x424   : > { %10958 = vmatpush1.bf16.msra.mxu0 %v21826_v59  ;;  %21830 = vst [vmem:[#allocation166_spill] sm:$0xff] %v17567_v58  ;;  %v21831_v59 = vld [vmem:[#allocation124_spill] sm:$0xff]  ;;  %21837 = vst [vmem:[#allocation197_spill] sm:$0xff] %v17590_v3  ;;  %v632_v52 = vld [vmem:[%s18494_s2 + $0xae8] sm:$0xff] }
 0x425   : > { %10960 = vmatprep.subr.bf16.mxu0 %v21827_v35  ;;  %v610_v35 = vld [vmem:[%s18494_s2 + $0xa38] sm:$0xff]  ;;  %21839 = vst [vmem:[#allocation140_spill] sm:$0xff] %v17594_v42  ;;  %21842 = vst [vmem:[#allocation3_spill] sm:$0xff] %v17602_v13  ;;  %v17604_v58 = vsub.f32 %v591_v44, %v6297_v47  ;;  %v17616_v2 = vpack.c.bf16 %v6301_v40, %v6297_v47  ;;  %v17618_v44 = vsub.f32 %v599_v26, %v6301_v40  ;;  %v21852_v26 = vld [vmem:[#allocation44_spill] sm:$0xff] }
 0x426   : > { %11534 = vmatpush1.bf16.msra.mxu1 %v21831_v59  ;;  %v6303_v59 = vand.u32 4294901760, %v608_v33  ;;  %v8442_v5 = vand.u32 4294901760, %v610_v35  ;;  %v17623_v13 = vsub.f32 %v593_v38, %v8436_v34  ;;  %v634_v40 = vld [vmem:[%s18494_s2 + $0xaf8] sm:$0xff]  ;;  %v8444_v47 = vand.u32 4294901760, %v609_v18  ;;  %v623_v38 = vld [vmem:[%s18494_s2 + $0xaa0] sm:$0xff] }
 0x427   : > { %11536 = vmatprep.subr.bf16.mxu1 %v21835_v31  ;;  %v17596_v31 = vsub.f32 %v594_v62, %v8434_v43  ;;  %21843 = vst [vmem:[#allocation108_spill] sm:$0xff] %v17604_v58  ;;  %v624_v62 = vld [vmem:[%s18494_s2 + $0xaa8] sm:$0xff]  ;;  %21845 = vst [vmem:[#allocation129_spill] sm:$0xff] %v17616_v2  ;;  %v6305_v43 = vand.u32 4294901760, %v607_v10  ;;  %v17621_v58 = vpack.c.bf16 %v8440_v21, %v8436_v34  ;;  %v21853_v34 = vld [vmem:[#allocation145_spill] sm:$0xff]  ;;  %v8454_v19 = vand.u32 4294901760, %v634_v40 }
 0x428   : > { %10962 = vmatpush1.bf16.msra.mxu0 %v21836_v57  ;;  %v8446_v57 = vand.u32 4294901760, %v618_v14  ;;  %21846 = vst [vmem:[#allocation120_spill] sm:$0xff] %v17618_v44  ;;  %21849 = vst [vmem:[#allocation147_spill] sm:$0xff] %v17623_v13  ;;  %v17627_v29 = vpack.c.bf16 %v6307_v0, %v6303_v59  ;;  %v6311_v44 = vand.u32 4294901760, %v624_v62 }
 0x429   : > { %21840 = vst [vmem:[#allocation162_spill] sm:$0xff] %v17596_v31  ;;  %10964 = vmatprep.subr.bf16.mxu0 %v21841_v55  ;;  %v21847_v55 = vld [vmem:[#allocation22_spill] sm:$0xff]  ;;  %21848 = vst [vmem:[#allocation118_spill] sm:$0xff] %v17621_v58  ;;  %v17625_v31 = vsub.f32 %v601_v60, %v8440_v21  ;;  %v6315_v58 = vand.u32 4294901760, %v632_v52  ;;  %v17643_v21 = vsub.f32 %v608_v33, %v6303_v59  ;;  %v633_v33 = vld [vmem:[%s18494_s2 + $0xaf0] sm:$0xff] }
 0x42a   : > { %11538 = vmatpush1.bf16.msra.mxu1 %v21844_v61  ;;  %21851 = vst [vmem:[#allocation94_spill] sm:$0xff] %v17627_v29  ;;  %v626_v61 = vld [vmem:[%s18494_s2 + $0xab8] sm:$0xff]  ;;  %v631_v60 = vld [vmem:[%s18494_s2 + $0xae0] sm:$0xff]  ;;  %v17647_v13 = vpack.c.bf16 %v8446_v57, %v8442_v5  ;;  %v17652_v2 = vsub.f32 %v618_v14, %v8446_v57  ;;  %v17654_v42 = vpack.c.bf16 %v6309_v17, %v6305_v43  ;;  %v640_v59 = vld [vmem:[%s18494_s2 + $0xb28] sm:$0xff] }
 0x42b   : > { %11540 = vmatprep.subr.bf16.mxu1 %v21847_v55  ;;  %21850 = vst [vmem:[#allocation84_spill] sm:$0xff] %v17625_v31  ;;  %v8448_v55 = vand.u32 4294901760, %v617_v36  ;;  %21854 = vst [vmem:[#allocation93_spill] sm:$0xff] %v17643_v21  ;;  %v17645_v31 = vsub.f32 %v616_v39, %v6307_v0  ;;  %v21858_v29 = vld [vmem:[#allocation70_spill] sm:$0xff]  ;;  %v8450_v3 = vand.u32 4294901760, %v626_v61  ;;  %v21861_v39 = vld [vmem:[#allocation16_spill] sm:$0xff] }
 0x42c   : > { %10966 = vmatpush1.bf16.msra.mxu0 %v21852_v26  ;;  %21856 = vst [vmem:[#allocation31_spill] sm:$0xff] %v17647_v13  ;;  %v17649_v26 = vsub.f32 %v610_v35, %v8442_v5  ;;  %21859 = vst [vmem:[#allocation49_spill] sm:$0xff] %v17652_v2  ;;  %v17663_v5 = vsub.f32 %v607_v10, %v6305_v43  ;;  %v17665_v35 = vsub.f32 %v615_v32, %v6309_v17  ;;  %v648_v0 = vld [vmem:[%s18494_s2 + $0xb68] sm:$0xff]  ;;  %v21864_v57 = vld [vmem:[#allocation52_spill] sm:$0xff] }
 0x42d   : > { %10968 = vmatprep.subr.bf16.mxu0 %v21853_v34  ;;  %21855 = vst [vmem:[#allocation18_spill] sm:$0xff] %v17645_v31  ;;  %21860 = vst [vmem:[#allocation75_spill] sm:$0xff] %v17654_v42  ;;  %v625_v34 = vld [vmem:[%s18494_s2 + $0xab0] sm:$0xff]  ;;  %v6317_v14 = vand.u32 4294901760, %v631_v60  ;;  %v17674_v2 = vpack.c.bf16 %v8448_v55, %v8444_v47  ;;  %v17678_v10 = vsub.f32 %v617_v36, %v8448_v55  ;;  %v642_v43 = vld [vmem:[%s18494_s2 + $0xb38] sm:$0xff] }
 0x42e   : > { %21857 = vst [vmem:[#allocation63_spill] sm:$0xff] %v17649_v26  ;;  %11542 = vmatpush1.bf16.msra.mxu1 %v21858_v29  ;;  %21862 = vst [vmem:[#allocation69_spill] sm:$0xff] %v17663_v5  ;;  %v6313_v29 = vand.u32 4294901760, %v623_v38  ;;  %v17676_v26 = vsub.f32 %v609_v18, %v8444_v47  ;;  %v17680_v32 = vpack.c.bf16 %v6315_v58, %v6311_v44  ;;  %v650_v17 = vld [vmem:[%s18494_s2 + $0xb78] sm:$0xff]  ;;  %v8452_v18 = vand.u32 4294901760, %v625_v34  ;;  %v639_v36 = vld [vmem:[%s18494_s2 + $0xb20] sm:$0xff] }
 0x42f   : > { %11544 = vmatprep.subr.bf16.mxu1 %v21861_v39  ;;  %21863 = vst [vmem:[#allocation46_spill] sm:$0xff] %v17665_v35  ;;  %21865 = vst [vmem:[#allocation40_spill] sm:$0xff] %v17674_v2  ;;  %v21869_v39 = vld [vmem:[#allocation60_spill] sm:$0xff]  ;;  %v17689_v35 = vsub.f32 %v624_v62, %v6311_v44  ;;  %v8456_v47 = vand.u32 4294901760, %v633_v33  ;;  %v647_v55 = vld [vmem:[%s18494_s2 + $0xb60] sm:$0xff]  ;;  %v17702_v5 = vsub.f32 %v626_v61, %v8450_v3  ;;  %v6319_v62 = vand.u32 4294901760, %v640_v59 }
 0x430   : > { %10970 = vmatpush1.bf16.msra.mxu0 %v21864_v57  ;;  %21866 = vst [vmem:[#allocation105_spill] sm:$0xff] %v17676_v26  ;;  %21867 = vst [vmem:[#allocation73_spill] sm:$0xff] %v17678_v10  ;;  %v17691_v57 = vsub.f32 %v632_v52, %v6315_v58  ;;  %v21872_v10 = vld [vmem:[#allocation33_spill] sm:$0xff]  ;;  %v17700_v26 = vpack.c.bf16 %v8454_v19, %v8450_v3  ;;  %v6323_v44 = vand.u32 4294901760, %v648_v0  ;;  %v641_v58 = vld [vmem:[%s18494_s2 + $0xb30] sm:$0xff]  ;;  %v8462_v31 = vand.u32 4294901760, %v650_v17 }
 0x431   : > { %21868 = vst [vmem:[#allocation109_spill] sm:$0xff] %v17680_v32  ;;  %10972 = vmatprep.subr.bf16.mxu0 %v21869_v39  ;;  %21870 = vst [vmem:[#allocation196_spill] sm:$0xff] %v17689_v35  ;;  %v649_v52 = vld [vmem:[%s18494_s2 + $0xb70] sm:$0xff]  ;;  %v17713_v35 = vpack.c.bf16 %v6317_v14, %v6313_v29  ;;  %v21878_v3 = vld [vmem:[#allocation77_spill] sm:$0xff]  ;;  %v17716_v61 = vsub.f32 %v623_v38, %v6313_v29  ;;  %v6321_v21 = vand.u32 4294901760, %v639_v36  ;;  %v8460_v38 = vand.u32 4294901760, %v641_v58 }
 0x432   : > { %21871 = vst [vmem:[#allocation199_spill] sm:$0xff] %v17691_v57  ;;  %11546 = vmatpush1.bf16.msra.mxu1 %v21872_v10  ;;  %21873 = vst [vmem:[#allocation10_spill] sm:$0xff] %v17700_v26  ;;  %v21875_v39 = vld [vmem:[#allocation72_spill] sm:$0xff]  ;;  %v17711_v57 = vsub.f32 %v634_v40, %v8454_v19  ;;  %v8458_v10 = vand.u32 4294901760, %v642_v43  ;;  %v6325_v26 = vand.u32 4294901760, %v647_v55  ;;  %v656_v2 = vld [vmem:[%s18494_s2 + $0xba8] sm:$0xff]  ;;  %v17752_v13 = vsub.f32 %v650_v17, %v8462_v31 }
 0x433   : > { %21874 = vst [vmem:[#allocation48_spill] sm:$0xff] %v17702_v5  ;;  %11548 = vmatprep.subr.bf16.mxu1 %v21875_v39  ;;  %21877 = vst [vmem:[#allocation204_spill] sm:$0xff] %v17713_v35  ;;  %v17718_v5 = vsub.f32 %v631_v60, %v6317_v14  ;;  %v664_v19 = vld [vmem:[%s18494_s2 + $0xbe8] sm:$0xff]  ;;  %v21881_v40 = vld [vmem:[#allocation130_spill] sm:$0xff]  ;;  %v17727_v39 = vpack.c.bf16 %v8456_v47, %v8452_v18  ;;  %v8464_v29 = vand.u32 4294901760, %v649_v52  ;;  %v6327_v35 = vand.u32 4294901760, %v656_v2 }
 0x434   : > { %21876 = vst [vmem:[#allocation58_spill] sm:$0xff] %v17711_v57  ;;  %10974 = vmatpush1.bf16.msra.mxu0 %v21878_v3  ;;  %21879 = vst [vmem:[#allocation198_spill] sm:$0xff] %v17716_v61  ;;  %v17729_v57 = vsub.f32 %v625_v34, %v8452_v18  ;;  %v658_v60 = vld [vmem:[%s18494_s2 + $0xbb8] sm:$0xff]  ;;  %v17740_v61 = vpack.c.bf16 %v6323_v44, %v6319_v62  ;;  %v17744_v34 = vsub.f32 %v648_v0, %v6323_v44  ;;  %v21886_v18 = vld [vmem:[#allocation91_spill] sm:$0xff] }
 0x435   : > { %21880 = vst [vmem:[#allocation195_spill] sm:$0xff] %v17718_v5  ;;  %10976 = vmatprep.subr.bf16.mxu0 %v21881_v40  ;;  %21882 = vst [vmem:[#allocation184_spill] sm:$0xff] %v17727_v39  ;;  %v666_v14 = vld [vmem:[%s18494_s2 + $0xbf8] sm:$0xff]  ;;  %v17738_v5 = vsub.f32 %v633_v33, %v8456_v47  ;;  %v17742_v40 = vsub.f32 %v640_v59, %v6319_v62  ;;  %v17749_v39 = vsub.f32 %v642_v43, %v8458_v10  ;;  %v21890_v59 = vld [vmem:[#allocation19_spill] sm:$0xff] }
 0x436   : > { %21883 = vst [vmem:[#allocation175_spill] sm:$0xff] %v17729_v57  ;;  %v21884_v3 = vld [vmem:[#allocation121_spill] sm:$0xff]  ;;  %21885 = vst [vmem:[#allocation177_spill] sm:$0xff] %v17740_v61  ;;  %v17747_v57 = vpack.c.bf16 %v8462_v31, %v8458_v10  ;;  %v6331_v32 = vand.u32 4294901760, %v664_v19  ;;  %v17754_v33 = vpack.c.bf16 %v6325_v26, %v6321_v21  ;;  %v8466_v47 = vand.u32 4294901760, %v658_v60  ;;  %v17773_v31 = vld [vmem:[%s18494_s2 + $0xbe0] sm:$0xff] }
 0x437   : > { %11550 = vmatpush1.bf16.msra.mxu1 %v21884_v3  ;;  %v21888_v42 = vld [vmem:[#allocation97_spill] sm:$0xff]  ;;  %v8470_v3 = vand.u32 4294901760, %v666_v14  ;;  %v17757_v0 = vsub.f32 %v639_v36, %v6321_v21  ;;  %v17759_v62 = vsub.f32 %v647_v55, %v6325_v26  ;;  %v17761_v44 = vpack.c.bf16 %v8464_v29, %v8460_v38 }
 0x438   : > { %11552 = vmatprep.subr.bf16.mxu1 %v21886_v18  ;;  %21887 = vst [vmem:[#allocation181_spill] sm:$0xff] %v17747_v57  ;;  %10978 = vmatpush1.bf16.msra.mxu0 %v21888_v42  ;;  %21889 = vst [vmem:[#allocation185_spill] sm:$0xff] %v17754_v33  ;;  %v19598_v43 = vand.u32 4294901760, %v17424_v51  ;;  %v17768_v42 = vld [vmem:[%s18494_s2 + $0xba0] sm:$0xff]  ;;  %v19599_v26 = vand.u32 4294901760, %v17431_v1  ;;  %v17782_v55 = vsub.f32 %v649_v52, %v8464_v29  ;;  %v19606_v18 = vand.u32 4294901760, %v17453_v11 }
 0x439   : > { %10980 = vmatprep.subr.bf16.mxu0 %v21890_v59  ;;  %21891 = vst [vmem:[#allocation189_spill] sm:$0xff] %v17761_v44  ;;  %v17784_v10 = vpack.c.bf16 %v6331_v32, %v6327_v35  ;;  %v17788_v59 = vsub.f32 %v656_v2, %v6327_v35  ;;  %v17790_v21 = vsub.f32 %v664_v19, %v6331_v32  ;;  %v6333_v52 = vand.u32 4294901760, %v17773_v31  ;;  %v657_v2 = vld [vmem:[%s18494_s2 + $0xbb0] sm:$0xff] }
 0x43a   : > { %21892 = vst [vmem:[#allocation190_spill] sm:$0xff] %v17782_v55  ;;  %v665_v35 = vld [vmem:[%s18494_s2 + $0xbf0] sm:$0xff]  ;;  %v21895_v32 = vand.u32 4294901760, %v17426_v63  ;;  %v21896_v29 = vand.u32 4294901760, %v17440_v16  ;;  %v17823_v17 = vsub.f32 %v658_v60, %v8466_v47  ;;  %v21900_v60 = vand.u32 4294901760, %v17469_v45 }
 0x43b   : > { %11554 = vmatpush1.bf16.msra.mxu1 %v21548_v50  ;;  %v17780_v50 = vsub.f32 %v641_v58, %v8460_v38  ;;  %21893 = vst [vmem:[#allocation8_spill] sm:$0xff] %v17784_v10  ;;  %v6329_v58 = vand.u32 4294901760, %v17768_v42  ;;  %v8521_v38 = vsub.f32 %v17431_v1, %v19599_v26  ;;  %v21947_v1 = vld [vmem:[#allocation109_spill] sm:$0xff] }
 0x43c   : > { %11556 = vmatprep.subr.bf16.mxu1 %v21549_v12  ;;  %10982 = vmatpush1.bf16.msra.mxu0 %v21552_v53  ;;  %v17795_v12 = vpack.c.bf16 %v8470_v3, %v8466_v47  ;;  %v6382_v53 = vsub.f32 %v17424_v51, %v19598_v43  ;;  %v6394_v19 = vsub.f32 %v17426_v63, %v21895_v32  ;;  %v21897_v43 = vand.u32 4294901760, %v17451_v20  ;;  %v21948_v63 = vld [vmem:[#allocation120_spill] sm:$0xff] }
 0x43d   : > { %10984 = vmatprep.subr.bf16.mxu0 %v17422_v22  ;;  %v6400_v32 = vsub.f32 %v17453_v11, %v19606_v18  ;;  %v8539_v47 = vsub.f32 %v17469_v45, %v21900_v60  ;;  %v17843_v22 = vpack.c.bf16 %v6333_v52, %v6329_v58  ;;  %v21949_v51 = vld [vmem:[#allocation40_spill] sm:$0xff] }
 0x43e   : > { %21894 = vst [vmem:[#allocation15_spill] sm:$0xff] %v17795_v12  ;;  %v6388_v36 = vsub.f32 %v17451_v20, %v21897_v43  ;;  %v21899_v43 = vand.u32 4294901760, %v17457_v41  ;;  %v6383_v26 = vand.u32 4294901760, %v6382_v53  ;;  %v21943_v20 = vld [vmem:[#allocation75_spill] sm:$0xff] }
 0x43f   : > { %11558 = vmatpush1.bf16.msra.mxu1 %v21557_v54  ;;  %v8533_v54 = vsub.f32 %v17440_v16, %v21896_v29  ;;  %6265 = vmatmul.mubr.f32.vlgmr.msra.gmra.mrb[2].mxu0 %v21758_v9  ;;  %v17831_v29 = vsub.f32 %v666_v14, %v8470_v3  ;;  %v21898_v16 = vmov 0.0   ;;  %21901 = vst [vmem:[#allocation193_spill] sm:$0xff] %v17843_v22  ;;  %v8468_v14 = vand.u32 4294901760, %v657_v2 }
 0x440   : > { %11560 = vmatprep.subr.bf16.mxu1 %v17429_v15  ;;  %10986 = vmatpush1.bf16.msra.mxu0 %v17442_v48  ;;  %v8527_v15 = vsub.f32 %v17457_v41, %v21899_v43  ;;  %v8472_v3 = vand.u32 4294901760, %v665_v35  ;;  %v6395_v48 = vand.u32 4294901760, %v6394_v19  ;;  %v8522_v43 = vand.u32 4294901760, %v8521_v38 }
 0x441   : > { %6367 = vmatprep.mubr.f32.mxu0 %v21898_v16  ;;  %10988 = vmatprep.subr.bf16.mxu0 %v17483_v56  ;;  %v8534_v41 = vand.u32 4294901760, %v8533_v54  ;;  %v6389_v11 = vand.u32 4294901760, %v6388_v36  ;;  %v6401_v60 = vand.u32 4294901760, %v6400_v32  ;;  %v21903_v56 = vand.u32 4294901760, %v17485_v23 }
 0x442   : > { %8404 = vmatmul.mubr.f32.vlgmr.msra.gmra.mrb[2].mxu1 %v21758_v9  ;;  %v21902_v9 = vand.u32 4294901760, %v17471_v6  ;;  %v8528_v19 = vand.u32 4294901760, %v8527_v15  ;;  %v21904_v38 = vand.u32 4294901760, %v17490_v25  ;;  %v17864_v32 = vsub.f32 %v17768_v42, %v6329_v58 }
 0x443   : > { %11562 = vmatpush1.bf16.msra.mxu1 %v17455_v8  ;;  %8506 = vmatprep.mubr.f32.mxu1 %v21898_v16  ;;  %v6418_v45 = vsub.f32 %v17485_v23, %v21903_v56  ;;  %v8540_v8 = vand.u32 4294901760, %v8539_v47  ;;  %v17867_v56 = vsub.f32 %v17773_v31, %v6333_v52  ;;  %v17873_v47 = vsub.f32 %v657_v2, %v8468_v14 }
 0x444   : > { %11564 = vmatprep.subr.bf16.mxu1 %v17488_v37  ;;  %v6406_v18 = vsub.f32 %v17471_v6, %v21902_v9  ;;  %10990 = vmatpush1.bf16.msra.mxu0 %v17502_v28  ;;  %v17859_v36 = vsub.f32 %v17490_v25, %v21904_v38  ;;  %v17869_v9 = vpack.c.bf16 %v8472_v3, %v8468_v14  ;;  %v21909_v52 = vand.u32 4294901760, %v17500_v4  ;;  %v21921_v28 = vld [vmem:[#allocation156_spill] sm:$0xff]  ;;  %v21928_v25 = vld [vmem:[#allocation178_spill] sm:$0xff] }
 0x445   : > { %10992 = vmatprep.subr.bf16.mxu0 %v17528_v49  ;;  %21905 = vst [vmem:[#allocation2_spill] sm:$0xff] %v17867_v56  ;;  %21907 = vst [vmem:[#allocation21_spill] sm:$0xff] %v17873_v47  ;;  %v17875_v38 = vsub.f32 %v665_v35, %v8472_v3  ;;  %v17877_v53 = vpack.c.bf16 %v6395_v48, %v6383_v26  ;;  %v17879_v54 = vpack.c.bf16 %v8534_v41, %v8522_v43  ;;  %v21914_v3 = vld [vmem:[#allocation81_spill] sm:$0xff]  ;;  %v21917_v48 = vld [vmem:[#allocation166_spill] sm:$0xff] }
 0x446   : > { %21906 = vst [vmem:[#allocation17_spill] sm:$0xff] %v17869_v9  ;;  %v17882_v42 = vpack.c.bf16 %v6401_v60, %v6389_v11  ;;  %v6407_v31 = vand.u32 4294901760, %v6406_v18  ;;  %v6419_v58 = vand.u32 4294901760, %v6418_v45  ;;  %v17887_v15 = vsub.f32 %v17500_v4, %v21909_v52  ;;  %v21911_v11 = vld [vmem:[#allocation53_spill] sm:$0xff]  ;;  %v21920_v49 = vld [vmem:[#allocation160_spill] sm:$0xff]  ;;  %v21923_v43 = vld [vmem:[#allocation171_spill] sm:$0xff] }
 0x447   : > { %11566 = vmatpush1.bf16.msra.mxu1 %v17512_v27  ;;  %21908 = vst [vmem:[#allocation24_spill] sm:$0xff] %v17875_v38  ;;  %v17890_v2 = vpack.c.bf16 %v8540_v8, %v8528_v19  ;;  %v21910_v41 = vand.u32 4294901760, %v17504_v46  ;;  %v21912_v18 = vld [vmem:[#allocation197_spill] sm:$0xff]  ;;  %v21913_v45 = vand.u32 4294901760, %v17506_v30  ;;  %v21916_v19 = vld [vmem:[#allocation136_spill] sm:$0xff]  ;;  %v21926_v27 = vand.u32 4294901760, %v21911_v11 }
 0x448   : > { %11568 = vmatprep.subr.bf16.mxu1 %v17538_v7  ;;  %10994 = vmatpush1.bf16.msra.mxu0 %v17544_v24  ;;  %v21915_v60 = vld [vmem:[#allocation85_spill] sm:$0xff]  ;;  %v21922_v37 = vld [vmem:[#allocation140_spill] sm:$0xff] }
 0x449   : > { %v17896_v26 = vsub.f32 %v17504_v46, %v21910_v41  ;;  %10996 = vmatprep.subr.bf16.mxu0 %v21912_v18  ;;  %v6424_v14 = vsub.f32 %v17506_v30, %v21913_v45  ;;  %v21918_v24 = vld [vmem:[#allocation133_spill] sm:$0xff]  ;;  %v17912_v46 = vpack.c.bf16 %v6419_v58, %v6407_v31  ;;  %v8558_v45 = vand.u32 4294901760, %v17887_v15  ;;  %v21924_v30 = vld [vmem:[#allocation168_spill] sm:$0xff]  ;;  %v21929_v31 = vld [vmem:[#allocation94_spill] sm:$0xff] }
 0x44a   : > { %v21919_v41 = vld [vmem:[#allocation157_spill] sm:$0xff]  ;;  %v8551_v35 = vsub.f32 %v21911_v11, %v21926_v27  ;;  %v21930_v15 = vand.u32 4294901760, %v21914_v3  ;;  %v21931_v52 = vand.u32 4294901760, %v21915_v60  ;;  %v21933_v27 = vld [vmem:[#allocation118_spill] sm:$0xff]  ;;  %v21934_v18 = vand.u32 4294901760, %v21918_v24 }
 0x44b   : > { %11570 = vmatpush1.bf16.msra.mxu1 %v21917_v48  ;;  %v21925_v4 = vld [vmem:[#allocation129_spill] sm:$0xff]  ;;  %v6413_v7 = vand.u32 4294901760, %v17896_v26  ;;  %v6425_v58 = vand.u32 4294901760, %v6424_v14  ;;  %v21932_v26 = vand.u32 4294901760, %v21916_v19  ;;  %v21935_v14 = vand.u32 4294901760, %v21919_v41 }
 0x44c   : > { %11572 = vmatprep.subr.bf16.mxu1 %v21922_v37  ;;  %10998 = vmatpush1.bf16.msra.mxu0 %v21925_v4  ;;  %v21927_v48 = vld [vmem:[#allocation169_spill] sm:$0xff]  ;;  %v8563_v8 = vsub.f32 %v21914_v3, %v21930_v15  ;;  %v6430_v4 = vsub.f32 %v21915_v60, %v21931_v52  ;;  %v8569_v37 = vsub.f32 %v21918_v24, %v21934_v18  ;;  %v21936_v15 = vand.u32 4294901760, %v21920_v49  ;;  %v21938_v60 = vld [vmem:[#allocation31_spill] sm:$0xff] }
 0x44d   : > { %11000 = vmatprep.subr.bf16.mxu0 %v21929_v31  ;;  %v6442_v23 = vsub.f32 %v21916_v19, %v21932_v26  ;;  %v8581_v31 = vsub.f32 %v21919_v41, %v21935_v14  ;;  %v21937_v52 = vand.u32 4294901760, %v21921_v28  ;;  %v21939_v26 = vand.u32 4294901760, %v21923_v43  ;;  %v21941_v19 = vld [vmem:[#allocation162_spill] sm:$0xff]  ;;  %v21942_v41 = vld [vmem:[#allocation3_spill] sm:$0xff] }
 0x44e   : > { %v6436_v3 = vsub.f32 %v21920_v49, %v21936_v15  ;;  %v21940_v18 = vand.u32 4294901760, %v21924_v30  ;;  %v8552_v15 = vand.u32 4294901760, %v8551_v35  ;;  %v21944_v49 = vand.u32 4294901760, %v21927_v48 }
 0x44f   : > { %11574 = vmatpush1.bf16.msra.mxu1 %v21933_v27  ;;  %v6448_v11 = vsub.f32 %v21921_v28, %v21937_v52  ;;  %v8575_v27 = vsub.f32 %v21923_v43, %v21939_v26  ;;  %v21946_v26 = vld [vmem:[#allocation108_spill] sm:$0xff]  ;;  %v6443_v14 = vand.u32 4294901760, %v6442_v23  ;;  %v8570_v35 = vand.u32 4294901760, %v8569_v37 }
 0x450   : > { %11576 = vmatprep.subr.bf16.mxu1 %v21938_v60  ;;  %v8587_v24 = vsub.f32 %v21924_v30, %v21940_v18  ;;  %11002 = vmatpush1.bf16.msra.mxu0 %v21943_v20  ;;  %v6454_v52 = vsub.f32 %v21927_v48, %v21944_v49  ;;  %v21945_v60 = vand.u32 4294901760, %v21928_v25  ;;  %v8564_v18 = vand.u32 4294901760, %v8563_v8  ;;  %v21950_v49 = vld [vmem:[#allocation10_spill] sm:$0xff] }
 0x451   : > { %11004 = vmatprep.subr.bf16.mxu0 %v21947_v1  ;;  %v6431_v30 = vand.u32 4294901760, %v6430_v4  ;;  %v8582_v20 = vand.u32 4294901760, %v8581_v31  ;;  %v6437_v38 = vand.u32 4294901760, %v6436_v3  ;;  %v6449_v47 = vand.u32 4294901760, %v6448_v11  ;;  %v21953_v4 = vld [vmem:[#allocation204_spill] sm:$0xff]  ;;  %v21955_v3 = vld [vmem:[#allocation147_spill] sm:$0xff] }
 0x452   : > { %v6466_v28 = vsub.f32 %v21928_v25, %v21945_v60  ;;  %v8576_v48 = vand.u32 4294901760, %v8575_v27  ;;  %v8588_v56 = vand.u32 4294901760, %v8587_v24  ;;  %v21951_v60 = vand.u32 4294901760, %v21941_v19  ;;  %v21959_v31 = vld [vmem:[#allocation84_spill] sm:$0xff]  ;;  %v21960_v1 = vld [vmem:[#allocation93_spill] sm:$0xff] }
 0x453   : > { %11578 = vmatpush1.bf16.msra.mxu1 %v21949_v51  ;;  %v21952_v8 = vand.u32 4294901760, %v21942_v41  ;;  %v6455_v6 = vand.u32 4294901760, %v6454_v52  ;;  %v21954_v37 = vand.u32 4294901760, %v21946_v26  ;;  %v21956_v24 = vand.u32 4294901760, %v17859_v36  ;;  %v21958_v52 = vld [vmem:[#allocation184_spill] sm:$0xff] }
 0x454   : > { %11580 = vmatprep.subr.bf16.mxu1 %v21950_v49  ;;  %v8593_v43 = vsub.f32 %v21941_v19, %v21951_v60  ;;  %11006 = vmatpush1.bf16.msra.mxu0 %v21953_v4  ;;  %v6467_v51 = vand.u32 4294901760, %v6466_v28  ;;  %v17984_v60 = vpack.c.bf16 %v6425_v58, %v6413_v7  ;;  %v17986_v49 = vpack.c.bf16 %v8564_v18, %v8552_v15 }
 0x455   : > { %v8605_v23 = vsub.f32 %v21942_v41, %v21952_v8  ;;  %v6460_v11 = vsub.f32 %v21946_v26, %v21954_v37  ;;  %11008 = vmatprep.subr.bf16.mxu0 %v17740_v61  ;;  %v17982_v27 = vpack.c.bf16 %v8558_v45, %v21956_v24  ;;  %v21957_v8 = vand.u32 4294901760, %v21948_v63  ;;  %v21967_v24 = vld [vmem:[#allocation105_spill] sm:$0xff] }
 0x456   : > { %v17992_v4 = vpack.c.bf16 %v6443_v14, %v6431_v30  ;;  %v17994_v37 = vpack.c.bf16 %v8582_v20, %v8570_v35  ;;  %v19675_v61 = vand.u32 4294901760, %v21959_v31  ;;  %v19676_v36 = vand.u32 4294901760, %v21960_v1  ;;  %v21962_v35 = vld [vmem:[#allocation18_spill] sm:$0xff] }
 0x457   : > { %v6472_v28 = vsub.f32 %v21948_v63, %v21957_v8  ;;  %11582 = vmatpush1.bf16.msra.mxu1 %v21958_v52  ;;  %v17999_v7 = vpack.c.bf16 %v6449_v47, %v6437_v38  ;;  %v18001_v45 = vpack.c.bf16 %v8588_v56, %v8576_v48  ;;  %v8594_v58 = vand.u32 4294901760, %v8593_v43  ;;  %v21963_v38 = vld [vmem:[#allocation63_spill] sm:$0xff]  ;;  %v21964_v48 = vld [vmem:[#allocation49_spill] sm:$0xff]  ;;  %v21972_v52 = vld [vmem:[#allocation48_spill] sm:$0xff] }
 0x458   : > { %11584 = vmatprep.subr.bf16.mxu1 %v17747_v57  ;;  %v8606_v15 = vand.u32 4294901760, %v8605_v23  ;;  %11010 = vmatpush1.bf16.msra.mxu0 %v17754_v33  ;;  %v18004_v18 = vpack.c.bf16 %v6467_v51, %v6455_v6  ;;  %v6461_v30 = vand.u32 4294901760, %v6460_v11  ;;  %v21961_v20 = vand.u32 4294901760, %v21955_v3  ;;  %v21965_v23 = vld [vmem:[#allocation69_spill] sm:$0xff]  ;;  %v21966_v11 = vld [vmem:[#allocation46_spill] sm:$0xff]  ;;  %v21970_v33 = vld [vmem:[#allocation199_spill] sm:$0xff] }
 0x459   : > { %11012 = vmatprep.subr.bf16.mxu0 %v17784_v10  ;;  %v6473_v47 = vand.u32 4294901760, %v6472_v28  ;;  %v8611_v51 = vsub.f32 %v21959_v31, %v19675_v61  ;;  %v6478_v6 = vsub.f32 %v21960_v1, %v19676_v36  ;;  %v21968_v43 = vld [vmem:[#allocation73_spill] sm:$0xff]  ;;  %v21969_v10 = vld [vmem:[#allocation196_spill] sm:$0xff]  ;;  %v21971_v36 = vand.u32 4294901760, %v21962_v35  ;;  %v21973_v31 = vld [vmem:[#allocation58_spill] sm:$0xff] }
 0x45a   : > { %v18009_v14 = vsub.f32 %v21955_v3, %v21961_v20  ;;  %v18026_v56 = vpack.c.bf16 %v8606_v15, %v8594_v58  ;;  %v21974_v15 = vand.u32 4294901760, %v21963_v38  ;;  %v21976_v8 = vand.u32 4294901760, %v21965_v23  ;;  %v21979_v28 = vld [vmem:[#allocation198_spill] sm:$0xff] }
 0x45b   : > { %11586 = vmatpush1.bf16.msra.mxu1 %v17761_v44  ;;  %v6490_v20 = vsub.f32 %v21962_v35, %v21971_v36  ;;  %v18039_v58 = vpack.c.bf16 %v6473_v47, %v6461_v30  ;;  %v21975_v44 = vand.u32 4294901760, %v21964_v48  ;;  %v21978_v30 = vand.u32 4294901760, %v21967_v24 }
 0x45c   : > { %11588 = vmatprep.subr.bf16.mxu1 %v17795_v12  ;;  %11014 = vmatpush1.bf16.msra.mxu0 %v17843_v22  ;;  %v8600_v61 = vand.u32 4294901760, %v18009_v14  ;;  %v8617_v57 = vsub.f32 %v21963_v38, %v21974_v15  ;;  %v6484_v36 = vsub.f32 %v21965_v23, %v21976_v8  ;;  %v21977_v12 = vand.u32 4294901760, %v21966_v11  ;;  %v21980_v22 = vld [vmem:[#allocation195_spill] sm:$0xff] }
 0x45d   : > { %11016 = vmatprep.subr.bf16.mxu0 %v17877_v53  ;;  %v8629_v14 = vsub.f32 %v21964_v48, %v21975_v44  ;;  %v8623_v47 = vsub.f32 %v21967_v24, %v21978_v30  ;;  %v21981_v44 = vld [vmem:[#allocation76_spill] sm:$0xff]  ;;  %v8612_v48 = vand.u32 4294901760, %v8611_v51  ;;  %v21982_v8 = vand.u32 4294901760, %v21968_v43 }
 0x45e   : > { %v6496_v53 = vsub.f32 %v21966_v11, %v21977_v12  ;;  %v21983_v23 = vand.u32 4294901760, %v21969_v10  ;;  %v21984_v11 = vand.u32 4294901760, %v21970_v33  ;;  %v6479_v38 = vand.u32 4294901760, %v6478_v6 }
 0x45f   : > { %11590 = vmatpush1.bf16.msra.mxu1 %v17869_v9  ;;  %6373 = vmatmul.mubr.f32.vlgmr.msra.gmra.mrb[2].mxu0 %v21981_v44  ;;  %v8635_v9 = vsub.f32 %v21968_v43, %v21982_v8  ;;  %v6491_v15 = vand.u32 4294901760, %v6490_v20  ;;  %v21986_v24 = vand.u32 4294901760, %v21973_v31  ;;  %v6485_v43 = vand.u32 4294901760, %v6484_v36 }
 0x460   : > { %11592 = vmatprep.subr.bf16.mxu1 %v17879_v54  ;;  %v6502_v12 = vsub.f32 %v21969_v10, %v21983_v23  ;;  %v6514_v30 = vsub.f32 %v21970_v33, %v21984_v11  ;;  %11018 = vmatpush1.bf16.msra.mxu0 %v17882_v42  ;;  %v21985_v54 = vand.u32 4294901760, %v21972_v52  ;;  %v8618_v23 = vand.u32 4294901760, %v8617_v57  ;;  %v21987_v42 = vld [vmem:[#allocation175_spill] sm:$0xff] }
 0x461   : > { %v8653_v8 = vsub.f32 %v21973_v31, %v21986_v24  ;;  %6603 = vmatprep.mubr.f32.mxu0 %v21898_v16  ;;  %11020 = vmatprep.subr.bf16.mxu0 %v17912_v46  ;;  %v8630_v11 = vand.u32 4294901760, %v8629_v14  ;;  %v6497_v20 = vand.u32 4294901760, %v6496_v53  ;;  %v21989_v24 = vand.u32 4294901760, %v21980_v22 }
 0x462   : > { %v8641_v51 = vsub.f32 %v21972_v52, %v21985_v54  ;;  %8512 = vmatmul.mubr.f32.vlgmr.msra.gmra.mrb[2].mxu1 %v21981_v44  ;;  %v21988_v54 = vand.u32 4294901760, %v21979_v28  ;;  %v8624_v46 = vand.u32 4294901760, %v8623_v47  ;;  %v8636_v57 = vand.u32 4294901760, %v8635_v9 }
 0x463   : > { %11594 = vmatpush1.bf16.msra.mxu1 %v17890_v2  ;;  %v6520_v31 = vsub.f32 %v21980_v22, %v21989_v24  ;;  %8742 = vmatprep.mubr.f32.mxu1 %v21898_v16  ;;  %v6503_v14 = vand.u32 4294901760, %v6502_v12  ;;  %v6515_v36 = vand.u32 4294901760, %v6514_v30  ;;  %v11605_v2 = vpack.c.bf16 %v8612_v48, %v8600_v61 }
 0x464   : > { %v6508_v52 = vsub.f32 %v21979_v28, %v21988_v54  ;;  %11596 = vmatprep.subr.bf16.mxu1 %v17982_v27  ;;  %11022 = vmatpush1.bf16.msra.mxu0 %v17984_v60  ;;  %v8642_v53 = vand.u32 4294901760, %v8641_v51  ;;  %v8654_v6 = vand.u32 4294901760, %v8653_v8  ;;  %v19709_v54 = vand.u32 4294901760, %v17742_v40 }
 0x465   : > { %11024 = vmatprep.subr.bf16.mxu0 %v17992_v4  ;;  %v11031_v24 = vpack.c.bf16 %v6491_v15, %v6479_v38  ;;  %v11607_v22 = vpack.c.bf16 %v8630_v11, %v8618_v23  ;;  %v21990_v44 = vand.u32 4294901760, %v21987_v42  ;;  %v19703_v27 = vand.u32 4294901760, %v17744_v34 }
 0x466   : > { %v11033_v9 = vpack.c.bf16 %v6497_v20, %v6485_v43  ;;  %v6509_v47 = vand.u32 4294901760, %v6508_v52  ;;  %v6521_v60 = vand.u32 4294901760, %v6520_v31  ;;  %v21991_v61 = vand.u32 4294901760, %v17738_v5 }
 0x467   : > { %v8647_v28 = vsub.f32 %v21987_v42, %v21990_v44  ;;  %11598 = vmatpush1.bf16.msra.mxu1 %v17986_v49  ;;  %v11609_v4 = vpack.c.bf16 %v8636_v57, %v8624_v46  ;;  %v11035_v38 = vpack.c.bf16 %v6515_v36, %v6503_v14  ;;  %v19702_v15 = vand.u32 4294901760, %v17749_v39  ;;  %v21992_v57 = vld [vmem:[#allocation2_spill] sm:$0xff] }
 0x468   : > { %v8659_v48 = vsub.f32 %v17738_v5, %v21991_v61  ;;  %11600 = vmatprep.subr.bf16.mxu1 %v17994_v37  ;;  %v19700_v12 = vand.u32 4294901760, %v17752_v13  ;;  %11026 = vmatpush1.bf16.msra.mxu0 %v17999_v7  ;;  %v11611_v30 = vpack.c.bf16 %v8654_v6, %v8642_v53  ;;  %v6526_v49 = vsub.f32 %v17742_v40, %v19709_v54 }
 0x469   : > { %v19698_v31 = vand.u32 4294901760, %v17757_v0  ;;  %v19694_v52 = vand.u32 4294901760, %v17759_v62  ;;  %11028 = vmatprep.subr.bf16.mxu0 %v18004_v18  ;;  %v8648_v37 = vand.u32 4294901760, %v8647_v28  ;;  %v6538_v43 = vsub.f32 %v17744_v34, %v19703_v27 }
 0x46a   : > { %v19695_v51 = vand.u32 4294901760, %v17788_v59  ;;  %v19696_v7 = vand.u32 4294901760, %v17790_v21  ;;  %v11037_v8 = vpack.c.bf16 %v6521_v60, %v6509_v47  ;;  %v8660_v23 = vand.u32 4294901760, %v8659_v48 }
 0x46b   : > { %11602 = vmatpush1.bf16.msra.mxu1 %v18001_v45  ;;  %v19697_v11 = vand.u32 4294901760, %v17780_v50  ;;  %v19699_v6 = vand.u32 4294901760, %v17782_v55  ;;  %v8665_v18 = vsub.f32 %v17749_v39, %v19702_v15  ;;  %v8677_v28 = vsub.f32 %v17752_v13, %v19700_v12 }
 0x46c   : > { %11604 = vmatprep.subr.bf16.mxu1 %v18026_v56  ;;  %v19701_v20 = vand.u32 4294901760, %v17823_v17  ;;  %v19708_v45 = vand.u32 4294901760, %v17831_v29  ;;  %11030 = vmatpush1.bf16.msra.mxu0 %v18039_v58  ;;  %v6532_v44 = vsub.f32 %v17757_v0, %v19698_v31  ;;  %v6544_v56 = vsub.f32 %v17759_v62, %v19694_v52 }
 0x46d   : > { %v19704_v46 = vand.u32 4294901760, %v17864_v32  ;;  %v19705_v14 = vand.u32 4294901760, %v21992_v57  ;;  %11032 = vmatprep.subr.bf16.mxu0 %v11031_v24  ;;  %v6527_v36 = vand.u32 4294901760, %v6526_v49  ;;  %v6539_v53 = vand.u32 4294901760, %v6538_v43  ;;  %v21993_v24 = vld [vmem:[#allocation21_spill] sm:$0xff]  ;;  %v21994_v49 = vld [vmem:[#allocation24_spill] sm:$0xff] }
 0x46e   : > { %v6550_v47 = vsub.f32 %v17788_v59, %v19695_v51  ;;  %v6562_v58 = vsub.f32 %v17790_v21, %v19696_v7  ;;  %v8671_v60 = vsub.f32 %v17780_v50, %v19697_v11  ;;  %v8683_v61 = vsub.f32 %v17782_v55, %v19699_v6 }
 0x46f   : > { %11606 = vmatpush1.bf16.msra.mxu1 %v11605_v2  ;;  %v19707_v48 = vand.u32 4294901760, %v21993_v24  ;;  %v19706_v43 = vand.u32 4294901760, %v21994_v49  ;;  %v8666_v52 = vand.u32 4294901760, %v8665_v18  ;;  %v8678_v51 = vand.u32 4294901760, %v8677_v28 }
 0x470   : > { %11608 = vmatprep.subr.bf16.mxu1 %v11607_v22  ;;  %v8689_v7 = vsub.f32 %v17823_v17, %v19701_v20  ;;  %v8701_v2 = vsub.f32 %v17831_v29, %v19708_v45  ;;  %11034 = vmatpush1.bf16.msra.mxu0 %v11033_v9  ;;  %v6533_v11 = vand.u32 4294901760, %v6532_v44  ;;  %v6545_v31 = vand.u32 4294901760, %v6544_v56 }
 0x471   : > { %v6556_v6 = vsub.f32 %v17864_v32, %v19704_v46  ;;  %v6568_v22 = vsub.f32 %v21992_v57, %v19705_v14  ;;  %11036 = vmatprep.subr.bf16.mxu0 %v11035_v38  ;;  %v11613_v18 = vpack.c.bf16 %v8660_v23, %v8648_v37  ;;  %v11039_v28 = vpack.c.bf16 %v6539_v53, %v6527_v36 }
 0x472   : > { %v6551_v12 = vand.u32 4294901760, %v6550_v47  ;;  %v6563_v20 = vand.u32 4294901760, %v6562_v58  ;;  %v8672_v15 = vand.u32 4294901760, %v8671_v60  ;;  %v8684_v27 = vand.u32 4294901760, %v8683_v61  ;;  %v21995_v61 = vld [vmem:[#allocation144_spill] sm:$0xff] }
 0x473   : > { %11610 = vmatpush1.bf16.msra.mxu1 %v11609_v4  ;;  %v8695_v9 = vsub.f32 %v21993_v24, %v19707_v48  ;;  %v8707_v44 = vsub.f32 %v21994_v49, %v19706_v43  ;;  %v11615_v56 = vpack.c.bf16 %v8678_v51, %v8666_v52  ;;  %v8690_v46 = vand.u32 4294901760, %v8689_v7  ;;  %v21998_v7 = vld [vmem:[#allocation42_spill] sm:$0xff]  ;;  %v22018_v43 = vld [vmem:[#allocation169_spill] sm:$0xff]  ;;  %v22019_v48 = vld [vmem:[#allocation171_spill] sm:$0xff] }
 0x474   : > { %11612 = vmatprep.subr.bf16.mxu1 %v11611_v30  ;;  %v8702_v14 = vand.u32 4294901760, %v8701_v2  ;;  %11038 = vmatpush1.bf16.msra.mxu0 %v11037_v8  ;;  %v11041_v38 = vpack.c.bf16 %v6545_v31, %v6533_v11  ;;  %v6557_v37 = vand.u32 4294901760, %v6556_v6  ;;  %v6569_v23 = vand.u32 4294901760, %v6568_v22  ;;  %v21996_v30 = vld [vmem:[#allocation153_spill] sm:$0xff]  ;;  %v22000_v11 = vld [vmem:[#allocation208_spill] sm:$0xff] }
 0x475   : > { %11040 = vmatprep.subr.bf16.mxu0 %v11039_v28  ;;  %v11043_v4 = vpack.c.bf16 %v6563_v20, %v6551_v12  ;;  %v11617_v36 = vpack.c.bf16 %v8684_v27, %v8672_v15  ;;  %v8696_v53 = vand.u32 4294901760, %v8695_v9  ;;  %v8708_v47 = vand.u32 4294901760, %v8707_v44  ;;  %v21997_v31 = vld [vmem:[#allocation25_spill] sm:$0xff]  ;;  %v21999_v12 = vld [vmem:[#allocation206_spill] sm:$0xff]  ;;  %v22001_v15 = vld [vmem:[#allocation211_spill] sm:$0xff] }
 0x476   : > { %v11619_v58 = vpack.c.bf16 %v8702_v14, %v8690_v46  ;;  %v11045_v60 = vpack.c.bf16 %v6569_v23, %v6557_v37  ;;  %v11047_v52 = vpack.c.bf16 %v21996_v30, %v21995_v61  ;;  %v11623_v8 = vpack.c.bf16 %v21998_v7, %v21997_v31  ;;  %v22002_v6 = vld [vmem:[#allocation113_spill] sm:$0xff]  ;;  %v22004_v14 = vld [vmem:[#allocation210_spill] sm:$0xff]  ;;  %v22005_v22 = vld [vmem:[#allocation64_spill] sm:$0xff] }
 0x477   : > { %11614 = vmatpush1.bf16.msra.mxu1 %v11613_v18  ;;  %v11621_v51 = vpack.c.bf16 %v8708_v47, %v8696_v53  ;;  %v11049_v27 = vpack.c.bf16 %v22000_v11, %v21999_v12  ;;  %v11051_v20 = vpack.c.bf16 %v22002_v6, %v22001_v15  ;;  %v22003_v46 = vld [vmem:[#allocation209_spill] sm:$0xff]  ;;  %v22007_v28 = vld [vmem:[#allocation215_spill] sm:$0xff]  ;;  %v22008_v44 = vld [vmem:[#allocation214_spill] sm:$0xff]  ;;  %v11635_v54 = vpack.c.bf16 %v21942_v41, %v21941_v19 }
 0x478   : > { %11616 = vmatprep.subr.bf16.mxu1 %v11615_v56  ;;  %11042 = vmatpush1.bf16.msra.mxu0 %v11041_v38  ;;  %v11625_v2 = vpack.c.bf16 %v22004_v14, %v22003_v46  ;;  %v22006_v18 = vld [vmem:[#allocation213_spill] sm:$0xff]  ;;  %v22011_v23 = vld [vmem:[#allocation136_spill] sm:$0xff] }
 0x479   : > { %11044 = vmatprep.subr.bf16.mxu0 %v11043_v4  ;;  %v11627_v9 = vpack.c.bf16 %v22007_v28, %v22006_v18  ;;  %v22009_v56 = vld [vmem:[#allocation125_spill] sm:$0xff] }
 0x47a   : > { %v11053_v38 = vpack.c.bf16 %v22009_v56, %v22008_v44  ;;  %v22010_v37 = vld [vmem:[#allocation85_spill] sm:$0xff] }
 0x47b   : > { %11618 = vmatpush1.bf16.msra.mxu1 %v11617_v36  ;;  %v11055_v4 = vpack.c.bf16 %v22011_v23, %v22010_v37  ;;  %v22012_v36 = vld [vmem:[#allocation53_spill] sm:$0xff] }
 0x47c   : > { %11620 = vmatprep.subr.bf16.mxu1 %v11619_v58  ;;  %11046 = vmatpush1.bf16.msra.mxu0 %v11045_v60  ;;  %v22013_v53 = vld [vmem:[#allocation81_spill] sm:$0xff] }
 0x47d   : > { %11048 = vmatprep.subr.bf16.mxu0 %v11047_v52  ;;  %v11629_v47 = vpack.c.bf16 %v22013_v53, %v22012_v36  ;;  %v22014_v58 = vld [vmem:[#allocation133_spill] sm:$0xff] }
 0x47e   : > { %v22015_v60 = vld [vmem:[#allocation157_spill] sm:$0xff] }
 0x47f   : > { %11622 = vmatpush1.bf16.msra.mxu1 %v11621_v51  ;;  %6605 = vmatmul.mubr.f32.vlgmr.msra.gmra.mrb[2].mxu0 %v22005_v22  ;;  %v11631_v52 = vpack.c.bf16 %v22015_v60, %v22014_v58  ;;  %v22016_v51 = vld [vmem:[#allocation160_spill] sm:$0xff] }
 0x480   : > { %11624 = vmatprep.subr.bf16.mxu1 %v11623_v8  ;;  %11050 = vmatpush1.bf16.msra.mxu0 %v11049_v27  ;;  %v22017_v8 = vld [vmem:[#allocation156_spill] sm:$0xff] }
 0x481   : > { %6739 = vmatprep.mubr.f32.mxu0 %v21898_v16  ;;  %11052 = vmatprep.subr.bf16.mxu0 %v11051_v20  ;;  %v11057_v27 = vpack.c.bf16 %v22017_v8, %v22016_v51  ;;  %v11059_v20 = vpack.c.bf16 %v21928_v25, %v22018_v43  ;;  %v22023_v25 = vld [vmem:[#allocation49_spill] sm:$0xff] }
 0x482   : > { %8744 = vmatmul.mubr.f32.vlgmr.msra.gmra.mrb[2].mxu1 %v22005_v22 }
 0x483   : > { %11626 = vmatpush1.bf16.msra.mxu1 %v11625_v2  ;;  %8878 = vmatprep.mubr.f32.mxu1 %v21898_v16  ;;  %v22020_v2 = vld [vmem:[#allocation168_spill] sm:$0xff] }
 0x484   : > { %11628 = vmatprep.subr.bf16.mxu1 %v11627_v9  ;;  %11054 = vmatpush1.bf16.msra.mxu0 %v11053_v38  ;;  %v11633_v45 = vpack.c.bf16 %v22020_v2, %v22019_v48  ;;  %v11061_v9 = vpack.c.bf16 %v21948_v63, %v21946_v26  ;;  %v11063_v38 = vpack.c.bf16 %v21962_v35, %v21960_v1  ;;  %v22025_v48 = vld [vmem:[#allocation46_spill] sm:$0xff]  ;;  %v22027_v63 = vld [vmem:[#allocation73_spill] sm:$0xff] }
 0x485   : > { %11056 = vmatprep.subr.bf16.mxu0 %v11055_v4  ;;  %v22021_v4 = vld [vmem:[#allocation84_spill] sm:$0xff]  ;;  %v22029_v1 = vld [vmem:[#allocation58_spill] sm:$0xff] }
 0x486   : > { %v11637_v22 = vpack.c.bf16 %v22021_v4, %v21955_v3  ;;  %v22031_v3 = vld [vmem:[#allocation195_spill] sm:$0xff] }
 0x487   : > { %11630 = vmatpush1.bf16.msra.mxu1 %v11629_v47  ;;  %v22022_v47 = vld [vmem:[#allocation63_spill] sm:$0xff] }
 0x488   : > { %11632 = vmatprep.subr.bf16.mxu1 %v11631_v52  ;;  %11058 = vmatpush1.bf16.msra.mxu0 %v11057_v27  ;;  %v11639_v2 = vpack.c.bf16 %v22023_v25, %v22022_v47  ;;  %v22024_v52 = vld [vmem:[#allocation69_spill] sm:$0xff]  ;;  %v11067_v27 = vpack.c.bf16 %v21970_v33, %v21969_v10 }
 0x489   : > { %11060 = vmatprep.subr.bf16.mxu0 %v11059_v20  ;;  %v11065_v41 = vpack.c.bf16 %v22025_v48, %v22024_v52  ;;  %v22026_v20 = vld [vmem:[#allocation105_spill] sm:$0xff] }
 0x48a   : > { %v11641_v35 = vpack.c.bf16 %v22027_v63, %v22026_v20 }
 0x48b   : > { %11634 = vmatpush1.bf16.msra.mxu1 %v11633_v45  ;;  %v22028_v45 = vld [vmem:[#allocation48_spill] sm:$0xff] }
 0x48c   : > { %11636 = vmatprep.subr.bf16.mxu1 %v11635_v54  ;;  %11062 = vmatpush1.bf16.msra.mxu0 %v11061_v9  ;;  %v11643_v4 = vpack.c.bf16 %v22029_v1, %v22028_v45  ;;  %v22030_v54 = vld [vmem:[#allocation198_spill] sm:$0xff]  ;;  %v11071_v9 = vpack.c.bf16 %v17744_v34, %v17742_v40 }
 0x48d   : > { %11064 = vmatprep.subr.bf16.mxu0 %v11063_v38  ;;  %v11069_v25 = vpack.c.bf16 %v22031_v3, %v22030_v54  ;;  %v11645_v38 = vpack.c.bf16 %v17738_v5, %v21987_v42 }
 0x48f   : > { %11638 = vmatpush1.bf16.msra.mxu1 %v11637_v22  ;;  %v11647_v22 = vpack.c.bf16 %v17752_v13, %v17749_v39 }
 0x490   : > { %11640 = vmatprep.subr.bf16.mxu1 %v11639_v2  ;;  %11066 = vmatpush1.bf16.msra.mxu0 %v11065_v41  ;;  %v11073_v2 = vpack.c.bf16 %v17759_v62, %v17757_v0  ;;  %v11075_v41 = vpack.c.bf16 %v17790_v21, %v17788_v59 }
 0x491   : > { %11068 = vmatprep.subr.bf16.mxu0 %v11067_v27  ;;  %v11649_v27 = vpack.c.bf16 %v17782_v55, %v17780_v50  ;;  %v22035_v55 = vld [vmem:[#allocation205_spill] sm:$0xff] }
 0x493   : > { %11642 = vmatpush1.bf16.msra.mxu1 %v11641_v35  ;;  %v11651_v35 = vpack.c.bf16 %v17831_v29, %v17823_v17 }
 0x494   : > { %11644 = vmatprep.subr.bf16.mxu1 %v11643_v4  ;;  %11070 = vmatpush1.bf16.msra.mxu0 %v11069_v25  ;;  %v11077_v4 = vpack.c.bf16 %v21992_v57, %v17864_v32  ;;  %v11653_v25 = vpack.c.bf16 %v21994_v49, %v21993_v24  ;;  %v22048_v49 = vld [vmem:[#allocation94_spill] sm:$0xff]  ;;  %v22067_v24 = vld [vmem:[#allocation193_spill] sm:$0xff] }
 0x495   : > { %11072 = vmatprep.subr.bf16.mxu0 %v11071_v9  ;;  %v22032_v9 = vld [vmem:[#allocation142_spill] sm:$0xff] }
 0x497   : > { %11646 = vmatpush1.bf16.msra.mxu1 %v11645_v38  ;;  %v22033_v38 = vld [vmem:[#allocation7_spill] sm:$0xff] }
 0x498   : > { %11648 = vmatprep.subr.bf16.mxu1 %v11647_v22  ;;  %11074 = vmatpush1.bf16.msra.mxu0 %v11073_v2  ;;  %v22034_v22 = vld [vmem:[#allocation65_spill] sm:$0xff]  ;;  %v22036_v2 = vld [vmem:[#allocation200_spill] sm:$0xff] }
 0x499   : > { %11076 = vmatprep.subr.bf16.mxu0 %v11075_v41  ;;  %v22037_v41 = vld [vmem:[#allocation207_spill] sm:$0xff] }
 0x49b   : > { %11650 = vmatpush1.bf16.msra.mxu1 %v11649_v27  ;;  %v22038_v27 = vld [vmem:[#allocation212_spill] sm:$0xff] }
 0x49c   : > { %11652 = vmatprep.subr.bf16.mxu1 %v11651_v35  ;;  %11078 = vmatpush1.bf16.msra.mxu0 %v11077_v4  ;;  %v22039_v35 = vld [vmem:[#allocation117_spill] sm:$0xff]  ;;  %v22040_v4 = vld [vmem:[#allocation82_spill] sm:$0xff] }
 0x49d   : > { %11080 = vmatprep.subr.bf16.mxu0 %v22032_v9  ;;  %v22044_v9 = vld [vmem:[#allocation197_spill] sm:$0xff] }
 0x49f   : > { %11654 = vmatpush1.bf16.msra.mxu1 %v11653_v25  ;;  %6742 = vmatmul.mubr.f32.vlgmr.msra.gmra.mrb[2].mxu0 %v22034_v22  ;;  %v22041_v25 = vld [vmem:[#allocation148_spill] sm:$0xff] }
 0x4a0   : > { %11656 = vmatprep.subr.bf16.mxu1 %v22033_v38  ;;  %11082 = vmatpush1.bf16.msra.mxu0 %v22035_v55  ;;  %v22042_v38 = vld [vmem:[#allocation132_spill] sm:$0xff]  ;;  %v22043_v55 = vld [vmem:[#allocation163_spill] sm:$0xff] }
 0x4a1   : > { %6844 = vmatprep.mubr.f32.mxu0 %v21898_v16  ;;  %11084 = vmatprep.subr.bf16.mxu0 %v22036_v2  ;;  %v22046_v2 = vld [vmem:[#allocation140_spill] sm:$0xff] }
 0x4a2   : > { %8881 = vmatmul.mubr.f32.vlgmr.msra.gmra.mrb[2].mxu1 %v22034_v22  ;;  %v22045_v22 = vld [vmem:[#allocation166_spill] sm:$0xff] }
 0x4a3   : > { %11658 = vmatpush1.bf16.msra.mxu1 %v22037_v41  ;;  %8983 = vmatprep.mubr.f32.mxu1 %v21898_v16  ;;  %v22047_v41 = vld [vmem:[#allocation129_spill] sm:$0xff] }
 0x4a4   : > { %11660 = vmatprep.subr.bf16.mxu1 %v22038_v27  ;;  %11086 = vmatpush1.bf16.msra.mxu0 %v22039_v35  ;;  %v22049_v27 = vld [vmem:[#allocation118_spill] sm:$0xff]  ;;  %v22050_v35 = vld [vmem:[#allocation31_spill] sm:$0xff] }
 0x4a5   : > { %11088 = vmatprep.subr.bf16.mxu0 %v22040_v4  ;;  %v22051_v4 = vld [vmem:[#allocation75_spill] sm:$0xff] }
 0x4a7   : > { %11662 = vmatpush1.bf16.msra.mxu1 %v22041_v25  ;;  %v22052_v25 = vld [vmem:[#allocation109_spill] sm:$0xff] }
 0x4a8   : > { %11664 = vmatprep.subr.bf16.mxu1 %v22042_v38  ;;  %11090 = vmatpush1.bf16.msra.mxu0 %v22043_v55  ;;  %v22053_v38 = vld [vmem:[#allocation40_spill] sm:$0xff]  ;;  %v22054_v55 = vld [vmem:[#allocation10_spill] sm:$0xff] }
 0x4a9   : > { %11092 = vmatprep.subr.bf16.mxu0 %v22044_v9  ;;  %v22055_v9 = vld [vmem:[#allocation204_spill] sm:$0xff] }
 0x4ab   : > { %11666 = vmatpush1.bf16.msra.mxu1 %v22045_v22  ;;  %v22056_v22 = vld [vmem:[#allocation177_spill] sm:$0xff] }
 0x4ac   : > { %11668 = vmatprep.subr.bf16.mxu1 %v22046_v2  ;;  %11094 = vmatpush1.bf16.msra.mxu0 %v22047_v41  ;;  %v22057_v2 = vld [vmem:[#allocation184_spill] sm:$0xff]  ;;  %v22058_v41 = vld [vmem:[#allocation181_spill] sm:$0xff] }
 0x4ad   : > { %11096 = vmatprep.subr.bf16.mxu0 %v22048_v49  ;;  %v22059_v49 = vld [vmem:[#allocation185_spill] sm:$0xff] }
 0x4af   : > { %11670 = vmatpush1.bf16.msra.mxu1 %v22049_v27  ;;  %v22060_v27 = vld [vmem:[#allocation8_spill] sm:$0xff] }
 0x4b0   : > { %11672 = vmatprep.subr.bf16.mxu1 %v22050_v35  ;;  %11098 = vmatpush1.bf16.msra.mxu0 %v22051_v4  ;;  %v22061_v4 = vand.u32 4294901760, %v21995_v61  ;;  %v22070_v61 = vand.u32 4294901760, %v22001_v15  ;;  %v22078_v15 = vand.u32 4294901760, %v22008_v44  ;;  %v22084_v44 = vand.u32 4294901760, %v22014_v58 }
 0x4b1   : > { %11100 = vmatprep.subr.bf16.mxu0 %v22052_v25  ;;  %v22062_v25 = vand.u32 4294901760, %v21996_v30  ;;  %v22071_v30 = vand.u32 4294901760, %v22002_v6  ;;  %v22079_v6 = vand.u32 4294901760, %v22009_v56  ;;  %v22085_v56 = vand.u32 4294901760, %v22015_v60 }
 0x4b2   : > { %v22095_v60 = vand.u32 4294901760, %v21941_v19 }
 0x4b3   : > { %11674 = vmatpush1.bf16.msra.mxu1 %v22053_v38  ;;  %v11111_v35 = vpack.c.bf16 %v22062_v25, %v22061_v4  ;;  %v22063_v38 = vld [vmem:[#allocation189_spill] sm:$0xff]  ;;  %v11115_v4 = vpack.c.bf16 %v22071_v30, %v22070_v61  ;;  %v22089_v30 = vld [vmem:[#allocation178_spill] sm:$0xff] }
 0x4b4   : > { %11676 = vmatprep.subr.bf16.mxu1 %v22054_v55  ;;  %11102 = vmatpush1.bf16.msra.mxu0 %v22055_v9  ;;  %v22064_v55 = vld [vmem:[#allocation15_spill] sm:$0xff]  ;;  %v22065_v9 = vand.u32 4294901760, %v21997_v31  ;;  %v22072_v25 = vld [vmem:[#allocation17_spill] sm:$0xff]  ;;  %v22073_v31 = vand.u32 4294901760, %v22003_v46  ;;  %v22080_v46 = vand.u32 4294901760, %v22010_v37  ;;  %v22086_v37 = vand.u32 4294901760, %v22016_v51 }
 0x4b5   : > { %11104 = vmatprep.subr.bf16.mxu0 %v22056_v22  ;;  %v22066_v22 = vand.u32 4294901760, %v21998_v7  ;;  %v22074_v7 = vand.u32 4294901760, %v22004_v14  ;;  %v22081_v14 = vand.u32 4294901760, %v22011_v23  ;;  %v22087_v23 = vand.u32 4294901760, %v22017_v8 }
 0x4b6   : > { %v22098_v8 = vand.u32 4294901760, %v21946_v26 }
 0x4b7   : > { %11678 = vmatpush1.bf16.msra.mxu1 %v22057_v2  ;;  %v11687_v2 = vpack.c.bf16 %v22066_v22, %v22065_v9  ;;  %v11689_v9 = vpack.c.bf16 %v22074_v7, %v22073_v31  ;;  %v22075_v22 = vld [vmem:[#allocation67_spill] sm:$0xff]  ;;  %v11121_v61 = vpack.c.bf16 %v22087_v23, %v22086_v37  ;;  %v22112_v23 = vand.u32 4294901760, %v22024_v52 }
 0x4b8   : > { %11680 = vmatprep.subr.bf16.mxu1 %v22058_v41  ;;  %11106 = vmatpush1.bf16.msra.mxu0 %v22059_v49  ;;  %v22068_v49 = vand.u32 4294901760, %v21999_v12  ;;  %v22076_v12 = vand.u32 4294901760, %v22006_v18  ;;  %v22082_v18 = vand.u32 4294901760, %v22012_v36  ;;  %v22088_v36 = vand.u32 4294901760, %v22018_v43  ;;  %v22091_v31 = vld [vmem:[#allocation171_spill] sm:$0xff] }
 0x4b9   : > { %11108 = vmatprep.subr.bf16.mxu0 %v22060_v27  ;;  %v22069_v27 = vand.u32 4294901760, %v22000_v11  ;;  %v22092_v7 = vand.u32 4294901760, %v22091_v31  ;;  %v22116_v31 = vand.u32 4294901760, %v22026_v20  ;;  %v22119_v52 = vand.u32 4294901760, %v22029_v1 }
 0x4ba   : > { %v22123_v20 = vand.u32 4294901760, %v17744_v34  ;;  %v22126_v1 = vand.u32 4294901760, %v17749_v39  ;;  %v22130_v34 = vand.u32 4294901760, %v17788_v59  ;;  %v22138_v59 = vand.u32 4294901760, %v21992_v57  ;;  %v22147_v57 = vld [vmem:[#allocation200_spill] sm:$0xff] }
 0x4bb   : > { %11682 = vmatpush1.bf16.msra.mxu1 %v22063_v38  ;;  %v11113_v41 = vpack.c.bf16 %v22069_v27, %v22068_v49  ;;  %v22077_v49 = vand.u32 4294901760, %v22007_v28  ;;  %v11117_v27 = vpack.c.bf16 %v22079_v6, %v22078_v15  ;;  %v22083_v28 = vand.u32 4294901760, %v22013_v53  ;;  %v22101_v6 = vld [vmem:[#allocation93_spill] sm:$0xff] }
 0x4bc   : > { %11684 = vmatprep.subr.bf16.mxu1 %v22064_v55  ;;  %11110 = vmatpush1.bf16.msra.mxu0 %v22067_v24  ;;  %v22090_v53 = vand.u32 4294901760, %v22089_v30  ;;  %v22114_v30 = vand.u32 4294901760, %v21969_v10  ;;  %v22121_v10 = vand.u32 4294901760, %v22031_v3  ;;  %v22128_v3 = vand.u32 4294901760, %v17757_v0 }
 0x4bd   : > { %11112 = vmatprep.subr.bf16.mxu0 %v11111_v35  ;;  %v11691_v11 = vpack.c.bf16 %v22077_v49, %v22076_v12  ;;  %v11695_v35 = vpack.c.bf16 %v22085_v56, %v22084_v44  ;;  %v22096_v12 = vld [vmem:[#allocation3_spill] sm:$0xff]  ;;  %v22109_v56 = vand.u32 4294901760, %v22022_v47  ;;  %v22117_v47 = vand.u32 4294901760, %v22027_v63 }
 0x4be   : > { %v22097_v51 = vand.u32 4294901760, %v22096_v12  ;;  %v22124_v63 = vand.u32 4294901760, %v21987_v42  ;;  %v22131_v42 = vand.u32 4294901760, %v17790_v21  ;;  %v22136_v0 = vand.u32 4294901760, %v17831_v29  ;;  %v22139_v21 = vld [vmem:[#allocation21_spill] sm:$0xff]  ;;  %v22145_v29 = vld [vmem:[#allocation64_spill] sm:$0xff] }
 0x4bf   : > { %11686 = vmatpush1.bf16.msra.mxu1 %v22072_v25  ;;  %6848 = vmatmul.mubr.f32.vlgmr.msra.gmra.mrb[2].mxu0 %v22075_v22 }
 0x4c0   : > { %11688 = vmatprep.subr.bf16.mxu1 %v11687_v2  ;;  %11114 = vmatpush1.bf16.msra.mxu0 %v11113_v41  ;;  %v11119_v2 = vpack.c.bf16 %v22081_v14, %v22080_v46  ;;  %v11693_v41 = vpack.c.bf16 %v22083_v28, %v22082_v18  ;;  %v11699_v49 = vpack.c.bf16 %v22097_v51, %v22095_v60  ;;  %v22103_v46 = vld [vmem:[#allocation18_spill] sm:$0xff]  ;;  %v22105_v18 = vld [vmem:[#allocation147_spill] sm:$0xff] }
 0x4c1   : > { %7014 = vmatprep.mubr.f32.mxu0 %v21898_v16  ;;  %11116 = vmatprep.subr.bf16.mxu0 %v11115_v4  ;;  %v11123_v4 = vpack.c.bf16 %v22090_v53, %v22088_v36  ;;  %v22104_v14 = vand.u32 4294901760, %v22103_v46  ;;  %v22106_v28 = vand.u32 4294901760, %v22105_v18  ;;  %v22115_v53 = vand.u32 4294901760, %v21970_v33  ;;  %v22148_v18 = vld [vmem:[#allocation207_spill] sm:$0xff] }
 0x4c2   : > { %8987 = vmatmul.mubr.f32.vlgmr.msra.gmra.mrb[2].mxu1 %v22075_v22  ;;  %v22122_v33 = vand.u32 4294901760, %v17742_v40  ;;  %v22129_v40 = vand.u32 4294901760, %v17759_v62  ;;  %v22137_v62 = vand.u32 4294901760, %v17864_v32  ;;  %v22146_v32 = vld [vmem:[#allocation205_spill] sm:$0xff] }
 0x4c3   : > { %11690 = vmatpush1.bf16.msra.mxu1 %v11689_v9  ;;  %9153 = vmatprep.mubr.f32.mxu1 %v21898_v16  ;;  %v22093_v9 = vld [vmem:[#allocation168_spill] sm:$0xff] }
 0x4c4   : > { %11692 = vmatprep.subr.bf16.mxu1 %v11691_v11  ;;  %11118 = vmatpush1.bf16.msra.mxu0 %v11117_v27  ;;  %v22094_v58 = vand.u32 4294901760, %v22093_v9  ;;  %v22099_v11 = vld [vmem:[#allocation120_spill] sm:$0xff]  ;;  %v22102_v27 = vand.u32 4294901760, %v22101_v6  ;;  %v22118_v9 = vand.u32 4294901760, %v22028_v45  ;;  %v11135_v60 = vpack.c.bf16 %v22123_v20, %v22122_v33 }
 0x4c5   : > { %11120 = vmatprep.subr.bf16.mxu0 %v11119_v2  ;;  %v22100_v43 = vand.u32 4294901760, %v22099_v11  ;;  %v22125_v45 = vand.u32 4294901760, %v17738_v5  ;;  %v22132_v5 = vand.u32 4294901760, %v17780_v50  ;;  %v22133_v11 = vld [vmem:[#allocation190_spill] sm:$0xff]  ;;  %v11141_v6 = vpack.c.bf16 %v22138_v59, %v22137_v62  ;;  %v22141_v50 = vld [vmem:[#allocation24_spill] sm:$0xff]  ;;  %v22174_v59 = vld [vmem:[#allocation159_spill] sm:$0xff] }
 0x4c6   : > { %v11697_v22 = vpack.c.bf16 %v22094_v58, %v22092_v7  ;;  %v11127_v2 = vpack.c.bf16 %v22104_v14, %v22102_v27  ;;  %v11705_v7 = vpack.c.bf16 %v22117_v47, %v22116_v31  ;;  %v11707_v58 = vpack.c.bf16 %v22119_v52, %v22118_v9  ;;  %v22164_v31 = vld [vmem:[#allocation40_spill] sm:$0xff]  ;;  %v22165_v47 = vld [vmem:[#allocation10_spill] sm:$0xff]  ;;  %v22167_v9 = vld [vmem:[#allocation177_spill] sm:$0xff] }
 0x4c7   : > { %11694 = vmatpush1.bf16.msra.mxu1 %v11693_v41  ;;  %v11125_v15 = vpack.c.bf16 %v22100_v43, %v22098_v8  ;;  %v22107_v41 = vld [vmem:[#allocation84_spill] sm:$0xff]  ;;  %v11709_v12 = vpack.c.bf16 %v22125_v45, %v22124_v63  ;;  %v11139_v8 = vpack.c.bf16 %v22131_v42, %v22130_v34  ;;  %v22134_v39 = vand.u32 4294901760, %v22133_v11  ;;  %v667_v63 = vld [vmem:[%s18495_s3] sm:$0xff] }
 0x4c8   : > { %11696 = vmatprep.subr.bf16.mxu1 %v11695_v35  ;;  %11122 = vmatpush1.bf16.msra.mxu0 %v11121_v61  ;;  %v22108_v19 = vand.u32 4294901760, %v22107_v41  ;;  %v22110_v35 = vld [vmem:[#allocation49_spill] sm:$0xff]  ;;  %v22113_v61 = vand.u32 4294901760, %v22025_v48  ;;  %v22120_v48 = vand.u32 4294901760, %v22030_v54  ;;  %v22127_v54 = vand.u32 4294901760, %v17752_v13  ;;  %v22168_v52 = vld [vmem:[#allocation184_spill] sm:$0xff] }
 0x4c9   : > { %11124 = vmatprep.subr.bf16.mxu0 %v11123_v4  ;;  %v22111_v26 = vand.u32 4294901760, %v22110_v35  ;;  %v11131_v4 = vpack.c.bf16 %v22115_v53, %v22114_v30  ;;  %v11713_v43 = vpack.c.bf16 %v22134_v39, %v22132_v5  ;;  %v22135_v13 = vand.u32 4294901760, %v17823_v17  ;;  %v22144_v17 = vld [vmem:[#allocation7_spill] sm:$0xff]  ;;  %v22150_v41 = vld [vmem:[#allocation117_spill] sm:$0xff]  ;;  %v22172_v5 = vld [vmem:[#allocation20_spill] sm:$0xff] }
 0x4ca   : > { %v11701_v44 = vpack.c.bf16 %v22108_v19, %v22106_v28  ;;  %v11129_v36 = vpack.c.bf16 %v22113_v61, %v22112_v23  ;;  %v11711_v51 = vpack.c.bf16 %v22127_v54, %v22126_v1  ;;  %v22140_v27 = vand.u32 4294901760, %v22139_v21  ;;  %v22149_v28 = vld [vmem:[#allocation212_spill] sm:$0xff]  ;;  %v22151_v19 = vld [vmem:[#allocation82_spill] sm:$0xff]  ;;  %v22154_v35 = vld [vmem:[#allocation163_spill] sm:$0xff] }
 0x4cb   : > { %11698 = vmatpush1.bf16.msra.mxu1 %v11697_v22  ;;  %v11703_v37 = vpack.c.bf16 %v22111_v26, %v22109_v56  ;;  %v11133_v22 = vpack.c.bf16 %v22121_v10, %v22120_v48  ;;  %v22142_v46 = vand.u32 4294901760, %v22141_v50  ;;  %v22153_v56 = vld [vmem:[#allocation132_spill] sm:$0xff]  ;;  %v22155_v26 = vld [vmem:[#allocation197_spill] sm:$0xff]  ;;  %v22161_v30 = vld [vmem:[#allocation31_spill] sm:$0xff] }
 0x4cc   : > { %11700 = vmatprep.subr.bf16.mxu1 %v11699_v49  ;;  %11126 = vmatpush1.bf16.msra.mxu0 %v11125_v15  ;;  %v11137_v49 = vpack.c.bf16 %v22129_v40, %v22128_v3  ;;  %v11715_v15 = vpack.c.bf16 %v22136_v0, %v22135_v13  ;;  %v22157_v23 = vld [vmem:[#allocation140_spill] sm:$0xff]  ;;  %v22158_v61 = vld [vmem:[#allocation129_spill] sm:$0xff]  ;;  %v22162_v53 = vld [vmem:[#allocation75_spill] sm:$0xff] }
 0x4cd   : > { %11128 = vmatprep.subr.bf16.mxu0 %v11127_v2  ;;  %v11717_v14 = vpack.c.bf16 %v22142_v46, %v22140_v27  ;;  %v22143_v2 = vld [vmem:[#allocation142_spill] sm:$0xff]  ;;  %v22170_v48 = vld [vmem:[#allocation185_spill] sm:$0xff]  ;;  %v22171_v10 = vld [vmem:[#allocation8_spill] sm:$0xff] }
 0x4ce   : > { %v22173_v13 = vld [vmem:[#allocation89_spill] sm:$0xff]  ;;  %v22175_v46 = vld [vmem:[#allocation99_spill] sm:$0xff] }
 0x4cf   : > { %11702 = vmatpush1.bf16.msra.mxu1 %v11701_v44  ;;  %v22152_v44 = vld [vmem:[#allocation148_spill] sm:$0xff] }
 0x4d0   : > { %11704 = vmatprep.subr.bf16.mxu1 %v11703_v37  ;;  %11130 = vmatpush1.bf16.msra.mxu0 %v11129_v36  ;;  %v22156_v37 = vld [vmem:[#allocation166_spill] sm:$0xff] }
 0x4d1   : > { %11132 = vmatprep.subr.bf16.mxu0 %v11131_v4  ;;  %v22160_v36 = vld [vmem:[#allocation118_spill] sm:$0xff]  ;;  %v22163_v4 = vld [vmem:[#allocation109_spill] sm:$0xff] }
 0x4d3   : > { %11706 = vmatpush1.bf16.msra.mxu1 %v11705_v7  ;;  %v22166_v7 = vld [vmem:[#allocation204_spill] sm:$0xff] }
 0x4d4   : > { %11708 = vmatprep.subr.bf16.mxu1 %v11707_v58  ;;  %11134 = vmatpush1.bf16.msra.mxu0 %v11133_v22  ;;  %v22169_v58 = vld [vmem:[#allocation181_spill] sm:$0xff]  ;;  %v669_v22 = vlaneseq }
 0x4d5   : > { %11136 = vmatprep.subr.bf16.mxu0 %v11135_v60 }
 0x4d6   : > { %v670_v33 = vshrl.u32 %v669_v22, 7 }
 0x4d7   : > { %11710 = vmatpush1.bf16.msra.mxu1 %v11709_v12 }
 0x4d8   : > { %11712 = vmatprep.subr.bf16.mxu1 %v11711_v51  ;;  %11138 = vmatpush1.bf16.msra.mxu0 %v11137_v49  ;;  %v671_v20 = vsub.s32 0, %v670_v33  ;;  %v687_v60 = vsub.s32 4, %v670_v33  ;;  %v675_v45 = vsub.s32 1, %v670_v33  ;;  %v679_v12 = vsub.s32 2, %v670_v33 }
 0x4d9   : > { %11140 = vmatprep.subr.bf16.mxu0 %v11139_v8  ;;  %v683_v1 = vsub.s32 3, %v670_v33 }
 0x4da   : > { %v672_v54 = vrot.slane %v667_v63, %v671_v20  ;;  %v676_v51 = vrot.slane %v667_v63, %v675_v45  ;;  %v680_v40 = vrot.slane %v667_v63, %v679_v12 }
 0x4db   : > { %11714 = vmatpush1.bf16.msra.mxu1 %v11713_v43  ;;  %v684_v34 = vrot.slane %v667_v63, %v683_v1 }
 0x4dc   : > { %11716 = vmatprep.subr.bf16.mxu1 %v11715_v15  ;;  %11142 = vmatpush1.bf16.msra.mxu0 %v11141_v6  ;;  %v18448_v11 = vadd.f32 %v22172_v5, %v672_v54  ;;  %v18451_v0 = vadd.f32 %v22173_v13, %v676_v51  ;;  %v18454_v6 = vadd.f32 %v22174_v59, %v680_v40 }
 0x4dd   : > { %11144 = vmatprep.subr.bf16.mxu0 %v22143_v2 }
 0x4de   : > { %vm9265_vm2 = vcmp.gt.f32.partialorder %v18448_v11, 0.0  ;;  %vm9266_vm3 = vcmp.gt.f32.partialorder %v18451_v0, 0.0  ;;  %vm9267_vm4 = vcmp.gt.f32.partialorder %v18454_v6, 0.0 }
 0x4df   : > { %11718 = vmatpush1.bf16.msra.mxu1 %v11717_v14  ;;  %7016 = vmatmul.mubr.f32.vlgmr.msra.gmra.mrb[2].mxu0 %v22145_v29  ;;  %v18457_v14 = vadd.f32 %v22175_v46, %v684_v34 }
 0x4e0   : > { %11720 = vmatprep.subr.bf16.mxu1 %v22144_v17  ;;  %11146 = vmatpush1.bf16.msra.mxu0 %v22146_v32 }
 0x4e1   : > { %7118 = vmatprep.mubr.f32.mxu0 %v21898_v16  ;;  %11148 = vmatprep.subr.bf16.mxu0 %v22147_v57  ;;  %vm9268_vm5 = vcmp.gt.f32.partialorder %v18457_v14, 0.0 }
 0x4e2   : > { %9155 = vmatmul.mubr.f32.vlgmr.msra.gmra.mrb[2].mxu1 %v22145_v29 }
 0x4e3   : > { %11722 = vmatpush1.bf16.msra.mxu1 %v22148_v18  ;;  %9257 = vmatprep.mubr.f32.mxu1 %v21898_v16  ;;  %v22159_v16 = vld [vmem:[#allocation94_spill] sm:$0xff]  ;;  %v9270_v18 = vmin.f32 %v18451_v0, 0.0 }
 0x4e4   : > { %11724 = vmatprep.subr.bf16.mxu1 %v22149_v28  ;;  %11150 = vmatpush1.bf16.msra.mxu0 %v22150_v41 }
 0x4e5   : > { %11152 = vmatprep.subr.bf16.mxu0 %v22151_v19  ;;  %v9271_v19 = vmin.f32 %v18454_v6, 0.0 }
 0x4e7   : > { %11726 = vmatpush1.bf16.msra.mxu1 %v22152_v44 }
 0x4e8   : > { %11728 = vmatprep.subr.bf16.mxu1 %v22153_v56  ;;  %11154 = vmatpush1.bf16.msra.mxu0 %v22154_v35  ;;  %v9272_v56 = vmin.f32 %v18457_v14, 0.0 }
 0x4e9   : > { %11156 = vmatprep.subr.bf16.mxu0 %v22155_v26 }
 0x4eb   : > { %11730 = vmatpush1.bf16.msra.mxu1 %v22156_v37  ;;  %v9275_v37 = vmul.f32 1.442695, %v9270_v18 }
 0x4ec   : > { %11732 = vmatprep.subr.bf16.mxu1 %v22157_v23  ;;  %11158 = vmatpush1.bf16.msra.mxu0 %v22158_v61  ;;  %v9277_v23 = vmul.f32 1.442695, %v9271_v19  ;;  %v9279_v61 = vmul.f32 1.442695, %v9272_v56 }
 0x4ed   : > { %11160 = vmatprep.subr.bf16.mxu0 %v22159_v16 }
 0x4ef   : > { %11734 = vmatpush1.bf16.msra.mxu1 %v22160_v36 }
 0x4f0   : > { %11736 = vmatprep.subr.bf16.mxu1 %v22161_v30  ;;  %11162 = vmatpush1.bf16.msra.mxu0 %v22162_v53 }
 0x4f1   : > { %11164 = vmatprep.subr.bf16.mxu0 %v22163_v4 }
 0x4f3   : > { %11738 = vmatpush1.bf16.msra.mxu1 %v22164_v31 }
 0x4f4   : > { %11740 = vmatprep.subr.bf16.mxu1 %v22165_v47  ;;  %11166 = vmatpush1.bf16.msra.mxu0 %v22166_v7 }
 0x4f5   : > { %11168 = vmatprep.subr.bf16.mxu0 %v22167_v9 }
 0x4f7   : > { %11742 = vmatpush1.bf16.msra.mxu1 %v22168_v52 }
 0x4f8   : > { %11744 = vmatprep.subr.bf16.mxu1 %v22169_v58  ;;  %11170 = vmatpush1.bf16.msra.mxu0 %v22170_v48 }
 0x4f9   : > { %11172 = vmatprep.subr.bf16.mxu0 %v22171_v10 }
 0x4fb   : > { %11746 = vmatpush1.bf16.msra.mxu1 %v22063_v38  ;;  %v691_v38 = vsub.s32 5, %v670_v33 }
 0x4fc   : > { %11748 = vmatprep.subr.bf16.mxu1 %v22064_v55  ;;  %11174 = vmatpush1.bf16.msra.mxu0 %v22067_v24  ;;  %v695_v55 = vsub.s32 6, %v670_v33  ;;  %v699_v24 = vsub.s32 7, %v670_v33 }
 0x4fd   : > { %v692_v3 = vrot.slane %v667_v63, %v691_v38 }
 0x4fe   : > { %v696_v49 = vrot.slane %v667_v63, %v695_v55  ;;  %v700_v8 = vrot.slane %v667_v63, %v699_v24 }
 0x4ff   : > { %11750 = vmatpush1.bf16.msra.mxu1 %v22072_v25  ;;  %7120 = vmatmul.mubr.f32.vlgmr.msra.gmra.mrb[2].mxu0 %v22145_v29  ;;  %v688_v25 = vrot.slane %v667_v63, %v687_v60 }
 0x502   : > { %9259 = vmatmul.mubr.f32.vlgmr.msra.gmra.mrb[2].mxu1 %v22145_v29  ;;  %v9269_v29 = vmin.f32 %v18448_v11, 0.0 }
 0x504   : > { %v9273_v26 = vmul.f32 1.442695, %v9269_v29 }
 0x5d2   : > { %v7121_v42 = vpop.f32.mrb[2].mxu0 }
 0x5d3   : > { %v11755_v39 = vadd.f32 %v7121_v42, %v688_v25  ;;  %v7123_v43 = vpop.f32.mrb[3].mxu0 }
 0x5d4   : > { %v11756_v62 = vadd.f32 %v7123_v43, %v692_v3 }
 0x5d5   : > { %v9260_v15 = vpop.f32.mrb[2].mxu1  ;;  %v9289_v21 = vsub.f32 0.0, %v11755_v39 }
 0x5d6   : > { %v11757_v27 = vadd.f32 %v9260_v15, %v696_v49  ;;  %v9262_v50 = vpop.f32.mrb[3].mxu1  ;;  %v9290_v2 = vsub.f32 0.0, %v11756_v62 }
 0x5d7   : > { %v11758_v17 = vadd.f32 %v9262_v50, %v700_v8  ;;  %v9293_v32 = vmul.f32 1.442695, %v9289_v21 }
 0x5d8   : > { %v9291_v57 = vsub.f32 0.0, %v11757_v27  ;;  %v9295_v28 = vmul.f32 1.442695, %v9290_v2 }
 0x5d9   : > { %v9292_v41 = vsub.f32 0.0, %v11758_v17  ;;  %11889 = vpow2.f32 %v9293_v32 }
 0x5da   : > { %v9297_v44 = vmul.f32 1.442695, %v9291_v57  ;;  %11891 = vpow2.f32 %v9295_v28 }
 0x5db   : > { %v9299_v35 = vmul.f32 1.442695, %v9292_v41 }
 0x5dc   : > { %11893 = vpow2.f32 %v9297_v44 }
 0x5dd   : > { %11895 = vpow2.f32 %v9299_v35 }
 0x5de   : > { %11897 = vpow2.f32 %v9273_v26 }
 0x5df   : > { %11899 = vpow2.f32 %v9275_v37 }
 0x5e0   : > { %11901 = vpow2.f32 %v9277_v23 }
 0x5e1   : > { %11903 = vpow2.f32 %v9279_v61 }
 0x5e3   : > { %v11890_v16 = vpop.eup %11889 }
 0x5e4   : > { %v11892_v36 = vpop.eup %11891  ;;  %v9301_v30 = vadd.f32 1.0, %v11890_v16 }
 0x5e5   : > { %v9302_v4 = vadd.f32 1.0, %v11892_v36 }
 0x5e6   : > { %v11894_v53 = vpop.eup %11893  ;;  %11905 = vrcp.f32 %v9301_v30 }
 0x5e7   : > { %v11896_v31 = vpop.eup %11895  ;;  %v9303_v47 = vadd.f32 1.0, %v11894_v53  ;;  %11907 = vrcp.f32 %v9302_v4 }
 0x5e8   : > { %v9304_v7 = vadd.f32 1.0, %v11896_v31  ;;  %v11898_v9 = vpop.eup %11897 }
 0x5e9   : > { %11909 = vrcp.f32 %v9303_v47  ;;  %v11900_v52 = vpop.eup %11899  ;;  %v9441_v10 = vadd.f32 -1.0, %v11898_v9 }
 0x5ea   : > { %11911 = vrcp.f32 %v9304_v7  ;;  %v11902_v58 = vpop.eup %11901  ;;  %v9442_v22 = vadd.f32 -1.0, %v11900_v52 }
 0x5eb   : > { %v11904_v48 = vpop.eup %11903  ;;  %v9443_v33 = vadd.f32 -1.0, %v11902_v58  ;;  %v9285_v63 = vsel %vm9265_vm2, %v18448_v11, %v9441_v10 }
 0x5ec   : > { %v9444_v20 = vadd.f32 -1.0, %v11904_v48  ;;  %v9286_v38 = vsel %vm9266_vm3, %v18451_v0, %v9442_v22 }
 0x5ed   : > { %v9287_v1 = vsel %vm9267_vm4, %v18454_v6, %v9443_v33 }
 0x5ee   : > { %v9288_v25 = vsel %vm9268_vm5, %v18457_v14, %v9444_v20 }
 0x5f0   : > { %v11906_v60 = vpop.eup %11905 }
 0x5f1   : > { %v11908_v45 = vpop.eup %11907  ;;  %v9313_v12 = vmul.f32 %v11906_v60, %v9285_v63 }
 0x5f2   : > { %v9314_v24 = vmul.f32 %v11908_v45, %v9286_v38 }
 0x5f3   : > { %v11910_v55 = vpop.eup %11909  ;;  %9317 = vst [vmem:[%s268_s27] sm:$0xff] %v9313_v12 }
 0x5f4   : > { %v11912_v54 = vpop.eup %11911  ;;  %v9315_v51 = vmul.f32 %v11910_v55, %v9287_v1  ;;  %9318 = vst [vmem:[%s268_s27 + $0x8] sm:$0xff] %v9314_v24 }
 0x5f5   : > { %v9316_v3 = vmul.f32 %v11912_v54, %v9288_v25 }
 0x5f6   : > { %9319 = vst [vmem:[%s268_s27 + $0x10] sm:$0xff] %v9315_v51 }
 0x5f7   : > { %9320 = vst [vmem:[%s268_s27 + $0x18] sm:$0xff] %v9316_v3 }
 0x5f8 PF: > { %s14_s19 = sadd.s32 1, %s11953_s19   ;;  %s22176_s15 = smov %s11945_s17 }
 0x5f9   : > { %p11_p9 = scmp.ge.s32.totalorder %s14_s19, 6   ;;  %s22177_s16 = smov %s11949_s18 }
 0x5fa   : > { %s22178_s17 = smov %s22181_s20  ;;  %s22179_s18 = smov %s22185_s21 }
 0x5fb   :  { %13 = sbr.rel (!%p11_p9) target bundleno = 3 (0x3), region = 69 }

</bundles_post_ra>
